<compile_context>
chip_gen: v7x
topology: tpu7x:2x2x1
jax: 0.10.0
libtpu: 0.0.40
codegen_flags: <defaults>
</compile_context>

<pallas_src>
import jax
import jax.numpy as jnp
from jax.experimental import pallas as pl
from jax.experimental.pallas import tpu as pltpu

DIM_IN = [7, 256, 256, 256, 128, 256, 256, 256, 256]
DIM_OUT = [256, 256, 249, 128, 256, 256, 128, 256, 7]
PADDING = 0.001
EPS = float(jnp.finfo(jnp.float32).eps)


def view_mlp_kernel(x_ref,
                    w0, b0, w1, b1, w2, b2, w3, b3, w4, b4,
                    w5, b5, w6, b6, w7, b7, w8, b8,
                    o_ref, xbuf_ref):
    tile = x_ref.shape[0]
    half = tile // 2

    # 256-lane carrier: x in lanes 0..6, zeros elsewhere.  Zeroed every step
    # (cheap) so it is correct even when the parallel grid axis is split
    # across TensorCores.  Used to fuse the layer-2 skip into one matmul.
    xbuf_ref[...] = jnp.zeros_like(xbuf_ref)
    xbuf_ref[:, 0:8] = x_ref[...]

    def layer(a_bf16, w_ref, b_ref):
        # bf16 operands -> native MXU rate; f32 accumulation; bf16 tanh (EUP).
        acc = jnp.dot(a_bf16, w_ref[...], preferred_element_type=jnp.float32)
        return jnp.tanh((acc + b_ref[...]).astype(jnp.bfloat16))

    def chain(lo, hi):
        x8 = x_ref[lo:hi, :]                 # (h, 8)   bf16, col 7 == 0
        x_wide = xbuf_ref[lo:hi, :]          # (h, 256) bf16, lanes 7..255 == 0
        h0 = layer(x8, w0, b0)               # (h, 256)
        h1 = layer(h0, w1, b1)               # (h, 256)
        h2 = layer(h1, w2, b2)               # (h, 256), lanes 0..6 == 0
        # skip i==2: cat([h2_real, x]) @ W3 == (h2 + x_wide) @ W3_permuted
        h3 = layer(h2 + x_wide, w3, b3)      # (h, 128)
        h4 = layer(h3, w4, b4)               # (h, 256)
        h5 = layer(h4, w5, b5)               # (h, 256)
        h6 = layer(h5, w6, b6)               # (h, 128)
        # skip i==6: lane-aligned concat, single K=256 matmul.
        h7 = layer(jnp.concatenate([h6, h3], axis=-1), w7, b7)   # (h, 256)
        h8 = layer(h7, w8, b8).astype(jnp.float32)                # (h, 8), col 7 == 0

        # helper.l2_normalize (eps applied to the squared norm), then padding.
        norm2 = jnp.sum(h8 * h8, axis=-1, keepdims=True)
        inv = jax.lax.rsqrt(jnp.maximum(norm2, EPS))
        return h8 * inv * (1.0 + 2.0 * PADDING) - PADDING

    # Two independent M-halves so MXU matmuls overlap EUP tanh.
    o_ref[0:half, :] = chain(0, half).astype(o_ref.dtype)
    o_ref[half:tile, :] = chain(half, tile).astype(o_ref.dtype)


def init_params(key):
    """Xavier-uniform weights (stored as (in, out)), torch-default uniform biases."""
    ws, bs = [], []
    for i in range(9):
        key, kw, kb = jax.random.split(key, 3)
        fan_in, fan_out = DIM_IN[i], DIM_OUT[i]
        wb = (6.0 / (fan_in + fan_out)) ** 0.5
        w = jax.random.uniform(kw, (fan_in, fan_out), jnp.float32, -wb, wb)
        bb = 1.0 / (fan_in ** 0.5)
        b = jax.random.uniform(kb, (1, fan_out), jnp.float32, -bb, bb)
        ws.append(w)
        bs.append(b)
    return ws, bs


def _prep_params(ws, bs):
    """Lane-align / permute the weights once (all exact, zero-padding only)."""
    bf16 = jnp.bfloat16
    w0 = jnp.pad(ws[0], ((0, 1), (0, 0)))                          # (8, 256), row 7 zero
    w2 = jnp.pad(ws[2], ((0, 0), (7, 0)))                          # zeros in cols 0..6
    b2 = jnp.pad(bs[2], ((0, 0), (7, 0)))
    # Row permutation so [x | h2_real] layout matches cat([h2_real, x]) @ W3.
    w3 = jnp.concatenate([ws[3][249:256], ws[3][0:249]], axis=0)   # (256, 128)
    w8 = jnp.pad(ws[8], ((0, 0), (0, 1)))                          # (256, 8), col 7 zero
    b8 = jnp.pad(bs[8], ((0, 0), (0, 1)))
    return [w0.astype(bf16), bs[0],
            ws[1].astype(bf16), bs[1],
            w2.astype(bf16), b2,
            w3.astype(bf16), bs[3],
            ws[4].astype(bf16), bs[4],
            ws[5].astype(bf16), bs[5],
            ws[6].astype(bf16), bs[6],
            ws[7].astype(bf16), bs[7],
            w8.astype(bf16), b8]


def view_mlp(x, ws, bs, *, tile_n=1024):
    N, D = x.shape
    assert D == 7
    assert tile_n % 16 == 0  # two sublane-aligned halves per tile

    n_pad = pl.cdiv(N, tile_n) * tile_n
    # x -> (n_pad, 8) bf16, real values in cols 0..6 (padded rows/col are zero).
    x8 = jnp.pad(x.astype(jnp.bfloat16), ((0, n_pad - N), (0, 1)))

    params = _prep_params(ws, bs)

    in_specs = [pl.BlockSpec((tile_n, 8), lambda i: (i, 0))]
    in_specs += [pl.BlockSpec(p.shape, lambda i: (0, 0)) for p in params]
    out_spec = pl.BlockSpec((tile_n, 8), lambda i: (i, 0))

    out = pl.pallas_call(
        view_mlp_kernel,
        out_shape=jax.ShapeDtypeStruct((n_pad, 8), jnp.float32),
        grid=(n_pad // tile_n,),
        in_specs=in_specs,
        out_specs=out_spec,
        scratch_shapes=[pltpu.VMEM((tile_n, 256), jnp.bfloat16)],
        compiler_params=pltpu.CompilerParams(
            dimension_semantics=("parallel",)),
    )(x8, *params)

    return out[:N, :7]


def reference(x, ws, bs):
    """Pure-JAX transcription of ViewMLP.forward at the same (bf16 matmul +
    bf16 tanh, f32 accumulate) precision as the kernel, for verification."""
    def layer(a, w, b):
        acc = jnp.dot(a.astype(jnp.bfloat16), w.astype(jnp.bfloat16),
                      preferred_element_type=jnp.float32)
        return jnp.tanh((acc + b).astype(jnp.bfloat16))
    inputs = x.astype(jnp.bfloat16)
    h = inputs
    for i in range(9):
        h = layer(h, ws[i], bs[i])
        if i == 2:
            h = jnp.concatenate([h, inputs], axis=-1)
        if i == 3:
            inputs = h
        if i == 6:
            h = jnp.concatenate([h, inputs], axis=-1)
    h = h.astype(jnp.float32)
    norm2 = jnp.sum(h * h, axis=-1, keepdims=True)
    h = h * jax.lax.rsqrt(jnp.maximum(norm2, EPS))
    return h * (1.0 + 2.0 * PADDING) - PADDING


if __name__ == "__main__":
    key = jax.random.PRNGKey(0)
    kx, kp = jax.random.split(key)
    N = 1000                              # pads to 1024 -> 2 grid steps at tile_n=512
    x = jax.random.normal(kx, (N, 7), jnp.float32)
    ws, bs = init_params(kp)

    out = jax.block_until_ready(view_mlp(x, ws, bs, tile_n=512))
    assert out.shape == (N, 7)

    ref = reference(x, ws, bs)
    err = float(jnp.max(jnp.abs(out - ref)))
    assert err < 5e-2, f"max abs err {err}"
    print("KERNEL_OK")
</pallas_src>

<mosaic_0001>
module attributes {stable_mosaic.version = 11 : i64} {
  func.func @view_mlp_kernel(%arg0: i32, %arg1: memref<512x8xbf16, #tpu.memory_space<vmem>>, %arg2: memref<8x256xbf16, #tpu.memory_space<vmem>>, %arg3: memref<1x256xf32, #tpu.memory_space<vmem>>, %arg4: memref<256x256xbf16, #tpu.memory_space<vmem>>, %arg5: memref<1x256xf32, #tpu.memory_space<vmem>>, %arg6: memref<256x256xbf16, #tpu.memory_space<vmem>>, %arg7: memref<1x256xf32, #tpu.memory_space<vmem>>, %arg8: memref<256x128xbf16, #tpu.memory_space<vmem>>, %arg9: memref<1x128xf32, #tpu.memory_space<vmem>>, %arg10: memref<128x256xbf16, #tpu.memory_space<vmem>>, %arg11: memref<1x256xf32, #tpu.memory_space<vmem>>, %arg12: memref<256x256xbf16, #tpu.memory_space<vmem>>, %arg13: memref<1x256xf32, #tpu.memory_space<vmem>>, %arg14: memref<256x128xbf16, #tpu.memory_space<vmem>>, %arg15: memref<1x128xf32, #tpu.memory_space<vmem>>, %arg16: memref<256x256xbf16, #tpu.memory_space<vmem>>, %arg17: memref<1x256xf32, #tpu.memory_space<vmem>>, %arg18: memref<256x8xbf16, #tpu.memory_space<vmem>>, %arg19: memref<1x8xf32, #tpu.memory_space<vmem>>, %arg20: memref<512x8xf32, #tpu.memory_space<vmem>>, %arg21: memref<512x256xbf16, #tpu.memory_space<vmem>>) attributes {dimension_semantics = [#tpu.dimension_semantics<parallel>], iteration_bounds = array<i64: 2>, scalar_prefetch = 0 : i64, scratch_operands = 1 : i64, tpu.core_type = #tpu.core_type<tc>, window_params = [{transform_indices = @transform_0, window_bounds = array<i64: 512, 8>}, {pipeline_mode = #tpu.pipeline_mode<synchronous>, transform_indices = @transform_1, window_bounds = array<i64: 8, 256>}, {pipeline_mode = #tpu.pipeline_mode<synchronous>, transform_indices = @transform_2, window_bounds = array<i64: 1, 256>}, {pipeline_mode = #tpu.pipeline_mode<synchronous>, transform_indices = @transform_3, window_bounds = array<i64: 256, 256>}, {pipeline_mode = #tpu.pipeline_mode<synchronous>, transform_indices = @transform_4, window_bounds = array<i64: 1, 256>}, {pipeline_mode = #tpu.pipeline_mode<synchronous>, transform_indices = @transform_5, window_bounds = array<i64: 256, 256>}, {pipeline_mode = #tpu.pipeline_mode<synchronous>, transform_indices = @transform_6, window_bounds = array<i64: 1, 256>}, {pipeline_mode = #tpu.pipeline_mode<synchronous>, transform_indices = @transform_7, window_bounds = array<i64: 256, 128>}, {pipeline_mode = #tpu.pipeline_mode<synchronous>, transform_indices = @transform_8, window_bounds = array<i64: 1, 128>}, {pipeline_mode = #tpu.pipeline_mode<synchronous>, transform_indices = @transform_9, window_bounds = array<i64: 128, 256>}, {pipeline_mode = #tpu.pipeline_mode<synchronous>, transform_indices = @transform_10, window_bounds = array<i64: 1, 256>}, {pipeline_mode = #tpu.pipeline_mode<synchronous>, transform_indices = @transform_11, window_bounds = array<i64: 256, 256>}, {pipeline_mode = #tpu.pipeline_mode<synchronous>, transform_indices = @transform_12, window_bounds = array<i64: 1, 256>}, {pipeline_mode = #tpu.pipeline_mode<synchronous>, transform_indices = @transform_13, window_bounds = array<i64: 256, 128>}, {pipeline_mode = #tpu.pipeline_mode<synchronous>, transform_indices = @transform_14, window_bounds = array<i64: 1, 128>}, {pipeline_mode = #tpu.pipeline_mode<synchronous>, transform_indices = @transform_15, window_bounds = array<i64: 256, 256>}, {pipeline_mode = #tpu.pipeline_mode<synchronous>, transform_indices = @transform_16, window_bounds = array<i64: 1, 256>}, {pipeline_mode = #tpu.pipeline_mode<synchronous>, transform_indices = @transform_17, window_bounds = array<i64: 256, 8>}, {pipeline_mode = #tpu.pipeline_mode<synchronous>, transform_indices = @transform_18, window_bounds = array<i64: 1, 8>}, {transform_indices = @transform_19, window_bounds = array<i64: 512, 8>}]} {
    %cst = arith.constant 0.000000e+00 : bf16
    %0 = vector.broadcast %cst : bf16 to vector<512x256xbf16>
    %c0 = arith.constant 0 : index
    %c0_0 = arith.constant 0 : index
    %1 = vector.load %arg21[%c0, %c0_0] : memref<512x256xbf16, #tpu.memory_space<vmem>>, vector<512x256xbf16>
    tpu.vector_store %arg21[%c0, %c0_0], %0 {strides = array<i32>} : memref<512x256xbf16, #tpu.memory_space<vmem>>, vector<512x256xbf16>,
    %c0_1 = arith.constant 0 : index
    %c0_2 = arith.constant 0 : index
    %2 = vector.load %arg1[%c0_1, %c0_2] : memref<512x8xbf16, #tpu.memory_space<vmem>>, vector<512x8xbf16>
    %c0_3 = arith.constant 0 : index
    %c0_4 = arith.constant 0 : index
    %3 = vector.load %arg21[%c0_3, %c0_4] : memref<512x256xbf16, #tpu.memory_space<vmem>>, vector<512x8xbf16>
    tpu.vector_store %arg21[%c0_3, %c0_4], %2 {strides = array<i32>} : memref<512x256xbf16, #tpu.memory_space<vmem>>, vector<512x8xbf16>,
    %c0_5 = arith.constant 0 : index
    %c0_6 = arith.constant 0 : index
    %4 = vector.load %arg1[%c0_5, %c0_6] : memref<512x8xbf16, #tpu.memory_space<vmem>>, vector<256x8xbf16>
    %c0_7 = arith.constant 0 : index
    %c0_8 = arith.constant 0 : index
    %5 = vector.load %arg21[%c0_7, %c0_8] : memref<512x256xbf16, #tpu.memory_space<vmem>>, vector<256x256xbf16>
    %c0_9 = arith.constant 0 : index
    %c0_10 = arith.constant 0 : index
    %6 = vector.load %arg2[%c0_9, %c0_10] : memref<8x256xbf16, #tpu.memory_space<vmem>>, vector<8x256xbf16>
    %cst_11 = arith.constant dense<0.000000e+00> : vector<256x256xf32>
    %7 = tpu.matmul %4, %6, %cst_11 {dimension_numbers = #tpu.dot_dimension_numbers<[1], [0], [0], [1], [0, 0, 1, 1], [], []>} : vector<256x8xbf16>, vector<8x256xbf16>, vector<256x256xf32> -> vector<256x256xf32>
    %c0_12 = arith.constant 0 : index
    %c0_13 = arith.constant 0 : index
    %8 = vector.load %arg3[%c0_12, %c0_13] : memref<1x256xf32, #tpu.memory_space<vmem>>, vector<1x256xf32>
    %9 = vector.broadcast %8 : vector<1x256xf32> to vector<256x256xf32>
    %10 = arith.addf %7, %9 : vector<256x256xf32>
    %11 = arith.truncf %10 : vector<256x256xf32> to vector<256x256xbf16>
    %12 = math.tanh %11 : vector<256x256xbf16>
    %c0_14 = arith.constant 0 : index
    %c0_15 = arith.constant 0 : index
    %13 = vector.load %arg4[%c0_14, %c0_15] : memref<256x256xbf16, #tpu.memory_space<vmem>>, vector<256x256xbf16>
    %cst_16 = arith.constant dense<0.000000e+00> : vector<256x256xf32>
    %14 = tpu.matmul %12, %13, %cst_16 {dimension_numbers = #tpu.dot_dimension_numbers<[1], [0], [0], [1], [0, 0, 1, 1], [], []>} : vector<256x256xbf16>, vector<256x256xbf16>, vector<256x256xf32> -> vector<256x256xf32>
    %c0_17 = arith.constant 0 : index
    %c0_18 = arith.constant 0 : index
    %15 = vector.load %arg5[%c0_17, %c0_18] : memref<1x256xf32, #tpu.memory_space<vmem>>, vector<1x256xf32>
    %16 = vector.broadcast %15 : vector<1x256xf32> to vector<256x256xf32>
    %17 = arith.addf %14, %16 : vector<256x256xf32>
    %18 = arith.truncf %17 : vector<256x256xf32> to vector<256x256xbf16>
    %19 = math.tanh %18 : vector<256x256xbf16>
    %c0_19 = arith.constant 0 : index
    %c0_20 = arith.constant 0 : index
    %20 = vector.load %arg6[%c0_19, %c0_20] : memref<256x256xbf16, #tpu.memory_space<vmem>>, vector<256x256xbf16>
    %cst_21 = arith.constant dense<0.000000e+00> : vector<256x256xf32>
    %21 = tpu.matmul %19, %20, %cst_21 {dimension_numbers = #tpu.dot_dimension_numbers<[1], [0], [0], [1], [0, 0, 1, 1], [], []>} : vector<256x256xbf16>, vector<256x256xbf16>, vector<256x256xf32> -> vector<256x256xf32>
    %c0_22 = arith.constant 0 : index
    %c0_23 = arith.constant 0 : index
    %22 = vector.load %arg7[%c0_22, %c0_23] : memref<1x256xf32, #tpu.memory_space<vmem>>, vector<1x256xf32>
    %23 = vector.broadcast %22 : vector<1x256xf32> to vector<256x256xf32>
    %24 = arith.addf %21, %23 : vector<256x256xf32>
    %25 = arith.truncf %24 : vector<256x256xf32> to vector<256x256xbf16>
    %26 = math.tanh %25 : vector<256x256xbf16>
    %27 = arith.addf %26, %5 : vector<256x256xbf16>
    %c0_24 = arith.constant 0 : index
    %c0_25 = arith.constant 0 : index
    %28 = vector.load %arg8[%c0_24, %c0_25] : memref<256x128xbf16, #tpu.memory_space<vmem>>, vector<256x128xbf16>
    %cst_26 = arith.constant dense<0.000000e+00> : vector<256x128xf32>
    %29 = tpu.matmul %27, %28, %cst_26 {dimension_numbers = #tpu.dot_dimension_numbers<[1], [0], [0], [1], [0, 0, 1, 1], [], []>} : vector<256x256xbf16>, vector<256x128xbf16>, vector<256x128xf32> -> vector<256x128xf32>
    %c0_27 = arith.constant 0 : index
    %c0_28 = arith.constant 0 : index
    %30 = vector.load %arg9[%c0_27, %c0_28] : memref<1x128xf32, #tpu.memory_space<vmem>>, vector<1x128xf32>
    %31 = vector.broadcast %30 : vector<1x128xf32> to vector<256x128xf32>
    %32 = arith.addf %29, %31 : vector<256x128xf32>
    %33 = arith.truncf %32 : vector<256x128xf32> to vector<256x128xbf16>
    %34 = math.tanh %33 : vector<256x128xbf16>
    %c0_29 = arith.constant 0 : index
    %c0_30 = arith.constant 0 : index
    %35 = vector.load %arg10[%c0_29, %c0_30] : memref<128x256xbf16, #tpu.memory_space<vmem>>, vector<128x256xbf16>
    %cst_31 = arith.constant dense<0.000000e+00> : vector<256x256xf32>
    %36 = tpu.matmul %34, %35, %cst_31 {dimension_numbers = #tpu.dot_dimension_numbers<[1], [0], [0], [1], [0, 0, 1, 1], [], []>} : vector<256x128xbf16>, vector<128x256xbf16>, vector<256x256xf32> -> vector<256x256xf32>
    %c0_32 = arith.constant 0 : index
    %c0_33 = arith.constant 0 : index
    %37 = vector.load %arg11[%c0_32, %c0_33] : memref<1x256xf32, #tpu.memory_space<vmem>>, vector<1x256xf32>
    %38 = vector.broadcast %37 : vector<1x256xf32> to vector<256x256xf32>
    %39 = arith.addf %36, %38 : vector<256x256xf32>
    %40 = arith.truncf %39 : vector<256x256xf32> to vector<256x256xbf16>
    %41 = math.tanh %40 : vector<256x256xbf16>
    %c0_34 = arith.constant 0 : index
    %c0_35 = arith.constant 0 : index
    %42 = vector.load %arg12[%c0_34, %c0_35] : memref<256x256xbf16, #tpu.memory_space<vmem>>, vector<256x256xbf16>
    %cst_36 = arith.constant dense<0.000000e+00> : vector<256x256xf32>
    %43 = tpu.matmul %41, %42, %cst_36 {dimension_numbers = #tpu.dot_dimension_numbers<[1], [0], [0], [1], [0, 0, 1, 1], [], []>} : vector<256x256xbf16>, vector<256x256xbf16>, vector<256x256xf32> -> vector<256x256xf32>
    %c0_37 = arith.constant 0 : index
    %c0_38 = arith.constant 0 : index
    %44 = vector.load %arg13[%c0_37, %c0_38] : memref<1x256xf32, #tpu.memory_space<vmem>>, vector<1x256xf32>
    %45 = vector.broadcast %44 : vector<1x256xf32> to vector<256x256xf32>
    %46 = arith.addf %43, %45 : vector<256x256xf32>
    %47 = arith.truncf %46 : vector<256x256xf32> to vector<256x256xbf16>
    %48 = math.tanh %47 : vector<256x256xbf16>
    %c0_39 = arith.constant 0 : index
    %c0_40 = arith.constant 0 : index
    %49 = vector.load %arg14[%c0_39, %c0_40] : memref<256x128xbf16, #tpu.memory_space<vmem>>, vector<256x128xbf16>
    %cst_41 = arith.constant dense<0.000000e+00> : vector<256x128xf32>
    %50 = tpu.matmul %48, %49, %cst_41 {dimension_numbers = #tpu.dot_dimension_numbers<[1], [0], [0], [1], [0, 0, 1, 1], [], []>} : vector<256x256xbf16>, vector<256x128xbf16>, vector<256x128xf32> -> vector<256x128xf32>
    %c0_42 = arith.constant 0 : index
    %c0_43 = arith.constant 0 : index
    %51 = vector.load %arg15[%c0_42, %c0_43] : memref<1x128xf32, #tpu.memory_space<vmem>>, vector<1x128xf32>
    %52 = vector.broadcast %51 : vector<1x128xf32> to vector<256x128xf32>
    %53 = arith.addf %50, %52 : vector<256x128xf32>
    %54 = arith.truncf %53 : vector<256x128xf32> to vector<256x128xbf16>
    %55 = math.tanh %54 : vector<256x128xbf16>
    %56 = tpu.concatenate %55, %34 in 1 : vector<256x128xbf16>, vector<256x128xbf16> -> vector<256x256xbf16>
    %c0_44 = arith.constant 0 : index
    %c0_45 = arith.constant 0 : index
    %57 = vector.load %arg16[%c0_44, %c0_45] : memref<256x256xbf16, #tpu.memory_space<vmem>>, vector<256x256xbf16>
    %cst_46 = arith.constant dense<0.000000e+00> : vector<256x256xf32>
    %58 = tpu.matmul %56, %57, %cst_46 {dimension_numbers = #tpu.dot_dimension_numbers<[1], [0], [0], [1], [0, 0, 1, 1], [], []>} : vector<256x256xbf16>, vector<256x256xbf16>, vector<256x256xf32> -> vector<256x256xf32>
    %c0_47 = arith.constant 0 : index
    %c0_48 = arith.constant 0 : index
    %59 = vector.load %arg17[%c0_47, %c0_48] : memref<1x256xf32, #tpu.memory_space<vmem>>, vector<1x256xf32>
    %60 = vector.broadcast %59 : vector<1x256xf32> to vector<256x256xf32>
    %61 = arith.addf %58, %60 : vector<256x256xf32>
    %62 = arith.truncf %61 : vector<256x256xf32> to vector<256x256xbf16>
    %63 = math.tanh %62 : vector<256x256xbf16>
    %c0_49 = arith.constant 0 : index
    %c0_50 = arith.constant 0 : index
    %64 = vector.load %arg18[%c0_49, %c0_50] : memref<256x8xbf16, #tpu.memory_space<vmem>>, vector<256x8xbf16>
    %cst_51 = arith.constant dense<0.000000e+00> : vector<256x8xf32>
    %65 = tpu.matmul %63, %64, %cst_51 {dimension_numbers = #tpu.dot_dimension_numbers<[1], [0], [0], [1], [0, 0, 1, 1], [], []>} : vector<256x256xbf16>, vector<256x8xbf16>, vector<256x8xf32> -> vector<256x8xf32>
    %c0_52 = arith.constant 0 : index
    %c0_53 = arith.constant 0 : index
    %66 = vector.load %arg19[%c0_52, %c0_53] : memref<1x8xf32, #tpu.memory_space<vmem>>, vector<1x8xf32>
    %67 = vector.broadcast %66 : vector<1x8xf32> to vector<256x8xf32>
    %68 = arith.addf %65, %67 : vector<256x8xf32>
    %69 = arith.truncf %68 : vector<256x8xf32> to vector<256x8xbf16>
    %70 = math.tanh %69 : vector<256x8xbf16>
    %71 = arith.extf %70 : vector<256x8xbf16> to vector<256x8xf32>
    %72 = arith.mulf %71, %71 : vector<256x8xf32>
    %cst_54 = arith.constant dense<0.000000e+00> : vector<256xf32>
    %73 = vector.multi_reduction <add>, %72, %cst_54 [1] : vector<256x8xf32> to vector<256xf32>
    %74 = vector.shape_cast %73 : vector<256xf32> to vector<256x1xf32>
    %cst_55 = arith.constant 1.1920929E-7 : f32
    %75 = vector.broadcast %cst_55 : f32 to vector<256x1xf32>
    %76 = arith.maximumf %74, %75 : vector<256x1xf32>
    %77 = math.rsqrt %76 : vector<256x1xf32>
    %78 = vector.broadcast %77 : vector<256x1xf32> to vector<256x8xf32>
    %79 = arith.mulf %71, %78 : vector<256x8xf32>
    %cst_56 = arith.constant 1.002000e+00 : f32
    %80 = vector.broadcast %cst_56 : f32 to vector<256x8xf32>
    %81 = arith.mulf %79, %80 : vector<256x8xf32>
    %cst_57 = arith.constant 1.000000e-03 : f32
    %82 = vector.broadcast %cst_57 : f32 to vector<256x8xf32>
    %83 = arith.subf %81, %82 : vector<256x8xf32>
    %c0_58 = arith.constant 0 : index
    %c0_59 = arith.constant 0 : index
    %84 = vector.load %arg20[%c0_58, %c0_59] : memref<512x8xf32, #tpu.memory_space<vmem>>, vector<256x8xf32>
    tpu.vector_store %arg20[%c0_58, %c0_59], %83 {strides = array<i32>} : memref<512x8xf32, #tpu.memory_space<vmem>>, vector<256x8xf32>,
    %c256 = arith.constant 256 : index
    %c0_60 = arith.constant 0 : index
    %85 = vector.load %arg1[%c256, %c0_60] : memref<512x8xbf16, #tpu.memory_space<vmem>>, vector<256x8xbf16>
    %c256_61 = arith.constant 256 : index
    %c0_62 = arith.constant 0 : index
    %86 = vector.load %arg21[%c256_61, %c0_62] : memref<512x256xbf16, #tpu.memory_space<vmem>>, vector<256x256xbf16>
    %c0_63 = arith.constant 0 : index
    %c0_64 = arith.constant 0 : index
    %87 = vector.load %arg2[%c0_63, %c0_64] : memref<8x256xbf16, #tpu.memory_space<vmem>>, vector<8x256xbf16>
    %cst_65 = arith.constant dense<0.000000e+00> : vector<256x256xf32>
    %88 = tpu.matmul %85, %87, %cst_65 {dimension_numbers = #tpu.dot_dimension_numbers<[1], [0], [0], [1], [0, 0, 1, 1], [], []>} : vector<256x8xbf16>, vector<8x256xbf16>, vector<256x256xf32> -> vector<256x256xf32>
    %c0_66 = arith.constant 0 : index
    %c0_67 = arith.constant 0 : index
    %89 = vector.load %arg3[%c0_66, %c0_67] : memref<1x256xf32, #tpu.memory_space<vmem>>, vector<1x256xf32>
    %90 = vector.broadcast %89 : vector<1x256xf32> to vector<256x256xf32>
    %91 = arith.addf %88, %90 : vector<256x256xf32>
    %92 = arith.truncf %91 : vector<256x256xf32> to vector<256x256xbf16>
    %93 = math.tanh %92 : vector<256x256xbf16>
    %c0_68 = arith.constant 0 : index
    %c0_69 = arith.constant 0 : index
    %94 = vector.load %arg4[%c0_68, %c0_69] : memref<256x256xbf16, #tpu.memory_space<vmem>>, vector<256x256xbf16>
    %cst_70 = arith.constant dense<0.000000e+00> : vector<256x256xf32>
    %95 = tpu.matmul %93, %94, %cst_70 {dimension_numbers = #tpu.dot_dimension_numbers<[1], [0], [0], [1], [0, 0, 1, 1], [], []>} : vector<256x256xbf16>, vector<256x256xbf16>, vector<256x256xf32> -> vector<256x256xf32>
    %c0_71 = arith.constant 0 : index
    %c0_72 = arith.constant 0 : index
    %96 = vector.load %arg5[%c0_71, %c0_72] : memref<1x256xf32, #tpu.memory_space<vmem>>, vector<1x256xf32>
    %97 = vector.broadcast %96 : vector<1x256xf32> to vector<256x256xf32>
    %98 = arith.addf %95, %97 : vector<256x256xf32>
    %99 = arith.truncf %98 : vector<256x256xf32> to vector<256x256xbf16>
    %100 = math.tanh %99 : vector<256x256xbf16>
    %c0_73 = arith.constant 0 : index
    %c0_74 = arith.constant 0 : index
    %101 = vector.load %arg6[%c0_73, %c0_74] : memref<256x256xbf16, #tpu.memory_space<vmem>>, vector<256x256xbf16>
    %cst_75 = arith.constant dense<0.000000e+00> : vector<256x256xf32>
    %102 = tpu.matmul %100, %101, %cst_75 {dimension_numbers = #tpu.dot_dimension_numbers<[1], [0], [0], [1], [0, 0, 1, 1], [], []>} : vector<256x256xbf16>, vector<256x256xbf16>, vector<256x256xf32> -> vector<256x256xf32>
    %c0_76 = arith.constant 0 : index
    %c0_77 = arith.constant 0 : index
    %103 = vector.load %arg7[%c0_76, %c0_77] : memref<1x256xf32, #tpu.memory_space<vmem>>, vector<1x256xf32>
    %104 = vector.broadcast %103 : vector<1x256xf32> to vector<256x256xf32>
    %105 = arith.addf %102, %104 : vector<256x256xf32>
    %106 = arith.truncf %105 : vector<256x256xf32> to vector<256x256xbf16>
    %107 = math.tanh %106 : vector<256x256xbf16>
    %108 = arith.addf %107, %86 : vector<256x256xbf16>
    %c0_78 = arith.constant 0 : index
    %c0_79 = arith.constant 0 : index
    %109 = vector.load %arg8[%c0_78, %c0_79] : memref<256x128xbf16, #tpu.memory_space<vmem>>, vector<256x128xbf16>
    %cst_80 = arith.constant dense<0.000000e+00> : vector<256x128xf32>
    %110 = tpu.matmul %108, %109, %cst_80 {dimension_numbers = #tpu.dot_dimension_numbers<[1], [0], [0], [1], [0, 0, 1, 1], [], []>} : vector<256x256xbf16>, vector<256x128xbf16>, vector<256x128xf32> -> vector<256x128xf32>
    %c0_81 = arith.constant 0 : index
    %c0_82 = arith.constant 0 : index
    %111 = vector.load %arg9[%c0_81, %c0_82] : memref<1x128xf32, #tpu.memory_space<vmem>>, vector<1x128xf32>
    %112 = vector.broadcast %111 : vector<1x128xf32> to vector<256x128xf32>
    %113 = arith.addf %110, %112 : vector<256x128xf32>
    %114 = arith.truncf %113 : vector<256x128xf32> to vector<256x128xbf16>
    %115 = math.tanh %114 : vector<256x128xbf16>
    %c0_83 = arith.constant 0 : index
    %c0_84 = arith.constant 0 : index
    %116 = vector.load %arg10[%c0_83, %c0_84] : memref<128x256xbf16, #tpu.memory_space<vmem>>, vector<128x256xbf16>
    %cst_85 = arith.constant dense<0.000000e+00> : vector<256x256xf32>
    %117 = tpu.matmul %115, %116, %cst_85 {dimension_numbers = #tpu.dot_dimension_numbers<[1], [0], [0], [1], [0, 0, 1, 1], [], []>} : vector<256x128xbf16>, vector<128x256xbf16>, vector<256x256xf32> -> vector<256x256xf32>
    %c0_86 = arith.constant 0 : index
    %c0_87 = arith.constant 0 : index
    %118 = vector.load %arg11[%c0_86, %c0_87] : memref<1x256xf32, #tpu.memory_space<vmem>>, vector<1x256xf32>
    %119 = vector.broadcast %118 : vector<1x256xf32> to vector<256x256xf32>
    %120 = arith.addf %117, %119 : vector<256x256xf32>
    %121 = arith.truncf %120 : vector<256x256xf32> to vector<256x256xbf16>
    %122 = math.tanh %121 : vector<256x256xbf16>
    %c0_88 = arith.constant 0 : index
    %c0_89 = arith.constant 0 : index
    %123 = vector.load %arg12[%c0_88, %c0_89] : memref<256x256xbf16, #tpu.memory_space<vmem>>, vector<256x256xbf16>
    %cst_90 = arith.constant dense<0.000000e+00> : vector<256x256xf32>
    %124 = tpu.matmul %122, %123, %cst_90 {dimension_numbers = #tpu.dot_dimension_numbers<[1], [0], [0], [1], [0, 0, 1, 1], [], []>} : vector<256x256xbf16>, vector<256x256xbf16>, vector<256x256xf32> -> vector<256x256xf32>
    %c0_91 = arith.constant 0 : index
    %c0_92 = arith.constant 0 : index
    %125 = vector.load %arg13[%c0_91, %c0_92] : memref<1x256xf32, #tpu.memory_space<vmem>>, vector<1x256xf32>
    %126 = vector.broadcast %125 : vector<1x256xf32> to vector<256x256xf32>
    %127 = arith.addf %124, %126 : vector<256x256xf32>
    %128 = arith.truncf %127 : vector<256x256xf32> to vector<256x256xbf16>
    %129 = math.tanh %128 : vector<256x256xbf16>
    %c0_93 = arith.constant 0 : index
    %c0_94 = arith.constant 0 : index
    %130 = vector.load %arg14[%c0_93, %c0_94] : memref<256x128xbf16, #tpu.memory_space<vmem>>, vector<256x128xbf16>
    %cst_95 = arith.constant dense<0.000000e+00> : vector<256x128xf32>
    %131 = tpu.matmul %129, %130, %cst_95 {dimension_numbers = #tpu.dot_dimension_numbers<[1], [0], [0], [1], [0, 0, 1, 1], [], []>} : vector<256x256xbf16>, vector<256x128xbf16>, vector<256x128xf32> -> vector<256x128xf32>
    %c0_96 = arith.constant 0 : index
    %c0_97 = arith.constant 0 : index
    %132 = vector.load %arg15[%c0_96, %c0_97] : memref<1x128xf32, #tpu.memory_space<vmem>>, vector<1x128xf32>
    %133 = vector.broadcast %132 : vector<1x128xf32> to vector<256x128xf32>
    %134 = arith.addf %131, %133 : vector<256x128xf32>
    %135 = arith.truncf %134 : vector<256x128xf32> to vector<256x128xbf16>
    %136 = math.tanh %135 : vector<256x128xbf16>
    %137 = tpu.concatenate %136, %115 in 1 : vector<256x128xbf16>, vector<256x128xbf16> -> vector<256x256xbf16>
    %c0_98 = arith.constant 0 : index
    %c0_99 = arith.constant 0 : index
    %138 = vector.load %arg16[%c0_98, %c0_99] : memref<256x256xbf16, #tpu.memory_space<vmem>>, vector<256x256xbf16>
    %cst_100 = arith.constant dense<0.000000e+00> : vector<256x256xf32>
    %139 = tpu.matmul %137, %138, %cst_100 {dimension_numbers = #tpu.dot_dimension_numbers<[1], [0], [0], [1], [0, 0, 1, 1], [], []>} : vector<256x256xbf16>, vector<256x256xbf16>, vector<256x256xf32> -> vector<256x256xf32>
    %c0_101 = arith.constant 0 : index
    %c0_102 = arith.constant 0 : index
    %140 = vector.load %arg17[%c0_101, %c0_102] : memref<1x256xf32, #tpu.memory_space<vmem>>, vector<1x256xf32>
    %141 = vector.broadcast %140 : vector<1x256xf32> to vector<256x256xf32>
    %142 = arith.addf %139, %141 : vector<256x256xf32>
    %143 = arith.truncf %142 : vector<256x256xf32> to vector<256x256xbf16>
    %144 = math.tanh %143 : vector<256x256xbf16>
    %c0_103 = arith.constant 0 : index
    %c0_104 = arith.constant 0 : index
    %145 = vector.load %arg18[%c0_103, %c0_104] : memref<256x8xbf16, #tpu.memory_space<vmem>>, vector<256x8xbf16>
    %cst_105 = arith.constant dense<0.000000e+00> : vector<256x8xf32>
    %146 = tpu.matmul %144, %145, %cst_105 {dimension_numbers = #tpu.dot_dimension_numbers<[1], [0], [0], [1], [0, 0, 1, 1], [], []>} : vector<256x256xbf16>, vector<256x8xbf16>, vector<256x8xf32> -> vector<256x8xf32>
    %c0_106 = arith.constant 0 : index
    %c0_107 = arith.constant 0 : index
    %147 = vector.load %arg19[%c0_106, %c0_107] : memref<1x8xf32, #tpu.memory_space<vmem>>, vector<1x8xf32>
    %148 = vector.broadcast %147 : vector<1x8xf32> to vector<256x8xf32>
    %149 = arith.addf %146, %148 : vector<256x8xf32>
    %150 = arith.truncf %149 : vector<256x8xf32> to vector<256x8xbf16>
    %151 = math.tanh %150 : vector<256x8xbf16>
    %152 = arith.extf %151 : vector<256x8xbf16> to vector<256x8xf32>
    %153 = arith.mulf %152, %152 : vector<256x8xf32>
    %cst_108 = arith.constant dense<0.000000e+00> : vector<256xf32>
    %154 = vector.multi_reduction <add>, %153, %cst_108 [1] : vector<256x8xf32> to vector<256xf32>
    %155 = vector.shape_cast %154 : vector<256xf32> to vector<256x1xf32>
    %cst_109 = arith.constant 1.1920929E-7 : f32
    %156 = vector.broadcast %cst_109 : f32 to vector<256x1xf32>
    %157 = arith.maximumf %155, %156 : vector<256x1xf32>
    %158 = math.rsqrt %157 : vector<256x1xf32>
    %159 = vector.broadcast %158 : vector<256x1xf32> to vector<256x8xf32>
    %160 = arith.mulf %152, %159 : vector<256x8xf32>
    %cst_110 = arith.constant 1.002000e+00 : f32
    %161 = vector.broadcast %cst_110 : f32 to vector<256x8xf32>
    %162 = arith.mulf %160, %161 : vector<256x8xf32>
    %cst_111 = arith.constant 1.000000e-03 : f32
    %163 = vector.broadcast %cst_111 : f32 to vector<256x8xf32>
    %164 = arith.subf %162, %163 : vector<256x8xf32>
    %c256_112 = arith.constant 256 : index
    %c0_113 = arith.constant 0 : index
    %165 = vector.load %arg20[%c256_112, %c0_113] : memref<512x8xf32, #tpu.memory_space<vmem>>, vector<256x8xf32>
    tpu.vector_store %arg20[%c256_112, %c0_113], %164 {strides = array<i32>} : memref<512x8xf32, #tpu.memory_space<vmem>>, vector<256x8xf32>,
    return
  }
  func.func @transform_0(%arg0: i32) -> (i32, i32) {
    %c0_i32 = arith.constant 0 : i32
    %c0_i32_0 = arith.constant 0 : i32
    return %arg0, %c0_i32 : i32, i32
  }
  func.func @transform_1(%arg0: i32) -> (i32, i32) {
    %c0_i32 = arith.constant 0 : i32
    %c0_i32_0 = arith.constant 0 : i32
    %c0_i32_1 = arith.constant 0 : i32
    return %c0_i32, %c0_i32_0 : i32, i32
  }
  func.func @transform_2(%arg0: i32) -> (i32, i32) {
    %c0_i32 = arith.constant 0 : i32
    %c0_i32_0 = arith.constant 0 : i32
    %c0_i32_1 = arith.constant 0 : i32
    return %c0_i32, %c0_i32_0 : i32, i32
  }
  func.func @transform_3(%arg0: i32) -> (i32, i32) {
    %c0_i32 = arith.constant 0 : i32
    %c0_i32_0 = arith.constant 0 : i32
    %c0_i32_1 = arith.constant 0 : i32
    return %c0_i32, %c0_i32_0 : i32, i32
  }
  func.func @transform_4(%arg0: i32) -> (i32, i32) {
    %c0_i32 = arith.constant 0 : i32
    %c0_i32_0 = arith.constant 0 : i32
    %c0_i32_1 = arith.constant 0 : i32
    return %c0_i32, %c0_i32_0 : i32, i32
  }
  func.func @transform_5(%arg0: i32) -> (i32, i32) {
    %c0_i32 = arith.constant 0 : i32
    %c0_i32_0 = arith.constant 0 : i32
    %c0_i32_1 = arith.constant 0 : i32
    return %c0_i32, %c0_i32_0 : i32, i32
  }
  func.func @transform_6(%arg0: i32) -> (i32, i32) {
    %c0_i32 = arith.constant 0 : i32
    %c0_i32_0 = arith.constant 0 : i32
    %c0_i32_1 = arith.constant 0 : i32
    return %c0_i32, %c0_i32_0 : i32, i32
  }
  func.func @transform_7(%arg0: i32) -> (i32, i32) {
    %c0_i32 = arith.constant 0 : i32
    %c0_i32_0 = arith.constant 0 : i32
    %c0_i32_1 = arith.constant 0 : i32
    return %c0_i32, %c0_i32_0 : i32, i32
  }
  func.func @transform_8(%arg0: i32) -> (i32, i32) {
    %c0_i32 = arith.constant 0 : i32
    %c0_i32_0 = arith.constant 0 : i32
    %c0_i32_1 = arith.constant 0 : i32
    return %c0_i32, %c0_i32_0 : i32, i32
  }
  func.func @transform_9(%arg0: i32) -> (i32, i32) {
    %c0_i32 = arith.constant 0 : i32
    %c0_i32_0 = arith.constant 0 : i32
    %c0_i32_1 = arith.constant 0 : i32
    return %c0_i32, %c0_i32_0 : i32, i32
  }
  func.func @transform_10(%arg0: i32) -> (i32, i32) {
    %c0_i32 = arith.constant 0 : i32
    %c0_i32_0 = arith.constant 0 : i32
    %c0_i32_1 = arith.constant 0 : i32
    return %c0_i32, %c0_i32_0 : i32, i32
  }
  func.func @transform_11(%arg0: i32) -> (i32, i32) {
    %c0_i32 = arith.constant 0 : i32
    %c0_i32_0 = arith.constant 0 : i32
    %c0_i32_1 = arith.constant 0 : i32
    return %c0_i32, %c0_i32_0 : i32, i32
  }
  func.func @transform_12(%arg0: i32) -> (i32, i32) {
    %c0_i32 = arith.constant 0 : i32
    %c0_i32_0 = arith.constant 0 : i32
    %c0_i32_1 = arith.constant 0 : i32
    return %c0_i32, %c0_i32_0 : i32, i32
  }
  func.func @transform_13(%arg0: i32) -> (i32, i32) {
    %c0_i32 = arith.constant 0 : i32
    %c0_i32_0 = arith.constant 0 : i32
    %c0_i32_1 = arith.constant 0 : i32
    return %c0_i32, %c0_i32_0 : i32, i32
  }
  func.func @transform_14(%arg0: i32) -> (i32, i32) {
    %c0_i32 = arith.constant 0 : i32
    %c0_i32_0 = arith.constant 0 : i32
    %c0_i32_1 = arith.constant 0 : i32
    return %c0_i32, %c0_i32_0 : i32, i32
  }
  func.func @transform_15(%arg0: i32) -> (i32, i32) {
    %c0_i32 = arith.constant 0 : i32
    %c0_i32_0 = arith.constant 0 : i32
    %c0_i32_1 = arith.constant 0 : i32
    return %c0_i32, %c0_i32_0 : i32, i32
  }
  func.func @transform_16(%arg0: i32) -> (i32, i32) {
    %c0_i32 = arith.constant 0 : i32
    %c0_i32_0 = arith.constant 0 : i32
    %c0_i32_1 = arith.constant 0 : i32
    return %c0_i32, %c0_i32_0 : i32, i32
  }
  func.func @transform_17(%arg0: i32) -> (i32, i32) {
    %c0_i32 = arith.constant 0 : i32
    %c0_i32_0 = arith.constant 0 : i32
    %c0_i32_1 = arith.constant 0 : i32
    return %c0_i32, %c0_i32_0 : i32, i32
  }
  func.func @transform_18(%arg0: i32) -> (i32, i32) {
    %c0_i32 = arith.constant 0 : i32
    %c0_i32_0 = arith.constant 0 : i32
    %c0_i32_1 = arith.constant 0 : i32
    return %c0_i32, %c0_i32_0 : i32, i32
  }
  func.func @transform_19(%arg0: i32) -> (i32, i32) {
    %c0_i32 = arith.constant 0 : i32
    %c0_i32_0 = arith.constant 0 : i32
    return %arg0, %c0_i32 : i32, i32
  }
}

</mosaic_0001>

<bundles_post_ra>
// kernel: tpu_custom_call.1
= control target key start
LH: loop header
LB: loop body
LE: loop exit
PB: predicated region body
PF: predicated region fallthrough
CT: control target
= control target key end

     0   :  { %s15230_s0 = inlined_call_operand.vmem [shape: bf16[1024,8], index: 0, kind: input, shape index: {}]   ;;  %s15231_s1 = inlined_call_operand.vmem [shape: bf16[8,256], index: 1, kind: input, shape index: {}]   ;;  %s15232_s2 = inlined_call_operand.vmem [shape: f32[1,256], index: 2, kind: input, shape index: {}]   ;;  %s15233_s3 = inlined_call_operand.vmem [shape: bf16[256,256], index: 3, kind: input, shape index: {}]   ;;  %s15234_s4 = inlined_call_operand.vmem [shape: f32[1,256], index: 4, kind: input, shape index: {}]   ;;  %s15235_s5 = inlined_call_operand.vmem [shape: bf16[256,256], index: 5, kind: input, shape index: {}]   ;;  %s15236_s6 = inlined_call_operand.vmem [shape: f32[1,256], index: 6, kind: input, shape index: {}]   ;;  %s15237_s7 = inlined_call_operand.vmem [shape: bf16[256,128], index: 7, kind: input, shape index: {}]   ;;  %s15238_s8 = inlined_call_operand.vmem [shape: f32[1,128], index: 8, kind: input, shape index: {}]   ;;  %s15239_s9 = inlined_call_operand.hbm [shape: bf16[128,256], index: 9, kind: input, shape index: {}]   ;;  %s15240_s10 = inlined_call_operand.vmem [shape: f32[1,256], index: 10, kind: input, shape index: {}]   ;;  %s15241_s11 = inlined_call_operand.hbm [shape: bf16[256,256], index: 11, kind: input, shape index: {}]   ;;  %s15242_s12 = inlined_call_operand.vmem [shape: f32[1,256], index: 12, kind: input, shape index: {}]   ;;  %s15243_s13 = inlined_call_operand.hbm [shape: bf16[256,128], index: 13, kind: input, shape index: {}]   ;;  %s15244_s14 = inlined_call_operand.vmem [shape: f32[1,128], index: 14, kind: input, shape index: {}]   ;;  %s15245_s15 = inlined_call_operand.hbm [shape: bf16[256,256], index: 15, kind: input, shape index: {}]   ;;  %s15246_s16 = inlined_call_operand.vmem [shape: f32[1,256], index: 16, kind: input, shape index: {}]   ;;  %s15247_s17 = inlined_call_operand.vmem [shape: bf16[256,8], index: 17, kind: input, shape index: {}]   ;;  %s15248_s18 = inlined_call_operand.vmem [shape: f32[1,8], index: 18, kind: input, shape index: {}]   ;;  %s15249_s19 = inlined_call_operand.vmem [shape: f32[1024,8], index: 19, kind: output, shape index: {}]  }
   0x1   :  { %15262 = sst [smem:[#allocation13_spill]] %s15230_s0 }
   0x2   :  { %15263 = sst [smem:[#allocation14_spill]] %s15231_s1 }
   0x3   :  { %15264 = sst [smem:[#allocation15_spill]] %s15232_s2 }
   0x4   :  { %15265 = sst [smem:[#allocation16_spill]] %s15233_s3 }
   0x5   :  { %15266 = sst [smem:[#allocation17_spill]] %s15244_s14 }
   0x6   :  { %15267 = sst [smem:[#allocation18_spill]] %s15246_s16 }
   0x7   :  { %15268 = sst [smem:[#allocation19_spill]] %s15248_s18 }
   0x8   :  { %15269 = sst [smem:[#allocation20_spill]] %s15249_s19 }
   0x9   :  { %24 = vsyncpa [#allocation4], 0 }
   0xa   :  { %25 = vsyncpa [#allocation6], 0 }
   0xb   :  { %26 = vsyncpa [#allocation9], 0  ;;  %s12464_s0 = smov 0  }
   0xc LB: > { %s15253_s30 = sadd.s32 4294967295, %s12353_s0   ;;  %p9219_p0 = scmp.ge.s32.totalorder %s12353_s0, 1  ;;  %s12353_s0 = sphi %s12464_s0, %s32_s0  }
   0xd   : > { %p467_p1 = scmp.lt.s32.totalorder %s12353_s0, 3  ;;  %p12474_p2 = scmp.eq.s32.totalorder %s15253_s30, 0 }
   0xe   : > { %s12355_s1 = smov [#allocation5]   ;;  %s12356_s2 = smov [#allocation3]  }
   0xf   : > { %s15270_s20 = scalar_select %p12474_p2, 1, 0 }
  0x10   : > { %p12478_p3 = pnand %p9219_p0, %p467_p1  ;;  %s519_s22 = sshll.u32 %s12355_s1, 4  ;;  %s12482_s22 = int_to_ptr.vmem [resolvable:$true] %s519_s22 }
  0x11   : > { %s503_s23 = sshll.u32 %s12356_s2, 4  ;;  %s12357_s25 = smov [#allocation7]   ;;  %s12486_s23 = int_to_ptr.vmem [resolvable:$true] %s503_s23 }
  0x12   : > { %s15271_s21 = scalar_select %p12478_p3, 1, 0 }
  0x13   : > { %p10496_p4 = pneg %p12478_p3  ;;  %s535_s3 = sshll.u32 %s12357_s25, 4  ;;  %s12494_s3 = int_to_ptr.vmem [resolvable:$true] %s535_s3 }
  0x14   : > { %s12223_s28 = scalar_lea.hbm %s15241_s11, 4096 }
  0x15   : > { %p12490_p5 = pnand %p12474_p2, %p10496_p4  ;;  %p12224_p6 = scmp.ne.s32.totalorder %s15241_s11, %s12223_s28 }
  0x16   : > { %p12230_p10 = scmp.lt.u32.totalorder %s12223_s28, %s15241_s11 }
  0x17   : > { %p12504_p7 = pneg %p12490_p5 }
  0x19   : > { %p12226_p8 = pnand %p12504_p7, %p12224_p6 }
  0x1b   : > { %p12227_p9 = pneg %p12226_p8 }
  0x1d   : > { %p12232_p11 = pnand %p12230_p10, %p12227_p9 }
  0x1f   : > { %12235 = shalt.err (!%p12232_p11)
}
  0x20   : > { %s12236_s26 = scalar_lea.vmem %s12482_s22, 4096  ;;  %p12244_p1 = scmp.lt.s32.totalorder %s12482_s22, %s12482_s22 }
  0x21   : > { %p12237_p12 = scmp.ne.s32.totalorder %s12482_s22, %s12236_s26  ;;  %p12245_p4 = scmp.lt.s32.totalorder %s12236_s26, %s12236_s26 }
  0x23   : > { %p12239_p13 = pnand %p12237_p12, %p12504_p7  ;;  %p12246_p6 = por %p12245_p4, %p12244_p1 }
  0x25   : > { %p12240_p0 = pneg %p12239_p13 }
  0x27   : > { %p12247_p8 = pnand %p12246_p6, %p12240_p0 }
  0x29   : > { %12250 = shalt.err (!%p12247_p8)
}
  0x2a   : > { %s15257_s27 = smov 128   ;;  %s15258_s30 = smov 8  }
  0x2b   : > { %10502 = dma.hbm_to_vmem [thread:$0]  (!%p12490_p5), %s15241_s11, 4096, %s12482_s22, [#allocation6], %s15257_s27, %s15257_s27, %s15258_s30  }
  0x2c   : > { %s12251_s26 = scalar_lea.hbm %s15239_s9, 2048 }
  0x2d   : > { %p12252_p9 = scmp.ne.s32.totalorder %s15239_s9, %s12251_s26  ;;  %p12258_p12 = scmp.lt.u32.totalorder %s12251_s26, %s15239_s9 }
  0x2f   : > { %p12254_p10 = pnand %p12252_p9, %p12504_p7 }
  0x31   : > { %p12255_p11 = pneg %p12254_p10 }
  0x33   : > { %p12260_p13 = pnand %p12258_p12, %p12255_p11 }
  0x35   : > { %12263 = shalt.err (!%p12260_p13)
}
  0x36   : > { %s12264_s22 = scalar_lea.vmem %s12486_s23, 2048  ;;  %p12272_p6 = scmp.lt.s32.totalorder %s12486_s23, %s12486_s23 }
  0x37   : > { %p12265_p0 = scmp.ne.s32.totalorder %s12486_s23, %s12264_s22  ;;  %p12273_p8 = scmp.lt.s32.totalorder %s12264_s22, %s12264_s22 }
  0x39   : > { %p12267_p1 = pnand %p12265_p0, %p12504_p7  ;;  %p12274_p9 = por %p12273_p8, %p12272_p6 }
  0x3b   : > { %p12268_p4 = pneg %p12267_p1 }
  0x3d   : > { %p12275_p10 = pnand %p12274_p9, %p12268_p4 }
  0x3f   : > { %12278 = shalt.err (!%p12275_p10)
}
  0x40   : > { %10499 = dma.hbm_to_vmem [thread:$0]  (!%p12490_p5), %s15239_s9, 2048, %s12486_s23, [#allocation4], %s15257_s27, %s15257_s27, %s15258_s30  }
  0x41   : > { %s12279_s28 = scalar_lea.hbm %s15243_s13, 2048 }
  0x42   : > { %p12280_p11 = scmp.ne.s32.totalorder %s15243_s13, %s12279_s28  ;;  %p12286_p0 = scmp.lt.u32.totalorder %s12279_s28, %s15243_s13 }
  0x44   : > { %p12282_p12 = pnand %p12280_p11, %p12504_p7 }
  0x46   : > { %p12283_p13 = pneg %p12282_p12 }
  0x48   : > { %p12288_p1 = pnand %p12286_p0, %p12283_p13 }
  0x4a   : > { %12291 = shalt.err (!%p12288_p1)
}
  0x4b   : > { %s12292_s23 = scalar_lea.vmem %s12494_s3, 2048  ;;  %p12300_p9 = scmp.lt.s32.totalorder %s12494_s3, %s12494_s3 }
  0x4c   : > { %p12293_p4 = scmp.ne.s32.totalorder %s12494_s3, %s12292_s23  ;;  %p12301_p10 = scmp.lt.s32.totalorder %s12292_s23, %s12292_s23 }
  0x4e   : > { %p12295_p6 = pnand %p12293_p4, %p12504_p7  ;;  %p12302_p11 = por %p12301_p10, %p12300_p9 }
  0x50   : > { %p12296_p8 = pneg %p12295_p6 }
  0x52   : > { %p12303_p12 = pnand %p12302_p11, %p12296_p8 }
  0x54   : > { %12306 = shalt.err (!%p12303_p12)
}
  0x55   : > { %s12360_s22 = smov 64   ;;  %s12361_s14 = smov 4  }
  0x56   : > { %10505 = dma.hbm_to_vmem [thread:$0]  (!%p12490_p5), %s15243_s13, 2048, %s12494_s3, [#allocation6], %s12360_s22, %s12360_s22, %s12361_s14  }
  0x57   : > { %s12362_s19 = smov [#allocation8]   ;;  %s12307_s25 = scalar_lea.hbm %s15245_s15, 4096 }
  0x58   : > { %s551_s28 = sshll.u32 %s12362_s19, 4  ;;  %p12308_p13 = scmp.ne.s32.totalorder %s15245_s15, %s12307_s25  ;;  %s552_s28 = int_to_ptr.vmem [resolvable:$true] %s551_s28 }
  0x59   : > { %p12314_p4 = scmp.lt.u32.totalorder %s12307_s25, %s15245_s15 }
  0x5a   : > { %p12310_p0 = pnand %p12308_p13, %p12504_p7 }
  0x5c   : > { %p12311_p1 = pneg %p12310_p0 }
  0x5e   : > { %p12316_p6 = pnand %p12314_p4, %p12311_p1 }
  0x60   : > { %12319 = shalt.err (!%p12316_p6)
}
  0x61   : > { %s12320_s3 = scalar_lea.vmem %s552_s28, 4096  ;;  %p12328_p11 = scmp.lt.s32.totalorder %s552_s28, %s552_s28 }
  0x62   : > { %p12321_p8 = scmp.ne.s32.totalorder %s552_s28, %s12320_s3  ;;  %p12329_p12 = scmp.lt.s32.totalorder %s12320_s3, %s12320_s3 }
  0x64   : > { %p12323_p9 = pnand %p12321_p8, %p12504_p7  ;;  %p12330_p2 = por %p12329_p12, %p12328_p11 }
  0x66   : > { %p12324_p10 = pneg %p12323_p9 }
  0x68   : > { %p12331_p3 = pnand %p12330_p2, %p12324_p10 }
  0x6a   : > { %12334 = shalt.err (!%p12331_p3)
}
  0x6b   : > { %s15274_s22 = smov 8   ;;  %s15275_s14 = smov 128  }
  0x6c   : > { %10508 = dma.hbm_to_vmem [thread:$0]  (!%p12490_p5), %s15245_s15, 4096, %s552_s28, [#allocation9], %s15275_s14, %s15275_s14, %s15274_s22  }
  0x6d   : > { %p15276_p13 = scmp.ne.s32.totalorder %s15271_s21, 0 }
  0x6e   : > { %p15277_p7 = scmp.ne.s32.totalorder (!%p15276_p13), %s15270_s20, 0 }
  0x6f   : > { %585 = sbr.rel (%p15276_p13) target bundleno = 4275 (0x10b3), region = 96 }
  0x76   : > { %12340 = dma.done.wait (%p15277_p7), [#allocation4], 2048  }
  0x77   : > { %12342 = vsyncadd (%p15277_p7), [#allocation4], 4294965248 }
  0x78   : > { %12344 = dma.done.wait (%p15277_p7), [#allocation6], 6144  }
  0x79   : > { %12346 = vsyncadd (%p15277_p7), [#allocation6], 4294961152 }
  0x7a   : > { %12348 = dma.done.wait (%p15277_p7), [#allocation9], 4096  }
  0x7b   : > { %12350 = vsyncadd (%p15277_p7), [#allocation9], 4294963200  ;;  %s15278_s21 = sadd.s32 4294967295, %s12353_s0   ;;  %v12363_v0 = vmov 0   ;;  %s15279_s18 = sld [smem:[#allocation13_spill]]  ;;  %vm1229_vm0 = vcmask 1043456   ;;  %v1086_v53 = vlaneseq }
  0x7c   : > { %s12614_s24 = sshll.u32 %s15278_s21, 6  ;;  %1268 = vmatprep.mubr.bf16.mxu0 %v12363_v0  ;;  %666 = vst [vmem:[#allocation2] sm:$0xff] %v12363_v0  ;;  %667 = vst [vmem:[#allocation2 + $0x8] sm:$0xff] %v12363_v0  ;;  %s15280_s1 = sld [smem:[#allocation14_spill]]  ;;  %vm986_vm1 = vcmask 64512  }
  0x7d   : > { %668 = vst [vmem:[#allocation2 + $0x10] sm:$0xff] %v12363_v0  ;;  %670 = vst [vmem:[#allocation2 + $0x20] sm:$0xff] %v12363_v0  ;;  %p654_p2 = scmp.lt.s32.totalorder %s12614_s24, 127  ;;  %s15281_s23 = sld [smem:[#allocation16_spill]]  ;;  %v1087_v54 = vshrl.u32 %v1086_v53, 7 }
  0x7e   : > { %672 = vst [vmem:[#allocation2 + $0x30] sm:$0xff] %v12363_v0  ;;  %674 = vst [vmem:[#allocation2 + $0x40] sm:$0xff] %v12363_v0  ;;  %s15282_s16 = sld [smem:[#allocation15_spill]]  ;;  %v10600_v61 = vld [vmem:[%s15235_s5] ss:$8 sps:$4 sm:$0xff]   ;;  %s15283_s21 = sld [smem:[#allocation17_spill]] }
  0x7f   : > { %676 = vst [vmem:[#allocation2 + $0x50] sm:$0xff] %v12363_v0  ;;  %678 = vst [vmem:[#allocation2 + $0x60] sm:$0xff] %v12363_v0  ;;  %s15288_s24 = smov (!%p654_p2, %s12614_s24), 127  ;;  %v12808_v55 = vsub.s32 0, %v1087_v54  ;;  %v12810_v56 = vsub.s32 1, %v1087_v54  ;;  %s15284_s22 = sld [smem:[#allocation18_spill]] }
  0x80   : > { %680 = vst [vmem:[#allocation2 + $0x70] sm:$0xff] %v12363_v0  ;;  %682 = vst [vmem:[#allocation2 + $0x80] sm:$0xff] %v12363_v0  ;;  %s9231_s20 = sshll.u32 %s15288_s24, 2  ;;  %v10602_v62 = vld [vmem:[%s15235_s5 + $0x4] ss:$8 sps:$4 sm:$0xff]   ;;  %s15285_s27 = sld [smem:[#allocation19_spill]] }
  0x81   : > { %684 = vst [vmem:[#allocation2 + $0x90] sm:$0xff] %v12363_v0  ;;  %686 = vst [vmem:[#allocation2 + $0xa0] sm:$0xff] %v12363_v0  ;;  %s12658_s19 = scalar_lea.vmem %s15279_s18, %s9231_s20  ;;  %s9233_s3 = sshll.u32 %s15288_s24, 3 }
  0x82   : > { %688 = vst [vmem:[#allocation2 + $0xb0] sm:$0xff] %v12363_v0  ;;  %690 = vst [vmem:[#allocation2 + $0xc0] sm:$0xff] %v12363_v0  ;;  %v1083_v1 = vld [vmem:[%s15280_s1] sm:$0xff]  ;;  %v10537_v6 = vld [vmem:[%s12658_s19 + $0x8] sm:$0xff]   ;;  %s15286_s18 = sld [smem:[#allocation20_spill]] }
  0x83   : > { %692 = vst [vmem:[#allocation2 + $0xd0] sm:$0xff] %v12363_v0  ;;  %694 = vst [vmem:[#allocation2 + $0xe0] sm:$0xff] %v12363_v0  ;;  %v9283_v2 = vcombine.high %v1083_v1, %v1083_v1  ;;  %v9282_v3 = vcombine.low %v1083_v1, %v1083_v1  ;;  %v10536_v5 = vld [vmem:[%s12658_s19] sm:$0xff]   ;;  %v10555_v9 = vld [vmem:[%s15281_s23 + $0x14] ss:$8 sps:$4 sm:$0xff]  }
  0x84   : > { %696 = vst [vmem:[#allocation2 + $0xf0] sm:$0xff] %v12363_v0  ;;  %698 = vst [vmem:[#allocation2 + $0x100] sm:$0xff] %v12363_v0  ;;  %v10552_v7 = vld [vmem:[%s15281_s23 + $0x4] ss:$8 sps:$4 sm:$0xff]   ;;  %v10554_v8 = vld [vmem:[%s15281_s23] ss:$8 sps:$4 sm:$0xff]  }
  0x85   : > { %700 = vst [vmem:[#allocation2 + $0x110] sm:$0xff] %v12363_v0  ;;  %702 = vst [vmem:[#allocation2 + $0x120] sm:$0xff] %v12363_v0  ;;  %9284 = vmatprep.subr.msk.bf16.mxu0 %vm1229_vm0, %v9283_v2  ;;  %v1231_v4 = vsel %vm1229_vm0, %v9282_v3, 0  ;;  %v10538_v10 = vld [vmem:[%s12658_s19 + $0x10] sm:$0xff]   ;;  %1697 = vmatprep.subr.bf16.mxu1 %v10552_v7  ;;  %v10558_v12 = vld [vmem:[%s15281_s23 + $0x24] ss:$8 sps:$4 sm:$0xff]  }
  0x86   : > { %704 = vst [vmem:[#allocation2 + $0x130] sm:$0xff] %v12363_v0  ;;  %706 = vst [vmem:[#allocation2 + $0x140] sm:$0xff] %v12363_v0  ;;  %1237 = vmatpush1.bf16.msra.mxu0 %v1231_v4  ;;  %1698 = vmatpush1.bf16.msra.mxu1 %v10554_v8  ;;  %v10557_v11 = vld [vmem:[%s15281_s23 + $0x10] ss:$8 sps:$4 sm:$0xff]   ;;  %v10560_v13 = vld [vmem:[%s15281_s23 + $0x20] ss:$8 sps:$4 sm:$0xff]  }
  0x87   : > { %708 = vst [vmem:[#allocation2 + $0x150] sm:$0xff] %v12363_v0  ;;  %710 = vst [vmem:[#allocation2 + $0x160] sm:$0xff] %v12363_v0  ;;  %1699 = vmatprep.subr.bf16.mxu1 %v10555_v9  ;;  %v10561_v14 = vld [vmem:[%s15281_s23 + $0x34] ss:$8 sps:$4 sm:$0xff]   ;;  %v10563_v16 = vld [vmem:[%s15281_s23 + $0x30] ss:$8 sps:$4 sm:$0xff]   ;;  %2158 = vmatprep.subr.bf16.mxu0 %v10602_v62 }
  0x88   : > { %712 = vst [vmem:[#allocation2 + $0x170] sm:$0xff] %v12363_v0  ;;  %714 = vst [vmem:[#allocation2 + $0x180] sm:$0xff] %v12363_v0  ;;  %v10539_v15 = vld [vmem:[%s12658_s19 + $0x18] sm:$0xff]   ;;  %v10564_v17 = vld [vmem:[%s15281_s23 + $0x44] ss:$8 sps:$4 sm:$0xff]   ;;  %s14237_s28 = scalar_lea.vmem %s15286_s18, %s9233_s3 }
  0x89   : > { %716 = vst [vmem:[#allocation2 + $0x190] sm:$0xff] %v12363_v0  ;;  %718 = vst [vmem:[#allocation2 + $0x1a0] sm:$0xff] %v12363_v0  ;;  %9285 = vmatmul.mubr.msk.bf16.vlgmr.msra.gmra.mrb[0].mxu0 %vm986_vm1, %v10536_v5  ;;  %v10566_v18 = vld [vmem:[%s15281_s23 + $0x40] ss:$8 sps:$4 sm:$0xff]   ;;  %v10567_v19 = vld [vmem:[%s15281_s23 + $0x54] ss:$8 sps:$4 sm:$0xff]  }
  0x8a   : > { %720 = vst [vmem:[#allocation2 + $0x1b0] sm:$0xff] %v12363_v0  ;;  %722 = vst [vmem:[#allocation2 + $0x1c0] sm:$0xff] %v12363_v0  ;;  %1278 = vmatprep.mubr.bf16.mxu0 %v12363_v0  ;;  %1700 = vmatpush1.bf16.msra.mxu1 %v10557_v11  ;;  %v10540_v20 = vld [vmem:[%s12658_s19 + $0x20] sm:$0xff]   ;;  %v10569_v21 = vld [vmem:[%s15281_s23 + $0x50] ss:$8 sps:$4 sm:$0xff]  }
  0x8b   : > { %724 = vst [vmem:[#allocation2 + $0x1d0] sm:$0xff] %v12363_v0  ;;  %726 = vst [vmem:[#allocation2 + $0x1e0] sm:$0xff] %v12363_v0  ;;  %1701 = vmatprep.subr.bf16.mxu1 %v10558_v12  ;;  %v10570_v22 = vld [vmem:[%s15281_s23 + $0x64] ss:$8 sps:$4 sm:$0xff]   ;;  %v10572_v23 = vld [vmem:[%s15281_s23 + $0x60] ss:$8 sps:$4 sm:$0xff]   ;;  %2159 = vmatpush1.bf16.msra.mxu0 %v10600_v61 }
  0x8c   : > { %728 = vst [vmem:[#allocation2 + $0x1f0] sm:$0xff] %v12363_v0  ;;  %v10573_v24 = vld [vmem:[%s15281_s23 + $0x74] ss:$8 sps:$4 sm:$0xff]   ;;  %v10541_v25 = vld [vmem:[%s12658_s19 + $0x28] sm:$0xff]   ;;  %v10575_v26 = vld [vmem:[%s15281_s23 + $0x70] ss:$8 sps:$4 sm:$0xff]  }
  0x8d   : > { %v10576_v27 = vld [vmem:[%s15281_s23 + $0x84] ss:$8 sps:$4 sm:$0xff]   ;;  %v10578_v28 = vld [vmem:[%s15281_s23 + $0x80] ss:$8 sps:$4 sm:$0xff]   ;;  %v10579_v29 = vld [vmem:[%s15281_s23 + $0x94] ss:$8 sps:$4 sm:$0xff]  }
  0x8e   : > { %1702 = vmatpush1.bf16.msra.mxu1 %v10560_v13  ;;  %v10542_v30 = vld [vmem:[%s12658_s19 + $0x30] sm:$0xff]   ;;  %v10582_v32 = vld [vmem:[%s15281_s23 + $0xa4] ss:$8 sps:$4 sm:$0xff]   ;;  %v10584_v33 = vld [vmem:[%s15281_s23 + $0xa0] ss:$8 sps:$4 sm:$0xff]  }
  0x8f   : > { %1703 = vmatprep.subr.bf16.mxu1 %v10561_v14  ;;  %v10581_v31 = vld [vmem:[%s15281_s23 + $0x90] ss:$8 sps:$4 sm:$0xff]   ;;  %v10544_v35 = vld [vmem:[%s12658_s19 + $0x40] sm:$0xff]   ;;  %v10545_v36 = vld [vmem:[%s12658_s19 + $0x48] sm:$0xff]  }
  0x90   : > { %v10543_v34 = vld [vmem:[%s12658_s19 + $0x38] sm:$0xff]   ;;  %v10546_v37 = vld [vmem:[%s12658_s19 + $0x50] sm:$0xff]   ;;  %v10588_v41 = vld [vmem:[%s15281_s23 + $0xc4] ss:$8 sps:$4 sm:$0xff]  }
  0x91   : > { %9286 = vmatmul.mubr.msk.bf16.gmra.mrb[4].mxu0 %vm986_vm1, %v10537_v6  ;;  %v10547_v38 = vld [vmem:[%s12658_s19 + $0x58] sm:$0xff]   ;;  %v10590_v42 = vld [vmem:[%s15281_s23 + $0xc0] ss:$8 sps:$4 sm:$0xff]   ;;  %v10594_v46 = vld [vmem:[%s15281_s23 + $0xe4] ss:$8 sps:$4 sm:$0xff]  }
  0x92   : > { %1288 = vmatprep.mubr.bf16.mxu0 %v12363_v0  ;;  %1704 = vmatpush1.bf16.msra.mxu1 %v10563_v16  ;;  %v10585_v39 = vld [vmem:[%s15281_s23 + $0xb4] ss:$8 sps:$4 sm:$0xff]   ;;  %v10587_v40 = vld [vmem:[%s15281_s23 + $0xb0] ss:$8 sps:$4 sm:$0xff]   ;;  %v10548_v43 = vld [vmem:[%s12658_s19 + $0x60] sm:$0xff]  }
  0x93   : > { %1705 = vmatprep.subr.bf16.mxu1 %v10564_v17  ;;  %v10591_v44 = vld [vmem:[%s15281_s23 + $0xd4] ss:$8 sps:$4 sm:$0xff]   ;;  %v10593_v45 = vld [vmem:[%s15281_s23 + $0xd0] ss:$8 sps:$4 sm:$0xff]   ;;  %v10596_v47 = vld [vmem:[%s15281_s23 + $0xe0] ss:$8 sps:$4 sm:$0xff]  }
  0x94   : > { %v10549_v48 = vld [vmem:[%s12658_s19 + $0x68] sm:$0xff]   ;;  %v10597_v49 = vld [vmem:[%s15281_s23 + $0xf4] ss:$8 sps:$4 sm:$0xff]   ;;  %v10599_v50 = vld [vmem:[%s15281_s23 + $0xf0] ss:$8 sps:$4 sm:$0xff]  }
  0x95   : > { %v10550_v51 = vld [vmem:[%s12658_s19 + $0x70] sm:$0xff]   ;;  %v10551_v52 = vld [vmem:[%s12658_s19 + $0x78] sm:$0xff]   ;;  %v1084_v57 = vld [vmem:[%s15282_s16] sm:$0x3] }
  0x96   : > { %1706 = vmatpush1.bf16.msra.mxu1 %v10566_v18  ;;  %v12816_v58 = vrot.slane %v1084_v57, %v12808_v55  ;;  %v12819_v60 = vrot.slane %v1084_v57, %v12810_v56  ;;  %v10603_v6 = vld [vmem:[%s15235_s5 + $0x10] ss:$8 sps:$4 sm:$0xff]   ;;  %v10605_v7 = vld [vmem:[%s15235_s5 + $0x14] ss:$8 sps:$4 sm:$0xff]   ;;  %v10606_v18 = vld [vmem:[%s15235_s5 + $0x20] ss:$8 sps:$4 sm:$0xff]  }
  0x97   : > { %1707 = vmatprep.subr.bf16.mxu1 %v10567_v19  ;;  %2160 = vmatprep.subr.bf16.mxu0 %v10605_v7  ;;  %v10608_v19 = vld [vmem:[%s15235_s5 + $0x24] ss:$8 sps:$4 sm:$0xff]   ;;  %v10621_v57 = vld [vmem:[%s15235_s5 + $0x70] ss:$8 sps:$4 sm:$0xff]  }
  0x98   : > { %2161 = vmatpush1.bf16.msra.mxu0 %v10603_v6  ;;  %v10626_v61 = vld [vmem:[%s15235_s5 + $0x84] ss:$8 sps:$4 sm:$0xff]  }
  0x99   : > { %9287 = vmatmul.mubr.msk.bf16.gmra.mrb[8].mxu0 %vm986_vm1, %v10538_v10  ;;  %2162 = vmatprep.subr.bf16.mxu0 %v10608_v19 }
  0x9a   : > { %1298 = vmatprep.mubr.bf16.mxu0 %v12363_v0  ;;  %1708 = vmatpush1.bf16.msra.mxu1 %v10569_v21  ;;  %v10611_v21 = vld [vmem:[%s15235_s5 + $0x34] ss:$8 sps:$4 sm:$0xff]  }
  0x9b   : > { %1709 = vmatprep.subr.bf16.mxu1 %v10570_v22 }
  0x9c   : > { %2163 = vmatpush1.bf16.msra.mxu0 %v10606_v18 }
  0x9d   : > { %2164 = vmatprep.subr.bf16.mxu0 %v10611_v21 }
  0x9e   : > { %1710 = vmatpush1.bf16.msra.mxu1 %v10572_v23  ;;  %v10609_v23 = vld [vmem:[%s15235_s5 + $0x30] ss:$8 sps:$4 sm:$0xff]  }
  0x9f   : > { %1711 = vmatprep.subr.bf16.mxu1 %v10573_v24 }
  0xa0   : > { %2165 = vmatpush1.bf16.msra.mxu0 %v10609_v23 }
  0xa1   : > { %9288 = vmatmul.mubr.msk.bf16.gmra.mrb[12].mxu0 %vm986_vm1, %v10539_v15 }
  0xa2   : > { %1308 = vmatprep.mubr.bf16.mxu0 %v12363_v0  ;;  %1712 = vmatpush1.bf16.msra.mxu1 %v10575_v26 }
  0xa3   : > { %1713 = vmatprep.subr.bf16.mxu1 %v10576_v27 }
  0xa6   : > { %1714 = vmatpush1.bf16.msra.mxu1 %v10578_v28 }
  0xa7   : > { %1715 = vmatprep.subr.bf16.mxu1 %v10579_v29 }
  0xa9   : > { %9289 = vmatmul.mubr.msk.bf16.gmra.mrb[16].mxu0 %vm986_vm1, %v10540_v20 }
  0xaa   : > { %1318 = vmatprep.mubr.bf16.mxu0 %v12363_v0  ;;  %1716 = vmatpush1.bf16.msra.mxu1 %v10581_v31 }
  0xab   : > { %1717 = vmatprep.subr.bf16.mxu1 %v10582_v32  ;;  %v10612_v32 = vld [vmem:[%s15235_s5 + $0x40] ss:$8 sps:$4 sm:$0xff]  }
  0xae   : > { %1718 = vmatpush1.bf16.msra.mxu1 %v10584_v33 }
  0xaf   : > { %1719 = vmatprep.subr.bf16.mxu1 %v10585_v39  ;;  %v10615_v39 = vld [vmem:[%s15235_s5 + $0x50] ss:$8 sps:$4 sm:$0xff]  }
  0xb1   : > { %9290 = vmatmul.mubr.msk.bf16.gmra.mrb[20].mxu0 %vm986_vm1, %v10541_v25  ;;  %v10614_v25 = vld [vmem:[%s15235_s5 + $0x44] ss:$8 sps:$4 sm:$0xff]  }
  0xb2   : > { %1328 = vmatprep.mubr.bf16.mxu0 %v12363_v0  ;;  %1720 = vmatpush1.bf16.msra.mxu1 %v10587_v40 }
  0xb3   : > { %1721 = vmatprep.subr.bf16.mxu1 %v10588_v41  ;;  %2166 = vmatprep.subr.bf16.mxu0 %v10614_v25  ;;  %v10620_v41 = vld [vmem:[%s15235_s5 + $0x64] ss:$8 sps:$4 sm:$0xff]  }
  0xb4   : > { %2167 = vmatpush1.bf16.msra.mxu0 %v10612_v32 }
  0xb6   : > { %1722 = vmatpush1.bf16.msra.mxu1 %v10590_v42 }
  0xb7   : > { %1723 = vmatprep.subr.bf16.mxu1 %v10591_v44 }
  0xb9   : > { %9291 = vmatmul.mubr.msk.bf16.gmra.mrb[24].mxu0 %vm986_vm1, %v10542_v30 }
  0xba   : > { %1338 = vmatprep.mubr.bf16.mxu0 %v12363_v0  ;;  %1724 = vmatpush1.bf16.msra.mxu1 %v10593_v45 }
  0xbb   : > { %1725 = vmatprep.subr.bf16.mxu1 %v10594_v46 }
  0xbe   : > { %1726 = vmatpush1.bf16.msra.mxu1 %v10596_v47 }
  0xbf   : > { %1727 = vmatprep.subr.bf16.mxu1 %v10597_v49 }
  0xc1   : > { %9292 = vmatmul.mubr.msk.bf16.gmra.mrb[28].mxu0 %vm986_vm1, %v10543_v34 }
  0xc2   : > { %1348 = vmatprep.mubr.bf16.mxu0 %v12363_v0  ;;  %1728 = vmatpush1.bf16.msra.mxu1 %v10599_v50 }
  0xc9   : > { %9293 = vmatmul.mubr.msk.bf16.gmra.mrb[32].mxu0 %vm986_vm1, %v10544_v35 }
  0xca   : > { %1358 = vmatprep.mubr.bf16.mxu0 %v12363_v0 }
  0xd1   : > { %9294 = vmatmul.mubr.msk.bf16.gmra.mrb[36].mxu0 %vm986_vm1, %v10545_v36  ;;  %v10617_v36 = vld [vmem:[%s15235_s5 + $0x54] ss:$8 sps:$4 sm:$0xff]  }
  0xd2   : > { %1368 = vmatprep.mubr.bf16.mxu0 %v12363_v0  ;;  %2168 = vmatprep.subr.bf16.mxu0 %v10617_v36  ;;  %v10636_v36 = vld [vmem:[%s15235_s5 + $0xc0] ss:$8 sps:$4 sm:$0xff]  }
  0xd3   : > { %2169 = vmatpush1.bf16.msra.mxu0 %v10615_v39 }
  0xd4   : > { %2170 = vmatprep.subr.bf16.mxu0 %v10620_v41 }
  0xd9   : > { %9295 = vmatmul.mubr.msk.bf16.gmra.mrb[40].mxu0 %vm986_vm1, %v10546_v37 }
  0xda   : > { %1378 = vmatprep.mubr.bf16.mxu0 %v12363_v0 }
  0xe1   : > { %9296 = vmatmul.mubr.msk.bf16.gmra.mrb[44].mxu0 %vm986_vm1, %v10547_v38 }
  0xe2   : > { %1388 = vmatprep.mubr.bf16.mxu0 %v12363_v0 }
  0xe9   : > { %9297 = vmatmul.mubr.msk.bf16.gmra.mrb[48].mxu0 %vm986_vm1, %v10548_v43 }
  0xea   : > { %1398 = vmatprep.mubr.bf16.mxu0 %v12363_v0 }
  0xf1   : > { %9298 = vmatmul.mubr.msk.bf16.gmra.mrb[52].mxu0 %vm986_vm1, %v10549_v48  ;;  %v10618_v48 = vld [vmem:[%s15235_s5 + $0x60] ss:$8 sps:$4 sm:$0xff]  }
  0xf2   : > { %1408 = vmatprep.mubr.bf16.mxu0 %v12363_v0  ;;  %2171 = vmatpush1.bf16.msra.mxu0 %v10618_v48 }
  0xf9   : > { %9299 = vmatmul.mubr.msk.bf16.gmra.mrb[56].mxu0 %vm986_vm1, %v10550_v51 }
  0xfa   : > { %1418 = vmatprep.mubr.bf16.mxu0 %v12363_v0 }
 0x101   : > { %9300 = vmatmul.mubr.msk.bf16.gmra.mrb[60].mxu0 %vm986_vm1, %v10551_v52  ;;  %v10623_v52 = vld [vmem:[%s15235_s5 + $0x74] ss:$8 sps:$4 sm:$0xff]  }
 0x102   : > { %2172 = vmatprep.subr.bf16.mxu0 %v10623_v52 }
 0x103   : > { %2173 = vmatpush1.bf16.msra.mxu0 %v10621_v57 }
 0x104   : > { %2174 = vmatprep.subr.bf16.mxu0 %v10626_v61 }
 0x15c   : > { %v1270_v59 = vpop.f32.mrb[0].mxu0 }
 0x15d   : > { %v1272_v63 = vpop.f32.mrb[1].mxu0  ;;  %v1271_v1 = vadd.f32 %v1270_v59, %v12816_v58 }
 0x15e   : > { %v1274_v0 = vpop.f32.mrb[2].mxu0  ;;  %v1273_v4 = vadd.f32 %v1272_v63, %v12819_v60 }
 0x15f   : > { %v1275_v2 = vadd.f32 %v1274_v0, %v12816_v58  ;;  %v1276_v3 = vpop.f32.mrb[3].mxu0 }
 0x160   : > { %v1277_v5 = vadd.f32 %v1276_v3, %v12819_v60 }
 0x161   : > { %v1429_v8 = vpack.c.bf16 %v1275_v2, %v1271_v1 }
 0x162   : > { %v1430_v9 = vpack.c.bf16 %v1277_v5, %v1273_v4  ;;  %v10624_v4 = vld [vmem:[%s15235_s5 + $0x80] ss:$8 sps:$4 sm:$0xff]  }
 0x163   : > { %2175 = vmatpush1.bf16.msra.mxu0 %v10624_v4 }
 0x164   : > { %v1280_v10 = vpop.f32.mrb[4].mxu0  ;;  %11130 = vtanh.bf16 %v1430_v9 }
 0x165   : > { %11132 = vtanh.bf16 %v1429_v8  ;;  %v1282_v11 = vpop.f32.mrb[5].mxu0  ;;  %v1281_v13 = vadd.f32 %v1280_v10, %v12816_v58  ;;  %v10629_v8 = vld [vmem:[%s15235_s5 + $0x94] ss:$8 sps:$4 sm:$0xff]  }
 0x166   : > { %v1284_v12 = vpop.f32.mrb[6].mxu0  ;;  %v1283_v16 = vadd.f32 %v1282_v11, %v12819_v60  ;;  %v10627_v11 = vld [vmem:[%s15235_s5 + $0x90] ss:$8 sps:$4 sm:$0xff]   ;;  %2176 = vmatprep.subr.bf16.mxu0 %v10629_v8 }
 0x167   : > { %v1285_v14 = vadd.f32 %v1284_v12, %v12816_v58  ;;  %v1286_v15 = vpop.f32.mrb[7].mxu0  ;;  %2177 = vmatpush1.bf16.msra.mxu0 %v10627_v11 }
 0x168   : > { %v1287_v17 = vadd.f32 %v1286_v15, %v12819_v60 }
 0x169   : > { %v1431_v20 = vpack.c.bf16 %v1285_v14, %v1281_v13  ;;  %v10632_v13 = vld [vmem:[%s15235_s5 + $0xa4] ss:$8 sps:$4 sm:$0xff]  }
 0x16a   : > { %v1432_v22 = vpack.c.bf16 %v1287_v17, %v1283_v16  ;;  %2178 = vmatprep.subr.bf16.mxu0 %v10632_v13 }
 0x16c   : > { %11134 = vtanh.bf16 %v1432_v22  ;;  %v1290_v24 = vpop.f32.mrb[8].mxu0 }
 0x16d   : > { %11136 = vtanh.bf16 %v1431_v20  ;;  %v1292_v26 = vpop.f32.mrb[9].mxu0  ;;  %v1291_v29 = vadd.f32 %v1290_v24, %v12816_v58  ;;  %v10630_v20 = vld [vmem:[%s15235_s5 + $0xa0] ss:$8 sps:$4 sm:$0xff]   ;;  %v10635_v24 = vld [vmem:[%s15235_s5 + $0xb4] ss:$8 sps:$4 sm:$0xff]  }
 0x16e   : > { %v1294_v27 = vpop.f32.mrb[10].mxu0  ;;  %v1293_v34 = vadd.f32 %v1292_v26, %v12819_v60  ;;  %2179 = vmatpush1.bf16.msra.mxu0 %v10630_v20 }
 0x16f   : > { %v11131_v28 = vpop.eup %11130  ;;  %v1295_v30 = vadd.f32 %v1294_v27, %v12816_v58  ;;  %v1296_v31 = vpop.f32.mrb[11].mxu0  ;;  %v10633_v27 = vld [vmem:[%s15235_s5 + $0xb0] ss:$8 sps:$4 sm:$0xff]   ;;  %2180 = vmatprep.subr.bf16.mxu0 %v10635_v24 }
 0x170   : > { %v11133_v33 = vpop.eup %11132  ;;  %v1297_v35 = vadd.f32 %v1296_v31, %v12819_v60  ;;  %1729 = vmatprep.mubr.bf16.mxu1 %v11131_v28 }
 0x171   : > { %v1433_v37 = vpack.c.bf16 %v1295_v30, %v1291_v29  ;;  %1730 = vmatmul.mubr.bf16.vlgmr.msra.gmra.mrb[0].mxu1 %v11133_v33  ;;  %v10638_v29 = vld [vmem:[%s15235_s5 + $0xc4] ss:$8 sps:$4 sm:$0xff]  }
 0x172   : > { %v1434_v38 = vpack.c.bf16 %v1297_v35, %v1293_v34  ;;  %2181 = vmatpush1.bf16.msra.mxu0 %v10633_v27 }
 0x173   : > { %2182 = vmatprep.subr.bf16.mxu0 %v10638_v29 }
 0x174   : > { %11138 = vtanh.bf16 %v1434_v38  ;;  %v1300_v40 = vpop.f32.mrb[12].mxu0 }
 0x175   : > { %11140 = vtanh.bf16 %v1433_v37  ;;  %v1302_v42 = vpop.f32.mrb[13].mxu0  ;;  %v1301_v45 = vadd.f32 %v1300_v40, %v12816_v58  ;;  %v10641_v40 = vld [vmem:[%s15235_s5 + $0xd4] ss:$8 sps:$4 sm:$0xff]  }
 0x176   : > { %v1304_v43 = vpop.f32.mrb[14].mxu0  ;;  %v1303_v50 = vadd.f32 %v1302_v42, %v12819_v60  ;;  %2183 = vmatpush1.bf16.msra.mxu0 %v10636_v36 }
 0x177   : > { %v11135_v44 = vpop.eup %11134  ;;  %v1305_v46 = vadd.f32 %v1304_v43, %v12816_v58  ;;  %v1306_v47 = vpop.f32.mrb[15].mxu0  ;;  %v10639_v43 = vld [vmem:[%s15235_s5 + $0xd0] ss:$8 sps:$4 sm:$0xff]   ;;  %2184 = vmatprep.subr.bf16.mxu0 %v10641_v40 }
 0x178   : > { %v11137_v49 = vpop.eup %11136  ;;  %v1307_v51 = vadd.f32 %v1306_v47, %v12819_v60  ;;  %1739 = vmatprep.mubr.bf16.mxu1 %v11135_v44 }
 0x179   : > { %v1435_v53 = vpack.c.bf16 %v1305_v46, %v1301_v45  ;;  %1740 = vmatmul.mubr.bf16.gmra.mrb[4].mxu1 %v11137_v49 }
 0x17a   : > { %v1436_v54 = vpack.c.bf16 %v1307_v51, %v1303_v50  ;;  %2185 = vmatpush1.bf16.msra.mxu0 %v10639_v43 }
 0x17c   : > { %11142 = vtanh.bf16 %v1436_v54  ;;  %v1310_v59 = vpop.f32.mrb[16].mxu0 }
 0x17d   : > { %11144 = vtanh.bf16 %v1435_v53  ;;  %v1312_v62 = vpop.f32.mrb[17].mxu0  ;;  %v1311_v1 = vadd.f32 %v1310_v59, %v12816_v58 }
 0x17e   : > { %v1314_v63 = vpop.f32.mrb[18].mxu0  ;;  %v1313_v6 = vadd.f32 %v1312_v62, %v12819_v60 }
 0x17f   : > { %v11139_v0 = vpop.eup %11138  ;;  %v1315_v2 = vadd.f32 %v1314_v63, %v12816_v58  ;;  %v1316_v3 = vpop.f32.mrb[19].mxu0 }
 0x180   : > { %v11141_v5 = vpop.eup %11140  ;;  %v1317_v7 = vadd.f32 %v1316_v3, %v12819_v60  ;;  %1749 = vmatprep.mubr.bf16.mxu1 %v11139_v0 }
 0x181   : > { %v1437_v9 = vpack.c.bf16 %v1315_v2, %v1311_v1  ;;  %1750 = vmatmul.mubr.bf16.gmra.mrb[8].mxu1 %v11141_v5 }
 0x182   : > { %v1438_v10 = vpack.c.bf16 %v1317_v7, %v1313_v6 }
 0x184   : > { %11146 = vtanh.bf16 %v1438_v10  ;;  %v1320_v12 = vpop.f32.mrb[20].mxu0 }
 0x185   : > { %11148 = vtanh.bf16 %v1437_v9  ;;  %v1322_v14 = vpop.f32.mrb[21].mxu0  ;;  %v1321_v17 = vadd.f32 %v1320_v12, %v12816_v58 }
 0x186   : > { %v1324_v15 = vpop.f32.mrb[22].mxu0  ;;  %v1323_v22 = vadd.f32 %v1322_v14, %v12819_v60 }
 0x187   : > { %v11143_v16 = vpop.eup %11142  ;;  %v1325_v18 = vadd.f32 %v1324_v15, %v12816_v58  ;;  %v1326_v19 = vpop.f32.mrb[23].mxu0 }
 0x188   : > { %v11145_v21 = vpop.eup %11144  ;;  %v1327_v23 = vadd.f32 %v1326_v19, %v12819_v60  ;;  %1759 = vmatprep.mubr.bf16.mxu1 %v11143_v16 }
 0x189   : > { %v1439_v25 = vpack.c.bf16 %v1325_v18, %v1321_v17  ;;  %1760 = vmatmul.mubr.bf16.gmra.mrb[12].mxu1 %v11145_v21 }
 0x18a   : > { %v1440_v26 = vpack.c.bf16 %v1327_v23, %v1323_v22 }
 0x18c   : > { %11150 = vtanh.bf16 %v1440_v26  ;;  %v1330_v28 = vpop.f32.mrb[24].mxu0 }
 0x18d   : > { %11152 = vtanh.bf16 %v1439_v25  ;;  %v1332_v30 = vpop.f32.mrb[25].mxu0  ;;  %v1331_v33 = vadd.f32 %v1330_v28, %v12816_v58 }
 0x18e   : > { %v1334_v31 = vpop.f32.mrb[26].mxu0  ;;  %v1333_v38 = vadd.f32 %v1332_v30, %v12819_v60 }
 0x18f   : > { %v11147_v32 = vpop.eup %11146  ;;  %v1335_v34 = vadd.f32 %v1334_v31, %v12816_v58  ;;  %v1336_v35 = vpop.f32.mrb[27].mxu0 }
 0x190   : > { %v11149_v37 = vpop.eup %11148  ;;  %v1337_v39 = vadd.f32 %v1336_v35, %v12819_v60  ;;  %1769 = vmatprep.mubr.bf16.mxu1 %v11147_v32 }
 0x191   : > { %v1441_v41 = vpack.c.bf16 %v1335_v34, %v1331_v33  ;;  %1770 = vmatmul.mubr.bf16.gmra.mrb[16].mxu1 %v11149_v37 }
 0x192   : > { %v1442_v42 = vpack.c.bf16 %v1337_v39, %v1333_v38 }
 0x194   : > { %11154 = vtanh.bf16 %v1442_v42  ;;  %v1340_v44 = vpop.f32.mrb[28].mxu0 }
 0x195   : > { %11156 = vtanh.bf16 %v1441_v41  ;;  %v1342_v45 = vpop.f32.mrb[29].mxu0  ;;  %v1341_v48 = vadd.f32 %v1340_v44, %v12816_v58 }
 0x196   : > { %v1344_v46 = vpop.f32.mrb[30].mxu0  ;;  %v1343_v52 = vadd.f32 %v1342_v45, %v12819_v60 }
 0x197   : > { %v11151_v47 = vpop.eup %11150  ;;  %v1345_v49 = vadd.f32 %v1344_v46, %v12816_v58  ;;  %v1346_v50 = vpop.f32.mrb[31].mxu0 }
 0x198   : > { %v11153_v51 = vpop.eup %11152  ;;  %v1347_v53 = vadd.f32 %v1346_v50, %v12819_v60  ;;  %1779 = vmatprep.mubr.bf16.mxu1 %v11151_v47 }
 0x199   : > { %v1443_v54 = vpack.c.bf16 %v1345_v49, %v1341_v48  ;;  %1780 = vmatmul.mubr.bf16.gmra.mrb[20].mxu1 %v11153_v51 }
 0x19a   : > { %v1444_v57 = vpack.c.bf16 %v1347_v53, %v1343_v52 }
 0x19c   : > { %11158 = vtanh.bf16 %v1444_v57  ;;  %v1350_v59 = vpop.f32.mrb[32].mxu0 }
 0x19d   : > { %11160 = vtanh.bf16 %v1443_v54  ;;  %v1352_v61 = vpop.f32.mrb[33].mxu0  ;;  %v1351_v0 = vadd.f32 %v1350_v59, %v12816_v58 }
 0x19e   : > { %v1354_v62 = vpop.f32.mrb[34].mxu0  ;;  %v1353_v4 = vadd.f32 %v1352_v61, %v12819_v60 }
 0x19f   : > { %v11155_v63 = vpop.eup %11154  ;;  %v1355_v1 = vadd.f32 %v1354_v62, %v12816_v58  ;;  %v1356_v2 = vpop.f32.mrb[35].mxu0 }
 0x1a0   : > { %v11157_v3 = vpop.eup %11156  ;;  %v1357_v5 = vadd.f32 %v1356_v2, %v12819_v60  ;;  %1789 = vmatprep.mubr.bf16.mxu1 %v11155_v63 }
 0x1a1   : > { %v1445_v6 = vpack.c.bf16 %v1355_v1, %v1351_v0  ;;  %1790 = vmatmul.mubr.bf16.gmra.mrb[24].mxu1 %v11157_v3 }
 0x1a2   : > { %v1446_v7 = vpack.c.bf16 %v1357_v5, %v1353_v4 }
 0x1a4   : > { %11162 = vtanh.bf16 %v1446_v7  ;;  %v1360_v8 = vpop.f32.mrb[36].mxu0 }
 0x1a5   : > { %11164 = vtanh.bf16 %v1445_v6  ;;  %v1362_v9 = vpop.f32.mrb[37].mxu0  ;;  %v1361_v12 = vadd.f32 %v1360_v8, %v12816_v58 }
 0x1a6   : > { %v1364_v10 = vpop.f32.mrb[38].mxu0  ;;  %v1363_v16 = vadd.f32 %v1362_v9, %v12819_v60  ;;  %v10642_v9 = vld [vmem:[%s15235_s5 + $0xe0] ss:$8 sps:$4 sm:$0xff]  }
 0x1a7   : > { %v11159_v11 = vpop.eup %11158  ;;  %v1365_v13 = vadd.f32 %v1364_v10, %v12816_v58  ;;  %v1366_v14 = vpop.f32.mrb[39].mxu0  ;;  %v10644_v10 = vld [vmem:[%s15235_s5 + $0xe4] ss:$8 sps:$4 sm:$0xff]  }
 0x1a8   : > { %v11161_v15 = vpop.eup %11160  ;;  %v1367_v17 = vadd.f32 %v1366_v14, %v12819_v60  ;;  %1799 = vmatprep.mubr.bf16.mxu1 %v11159_v11  ;;  %2186 = vmatprep.subr.bf16.mxu0 %v10644_v10 }
 0x1a9   : > { %v1447_v18 = vpack.c.bf16 %v1365_v13, %v1361_v12  ;;  %1800 = vmatmul.mubr.bf16.gmra.mrb[28].mxu1 %v11161_v15  ;;  %2187 = vmatpush1.bf16.msra.mxu0 %v10642_v9  ;;  %v10654_v9 = vld [vmem:[%s15237_s7 + $0x58] sm:$0xff]  }
 0x1aa   : > { %v1448_v19 = vpack.c.bf16 %v1367_v17, %v1363_v16 }
 0x1ac   : > { %11166 = vtanh.bf16 %v1448_v19  ;;  %v1370_v20 = vpop.f32.mrb[40].mxu0 }
 0x1ad   : > { %11168 = vtanh.bf16 %v1447_v18  ;;  %v1372_v21 = vpop.f32.mrb[41].mxu0  ;;  %v1371_v24 = vadd.f32 %v1370_v20, %v12816_v58 }
 0x1ae   : > { %v1374_v22 = vpop.f32.mrb[42].mxu0  ;;  %v1373_v28 = vadd.f32 %v1372_v21, %v12819_v60 }
 0x1af   : > { %v11163_v23 = vpop.eup %11162  ;;  %v1375_v25 = vadd.f32 %v1374_v22, %v12816_v58  ;;  %v1376_v26 = vpop.f32.mrb[43].mxu0  ;;  %v10647_v22 = vld [vmem:[%s15235_s5 + $0xf4] ss:$8 sps:$4 sm:$0xff]  }
 0x1b0   : > { %v11165_v27 = vpop.eup %11164  ;;  %v1377_v29 = vadd.f32 %v1376_v26, %v12819_v60  ;;  %1809 = vmatprep.mubr.bf16.mxu1 %v11163_v23  ;;  %2188 = vmatprep.subr.bf16.mxu0 %v10647_v22 }
 0x1b1   : > { %v1449_v30 = vpack.c.bf16 %v1375_v25, %v1371_v24  ;;  %1810 = vmatmul.mubr.bf16.gmra.mrb[32].mxu1 %v11165_v27  ;;  %v10645_v24 = vld [vmem:[%s15235_s5 + $0xf0] ss:$8 sps:$4 sm:$0xff]  }
 0x1b2   : > { %v1450_v31 = vpack.c.bf16 %v1377_v29, %v1373_v28  ;;  %2189 = vmatpush1.bf16.msra.mxu0 %v10645_v24 }
 0x1b4   : > { %11170 = vtanh.bf16 %v1450_v31  ;;  %v1380_v32 = vpop.f32.mrb[44].mxu0 }
 0x1b5   : > { %11172 = vtanh.bf16 %v1449_v30  ;;  %v1382_v33 = vpop.f32.mrb[45].mxu0  ;;  %v1381_v36 = vadd.f32 %v1380_v32, %v12816_v58 }
 0x1b6   : > { %v1384_v34 = vpop.f32.mrb[46].mxu0  ;;  %v1383_v40 = vadd.f32 %v1382_v33, %v12819_v60 }
 0x1b7   : > { %v11167_v35 = vpop.eup %11166  ;;  %v1385_v37 = vadd.f32 %v1384_v34, %v12816_v58  ;;  %v1386_v38 = vpop.f32.mrb[47].mxu0 }
 0x1b8   : > { %v11169_v39 = vpop.eup %11168  ;;  %v1387_v41 = vadd.f32 %v1386_v38, %v12819_v60  ;;  %1819 = vmatprep.mubr.bf16.mxu1 %v11167_v35 }
 0x1b9   : > { %v1451_v42 = vpack.c.bf16 %v1385_v37, %v1381_v36  ;;  %1820 = vmatmul.mubr.bf16.gmra.mrb[36].mxu1 %v11169_v39 }
 0x1ba   : > { %v1452_v43 = vpack.c.bf16 %v1387_v41, %v1383_v40 }
 0x1bc   : > { %11174 = vtanh.bf16 %v1452_v43  ;;  %v1390_v44 = vpop.f32.mrb[48].mxu0  ;;  %v10649_v43 = vld [vmem:[%s15237_s7] sm:$0xff]  }
 0x1bd   : > { %11176 = vtanh.bf16 %v1451_v42  ;;  %v1392_v45 = vpop.f32.mrb[49].mxu0  ;;  %v1391_v48 = vadd.f32 %v1390_v44, %v12816_v58  ;;  %v10648_v42 = vld [vmem:[%s15237_s7 + $0x40] sm:$0xff]  }
 0x1be   : > { %v1394_v46 = vpop.f32.mrb[50].mxu0  ;;  %v1393_v52 = vadd.f32 %v1392_v45, %v12819_v60  ;;  %9792 = vmatprep.subr.bf16.mxu1 %v10648_v42 }
 0x1bf   : > { %v11171_v47 = vpop.eup %11170  ;;  %v1395_v49 = vadd.f32 %v1394_v46, %v12816_v58  ;;  %v1396_v50 = vpop.f32.mrb[51].mxu0  ;;  %9793 = vmatpush3.bf16.msra.mxu1 %v10649_v43 }
 0x1c0   : > { %v11173_v51 = vpop.eup %11172  ;;  %v1397_v53 = vadd.f32 %v1396_v50, %v12819_v60  ;;  %1829 = vmatprep.mubr.bf16.mxu1 %v11171_v47 }
 0x1c1   : > { %v1453_v54 = vpack.c.bf16 %v1395_v49, %v1391_v48  ;;  %1830 = vmatmul.mubr.bf16.gmra.mrb[40].mxu1 %v11173_v51 }
 0x1c2   : > { %v1454_v57 = vpack.c.bf16 %v1397_v53, %v1393_v52 }
 0x1c4   : > { %11178 = vtanh.bf16 %v1454_v57  ;;  %v1400_v59 = vpop.f32.mrb[52].mxu0 }
 0x1c5   : > { %11180 = vtanh.bf16 %v1453_v54  ;;  %v1402_v61 = vpop.f32.mrb[53].mxu0  ;;  %v1401_v0 = vadd.f32 %v1400_v59, %v12816_v58 }
 0x1c6   : > { %v1404_v62 = vpop.f32.mrb[54].mxu0  ;;  %v1403_v4 = vadd.f32 %v1402_v61, %v12819_v60 }
 0x1c7   : > { %v11175_v63 = vpop.eup %11174  ;;  %v1405_v1 = vadd.f32 %v1404_v62, %v12816_v58  ;;  %v1406_v2 = vpop.f32.mrb[55].mxu0 }
 0x1c8   : > { %v11177_v3 = vpop.eup %11176  ;;  %v1407_v5 = vadd.f32 %v1406_v2, %v12819_v60  ;;  %1839 = vmatprep.mubr.bf16.mxu1 %v11175_v63  ;;  %v10650_v2 = vld [vmem:[%s15237_s7 + $0x48] sm:$0xff]  }
 0x1c9   : > { %v1455_v6 = vpack.c.bf16 %v1405_v1, %v1401_v0  ;;  %1840 = vmatmul.mubr.bf16.gmra.mrb[44].mxu1 %v11177_v3  ;;  %v10651_v3 = vld [vmem:[%s15237_s7 + $0x8] sm:$0xff]   ;;  %9794 = vmatprep.subr.bf16.mxu1 %v10650_v2 }
 0x1ca   : > { %v1456_v7 = vpack.c.bf16 %v1407_v5, %v1403_v4  ;;  %v10652_v4 = vld [vmem:[%s15237_s7 + $0x50] sm:$0xff]   ;;  %9795 = vmatpush3.bf16.msra.mxu1 %v10651_v3 }
 0x1cb   : > { %9796 = vmatprep.subr.bf16.mxu1 %v10652_v4 }
 0x1cc   : > { %11182 = vtanh.bf16 %v1456_v7  ;;  %v1410_v8 = vpop.f32.mrb[56].mxu0  ;;  %v10653_v7 = vld [vmem:[%s15237_s7 + $0x10] sm:$0xff]  }
 0x1cd   : > { %11184 = vtanh.bf16 %v1455_v6  ;;  %v1412_v11 = vpop.f32.mrb[57].mxu0  ;;  %v1411_v14 = vadd.f32 %v1410_v8, %v12816_v58 }
 0x1ce   : > { %v1414_v12 = vpop.f32.mrb[58].mxu0  ;;  %v1413_v18 = vadd.f32 %v1412_v11, %v12819_v60  ;;  %9797 = vmatpush3.bf16.msra.mxu1 %v10653_v7 }
 0x1cf   : > { %v11179_v13 = vpop.eup %11178  ;;  %v1415_v15 = vadd.f32 %v1414_v12, %v12816_v58  ;;  %v1416_v16 = vpop.f32.mrb[59].mxu0  ;;  %9798 = vmatprep.subr.bf16.mxu1 %v10654_v9 }
 0x1d0   : > { %v11181_v17 = vpop.eup %11180  ;;  %v1417_v19 = vadd.f32 %v1416_v16, %v12819_v60  ;;  %1849 = vmatprep.mubr.bf16.mxu1 %v11179_v13 }
 0x1d1   : > { %v1457_v20 = vpack.c.bf16 %v1415_v15, %v1411_v14  ;;  %1850 = vmatmul.mubr.bf16.gmra.mrb[48].mxu1 %v11181_v17 }
 0x1d2   : > { %v1458_v21 = vpack.c.bf16 %v1417_v19, %v1413_v18  ;;  %v10655_v18 = vld [vmem:[%s15237_s7 + $0x18] sm:$0xff]  }
 0x1d3   : > { %9799 = vmatpush3.bf16.msra.mxu1 %v10655_v18 }
 0x1d4   : > { %11186 = vtanh.bf16 %v1458_v21  ;;  %v1420_v23 = vpop.f32.mrb[60].mxu0 }
 0x1d5   : > { %11188 = vtanh.bf16 %v1457_v20  ;;  %v1422_v25 = vpop.f32.mrb[61].mxu0  ;;  %v1421_v28 = vadd.f32 %v1420_v23, %v12816_v58  ;;  %v10656_v20 = vld [vmem:[%s15237_s7 + $0x60] sm:$0xff]  }
 0x1d6   : > { %v1424_v26 = vpop.f32.mrb[62].mxu0  ;;  %v1423_v32 = vadd.f32 %v1422_v25, %v12819_v60  ;;  %v10657_v23 = vld [vmem:[%s15237_s7 + $0x20] sm:$0xff]   ;;  %9800 = vmatprep.subr.bf16.mxu1 %v10656_v20  ;;  %v10658_v25 = vld [vmem:[%s15237_s7 + $0x68] sm:$0xff]  }
 0x1d7   : > { %v11183_v27 = vpop.eup %11182  ;;  %v1425_v29 = vadd.f32 %v1424_v26, %v12816_v58  ;;  %v1426_v30 = vpop.f32.mrb[63].mxu0  ;;  %v1525_v58 = vld [vmem:[%s15234_s4] sm:$0x3]  ;;  %9801 = vmatpush3.bf16.msra.mxu1 %v10657_v23 }
 0x1d8   : > { %v11185_v31 = vpop.eup %11184  ;;  %v1427_v33 = vadd.f32 %v1426_v30, %v12819_v60  ;;  %1859 = vmatprep.mubr.bf16.mxu1 %v11183_v27  ;;  %v12985_v60 = vrot.slane %v1525_v58, %v12808_v55  ;;  %v12988_v41 = vrot.slane %v1525_v58, %v12810_v56  ;;  %9802 = vmatprep.subr.bf16.mxu1 %v10658_v25 }
 0x1d9   : > { %v1459_v34 = vpack.c.bf16 %v1425_v29, %v1421_v28  ;;  %1860 = vmatmul.mubr.bf16.gmra.mrb[52].mxu1 %v11185_v31 }
 0x1da   : > { %v1460_v35 = vpack.c.bf16 %v1427_v33, %v1423_v32 }
 0x1dc   : > { %11190 = vtanh.bf16 %v1460_v35 }
 0x1dd   : > { %11192 = vtanh.bf16 %v1459_v34  ;;  %v10659_v34 = vld [vmem:[%s15237_s7 + $0x28] sm:$0xff]  }
 0x1de   : > { %9803 = vmatpush3.bf16.msra.mxu1 %v10659_v34 }
 0x1df   : > { %v11187_v36 = vpop.eup %11186 }
 0x1e0   : > { %v11189_v37 = vpop.eup %11188  ;;  %1869 = vmatprep.mubr.bf16.mxu1 %v11187_v36  ;;  %v10660_v36 = vld [vmem:[%s15237_s7 + $0x70] sm:$0xff]  }
 0x1e1   : > { %1870 = vmatmul.mubr.bf16.gmra.mrb[56].mxu1 %v11189_v37  ;;  %9804 = vmatprep.subr.bf16.mxu1 %v10660_v36 }
 0x1e7   : > { %v11191_v38 = vpop.eup %11190 }
 0x1e8   : > { %v11193_v39 = vpop.eup %11192  ;;  %1879 = vmatprep.mubr.bf16.mxu1 %v11191_v38 }
 0x1e9   : > { %1880 = vmatmul.mubr.bf16.gmra.mrb[60].mxu1 %v11193_v39  ;;  %v10661_v39 = vld [vmem:[%s15237_s7 + $0x30] sm:$0xff]  }
 0x1ea   : > { %9805 = vmatpush3.bf16.msra.mxu1 %v10661_v39 }
 0x244   : > { %v1731_v40 = vpop.f32.mrb[0].mxu1 }
 0x245   : > { %v1733_v44 = vpop.f32.mrb[1].mxu1  ;;  %v1732_v46 = vadd.f32 %v1731_v40, %v12985_v60 }
 0x246   : > { %v1735_v45 = vpop.f32.mrb[2].mxu1  ;;  %v1734_v49 = vadd.f32 %v1733_v44, %v12988_v41 }
 0x247   : > { %v1736_v47 = vadd.f32 %v1735_v45, %v12985_v60  ;;  %v1737_v48 = vpop.f32.mrb[3].mxu1 }
 0x248   : > { %v1738_v50 = vadd.f32 %v1737_v48, %v12988_v41 }
 0x249   : > { %v1890_v51 = vpack.c.bf16 %v1736_v47, %v1732_v46 }
 0x24a   : > { %v1891_v52 = vpack.c.bf16 %v1738_v50, %v1734_v49 }
 0x24c   : > { %11194 = vtanh.bf16 %v1891_v52  ;;  %v1741_v53 = vpop.f32.mrb[4].mxu1 }
 0x24d   : > { %11196 = vtanh.bf16 %v1890_v51  ;;  %v1743_v54 = vpop.f32.mrb[5].mxu1  ;;  %v1742_v59 = vadd.f32 %v1741_v53, %v12985_v60 }
 0x24e   : > { %v1745_v57 = vpop.f32.mrb[6].mxu1  ;;  %v1744_v63 = vadd.f32 %v1743_v54, %v12988_v41 }
 0x24f   : > { %v1746_v61 = vadd.f32 %v1745_v57, %v12985_v60  ;;  %v1747_v62 = vpop.f32.mrb[7].mxu1 }
 0x250   : > { %v1748_v0 = vadd.f32 %v1747_v62, %v12988_v41 }
 0x251   : > { %v1892_v1 = vpack.c.bf16 %v1746_v61, %v1742_v59 }
 0x252   : > { %v1893_v5 = vpack.c.bf16 %v1748_v0, %v1744_v63 }
 0x254   : > { %11198 = vtanh.bf16 %v1893_v5  ;;  %v1751_v6 = vpop.f32.mrb[8].mxu1 }
 0x255   : > { %11200 = vtanh.bf16 %v1892_v1  ;;  %v1753_v8 = vpop.f32.mrb[9].mxu1  ;;  %v1752_v12 = vadd.f32 %v1751_v6, %v12985_v60 }
 0x256   : > { %v1755_v10 = vpop.f32.mrb[10].mxu1  ;;  %v1754_v16 = vadd.f32 %v1753_v8, %v12988_v41 }
 0x257   : > { %v11195_v11 = vpop.eup %11194  ;;  %v1756_v13 = vadd.f32 %v1755_v10, %v12985_v60  ;;  %v1757_v14 = vpop.f32.mrb[11].mxu1 }
 0x258   : > { %v11197_v15 = vpop.eup %11196  ;;  %v1758_v17 = vadd.f32 %v1757_v14, %v12988_v41  ;;  %2190 = vmatprep.mubr.bf16.mxu0 %v11195_v11 }
 0x259   : > { %v1894_v19 = vpack.c.bf16 %v1756_v13, %v1752_v12  ;;  %2191 = vmatmul.mubr.bf16.vlgmr.msra.gmra.mrb[64].mxu0 %v11197_v15 }
 0x25a   : > { %v1895_v21 = vpack.c.bf16 %v1758_v17, %v1754_v16 }
 0x25c   : > { %11202 = vtanh.bf16 %v1895_v21  ;;  %v1761_v22 = vpop.f32.mrb[12].mxu1 }
 0x25d   : > { %11204 = vtanh.bf16 %v1894_v19  ;;  %v1763_v24 = vpop.f32.mrb[13].mxu1  ;;  %v1762_v28 = vadd.f32 %v1761_v22, %v12985_v60 }
 0x25e   : > { %v1765_v26 = vpop.f32.mrb[14].mxu1  ;;  %v1764_v32 = vadd.f32 %v1763_v24, %v12988_v41 }
 0x25f   : > { %v11199_v27 = vpop.eup %11198  ;;  %v1766_v29 = vadd.f32 %v1765_v26, %v12985_v60  ;;  %v1767_v30 = vpop.f32.mrb[15].mxu1 }
 0x260   : > { %v11201_v31 = vpop.eup %11200  ;;  %v1768_v33 = vadd.f32 %v1767_v30, %v12988_v41  ;;  %2200 = vmatprep.mubr.bf16.mxu0 %v11199_v27 }
 0x261   : > { %v1896_v35 = vpack.c.bf16 %v1766_v29, %v1762_v28  ;;  %2201 = vmatmul.mubr.bf16.gmra.mrb[68].mxu0 %v11201_v31 }
 0x262   : > { %v1897_v37 = vpack.c.bf16 %v1768_v33, %v1764_v32 }
 0x264   : > { %11206 = vtanh.bf16 %v1897_v37  ;;  %v1771_v38 = vpop.f32.mrb[16].mxu1 }
 0x265   : > { %11208 = vtanh.bf16 %v1896_v35  ;;  %v1773_v58 = vpop.f32.mrb[17].mxu1  ;;  %v1772_v43 = vadd.f32 %v1771_v38, %v12985_v60 }
 0x266   : > { %v1775_v40 = vpop.f32.mrb[18].mxu1  ;;  %v1774_v47 = vadd.f32 %v1773_v58, %v12988_v41 }
 0x267   : > { %v11203_v42 = vpop.eup %11202  ;;  %v1776_v44 = vadd.f32 %v1775_v40, %v12985_v60  ;;  %v1777_v45 = vpop.f32.mrb[19].mxu1 }
 0x268   : > { %v11205_v46 = vpop.eup %11204  ;;  %v1778_v48 = vadd.f32 %v1777_v45, %v12988_v41  ;;  %2210 = vmatprep.mubr.bf16.mxu0 %v11203_v42 }
 0x269   : > { %v1898_v49 = vpack.c.bf16 %v1776_v44, %v1772_v43  ;;  %2211 = vmatmul.mubr.bf16.gmra.mrb[72].mxu0 %v11205_v46 }
 0x26a   : > { %v1899_v50 = vpack.c.bf16 %v1778_v48, %v1774_v47 }
 0x26c   : > { %11210 = vtanh.bf16 %v1899_v50  ;;  %v1781_v51 = vpop.f32.mrb[20].mxu1 }
 0x26d   : > { %11212 = vtanh.bf16 %v1898_v49  ;;  %v1783_v52 = vpop.f32.mrb[21].mxu1  ;;  %v1782_v57 = vadd.f32 %v1781_v51, %v12985_v60 }
 0x26e   : > { %v1785_v53 = vpop.f32.mrb[22].mxu1  ;;  %v1784_v63 = vadd.f32 %v1783_v52, %v12988_v41 }
 0x26f   : > { %v11207_v54 = vpop.eup %11206  ;;  %v1786_v59 = vadd.f32 %v1785_v53, %v12985_v60  ;;  %v1787_v61 = vpop.f32.mrb[23].mxu1 }
 0x270   : > { %v11209_v62 = vpop.eup %11208  ;;  %v1788_v0 = vadd.f32 %v1787_v61, %v12988_v41  ;;  %2220 = vmatprep.mubr.bf16.mxu0 %v11207_v54 }
 0x271   : > { %v1900_v1 = vpack.c.bf16 %v1786_v59, %v1782_v57  ;;  %2221 = vmatmul.mubr.bf16.gmra.mrb[76].mxu0 %v11209_v62 }
 0x272   : > { %v1901_v2 = vpack.c.bf16 %v1788_v0, %v1784_v63 }
 0x274   : > { %11214 = vtanh.bf16 %v1901_v2  ;;  %v1791_v3 = vpop.f32.mrb[24].mxu1 }
 0x275   : > { %11216 = vtanh.bf16 %v1900_v1  ;;  %v1793_v4 = vpop.f32.mrb[25].mxu1  ;;  %v1792_v7 = vadd.f32 %v1791_v3, %v12985_v60 }
 0x276   : > { %v1795_v5 = vpop.f32.mrb[26].mxu1  ;;  %v1794_v11 = vadd.f32 %v1793_v4, %v12988_v41 }
 0x277   : > { %v11211_v6 = vpop.eup %11210  ;;  %v1796_v8 = vadd.f32 %v1795_v5, %v12985_v60  ;;  %v1797_v9 = vpop.f32.mrb[27].mxu1 }
 0x278   : > { %v11213_v10 = vpop.eup %11212  ;;  %v1798_v12 = vadd.f32 %v1797_v9, %v12988_v41  ;;  %2230 = vmatprep.mubr.bf16.mxu0 %v11211_v6 }
 0x279   : > { %v1902_v13 = vpack.c.bf16 %v1796_v8, %v1792_v7  ;;  %2231 = vmatmul.mubr.bf16.gmra.mrb[80].mxu0 %v11213_v10 }
 0x27a   : > { %v1903_v14 = vpack.c.bf16 %v1798_v12, %v1794_v11 }
 0x27c   : > { %11218 = vtanh.bf16 %v1903_v14  ;;  %v1801_v15 = vpop.f32.mrb[28].mxu1 }
 0x27d   : > { %11220 = vtanh.bf16 %v1902_v13  ;;  %v1803_v16 = vpop.f32.mrb[29].mxu1  ;;  %v1802_v19 = vadd.f32 %v1801_v15, %v12985_v60 }
 0x27e   : > { %v1805_v17 = vpop.f32.mrb[30].mxu1  ;;  %v1804_v23 = vadd.f32 %v1803_v16, %v12988_v41 }
 0x27f   : > { %v11215_v18 = vpop.eup %11214  ;;  %v1806_v20 = vadd.f32 %v1805_v17, %v12985_v60  ;;  %v1807_v21 = vpop.f32.mrb[31].mxu1 }
 0x280   : > { %v11217_v22 = vpop.eup %11216  ;;  %v1808_v24 = vadd.f32 %v1807_v21, %v12988_v41  ;;  %2240 = vmatprep.mubr.bf16.mxu0 %v11215_v18 }
 0x281   : > { %v1904_v25 = vpack.c.bf16 %v1806_v20, %v1802_v19  ;;  %2241 = vmatmul.mubr.bf16.gmra.mrb[84].mxu0 %v11217_v22 }
 0x282   : > { %v1905_v26 = vpack.c.bf16 %v1808_v24, %v1804_v23 }
 0x284   : > { %11222 = vtanh.bf16 %v1905_v26  ;;  %v1811_v27 = vpop.f32.mrb[32].mxu1 }
 0x285   : > { %11224 = vtanh.bf16 %v1904_v25  ;;  %v1813_v28 = vpop.f32.mrb[33].mxu1  ;;  %v1812_v31 = vadd.f32 %v1811_v27, %v12985_v60 }
 0x286   : > { %v1815_v29 = vpop.f32.mrb[34].mxu1  ;;  %v1814_v35 = vadd.f32 %v1813_v28, %v12988_v41 }
 0x287   : > { %v11219_v30 = vpop.eup %11218  ;;  %v1816_v32 = vadd.f32 %v1815_v29, %v12985_v60  ;;  %v1817_v33 = vpop.f32.mrb[35].mxu1 }
 0x288   : > { %v11221_v34 = vpop.eup %11220  ;;  %v1818_v36 = vadd.f32 %v1817_v33, %v12988_v41  ;;  %2250 = vmatprep.mubr.bf16.mxu0 %v11219_v30 }
 0x289   : > { %v1906_v37 = vpack.c.bf16 %v1816_v32, %v1812_v31  ;;  %2251 = vmatmul.mubr.bf16.gmra.mrb[88].mxu0 %v11221_v34 }
 0x28a   : > { %v1907_v38 = vpack.c.bf16 %v1818_v36, %v1814_v35 }
 0x28c   : > { %11226 = vtanh.bf16 %v1907_v38  ;;  %v1821_v39 = vpop.f32.mrb[36].mxu1 }
 0x28d   : > { %11228 = vtanh.bf16 %v1906_v37  ;;  %v1823_v58 = vpop.f32.mrb[37].mxu1  ;;  %v1822_v43 = vadd.f32 %v1821_v39, %v12985_v60 }
 0x28e   : > { %v1825_v40 = vpop.f32.mrb[38].mxu1  ;;  %v1824_v47 = vadd.f32 %v1823_v58, %v12988_v41  ;;  %v10662_v58 = vld [vmem:[%s15237_s7 + $0x78] sm:$0xff]  }
 0x28f   : > { %v11223_v42 = vpop.eup %11222  ;;  %v1826_v44 = vadd.f32 %v1825_v40, %v12985_v60  ;;  %v1827_v45 = vpop.f32.mrb[39].mxu1  ;;  %v10663_v40 = vld [vmem:[%s15237_s7 + $0x38] sm:$0xff]   ;;  %9806 = vmatprep.subr.bf16.mxu1 %v10662_v58 }
 0x290   : > { %v11225_v46 = vpop.eup %11224  ;;  %v1828_v48 = vadd.f32 %v1827_v45, %v12988_v41  ;;  %2260 = vmatprep.mubr.bf16.mxu0 %v11223_v42  ;;  %9807 = vmatpush3.bf16.msra.mxu1 %v10663_v40 }
 0x291   : > { %v1908_v49 = vpack.c.bf16 %v1826_v44, %v1822_v43  ;;  %2261 = vmatmul.mubr.bf16.gmra.mrb[92].mxu0 %v11225_v46  ;;  %v10664_v43 = vld [vmem:[%s12658_s19] sm:$0xff]  }
 0x292   : > { %v1909_v50 = vpack.c.bf16 %v1828_v48, %v1824_v47  ;;  %987 = vst.msk [vmem:[#allocation2] sm:$0xff] %vm986_vm1, %v10664_v43 }
 0x294   : > { %11230 = vtanh.bf16 %v1909_v50  ;;  %v1831_v51 = vpop.f32.mrb[40].mxu1 }
 0x295   : > { %11232 = vtanh.bf16 %v1908_v49  ;;  %v1833_v52 = vpop.f32.mrb[41].mxu1  ;;  %v1832_v57 = vadd.f32 %v1831_v51, %v12985_v60 }
 0x296   : > { %v1835_v53 = vpop.f32.mrb[42].mxu1  ;;  %v1834_v63 = vadd.f32 %v1833_v52, %v12988_v41 }
 0x297   : > { %v11227_v54 = vpop.eup %11226  ;;  %v1836_v59 = vadd.f32 %v1835_v53, %v12985_v60  ;;  %v1837_v61 = vpop.f32.mrb[43].mxu1 }
 0x298   : > { %v11229_v62 = vpop.eup %11228  ;;  %v1838_v0 = vadd.f32 %v1837_v61, %v12988_v41  ;;  %2270 = vmatprep.mubr.bf16.mxu0 %v11227_v54 }
 0x299   : > { %v1910_v1 = vpack.c.bf16 %v1836_v59, %v1832_v57  ;;  %2271 = vmatmul.mubr.bf16.gmra.mrb[96].mxu0 %v11229_v62  ;;  %v10665_v59 = vld [vmem:[%s12658_s19 + $0x8] sm:$0xff]  }
 0x29a   : > { %v1911_v2 = vpack.c.bf16 %v1838_v0, %v1834_v63  ;;  %988 = vst.msk [vmem:[#allocation2 + $0x10] sm:$0xff] %vm986_vm1, %v10665_v59  ;;  %v1051_v59 = vld [vmem:[#allocation2] sm:$0xff] }
 0x29c   : > { %11234 = vtanh.bf16 %v1911_v2  ;;  %v1841_v3 = vpop.f32.mrb[44].mxu1 }
 0x29d   : > { %11236 = vtanh.bf16 %v1910_v1  ;;  %v1843_v4 = vpop.f32.mrb[45].mxu1  ;;  %v1842_v7 = vadd.f32 %v1841_v3, %v12985_v60 }
 0x29e   : > { %v1845_v5 = vpop.f32.mrb[46].mxu1  ;;  %v1844_v11 = vadd.f32 %v1843_v4, %v12988_v41 }
 0x29f   : > { %v11231_v6 = vpop.eup %11230  ;;  %v1846_v8 = vadd.f32 %v1845_v5, %v12985_v60  ;;  %v1847_v9 = vpop.f32.mrb[47].mxu1 }
 0x2a0   : > { %v11233_v10 = vpop.eup %11232  ;;  %v1848_v12 = vadd.f32 %v1847_v9, %v12988_v41  ;;  %2280 = vmatprep.mubr.bf16.mxu0 %v11231_v6  ;;  %v10667_v9 = vld [vmem:[%s12658_s19 + $0x18] sm:$0xff]  }
 0x2a1   : > { %v1912_v13 = vpack.c.bf16 %v1846_v8, %v1842_v7  ;;  %2281 = vmatmul.mubr.bf16.gmra.mrb[100].mxu0 %v11233_v10  ;;  %v10666_v7 = vld [vmem:[%s12658_s19 + $0x10] sm:$0xff]   ;;  %990 = vst.msk [vmem:[#allocation2 + $0x30] sm:$0xff] %vm986_vm1, %v10667_v9  ;;  %v10694_v9 = vld [vmem:[#allocation3 + $0x44] ss:$8 sps:$4 sm:$0xff]  }
 0x2a2   : > { %v1913_v14 = vpack.c.bf16 %v1848_v12, %v1844_v11  ;;  %989 = vst.msk [vmem:[#allocation2 + $0x20] sm:$0xff] %vm986_vm1, %v10666_v7  ;;  %v13110_v11 = vld [vmem:[#allocation2 + $0x8] sm:$0xff]  ;;  %v10668_v12 = vld [vmem:[%s12658_s19 + $0x20] sm:$0xff]  }
 0x2a3   : > { %991 = vst.msk [vmem:[#allocation2 + $0x40] sm:$0xff] %vm986_vm1, %v10668_v12 }
 0x2a4   : > { %11238 = vtanh.bf16 %v1913_v14  ;;  %v1851_v15 = vpop.f32.mrb[48].mxu1  ;;  %v10670_v14 = vld [vmem:[%s12658_s19 + $0x30] sm:$0xff]  }
 0x2a5   : > { %11240 = vtanh.bf16 %v1912_v13  ;;  %v1853_v16 = vpop.f32.mrb[49].mxu1  ;;  %v1852_v19 = vadd.f32 %v1851_v15, %v12985_v60  ;;  %v10669_v13 = vld [vmem:[%s12658_s19 + $0x28] sm:$0xff]   ;;  %993 = vst.msk [vmem:[#allocation2 + $0x60] sm:$0xff] %vm986_vm1, %v10670_v14  ;;  %v10671_v15 = vld [vmem:[%s12658_s19 + $0x38] sm:$0xff]   ;;  %v1053_v14 = vld [vmem:[#allocation2 + $0x10] sm:$0xff] }
 0x2a6   : > { %v1855_v17 = vpop.f32.mrb[50].mxu1  ;;  %v1854_v23 = vadd.f32 %v1853_v16, %v12988_v41  ;;  %992 = vst.msk [vmem:[#allocation2 + $0x50] sm:$0xff] %vm986_vm1, %v10669_v13  ;;  %994 = vst.msk [vmem:[#allocation2 + $0x70] sm:$0xff] %vm986_vm1, %v10671_v15  ;;  %v10672_v16 = vld [vmem:[%s12658_s19 + $0x40] sm:$0xff]  }
 0x2a7   : > { %v11235_v18 = vpop.eup %11234  ;;  %v1856_v20 = vadd.f32 %v1855_v17, %v12985_v60  ;;  %v1857_v21 = vpop.f32.mrb[51].mxu1  ;;  %995 = vst.msk [vmem:[#allocation2 + $0x80] sm:$0xff] %vm986_vm1, %v10672_v16  ;;  %v10673_v17 = vld [vmem:[%s12658_s19 + $0x48] sm:$0xff]  }
 0x2a8   : > { %v11237_v22 = vpop.eup %11236  ;;  %v1858_v24 = vadd.f32 %v1857_v21, %v12988_v41  ;;  %2290 = vmatprep.mubr.bf16.mxu0 %v11235_v18  ;;  %996 = vst.msk [vmem:[#allocation2 + $0x90] sm:$0xff] %vm986_vm1, %v10673_v17  ;;  %v10674_v18 = vld [vmem:[%s12658_s19 + $0x50] sm:$0xff]   ;;  %v10677_v21 = vld [vmem:[%s12658_s19 + $0x68] sm:$0xff]  }
 0x2a9   : > { %v1914_v25 = vpack.c.bf16 %v1856_v20, %v1852_v19  ;;  %2291 = vmatmul.mubr.bf16.gmra.mrb[104].mxu0 %v11237_v22  ;;  %997 = vst.msk [vmem:[#allocation2 + $0xa0] sm:$0xff] %vm986_vm1, %v10674_v18  ;;  %v10675_v19 = vld [vmem:[%s12658_s19 + $0x58] sm:$0xff]   ;;  %v10676_v20 = vld [vmem:[%s12658_s19 + $0x60] sm:$0xff]   ;;  %1000 = vst.msk [vmem:[#allocation2 + $0xd0] sm:$0xff] %vm986_vm1, %v10677_v21 }
 0x2aa   : > { %v1915_v26 = vpack.c.bf16 %v1858_v24, %v1854_v23  ;;  %998 = vst.msk [vmem:[#allocation2 + $0xb0] sm:$0xff] %vm986_vm1, %v10675_v19  ;;  %999 = vst.msk [vmem:[#allocation2 + $0xc0] sm:$0xff] %vm986_vm1, %v10676_v20  ;;  %v10681_v22 = vld [vmem:[%s12658_s19 + $0x70] sm:$0xff]   ;;  %v1986_v23 = vld [vmem:[%s15236_s6] sm:$0x3] }
 0x2ab   : > { %1001 = vst.msk [vmem:[#allocation2 + $0xe0] sm:$0xff] %vm986_vm1, %v10681_v22  ;;  %v13139_v24 = vrot.slane %v1986_v23, %v12808_v55  ;;  %v10692_v15 = vld [vmem:[#allocation3 + $0x40] ss:$8 sps:$4 sm:$0xff]   ;;  %v10697_v20 = vld [vmem:[#allocation3 + $0x54] ss:$8 sps:$4 sm:$0xff]  }
 0x2ac   : > { %11242 = vtanh.bf16 %v1915_v26  ;;  %v1861_v27 = vpop.f32.mrb[52].mxu1  ;;  %v13142_v26 = vrot.slane %v1986_v23, %v12810_v56 }
 0x2ad   : > { %11244 = vtanh.bf16 %v1914_v25  ;;  %v1863_v28 = vpop.f32.mrb[53].mxu1  ;;  %v1862_v31 = vadd.f32 %v1861_v27, %v12985_v60  ;;  %v10678_v27 = vld [vmem:[#allocation3] ss:$8 sps:$4 sm:$0xff]  }
 0x2ae   : > { %v1865_v29 = vpop.f32.mrb[54].mxu1  ;;  %v1864_v35 = vadd.f32 %v1863_v28, %v12988_v41  ;;  %v10680_v28 = vld [vmem:[#allocation3 + $0x4] ss:$8 sps:$4 sm:$0xff]  }
 0x2af   : > { %v11239_v30 = vpop.eup %11238  ;;  %v1866_v32 = vadd.f32 %v1865_v29, %v12985_v60  ;;  %v1867_v33 = vpop.f32.mrb[55].mxu1  ;;  %2883 = vmatprep.subr.bf16.mxu0 %v10680_v28 }
 0x2b0   : > { %v11241_v34 = vpop.eup %11240  ;;  %v1868_v36 = vadd.f32 %v1867_v33, %v12988_v41  ;;  %2300 = vmatprep.mubr.bf16.mxu0 %v11239_v30  ;;  %v10682_v30 = vld [vmem:[%s12658_s19 + $0x78] sm:$0xff]   ;;  %2884 = vmatpush1.bf16.msra.mxu0 %v10678_v27 }
 0x2b1   : > { %v1916_v37 = vpack.c.bf16 %v1866_v32, %v1862_v31  ;;  %2301 = vmatmul.mubr.bf16.gmra.mrb[108].mxu0 %v11241_v34  ;;  %1002 = vst.msk [vmem:[#allocation2 + $0xf0] sm:$0xff] %vm986_vm1, %v10682_v30  ;;  %v10700_v30 = vld [vmem:[#allocation3 + $0x64] ss:$8 sps:$4 sm:$0xff]  }
 0x2b2   : > { %v1917_v38 = vpack.c.bf16 %v1868_v36, %v1864_v35 }
 0x2b4   : > { %11246 = vtanh.bf16 %v1917_v38  ;;  %v1871_v39 = vpop.f32.mrb[56].mxu1 }
 0x2b5   : > { %11248 = vtanh.bf16 %v1916_v37  ;;  %v1873_v42 = vpop.f32.mrb[57].mxu1  ;;  %v1872_v46 = vadd.f32 %v1871_v39, %v12985_v60 }
 0x2b6   : > { %v1875_v44 = vpop.f32.mrb[58].mxu1  ;;  %v1874_v50 = vadd.f32 %v1873_v42, %v12988_v41 }
 0x2b7   : > { %v11243_v45 = vpop.eup %11242  ;;  %v1876_v47 = vadd.f32 %v1875_v44, %v12985_v60  ;;  %v1877_v48 = vpop.f32.mrb[59].mxu1 }
 0x2b8   : > { %v11245_v49 = vpop.eup %11244  ;;  %v1878_v51 = vadd.f32 %v1877_v48, %v12988_v41  ;;  %2310 = vmatprep.mubr.bf16.mxu0 %v11243_v45 }
 0x2b9   : > { %v1918_v52 = vpack.c.bf16 %v1876_v47, %v1872_v46  ;;  %2311 = vmatmul.mubr.bf16.gmra.mrb[112].mxu0 %v11245_v49  ;;  %v10683_v49 = vld [vmem:[#allocation3 + $0x10] ss:$8 sps:$4 sm:$0xff]  }
 0x2ba   : > { %v1919_v53 = vpack.c.bf16 %v1878_v51, %v1874_v50  ;;  %v10685_v50 = vld [vmem:[#allocation3 + $0x14] ss:$8 sps:$4 sm:$0xff]  }
 0x2bb   : > { %2885 = vmatprep.subr.bf16.mxu0 %v10685_v50 }
 0x2bc   : > { %11250 = vtanh.bf16 %v1919_v53  ;;  %v1881_v54 = vpop.f32.mrb[60].mxu1  ;;  %2886 = vmatpush1.bf16.msra.mxu0 %v10683_v49 }
 0x2bd   : > { %11252 = vtanh.bf16 %v1918_v52  ;;  %v1883_v57 = vpop.f32.mrb[61].mxu1  ;;  %v1882_v63 = vadd.f32 %v1881_v54, %v12985_v60  ;;  %v10688_v52 = vld [vmem:[#allocation3 + $0x24] ss:$8 sps:$4 sm:$0xff]  }
 0x2be   : > { %v1885_v61 = vpop.f32.mrb[62].mxu1  ;;  %v1884_v3 = vadd.f32 %v1883_v57, %v12988_v41  ;;  %2887 = vmatprep.subr.bf16.mxu0 %v10688_v52 }
 0x2bf   : > { %v11247_v62 = vpop.eup %11246  ;;  %v1886_v0 = vadd.f32 %v1885_v61, %v12985_v60  ;;  %v1887_v1 = vpop.f32.mrb[63].mxu1  ;;  %v10686_v61 = vld [vmem:[#allocation3 + $0x20] ss:$8 sps:$4 sm:$0xff]  }
 0x2c0   : > { %v11249_v2 = vpop.eup %11248  ;;  %v1888_v4 = vadd.f32 %v1887_v1, %v12988_v41  ;;  %2320 = vmatprep.mubr.bf16.mxu0 %v11247_v62  ;;  %2888 = vmatpush1.bf16.msra.mxu0 %v10686_v61 }
 0x2c1   : > { %v1920_v5 = vpack.c.bf16 %v1886_v0, %v1882_v63  ;;  %2321 = vmatmul.mubr.bf16.gmra.mrb[116].mxu0 %v11249_v2  ;;  %v10691_v2 = vld [vmem:[#allocation3 + $0x34] ss:$8 sps:$4 sm:$0xff]  }
 0x2c2   : > { %v1921_v6 = vpack.c.bf16 %v1888_v4, %v1884_v3  ;;  %2889 = vmatprep.subr.bf16.mxu0 %v10691_v2 }
 0x2c4   : > { %11254 = vtanh.bf16 %v1921_v6 }
 0x2c5   : > { %11256 = vtanh.bf16 %v1920_v5 }
 0x2c7   : > { %v11251_v8 = vpop.eup %11250 }
 0x2c8   : > { %v11253_v60 = vpop.eup %11252  ;;  %2330 = vmatprep.mubr.bf16.mxu0 %v11251_v8 }
 0x2c9   : > { %2331 = vmatmul.mubr.bf16.gmra.mrb[120].mxu0 %v11253_v60  ;;  %v10689_v60 = vld [vmem:[#allocation3 + $0x30] ss:$8 sps:$4 sm:$0xff]  }
 0x2ca   : > { %2890 = vmatpush1.bf16.msra.mxu0 %v10689_v60 }
 0x2cb   : > { %2891 = vmatprep.subr.bf16.mxu0 %v10694_v9 }
 0x2ce   : > { %2892 = vmatpush1.bf16.msra.mxu0 %v10692_v15 }
 0x2cf   : > { %v11255_v41 = vpop.eup %11254  ;;  %2893 = vmatprep.subr.bf16.mxu0 %v10697_v20  ;;  %v1061_v20 = vld [vmem:[#allocation2 + $0x50] sm:$0xff] }
 0x2d0   : > { %v11257_v10 = vpop.eup %11256  ;;  %2340 = vmatprep.mubr.bf16.mxu0 %v11255_v41 }
 0x2d1   : > { %2341 = vmatmul.mubr.bf16.gmra.mrb[124].mxu0 %v11257_v10 }
 0x2d2   : > { %2915 = vmatprep.mubr.bf16.mxu0 %v13110_v11 }
 0x32c   : > { %v2192_v25 = vpop.f32.mrb[64].mxu0 }
 0x32d   : > { %v2194_v29 = vpop.f32.mrb[65].mxu0  ;;  %v2193_v32 = vadd.f32 %v2192_v25, %v13139_v24 }
 0x32e   : > { %v2196_v31 = vpop.f32.mrb[66].mxu0  ;;  %v2195_v35 = vadd.f32 %v2194_v29, %v13142_v26  ;;  %v10695_v29 = vld [vmem:[#allocation3 + $0x50] ss:$8 sps:$4 sm:$0xff]  }
 0x32f   : > { %v2197_v33 = vadd.f32 %v2196_v31, %v13139_v24  ;;  %v2198_v34 = vpop.f32.mrb[67].mxu0  ;;  %2894 = vmatpush1.bf16.msra.mxu0 %v10695_v29 }
 0x330   : > { %v2199_v36 = vadd.f32 %v2198_v34, %v13142_v26  ;;  %2895 = vmatprep.subr.bf16.mxu0 %v10700_v30 }
 0x331   : > { %v2351_v37 = vpack.c.bf16 %v2197_v33, %v2193_v32 }
 0x332   : > { %v2352_v38 = vpack.c.bf16 %v2199_v36, %v2195_v35  ;;  %v1055_v35 = vld [vmem:[#allocation2 + $0x20] sm:$0xff] }
 0x333   : > { %11258 = vtanh.bf16 %v2351_v37  ;;  %v10698_v36 = vld [vmem:[#allocation3 + $0x60] ss:$8 sps:$4 sm:$0xff]  }
 0x334   : > { %11260 = vtanh.bf16 %v2352_v38  ;;  %v2202_v39 = vpop.f32.mrb[68].mxu0  ;;  %2896 = vmatpush1.bf16.msra.mxu0 %v10698_v36 }
 0x335   : > { %v2204_v58 = vpop.f32.mrb[69].mxu0  ;;  %v2203_v42 = vadd.f32 %v2202_v39, %v13139_v24 }
 0x336   : > { %v2206_v40 = vpop.f32.mrb[70].mxu0  ;;  %v2205_v45 = vadd.f32 %v2204_v58, %v13142_v26 }
 0x337   : > { %v2207_v43 = vadd.f32 %v2206_v40, %v13139_v24  ;;  %v2208_v44 = vpop.f32.mrb[71].mxu0 }
 0x338   : > { %v2209_v46 = vadd.f32 %v2208_v44, %v13142_v26 }
 0x339   : > { %v2353_v47 = vpack.c.bf16 %v2207_v43, %v2203_v42 }
 0x33a   : > { %v2354_v48 = vpack.c.bf16 %v2209_v46, %v2205_v45 }
 0x33b   : > { %11262 = vtanh.bf16 %v2353_v47 }
 0x33c   : > { %11264 = vtanh.bf16 %v2354_v48  ;;  %v2212_v51 = vpop.f32.mrb[72].mxu0 }
 0x33d   : > { %v2214_v53 = vpop.f32.mrb[73].mxu0  ;;  %v2213_v63 = vadd.f32 %v2212_v51, %v13139_v24  ;;  %v1057_v51 = vld [vmem:[#allocation2 + $0x30] sm:$0xff] }
 0x33e   : > { %v11259_v54 = vpop.eup %11258  ;;  %v2216_v57 = vpop.f32.mrb[74].mxu0  ;;  %v2215_v3 = vadd.f32 %v2214_v53, %v13142_v26 }
 0x33f   : > { %v11261_v62 = vpop.eup %11260  ;;  %v2217_v0 = vadd.f32 %v2216_v57, %v13139_v24  ;;  %v2218_v1 = vpop.f32.mrb[75].mxu0  ;;  %v2415_v7 = vadd.bf16 %v11259_v54, %v1051_v59 }
 0x340   : > { %v2219_v4 = vadd.f32 %v2218_v1, %v13142_v26  ;;  %v2416_v5 = vadd.bf16 %v13110_v11, %v11261_v62 }
 0x341   : > { %v2355_v6 = vpack.c.bf16 %v2217_v0, %v2213_v63 }
 0x342   : > { %v2356_v8 = vpack.c.bf16 %v2219_v4, %v2215_v3  ;;  %2614 = vmatprep.mubr.bf16.mxu1 %v2416_v5 }
 0x343   : > { %11266 = vtanh.bf16 %v2355_v6  ;;  %2615 = vmatmul.mubr.bf16.vlgmr.msra.gmra.mrb[64].mxu1 %v2415_v7  ;;  %v1059_v6 = vld [vmem:[#allocation2 + $0x40] sm:$0xff] }
 0x344   : > { %11268 = vtanh.bf16 %v2356_v8  ;;  %v2222_v41 = vpop.f32.mrb[76].mxu0 }
 0x345   : > { %v2224_v10 = vpop.f32.mrb[77].mxu0  ;;  %v2223_v17 = vadd.f32 %v2222_v41, %v13139_v24 }
 0x346   : > { %v11263_v12 = vpop.eup %11262  ;;  %v2226_v13 = vpop.f32.mrb[78].mxu0  ;;  %v2225_v21 = vadd.f32 %v2224_v10, %v13142_v26 }
 0x347   : > { %v11265_v16 = vpop.eup %11264  ;;  %v2227_v18 = vadd.f32 %v2226_v13, %v13139_v24  ;;  %v2228_v19 = vpop.f32.mrb[79].mxu0  ;;  %v2417_v27 = vadd.bf16 %v11263_v12, %v1053_v14 }
 0x348   : > { %v2229_v22 = vadd.f32 %v2228_v19, %v13142_v26  ;;  %v2418_v23 = vadd.bf16 %v13110_v11, %v11265_v16 }
 0x349   : > { %v2357_v25 = vpack.c.bf16 %v2227_v18, %v2223_v17 }
 0x34a   : > { %v2358_v28 = vpack.c.bf16 %v2229_v22, %v2225_v21  ;;  %2622 = vmatprep.mubr.bf16.mxu1 %v2418_v23 }
 0x34b   : > { %11270 = vtanh.bf16 %v2357_v25  ;;  %2623 = vmatmul.mubr.bf16.gmra.mrb[68].mxu1 %v2417_v27 }
 0x34c   : > { %11272 = vtanh.bf16 %v2358_v28  ;;  %v2232_v31 = vpop.f32.mrb[80].mxu0 }
 0x34d   : > { %v2234_v32 = vpop.f32.mrb[81].mxu0  ;;  %v2233_v38 = vadd.f32 %v2232_v31, %v13139_v24 }
 0x34e   : > { %v11267_v33 = vpop.eup %11266  ;;  %v2236_v34 = vpop.f32.mrb[82].mxu0  ;;  %v2235_v40 = vadd.f32 %v2234_v32, %v13142_v26 }
 0x34f   : > { %v11269_v37 = vpop.eup %11268  ;;  %v2237_v39 = vadd.f32 %v2236_v34, %v13139_v24  ;;  %v2238_v58 = vpop.f32.mrb[83].mxu0  ;;  %v2419_v45 = vadd.bf16 %v11267_v33, %v1055_v35 }
 0x350   : > { %v2239_v42 = vadd.f32 %v2238_v58, %v13142_v26  ;;  %v2420_v43 = vadd.bf16 %v13110_v11, %v11269_v37  ;;  %v1063_v37 = vld [vmem:[#allocation2 + $0x60] sm:$0xff] }
 0x351   : > { %v2359_v44 = vpack.c.bf16 %v2237_v39, %v2233_v38 }
 0x352   : > { %v2360_v46 = vpack.c.bf16 %v2239_v42, %v2235_v40  ;;  %2630 = vmatprep.mubr.bf16.mxu1 %v2420_v43 }
 0x353   : > { %11274 = vtanh.bf16 %v2359_v44  ;;  %2631 = vmatmul.mubr.bf16.gmra.mrb[72].mxu1 %v2419_v45 }
 0x354   : > { %11276 = vtanh.bf16 %v2360_v46  ;;  %v2242_v47 = vpop.f32.mrb[84].mxu0 }
 0x355   : > { %v2244_v48 = vpop.f32.mrb[85].mxu0  ;;  %v2243_v53 = vadd.f32 %v2242_v47, %v13139_v24 }
 0x356   : > { %v11271_v49 = vpop.eup %11270  ;;  %v2246_v50 = vpop.f32.mrb[86].mxu0  ;;  %v2245_v59 = vadd.f32 %v2244_v48, %v13142_v26 }
 0x357   : > { %v11273_v52 = vpop.eup %11272  ;;  %v2247_v54 = vadd.f32 %v2246_v50, %v13139_v24  ;;  %v2248_v57 = vpop.f32.mrb[87].mxu0  ;;  %v2421_v0 = vadd.bf16 %v11271_v49, %v1057_v51 }
 0x358   : > { %v2249_v61 = vadd.f32 %v2248_v57, %v13142_v26  ;;  %v2422_v62 = vadd.bf16 %v13110_v11, %v11273_v52  ;;  %v1065_v52 = vld [vmem:[#allocation2 + $0x70] sm:$0xff] }
 0x359   : > { %v2361_v63 = vpack.c.bf16 %v2247_v54, %v2243_v53 }
 0x35a   : > { %v2362_v1 = vpack.c.bf16 %v2249_v61, %v2245_v59  ;;  %2638 = vmatprep.mubr.bf16.mxu1 %v2422_v62 }
 0x35b   : > { %11278 = vtanh.bf16 %v2361_v63  ;;  %2639 = vmatmul.mubr.bf16.gmra.mrb[76].mxu1 %v2421_v0 }
 0x35c   : > { %11280 = vtanh.bf16 %v2362_v1  ;;  %v2252_v2 = vpop.f32.mrb[88].mxu0 }
 0x35d   : > { %v2254_v3 = vpop.f32.mrb[89].mxu0  ;;  %v2253_v8 = vadd.f32 %v2252_v2, %v13139_v24 }
 0x35e   : > { %v11275_v4 = vpop.eup %11274  ;;  %v2256_v5 = vpop.f32.mrb[90].mxu0  ;;  %v2255_v41 = vadd.f32 %v2254_v3, %v13142_v26 }
 0x35f   : > { %v11277_v7 = vpop.eup %11276  ;;  %v2257_v60 = vadd.f32 %v2256_v5, %v13139_v24  ;;  %v2258_v9 = vpop.f32.mrb[91].mxu0  ;;  %v2423_v14 = vadd.bf16 %v11275_v4, %v1059_v6 }
 0x360   : > { %v2259_v10 = vadd.f32 %v2258_v9, %v13142_v26  ;;  %v2424_v12 = vadd.bf16 %v13110_v11, %v11277_v7  ;;  %v1067_v7 = vld [vmem:[#allocation2 + $0x80] sm:$0xff] }
 0x361   : > { %v2363_v13 = vpack.c.bf16 %v2257_v60, %v2253_v8 }
 0x362   : > { %v2364_v15 = vpack.c.bf16 %v2259_v10, %v2255_v41  ;;  %2646 = vmatprep.mubr.bf16.mxu1 %v2424_v12 }
 0x363   : > { %11282 = vtanh.bf16 %v2363_v13  ;;  %2647 = vmatmul.mubr.bf16.gmra.mrb[80].mxu1 %v2423_v14 }
 0x364   : > { %11284 = vtanh.bf16 %v2364_v15  ;;  %v2262_v16 = vpop.f32.mrb[92].mxu0 }
 0x365   : > { %v2264_v17 = vpop.f32.mrb[93].mxu0  ;;  %v2263_v22 = vadd.f32 %v2262_v16, %v13139_v24 }
 0x366   : > { %v11279_v18 = vpop.eup %11278  ;;  %v2266_v19 = vpop.f32.mrb[94].mxu0  ;;  %v2265_v27 = vadd.f32 %v2264_v17, %v13142_v26 }
 0x367   : > { %v11281_v21 = vpop.eup %11280  ;;  %v2267_v23 = vadd.f32 %v2266_v19, %v13139_v24  ;;  %v2268_v25 = vpop.f32.mrb[95].mxu0  ;;  %v2425_v31 = vadd.bf16 %v11279_v18, %v1061_v20 }
 0x368   : > { %v2269_v28 = vadd.f32 %v2268_v25, %v13142_v26  ;;  %v2426_v29 = vadd.bf16 %v13110_v11, %v11281_v21  ;;  %v1069_v21 = vld [vmem:[#allocation2 + $0x90] sm:$0xff] }
 0x369   : > { %v2365_v30 = vpack.c.bf16 %v2267_v23, %v2263_v22 }
 0x36a   : > { %v2366_v32 = vpack.c.bf16 %v2269_v28, %v2265_v27  ;;  %2654 = vmatprep.mubr.bf16.mxu1 %v2426_v29 }
 0x36b   : > { %11286 = vtanh.bf16 %v2365_v30  ;;  %2655 = vmatmul.mubr.bf16.gmra.mrb[84].mxu1 %v2425_v31 }
 0x36c   : > { %11288 = vtanh.bf16 %v2366_v32  ;;  %v2272_v33 = vpop.f32.mrb[96].mxu0 }
 0x36d   : > { %v2274_v34 = vpop.f32.mrb[97].mxu0  ;;  %v2273_v39 = vadd.f32 %v2272_v33, %v13139_v24 }
 0x36e   : > { %v11283_v35 = vpop.eup %11282  ;;  %v2276_v36 = vpop.f32.mrb[98].mxu0  ;;  %v2275_v42 = vadd.f32 %v2274_v34, %v13142_v26 }
 0x36f   : > { %v11285_v38 = vpop.eup %11284  ;;  %v2277_v58 = vadd.f32 %v2276_v36, %v13139_v24  ;;  %v2278_v40 = vpop.f32.mrb[99].mxu0  ;;  %v2427_v46 = vadd.bf16 %v11283_v35, %v1063_v37 }
 0x370   : > { %v2279_v43 = vadd.f32 %v2278_v40, %v13142_v26  ;;  %v2428_v44 = vadd.bf16 %v13110_v11, %v11285_v38  ;;  %v1071_v38 = vld [vmem:[#allocation2 + $0xa0] sm:$0xff] }
 0x371   : > { %v2367_v45 = vpack.c.bf16 %v2277_v58, %v2273_v39 }
 0x372   : > { %v2368_v47 = vpack.c.bf16 %v2279_v43, %v2275_v42  ;;  %2662 = vmatprep.mubr.bf16.mxu1 %v2428_v44 }
 0x373   : > { %11290 = vtanh.bf16 %v2367_v45  ;;  %2663 = vmatmul.mubr.bf16.gmra.mrb[88].mxu1 %v2427_v46 }
 0x374   : > { %11292 = vtanh.bf16 %v2368_v47  ;;  %v2282_v48 = vpop.f32.mrb[100].mxu0 }
 0x375   : > { %v2284_v49 = vpop.f32.mrb[101].mxu0  ;;  %v2283_v54 = vadd.f32 %v2282_v48, %v13139_v24 }
 0x376   : > { %v11287_v50 = vpop.eup %11286  ;;  %v2286_v51 = vpop.f32.mrb[102].mxu0  ;;  %v2285_v61 = vadd.f32 %v2284_v49, %v13142_v26 }
 0x377   : > { %v11289_v53 = vpop.eup %11288  ;;  %v2287_v57 = vadd.f32 %v2286_v51, %v13139_v24  ;;  %v2288_v59 = vpop.f32.mrb[103].mxu0  ;;  %v2429_v1 = vadd.bf16 %v11287_v50, %v1065_v52 }
 0x378   : > { %v2289_v62 = vadd.f32 %v2288_v59, %v13142_v26  ;;  %v2430_v63 = vadd.bf16 %v13110_v11, %v11289_v53  ;;  %v1073_v53 = vld [vmem:[#allocation2 + $0xb0] sm:$0xff] }
 0x379   : > { %v2369_v0 = vpack.c.bf16 %v2287_v57, %v2283_v54 }
 0x37a   : > { %v2370_v2 = vpack.c.bf16 %v2289_v62, %v2285_v61  ;;  %2670 = vmatprep.mubr.bf16.mxu1 %v2430_v63 }
 0x37b   : > { %11294 = vtanh.bf16 %v2369_v0  ;;  %2671 = vmatmul.mubr.bf16.gmra.mrb[92].mxu1 %v2429_v1 }
 0x37c   : > { %11296 = vtanh.bf16 %v2370_v2  ;;  %v2292_v3 = vpop.f32.mrb[104].mxu0 }
 0x37d   : > { %v2294_v4 = vpop.f32.mrb[105].mxu0  ;;  %v2293_v60 = vadd.f32 %v2292_v3, %v13139_v24 }
 0x37e   : > { %v11291_v5 = vpop.eup %11290  ;;  %v2296_v6 = vpop.f32.mrb[106].mxu0  ;;  %v2295_v10 = vadd.f32 %v2294_v4, %v13142_v26 }
 0x37f   : > { %v11293_v8 = vpop.eup %11292  ;;  %v2297_v9 = vadd.f32 %v2296_v6, %v13139_v24  ;;  %v2298_v41 = vpop.f32.mrb[107].mxu0  ;;  %v2431_v15 = vadd.bf16 %v11291_v5, %v1067_v7 }
 0x380   : > { %v2299_v12 = vadd.f32 %v2298_v41, %v13142_v26  ;;  %v2432_v13 = vadd.bf16 %v13110_v11, %v11293_v8  ;;  %v1075_v8 = vld [vmem:[#allocation2 + $0xc0] sm:$0xff] }
 0x381   : > { %v2371_v14 = vpack.c.bf16 %v2297_v9, %v2293_v60 }
 0x382   : > { %v2372_v16 = vpack.c.bf16 %v2299_v12, %v2295_v10  ;;  %2678 = vmatprep.mubr.bf16.mxu1 %v2432_v13 }
 0x383   : > { %11298 = vtanh.bf16 %v2371_v14  ;;  %2679 = vmatmul.mubr.bf16.gmra.mrb[96].mxu1 %v2431_v15  ;;  %v10701_v15 = vld [vmem:[#allocation3 + $0x70] ss:$8 sps:$4 sm:$0xff]  }
 0x384   : > { %11300 = vtanh.bf16 %v2372_v16  ;;  %v2302_v17 = vpop.f32.mrb[108].mxu0  ;;  %v10703_v16 = vld [vmem:[#allocation3 + $0x74] ss:$8 sps:$4 sm:$0xff]  }
 0x385   : > { %v2304_v18 = vpop.f32.mrb[109].mxu0  ;;  %v2303_v23 = vadd.f32 %v2302_v17, %v13139_v24  ;;  %2897 = vmatprep.subr.bf16.mxu0 %v10703_v16 }
 0x386   : > { %v11295_v19 = vpop.eup %11294  ;;  %v2306_v20 = vpop.f32.mrb[110].mxu0  ;;  %v2305_v28 = vadd.f32 %v2304_v18, %v13142_v26  ;;  %2898 = vmatpush1.bf16.msra.mxu0 %v10701_v15 }
 0x387   : > { %v11297_v22 = vpop.eup %11296  ;;  %v2307_v25 = vadd.f32 %v2306_v20, %v13139_v24  ;;  %v2308_v27 = vpop.f32.mrb[111].mxu0  ;;  %v2433_v32 = vadd.bf16 %v11295_v19, %v1069_v21 }
 0x388   : > { %v2309_v29 = vadd.f32 %v2308_v27, %v13142_v26  ;;  %v2434_v30 = vadd.bf16 %v13110_v11, %v11297_v22 }
 0x389   : > { %v2373_v31 = vpack.c.bf16 %v2307_v25, %v2303_v23  ;;  %v1077_v25 = vld [vmem:[#allocation2 + $0xd0] sm:$0xff] }
 0x38a   : > { %v2374_v33 = vpack.c.bf16 %v2309_v29, %v2305_v28  ;;  %2686 = vmatprep.mubr.bf16.mxu1 %v2434_v30 }
 0x38b   : > { %11302 = vtanh.bf16 %v2373_v31  ;;  %2687 = vmatmul.mubr.bf16.gmra.mrb[100].mxu1 %v2433_v32 }
 0x38c   : > { %11304 = vtanh.bf16 %v2374_v33  ;;  %v2312_v34 = vpop.f32.mrb[112].mxu0 }
 0x38d   : > { %v2314_v35 = vpop.f32.mrb[113].mxu0  ;;  %v2313_v58 = vadd.f32 %v2312_v34, %v13139_v24 }
 0x38e   : > { %v11299_v36 = vpop.eup %11298  ;;  %v2316_v37 = vpop.f32.mrb[114].mxu0  ;;  %v2315_v43 = vadd.f32 %v2314_v35, %v13142_v26 }
 0x38f   : > { %v11301_v39 = vpop.eup %11300  ;;  %v2317_v40 = vadd.f32 %v2316_v37, %v13139_v24  ;;  %v2318_v42 = vpop.f32.mrb[115].mxu0  ;;  %v2435_v47 = vadd.bf16 %v11299_v36, %v1071_v38  ;;  %v1079_v38 = vld [vmem:[#allocation2 + $0xe0] sm:$0xff] }
 0x390   : > { %v2319_v44 = vadd.f32 %v2318_v42, %v13142_v26  ;;  %v2436_v45 = vadd.bf16 %v13110_v11, %v11301_v39  ;;  %v1081_v42 = vld [vmem:[#allocation2 + $0xf0] sm:$0xff] }
 0x391   : > { %v2375_v46 = vpack.c.bf16 %v2317_v40, %v2313_v58 }
 0x392   : > { %v2376_v48 = vpack.c.bf16 %v2319_v44, %v2315_v43  ;;  %2694 = vmatprep.mubr.bf16.mxu1 %v2436_v45 }
 0x393   : > { %11306 = vtanh.bf16 %v2375_v46  ;;  %2695 = vmatmul.mubr.bf16.gmra.mrb[104].mxu1 %v2435_v47 }
 0x394   : > { %11308 = vtanh.bf16 %v2376_v48  ;;  %v2322_v49 = vpop.f32.mrb[116].mxu0 }
 0x395   : > { %v2324_v50 = vpop.f32.mrb[117].mxu0  ;;  %v2323_v57 = vadd.f32 %v2322_v49, %v13139_v24  ;;  %v10704_v49 = vld [vmem:[#allocation5] ss:$8 sps:$4 sm:$0xff]  }
 0x396   : > { %v11303_v51 = vpop.eup %11302  ;;  %v2326_v52 = vpop.f32.mrb[118].mxu0  ;;  %v2325_v62 = vadd.f32 %v2324_v50, %v13142_v26  ;;  %v10706_v50 = vld [vmem:[#allocation5 + $0x4] ss:$8 sps:$4 sm:$0xff]  }
 0x397   : > { %v11305_v54 = vpop.eup %11304  ;;  %v2327_v59 = vadd.f32 %v2326_v52, %v13139_v24  ;;  %v2328_v61 = vpop.f32.mrb[119].mxu0  ;;  %v2437_v2 = vadd.bf16 %v11303_v51, %v1073_v53  ;;  %v13229_v51 = vld [vmem:[%s15238_s8] ss:$0 sm:$0xff]  ;;  %v10709_v53 = vld [vmem:[#allocation5 + $0x14] ss:$8 sps:$4 sm:$0xff]   ;;  %3344 = vmatprep.subr.bf16.mxu1 %v10706_v50 }
 0x398   : > { %v2329_v63 = vadd.f32 %v2328_v61, %v13142_v26  ;;  %v2438_v0 = vadd.bf16 %v13110_v11, %v11305_v54  ;;  %3345 = vmatpush1.bf16.msra.mxu1 %v10704_v49  ;;  %v10731_v49 = vld [vmem:[#allocation5 + $0x90] ss:$8 sps:$4 sm:$0xff]  }
 0x399   : > { %v2377_v1 = vpack.c.bf16 %v2327_v59, %v2323_v57  ;;  %v10707_v57 = vld [vmem:[#allocation5 + $0x10] ss:$8 sps:$4 sm:$0xff]   ;;  %3346 = vmatprep.subr.bf16.mxu1 %v10709_v53  ;;  %v10736_v53 = vld [vmem:[#allocation5 + $0xa4] ss:$8 sps:$4 sm:$0xff]  }
 0x39a   : > { %v2378_v3 = vpack.c.bf16 %v2329_v63, %v2325_v62  ;;  %2702 = vmatprep.mubr.bf16.mxu1 %v2438_v0  ;;  %v10712_v62 = vld [vmem:[#allocation5 + $0x24] ss:$8 sps:$4 sm:$0xff]  }
 0x39b   : > { %11310 = vtanh.bf16 %v2377_v1  ;;  %2703 = vmatmul.mubr.bf16.gmra.mrb[108].mxu1 %v2437_v2  ;;  %v10710_v2 = vld [vmem:[#allocation5 + $0x20] ss:$8 sps:$4 sm:$0xff]  }
 0x39c   : > { %11312 = vtanh.bf16 %v2378_v3  ;;  %v2332_v4 = vpop.f32.mrb[120].mxu0  ;;  %3347 = vmatpush1.bf16.msra.mxu1 %v10707_v57 }
 0x39d   : > { %v2334_v5 = vpop.f32.mrb[121].mxu0  ;;  %v2333_v9 = vadd.f32 %v2332_v4, %v13139_v24  ;;  %3348 = vmatprep.subr.bf16.mxu1 %v10712_v62 }
 0x39e   : > { %v11307_v6 = vpop.eup %11306  ;;  %v2336_v7 = vpop.f32.mrb[122].mxu0  ;;  %v2335_v12 = vadd.f32 %v2334_v5, %v13142_v26 }
 0x39f   : > { %v11309_v60 = vpop.eup %11308  ;;  %v2337_v41 = vadd.f32 %v2336_v7, %v13139_v24  ;;  %v2338_v10 = vpop.f32.mrb[123].mxu0  ;;  %v2439_v18 = vadd.bf16 %v11307_v6, %v1075_v8 }
 0x3a0   : > { %v2339_v13 = vadd.f32 %v2338_v10, %v13142_v26  ;;  %v2440_v14 = vadd.bf16 %v13110_v11, %v11309_v60  ;;  %3349 = vmatpush1.bf16.msra.mxu1 %v10710_v2  ;;  %v10713_v60 = vld [vmem:[#allocation5 + $0x30] ss:$8 sps:$4 sm:$0xff]  }
 0x3a1   : > { %v2379_v17 = vpack.c.bf16 %v2337_v41, %v2333_v9  ;;  %v10715_v9 = vld [vmem:[#allocation5 + $0x34] ss:$8 sps:$4 sm:$0xff]   ;;  %v10718_v41 = vld [vmem:[#allocation5 + $0x44] ss:$8 sps:$4 sm:$0xff]  }
 0x3a2   : > { %v2380_v19 = vpack.c.bf16 %v2339_v13, %v2335_v12  ;;  %2710 = vmatprep.mubr.bf16.mxu1 %v2440_v14  ;;  %3350 = vmatprep.subr.bf16.mxu1 %v10715_v9  ;;  %v10716_v14 = vld [vmem:[#allocation5 + $0x40] ss:$8 sps:$4 sm:$0xff]  }
 0x3a3   : > { %11314 = vtanh.bf16 %v2379_v17  ;;  %2711 = vmatmul.mubr.bf16.gmra.mrb[112].mxu1 %v2439_v18  ;;  %v10721_v17 = vld [vmem:[#allocation5 + $0x54] ss:$8 sps:$4 sm:$0xff]  }
 0x3a4   : > { %11316 = vtanh.bf16 %v2380_v19  ;;  %v2342_v20 = vpop.f32.mrb[124].mxu0  ;;  %3351 = vmatpush1.bf16.msra.mxu1 %v10713_v60 }
 0x3a5   : > { %v2344_v21 = vpop.f32.mrb[125].mxu0  ;;  %v2343_v28 = vadd.f32 %v2342_v20, %v13139_v24  ;;  %3352 = vmatprep.subr.bf16.mxu1 %v10718_v41  ;;  %v10740_v41 = vld [vmem:[#allocation5 + $0xc0] ss:$8 sps:$4 sm:$0xff]  }
 0x3a6   : > { %v11311_v22 = vpop.eup %11310  ;;  %v2346_v23 = vpop.f32.mrb[126].mxu0  ;;  %v2345_v31 = vadd.f32 %v2344_v21, %v13142_v26  ;;  %v10719_v21 = vld [vmem:[#allocation5 + $0x50] ss:$8 sps:$4 sm:$0xff]  }
 0x3a7   : > { %v11313_v27 = vpop.eup %11312  ;;  %v2347_v29 = vadd.f32 %v2346_v23, %v13139_v24  ;;  %v2348_v30 = vpop.f32.mrb[127].mxu0  ;;  %v2441_v35 = vadd.bf16 %v11311_v22, %v1077_v25  ;;  %v10724_v25 = vld [vmem:[#allocation5 + $0x64] ss:$8 sps:$4 sm:$0xff]  }
 0x3a8   : > { %v2349_v32 = vadd.f32 %v2348_v30, %v13142_v26  ;;  %v2442_v33 = vadd.bf16 %v13110_v11, %v11313_v27  ;;  %3353 = vmatpush1.bf16.msra.mxu1 %v10716_v14  ;;  %v10722_v30 = vld [vmem:[#allocation5 + $0x60] ss:$8 sps:$4 sm:$0xff]  }
 0x3a9   : > { %v2381_v34 = vpack.c.bf16 %v2347_v29, %v2343_v28  ;;  %3354 = vmatprep.subr.bf16.mxu1 %v10721_v17  ;;  %v10743_v17 = vld [vmem:[#allocation5 + $0xd0] ss:$8 sps:$4 sm:$0xff]  }
 0x3aa   : > { %v2382_v36 = vpack.c.bf16 %v2349_v32, %v2345_v31  ;;  %2718 = vmatprep.mubr.bf16.mxu1 %v2442_v33  ;;  %v10727_v33 = vld [vmem:[#allocation5 + $0x74] ss:$8 sps:$4 sm:$0xff]  }
 0x3ab   : > { %11318 = vtanh.bf16 %v2381_v34  ;;  %2719 = vmatmul.mubr.bf16.gmra.mrb[116].mxu1 %v2441_v35 }
 0x3ac   : > { %11320 = vtanh.bf16 %v2382_v36  ;;  %3355 = vmatpush1.bf16.msra.mxu1 %v10719_v21 }
 0x3ad   : > { %3356 = vmatprep.subr.bf16.mxu1 %v10724_v25 }
 0x3ae   : > { %v11315_v37 = vpop.eup %11314 }
 0x3af   : > { %v11317_v39 = vpop.eup %11316  ;;  %v2443_v24 = vadd.bf16 %v11315_v37, %v1079_v38  ;;  %v10725_v37 = vld [vmem:[#allocation5 + $0x70] ss:$8 sps:$4 sm:$0xff]  }
 0x3b0   : > { %v2444_v58 = vadd.bf16 %v13110_v11, %v11317_v39  ;;  %3357 = vmatpush1.bf16.msra.mxu1 %v10722_v30 }
 0x3b1   : > { %3358 = vmatprep.subr.bf16.mxu1 %v10727_v33  ;;  %v13270_v33 = vld [vmem:[#allocation2 + $0x8] sm:$0xff] }
 0x3b2   : > { %2726 = vmatprep.mubr.bf16.mxu1 %v2444_v58  ;;  %v10730_v58 = vld [vmem:[#allocation5 + $0x84] ss:$8 sps:$4 sm:$0xff]  }
 0x3b3   : > { %2727 = vmatmul.mubr.bf16.gmra.mrb[120].mxu1 %v2443_v24 }
 0x3b4   : > { %3359 = vmatpush1.bf16.msra.mxu1 %v10725_v37 }
 0x3b5   : > { %3360 = vmatprep.subr.bf16.mxu1 %v10730_v58 }
 0x3b6   : > { %v11319_v40 = vpop.eup %11318 }
 0x3b7   : > { %v11321_v26 = vpop.eup %11320  ;;  %v2445_v44 = vadd.bf16 %v11319_v40, %v1081_v42 }
 0x3b8   : > { %v2446_v43 = vadd.bf16 %v13110_v11, %v11321_v26  ;;  %v10728_v26 = vld [vmem:[#allocation5 + $0x80] ss:$8 sps:$4 sm:$0xff]  }
 0x3b9   : > { %3361 = vmatpush1.bf16.msra.mxu1 %v10728_v26 }
 0x3ba   : > { %2734 = vmatprep.mubr.bf16.mxu1 %v2446_v43 }
 0x3bb   : > { %2735 = vmatmul.mubr.bf16.gmra.mrb[124].mxu1 %v2445_v44 }
 0x416   : > { %v9808_v45 = vpop.f32.mrb[64].mxu1 }
 0x417   : > { %v9809_v46 = vpop.f32.mrb[65].mxu1 }
 0x418   : > { %v9810_v47 = vadd.f32 %v9809_v46, %v9808_v45  ;;  %v9811_v48 = vpop.f32.mrb[66].mxu1  ;;  %v10733_v45 = vld [vmem:[#allocation5 + $0x94] ss:$8 sps:$4 sm:$0xff]  }
 0x419   : > { %v9812_v52 = vpop.f32.mrb[67].mxu1  ;;  %3362 = vmatprep.subr.bf16.mxu1 %v10733_v45 }
 0x41a   : > { %v9813_v54 = vadd.f32 %v9812_v52, %v9811_v48  ;;  %v2617_v59 = vadd.f32 %v9810_v47, %v13229_v51  ;;  %3363 = vmatpush1.bf16.msra.mxu1 %v10731_v49 }
 0x41b   : > { %3364 = vmatprep.subr.bf16.mxu1 %v10736_v53 }
 0x41c   : > { %v2620_v61 = vadd.f32 %v9813_v54, %v13229_v51 }
 0x41e   : > { %v2743_v63 = vpack.c.bf16 %v2620_v61, %v2617_v59  ;;  %v9814_v0 = vpop.f32.mrb[68].mxu1  ;;  %v10734_v61 = vld [vmem:[#allocation5 + $0xa0] ss:$8 sps:$4 sm:$0xff]  }
 0x41f   : > { %v9815_v1 = vpop.f32.mrb[69].mxu1  ;;  %3365 = vmatpush1.bf16.msra.mxu1 %v10734_v61 }
 0x420   : > { %11322 = vtanh.bf16 %v2743_v63  ;;  %v9816_v3 = vadd.f32 %v9815_v1, %v9814_v0  ;;  %v9817_v4 = vpop.f32.mrb[70].mxu1  ;;  %v10739_v0 = vld [vmem:[#allocation5 + $0xb4] ss:$8 sps:$4 sm:$0xff]  }
 0x421   : > { %v9818_v5 = vpop.f32.mrb[71].mxu1  ;;  %3366 = vmatprep.subr.bf16.mxu1 %v10739_v0 }
 0x422   : > { %v9819_v6 = vadd.f32 %v9818_v5, %v9817_v4  ;;  %v2625_v7 = vadd.f32 %v9816_v3, %v13229_v51  ;;  %v10737_v4 = vld [vmem:[#allocation5 + $0xb0] ss:$8 sps:$4 sm:$0xff]  }
 0x423   : > { %3367 = vmatpush1.bf16.msra.mxu1 %v10737_v4 }
 0x424   : > { %v2628_v8 = vadd.f32 %v9819_v6, %v13229_v51 }
 0x426   : > { %v2744_v10 = vpack.c.bf16 %v2628_v8, %v2625_v7  ;;  %v9820_v12 = vpop.f32.mrb[72].mxu1  ;;  %v10742_v7 = vld [vmem:[#allocation5 + $0xc4] ss:$8 sps:$4 sm:$0xff]  }
 0x427   : > { %v9821_v13 = vpop.f32.mrb[73].mxu1  ;;  %3368 = vmatprep.subr.bf16.mxu1 %v10742_v7 }
 0x428   : > { %11324 = vtanh.bf16 %v2744_v10  ;;  %v9822_v15 = vadd.f32 %v9821_v13, %v9820_v12  ;;  %v9823_v16 = vpop.f32.mrb[74].mxu1  ;;  %v10745_v13 = vld [vmem:[#allocation5 + $0xd4] ss:$8 sps:$4 sm:$0xff]   ;;  %3369 = vmatpush1.bf16.msra.mxu1 %v10740_v41 }
 0x429   : > { %v9824_v18 = vpop.f32.mrb[75].mxu1  ;;  %3370 = vmatprep.subr.bf16.mxu1 %v10745_v13 }
 0x42a   : > { %v9825_v19 = vadd.f32 %v9824_v18, %v9823_v16  ;;  %v2633_v22 = vadd.f32 %v9822_v15, %v13229_v51 }
 0x42b   : > { %v13235_v20 = vpop.eup %11322 }
 0x42c   : > { %v2636_v23 = vadd.f32 %v9825_v19, %v13229_v51  ;;  %2916 = vmatmul.mubr.bf16.vlgmr.msra.gmra.mrb[128].mxu0 %v13235_v20  ;;  %3371 = vmatpush1.bf16.msra.mxu1 %v10743_v17 }
 0x42d   : > { %2925 = vmatprep.mubr.bf16.mxu0 %v13110_v11 }
 0x42e   : > { %v2745_v27 = vpack.c.bf16 %v2636_v23, %v2633_v22  ;;  %v9826_v28 = vpop.f32.mrb[76].mxu1 }
 0x42f   : > { %v9827_v29 = vpop.f32.mrb[77].mxu1 }
 0x430   : > { %11326 = vtanh.bf16 %v2745_v27  ;;  %v9828_v31 = vadd.f32 %v9827_v29, %v9826_v28  ;;  %v9829_v32 = vpop.f32.mrb[78].mxu1 }
 0x431   : > { %v9830_v34 = vpop.f32.mrb[79].mxu1 }
 0x432   : > { %v9831_v35 = vadd.f32 %v9830_v34, %v9829_v32  ;;  %v2641_v38 = vadd.f32 %v9828_v31, %v13229_v51 }
 0x433   : > { %v13241_v36 = vpop.eup %11324 }
 0x434   : > { %v2644_v39 = vadd.f32 %v9831_v35, %v13229_v51  ;;  %2926 = vmatmul.mubr.bf16.gmra.mrb[132].mxu0 %v13241_v36 }
 0x435   : > { %2935 = vmatprep.mubr.bf16.mxu0 %v13110_v11 }
 0x436   : > { %v2746_v24 = vpack.c.bf16 %v2644_v39, %v2641_v38  ;;  %v9832_v40 = vpop.f32.mrb[80].mxu1 }
 0x437   : > { %v9833_v42 = vpop.f32.mrb[81].mxu1 }
 0x438   : > { %11328 = vtanh.bf16 %v2746_v24  ;;  %v9834_v43 = vadd.f32 %v9833_v42, %v9832_v40  ;;  %v9835_v44 = vpop.f32.mrb[82].mxu1 }
 0x439   : > { %v9836_v46 = vpop.f32.mrb[83].mxu1 }
 0x43a   : > { %v9837_v47 = vadd.f32 %v9836_v46, %v9835_v44  ;;  %v2649_v50 = vadd.f32 %v9834_v43, %v13229_v51 }
 0x43b   : > { %v13247_v48 = vpop.eup %11326 }
 0x43c   : > { %v2652_v52 = vadd.f32 %v9837_v47, %v13229_v51  ;;  %2936 = vmatmul.mubr.bf16.gmra.mrb[136].mxu0 %v13247_v48 }
 0x43d   : > { %2945 = vmatprep.mubr.bf16.mxu0 %v13110_v11 }
 0x43e   : > { %v2747_v54 = vpack.c.bf16 %v2652_v52, %v2649_v50  ;;  %v9838_v57 = vpop.f32.mrb[84].mxu1 }
 0x43f   : > { %v9839_v59 = vpop.f32.mrb[85].mxu1 }
 0x440   : > { %11330 = vtanh.bf16 %v2747_v54  ;;  %v9840_v62 = vadd.f32 %v9839_v59, %v9838_v57  ;;  %v9841_v63 = vpop.f32.mrb[86].mxu1 }
 0x441   : > { %v9842_v1 = vpop.f32.mrb[87].mxu1 }
 0x442   : > { %v9843_v2 = vadd.f32 %v9842_v1, %v9841_v63  ;;  %v2657_v5 = vadd.f32 %v9840_v62, %v13229_v51 }
 0x443   : > { %v13253_v3 = vpop.eup %11328 }
 0x444   : > { %v2660_v6 = vadd.f32 %v9843_v2, %v13229_v51  ;;  %2946 = vmatmul.mubr.bf16.gmra.mrb[140].mxu0 %v13253_v3 }
 0x445   : > { %2955 = vmatprep.mubr.bf16.mxu0 %v13110_v11 }
 0x446   : > { %v2748_v8 = vpack.c.bf16 %v2660_v6, %v2657_v5  ;;  %v9844_v60 = vpop.f32.mrb[88].mxu1 }
 0x447   : > { %v9845_v9 = vpop.f32.mrb[89].mxu1 }
 0x448   : > { %11332 = vtanh.bf16 %v2748_v8  ;;  %v9846_v10 = vadd.f32 %v9845_v9, %v9844_v60  ;;  %v9847_v12 = vpop.f32.mrb[90].mxu1 }
 0x449   : > { %v9848_v14 = vpop.f32.mrb[91].mxu1 }
 0x44a   : > { %v9849_v15 = vadd.f32 %v9848_v14, %v9847_v12  ;;  %v2665_v18 = vadd.f32 %v9846_v10, %v13229_v51 }
 0x44b   : > { %v13259_v16 = vpop.eup %11330 }
 0x44c   : > { %v2668_v19 = vadd.f32 %v9849_v15, %v13229_v51  ;;  %2956 = vmatmul.mubr.bf16.gmra.mrb[144].mxu0 %v13259_v16 }
 0x44d   : > { %2965 = vmatprep.mubr.bf16.mxu0 %v13110_v11 }
 0x44e   : > { %v2749_v21 = vpack.c.bf16 %v2668_v19, %v2665_v18  ;;  %v9850_v22 = vpop.f32.mrb[92].mxu1 }
 0x44f   : > { %v9851_v23 = vpop.f32.mrb[93].mxu1 }
 0x450   : > { %11334 = vtanh.bf16 %v2749_v21  ;;  %v9852_v25 = vadd.f32 %v9851_v23, %v9850_v22  ;;  %v9853_v27 = vpop.f32.mrb[94].mxu1 }
 0x451   : > { %v9854_v28 = vpop.f32.mrb[95].mxu1 }
 0x452   : > { %v9855_v29 = vadd.f32 %v9854_v28, %v9853_v27  ;;  %v2673_v31 = vadd.f32 %v9852_v25, %v13229_v51 }
 0x453   : > { %v13265_v30 = vpop.eup %11332 }
 0x454   : > { %v2676_v32 = vadd.f32 %v9855_v29, %v13229_v51  ;;  %2966 = vmatmul.mubr.bf16.gmra.mrb[148].mxu0 %v13265_v30 }
 0x455   : > { %2975 = vmatprep.mubr.bf16.mxu0 %v13270_v33 }
 0x456   : > { %v2750_v11 = vpack.c.bf16 %v2676_v32, %v2673_v31  ;;  %v9856_v34 = vpop.f32.mrb[96].mxu1 }
 0x457   : > { %v9857_v35 = vpop.f32.mrb[97].mxu1 }
 0x458   : > { %11336 = vtanh.bf16 %v2750_v11  ;;  %v9858_v37 = vadd.f32 %v9857_v35, %v9856_v34  ;;  %v9859_v38 = vpop.f32.mrb[98].mxu1 }
 0x459   : > { %v9860_v39 = vpop.f32.mrb[99].mxu1 }
 0x45a   : > { %v9861_v58 = vadd.f32 %v9860_v39, %v9859_v38  ;;  %v2681_v40 = vadd.f32 %v9858_v37, %v13229_v51 }
 0x45b   : > { %v13273_v24 = vpop.eup %11334 }
 0x45c   : > { %v2684_v42 = vadd.f32 %v9861_v58, %v13229_v51  ;;  %2976 = vmatmul.mubr.bf16.gmra.mrb[152].mxu0 %v13273_v24 }
 0x45d   : > { %2985 = vmatprep.mubr.bf16.mxu0 %v13270_v33 }
 0x45e   : > { %v2751_v26 = vpack.c.bf16 %v2684_v42, %v2681_v40  ;;  %v9862_v43 = vpop.f32.mrb[100].mxu1 }
 0x45f   : > { %v9863_v44 = vpop.f32.mrb[101].mxu1 }
 0x460   : > { %11338 = vtanh.bf16 %v2751_v26  ;;  %v9864_v45 = vadd.f32 %v9863_v44, %v9862_v43  ;;  %v9865_v46 = vpop.f32.mrb[102].mxu1  ;;  %v10746_v26 = vld [vmem:[#allocation5 + $0xe0] ss:$8 sps:$4 sm:$0xff]   ;;  %v10748_v43 = vld [vmem:[#allocation5 + $0xe4] ss:$8 sps:$4 sm:$0xff]  }
 0x461   : > { %v9866_v47 = vpop.f32.mrb[103].mxu1  ;;  %3372 = vmatprep.subr.bf16.mxu1 %v10748_v43  ;;  %v10756_v43 = vld [vmem:[#allocation7 + $0x50] sm:$0xff]  }
 0x462   : > { %v9867_v49 = vadd.f32 %v9866_v47, %v9865_v46  ;;  %v2689_v52 = vadd.f32 %v9864_v45, %v13229_v51  ;;  %3373 = vmatpush1.bf16.msra.mxu1 %v10746_v26 }
 0x463   : > { %v13279_v50 = vpop.eup %11336 }
 0x464   : > { %v2692_v53 = vadd.f32 %v9867_v49, %v13229_v51  ;;  %2986 = vmatmul.mubr.bf16.gmra.mrb[156].mxu0 %v13279_v50 }
 0x465   : > { %2995 = vmatprep.mubr.bf16.mxu0 %v13270_v33 }
 0x466   : > { %v2752_v54 = vpack.c.bf16 %v2692_v53, %v2689_v52  ;;  %v9868_v57 = vpop.f32.mrb[104].mxu1 }
 0x467   : > { %v9869_v59 = vpop.f32.mrb[105].mxu1 }
 0x468   : > { %11340 = vtanh.bf16 %v2752_v54  ;;  %v9870_v61 = vadd.f32 %v9869_v59, %v9868_v57  ;;  %v9871_v62 = vpop.f32.mrb[106].mxu1  ;;  %v10751_v59 = vld [vmem:[#allocation5 + $0xf4] ss:$8 sps:$4 sm:$0xff]  }
 0x469   : > { %v9872_v63 = vpop.f32.mrb[107].mxu1  ;;  %3374 = vmatprep.subr.bf16.mxu1 %v10751_v59 }
 0x46a   : > { %v9873_v0 = vadd.f32 %v9872_v63, %v9871_v62  ;;  %v2697_v2 = vadd.f32 %v9870_v61, %v13229_v51  ;;  %v10749_v62 = vld [vmem:[#allocation5 + $0xf0] ss:$8 sps:$4 sm:$0xff]  }
 0x46b   : > { %v13285_v1 = vpop.eup %11338  ;;  %3375 = vmatpush1.bf16.msra.mxu1 %v10749_v62 }
 0x46c   : > { %v2700_v4 = vadd.f32 %v9873_v0, %v13229_v51  ;;  %2996 = vmatmul.mubr.bf16.gmra.mrb[160].mxu0 %v13285_v1 }
 0x46d   : > { %3005 = vmatprep.mubr.bf16.mxu0 %v13270_v33 }
 0x46e   : > { %v2753_v5 = vpack.c.bf16 %v2700_v4, %v2697_v2  ;;  %v9874_v6 = vpop.f32.mrb[108].mxu1 }
 0x46f   : > { %v9875_v7 = vpop.f32.mrb[109].mxu1 }
 0x470   : > { %11342 = vtanh.bf16 %v2753_v5  ;;  %v9876_v8 = vadd.f32 %v9875_v7, %v9874_v6  ;;  %v9877_v60 = vpop.f32.mrb[110].mxu1 }
 0x471   : > { %v9878_v9 = vpop.f32.mrb[111].mxu1 }
 0x472   : > { %v9879_v41 = vadd.f32 %v9878_v9, %v9877_v60  ;;  %v2705_v12 = vadd.f32 %v9876_v8, %v13229_v51 }
 0x473   : > { %v13291_v10 = vpop.eup %11340 }
 0x474   : > { %v2708_v13 = vadd.f32 %v9879_v41, %v13229_v51  ;;  %3006 = vmatmul.mubr.bf16.gmra.mrb[164].mxu0 %v13291_v10 }
 0x475   : > { %3015 = vmatprep.mubr.bf16.mxu0 %v13270_v33 }
 0x476   : > { %v2754_v14 = vpack.c.bf16 %v2708_v13, %v2705_v12  ;;  %v9880_v15 = vpop.f32.mrb[112].mxu1 }
 0x477   : > { %v9881_v17 = vpop.f32.mrb[113].mxu1 }
 0x478   : > { %11344 = vtanh.bf16 %v2754_v14  ;;  %v9882_v18 = vadd.f32 %v9881_v17, %v9880_v15  ;;  %v9883_v19 = vpop.f32.mrb[114].mxu1  ;;  %v10752_v14 = vld [vmem:[#allocation7 + $0x40] sm:$0xff]  }
 0x479   : > { %v9884_v21 = vpop.f32.mrb[115].mxu1  ;;  %v10753_v15 = vld [vmem:[#allocation7] sm:$0xff]   ;;  %9904 = vmatprep.subr.bf16.mxu0 %v10752_v14 }
 0x47a   : > { %v9885_v22 = vadd.f32 %v9884_v21, %v9883_v19  ;;  %v2713_v25 = vadd.f32 %v9882_v18, %v13229_v51  ;;  %9905 = vmatpush3.bf16.msra.mxu0 %v10753_v15 }
 0x47b   : > { %v13297_v23 = vpop.eup %11342 }
 0x47c   : > { %v2716_v27 = vadd.f32 %v9885_v22, %v13229_v51  ;;  %3016 = vmatmul.mubr.bf16.gmra.mrb[168].mxu0 %v13297_v23 }
 0x47d   : > { %3025 = vmatprep.mubr.bf16.mxu0 %v13270_v33 }
 0x47e   : > { %v2755_v28 = vpack.c.bf16 %v2716_v27, %v2713_v25  ;;  %v9886_v29 = vpop.f32.mrb[116].mxu1 }
 0x47f   : > { %v9887_v31 = vpop.f32.mrb[117].mxu1 }
 0x480   : > { %11346 = vtanh.bf16 %v2755_v28  ;;  %v9888_v32 = vadd.f32 %v9887_v31, %v9886_v29  ;;  %v9889_v11 = vpop.f32.mrb[118].mxu1 }
 0x481   : > { %v9890_v34 = vpop.f32.mrb[119].mxu1 }
 0x482   : > { %v9891_v35 = vadd.f32 %v9890_v34, %v9889_v11  ;;  %v2721_v38 = vadd.f32 %v9888_v32, %v13229_v51 }
 0x483   : > { %v13303_v37 = vpop.eup %11344 }
 0x484   : > { %v2724_v39 = vadd.f32 %v9891_v35, %v13229_v51  ;;  %3026 = vmatmul.mubr.bf16.gmra.mrb[172].mxu0 %v13303_v37 }
 0x485   : > { %3035 = vmatprep.mubr.bf16.mxu0 %v13270_v33 }
 0x486   : > { %v2756_v58 = vpack.c.bf16 %v2724_v39, %v2721_v38  ;;  %v9892_v40 = vpop.f32.mrb[120].mxu1 }
 0x487   : > { %v9893_v42 = vpop.f32.mrb[121].mxu1 }
 0x488   : > { %11348 = vtanh.bf16 %v2756_v58  ;;  %v9894_v44 = vadd.f32 %v9893_v42, %v9892_v40  ;;  %v9895_v45 = vpop.f32.mrb[122].mxu1  ;;  %v10754_v58 = vld [vmem:[#allocation7 + $0x48] sm:$0xff]  }
 0x489   : > { %v9896_v46 = vpop.f32.mrb[123].mxu1  ;;  %v10755_v42 = vld [vmem:[#allocation7 + $0x8] sm:$0xff]   ;;  %9906 = vmatprep.subr.bf16.mxu0 %v10754_v58 }
 0x48a   : > { %v9897_v47 = vadd.f32 %v9896_v46, %v9895_v45  ;;  %v2729_v52 = vadd.f32 %v9894_v44, %v13229_v51  ;;  %9907 = vmatpush3.bf16.msra.mxu0 %v10755_v42  ;;  %v10757_v44 = vld [vmem:[#allocation7 + $0x10] sm:$0xff]   ;;  %v10758_v46 = vld [vmem:[#allocation7 + $0x58] sm:$0xff]  }
 0x48b   : > { %v13309_v49 = vpop.eup %11346  ;;  %9908 = vmatprep.subr.bf16.mxu0 %v10756_v43 }
 0x48c   : > { %v2732_v53 = vadd.f32 %v9897_v47, %v13229_v51  ;;  %3036 = vmatmul.mubr.bf16.gmra.mrb[176].mxu0 %v13309_v49 }
 0x48d   : > { %3045 = vmatprep.mubr.bf16.mxu0 %v13270_v33 }
 0x48e   : > { %v2757_v54 = vpack.c.bf16 %v2732_v53, %v2729_v52  ;;  %v9898_v57 = vpop.f32.mrb[124].mxu1  ;;  %9909 = vmatpush3.bf16.msra.mxu0 %v10757_v44 }
 0x48f   : > { %v9899_v61 = vpop.f32.mrb[125].mxu1  ;;  %9910 = vmatprep.subr.bf16.mxu0 %v10758_v46 }
 0x490   : > { %11350 = vtanh.bf16 %v2757_v54  ;;  %v9900_v63 = vadd.f32 %v9899_v61, %v9898_v57  ;;  %v9901_v0 = vpop.f32.mrb[126].mxu1  ;;  %v10759_v61 = vld [vmem:[#allocation7 + $0x18] sm:$0xff]  }
 0x491   : > { %v9902_v2 = vpop.f32.mrb[127].mxu1 }
 0x492   : > { %v9903_v4 = vadd.f32 %v9902_v2, %v9901_v0  ;;  %v2737_v6 = vadd.f32 %v9900_v63, %v13229_v51  ;;  %v10760_v2 = vld [vmem:[#allocation7 + $0x60] sm:$0xff]   ;;  %9911 = vmatpush3.bf16.msra.mxu0 %v10759_v61 }
 0x493   : > { %v13315_v5 = vpop.eup %11348  ;;  %9912 = vmatprep.subr.bf16.mxu0 %v10760_v2 }
 0x494   : > { %v2740_v7 = vadd.f32 %v9903_v4, %v13229_v51  ;;  %3046 = vmatmul.mubr.bf16.gmra.mrb[180].mxu0 %v13315_v5  ;;  %v2791_v51 = vld [vmem:[%s15240_s10] sm:$0x3] }
 0x495   : > { %3055 = vmatprep.mubr.bf16.mxu0 %v13270_v33  ;;  %v13332_v41 = vrot.slane %v2791_v51, %v12808_v55  ;;  %v13335_v13 = vrot.slane %v2791_v51, %v12810_v56  ;;  %v10762_v51 = vld [vmem:[#allocation7 + $0x68] sm:$0xff]  }
 0x496   : > { %v2758_v8 = vpack.c.bf16 %v2740_v7, %v2737_v6  ;;  %v10761_v7 = vld [vmem:[#allocation7 + $0x20] sm:$0xff]  }
 0x497   : > { %9913 = vmatpush3.bf16.msra.mxu0 %v10761_v7 }
 0x498   : > { %11352 = vtanh.bf16 %v2758_v8  ;;  %9914 = vmatprep.subr.bf16.mxu0 %v10762_v51 }
 0x49b   : > { %v13321_v60 = vpop.eup %11350 }
 0x49c   : > { %3056 = vmatmul.mubr.bf16.gmra.mrb[184].mxu0 %v13321_v60 }
 0x49d   : > { %3065 = vmatprep.mubr.bf16.mxu0 %v13270_v33 }
 0x4a3   : > { %v13325_v9 = vpop.eup %11352 }
 0x4a4   : > { %3066 = vmatmul.mubr.bf16.gmra.mrb[188].mxu0 %v13325_v9 }
 0x4ff   : > { %v2917_v12 = vpop.f32.mrb[128].mxu0 }
 0x500   : > { %v2919_v17 = vpop.f32.mrb[129].mxu0  ;;  %v2918_v33 = vadd.f32 %v2917_v12, %v13332_v41 }
 0x501   : > { %v2921_v18 = vpop.f32.mrb[130].mxu0  ;;  %v2920_v22 = vadd.f32 %v2919_v17, %v13335_v13 }
 0x502   : > { %v2922_v19 = vadd.f32 %v2921_v18, %v13332_v41  ;;  %v2923_v21 = vpop.f32.mrb[131].mxu0 }
 0x503   : > { %v2924_v25 = vadd.f32 %v2923_v21, %v13335_v13 }
 0x504   : > { %v3076_v27 = vpack.c.bf16 %v2922_v19, %v2918_v33  ;;  %v10763_v19 = vld [vmem:[#allocation7 + $0x28] sm:$0xff]  }
 0x505   : > { %v3077_v28 = vpack.c.bf16 %v2924_v25, %v2920_v22  ;;  %9915 = vmatpush3.bf16.msra.mxu0 %v10763_v19 }
 0x507   : > { %11354 = vtanh.bf16 %v3077_v28  ;;  %v2927_v29 = vpop.f32.mrb[132].mxu0 }
 0x508   : > { %11356 = vtanh.bf16 %v3076_v27  ;;  %v2929_v31 = vpop.f32.mrb[133].mxu0  ;;  %v2928_v11 = vadd.f32 %v2927_v29, %v13332_v41  ;;  %v10764_v27 = vld [vmem:[#allocation7 + $0x70] sm:$0xff]  }
 0x509   : > { %v2931_v32 = vpop.f32.mrb[134].mxu0  ;;  %v2930_v38 = vadd.f32 %v2929_v31, %v13335_v13  ;;  %v10765_v31 = vld [vmem:[#allocation7 + $0x30] sm:$0xff]   ;;  %9916 = vmatprep.subr.bf16.mxu0 %v10764_v27 }
 0x50a   : > { %v2932_v34 = vadd.f32 %v2931_v32, %v13332_v41  ;;  %v2933_v35 = vpop.f32.mrb[135].mxu0  ;;  %9917 = vmatpush3.bf16.msra.mxu0 %v10765_v31 }
 0x50b   : > { %v2934_v39 = vadd.f32 %v2933_v35, %v13335_v13 }
 0x50c   : > { %v3078_v40 = vpack.c.bf16 %v2932_v34, %v2928_v11 }
 0x50d   : > { %v3079_v26 = vpack.c.bf16 %v2934_v39, %v2930_v38 }
 0x50f   : > { %11358 = vtanh.bf16 %v3079_v26  ;;  %v2937_v45 = vpop.f32.mrb[136].mxu0 }
 0x510   : > { %11360 = vtanh.bf16 %v3078_v40  ;;  %v2939_v47 = vpop.f32.mrb[137].mxu0  ;;  %v2938_v54 = vadd.f32 %v2937_v45, %v13332_v41 }
 0x511   : > { %v2941_v52 = vpop.f32.mrb[138].mxu0  ;;  %v2940_v63 = vadd.f32 %v2939_v47, %v13335_v13 }
 0x512   : > { %v11355_v53 = vpop.eup %11354  ;;  %v2942_v57 = vadd.f32 %v2941_v52, %v13332_v41  ;;  %v2943_v59 = vpop.f32.mrb[139].mxu0 }
 0x513   : > { %v11357_v62 = vpop.eup %11356  ;;  %v2944_v0 = vadd.f32 %v2943_v59, %v13335_v13  ;;  %3376 = vmatprep.mubr.bf16.mxu1 %v11355_v53 }
 0x514   : > { %v3080_v4 = vpack.c.bf16 %v2942_v57, %v2938_v54  ;;  %3377 = vmatmul.mubr.bf16.vlgmr.msra.gmra.mrb[128].mxu1 %v11357_v62 }
 0x515   : > { %v3081_v6 = vpack.c.bf16 %v2944_v0, %v2940_v63 }
 0x517   : > { %11362 = vtanh.bf16 %v3081_v6  ;;  %v2947_v8 = vpop.f32.mrb[140].mxu0 }
 0x518   : > { %11364 = vtanh.bf16 %v3080_v4  ;;  %v2949_v12 = vpop.f32.mrb[141].mxu0  ;;  %v2948_v17 = vadd.f32 %v2947_v8, %v13332_v41 }
 0x519   : > { %v2951_v14 = vpop.f32.mrb[142].mxu0  ;;  %v2950_v22 = vadd.f32 %v2949_v12, %v13335_v13 }
 0x51a   : > { %v11359_v15 = vpop.eup %11358  ;;  %v2952_v18 = vadd.f32 %v2951_v14, %v13332_v41  ;;  %v2953_v33 = vpop.f32.mrb[143].mxu0 }
 0x51b   : > { %v11361_v21 = vpop.eup %11360  ;;  %v2954_v25 = vadd.f32 %v2953_v33, %v13335_v13  ;;  %3386 = vmatprep.mubr.bf16.mxu1 %v11359_v15 }
 0x51c   : > { %v3082_v28 = vpack.c.bf16 %v2952_v18, %v2948_v17  ;;  %3387 = vmatmul.mubr.bf16.gmra.mrb[132].mxu1 %v11361_v21 }
 0x51d   : > { %v3083_v29 = vpack.c.bf16 %v2954_v25, %v2950_v22 }
 0x51f   : > { %11366 = vtanh.bf16 %v3083_v29  ;;  %v2957_v32 = vpop.f32.mrb[144].mxu0 }
 0x520   : > { %11368 = vtanh.bf16 %v3082_v28  ;;  %v2959_v11 = vpop.f32.mrb[145].mxu0  ;;  %v2958_v38 = vadd.f32 %v2957_v32, %v13332_v41 }
 0x521   : > { %v2961_v34 = vpop.f32.mrb[146].mxu0  ;;  %v2960_v42 = vadd.f32 %v2959_v11, %v13335_v13 }
 0x522   : > { %v11363_v35 = vpop.eup %11362  ;;  %v2962_v39 = vadd.f32 %v2961_v34, %v13332_v41  ;;  %v2963_v58 = vpop.f32.mrb[147].mxu0 }
 0x523   : > { %v11365_v40 = vpop.eup %11364  ;;  %v2964_v26 = vadd.f32 %v2963_v58, %v13335_v13  ;;  %3396 = vmatprep.mubr.bf16.mxu1 %v11363_v35 }
 0x524   : > { %v3084_v43 = vpack.c.bf16 %v2962_v39, %v2958_v38  ;;  %3397 = vmatmul.mubr.bf16.gmra.mrb[136].mxu1 %v11365_v40 }
 0x525   : > { %v3085_v44 = vpack.c.bf16 %v2964_v26, %v2960_v42 }
 0x527   : > { %11370 = vtanh.bf16 %v3085_v44  ;;  %v2967_v45 = vpop.f32.mrb[148].mxu0 }
 0x528   : > { %11372 = vtanh.bf16 %v3084_v43  ;;  %v2969_v46 = vpop.f32.mrb[149].mxu0  ;;  %v2968_v53 = vadd.f32 %v2967_v45, %v13332_v41 }
 0x529   : > { %v2971_v47 = vpop.f32.mrb[150].mxu0  ;;  %v2970_v61 = vadd.f32 %v2969_v46, %v13335_v13 }
 0x52a   : > { %v11367_v52 = vpop.eup %11366  ;;  %v2972_v54 = vadd.f32 %v2971_v47, %v13332_v41  ;;  %v2973_v57 = vpop.f32.mrb[151].mxu0 }
 0x52b   : > { %v11369_v59 = vpop.eup %11368  ;;  %v2974_v62 = vadd.f32 %v2973_v57, %v13335_v13  ;;  %3406 = vmatprep.mubr.bf16.mxu1 %v11367_v52 }
 0x52c   : > { %v3086_v63 = vpack.c.bf16 %v2972_v54, %v2968_v53  ;;  %3407 = vmatmul.mubr.bf16.gmra.mrb[140].mxu1 %v11369_v59 }
 0x52d   : > { %v3087_v0 = vpack.c.bf16 %v2974_v62, %v2970_v61 }
 0x52f   : > { %11374 = vtanh.bf16 %v3087_v0  ;;  %v2977_v2 = vpop.f32.mrb[152].mxu0 }
 0x530   : > { %11376 = vtanh.bf16 %v3086_v63  ;;  %v2979_v4 = vpop.f32.mrb[153].mxu0  ;;  %v2978_v8 = vadd.f32 %v2977_v2, %v13332_v41 }
 0x531   : > { %v2981_v6 = vpop.f32.mrb[154].mxu0  ;;  %v2980_v15 = vadd.f32 %v2979_v4, %v13335_v13 }
 0x532   : > { %v11371_v7 = vpop.eup %11370  ;;  %v2982_v51 = vadd.f32 %v2981_v6, %v13332_v41  ;;  %v2983_v12 = vpop.f32.mrb[155].mxu0 }
 0x533   : > { %v11373_v14 = vpop.eup %11372  ;;  %v2984_v17 = vadd.f32 %v2983_v12, %v13335_v13  ;;  %3416 = vmatprep.mubr.bf16.mxu1 %v11371_v7 }
 0x534   : > { %v3088_v18 = vpack.c.bf16 %v2982_v51, %v2978_v8  ;;  %3417 = vmatmul.mubr.bf16.gmra.mrb[144].mxu1 %v11373_v14 }
 0x535   : > { %v3089_v33 = vpack.c.bf16 %v2984_v17, %v2980_v15 }
 0x537   : > { %11378 = vtanh.bf16 %v3089_v33  ;;  %v2987_v19 = vpop.f32.mrb[156].mxu0 }
 0x538   : > { %11380 = vtanh.bf16 %v3088_v18  ;;  %v2989_v21 = vpop.f32.mrb[157].mxu0  ;;  %v2988_v27 = vadd.f32 %v2987_v19, %v13332_v41 }
 0x539   : > { %v2991_v22 = vpop.f32.mrb[158].mxu0  ;;  %v2990_v32 = vadd.f32 %v2989_v21, %v13335_v13 }
 0x53a   : > { %v11375_v25 = vpop.eup %11374  ;;  %v2992_v28 = vadd.f32 %v2991_v22, %v13332_v41  ;;  %v2993_v29 = vpop.f32.mrb[159].mxu0 }
 0x53b   : > { %v11377_v31 = vpop.eup %11376  ;;  %v2994_v11 = vadd.f32 %v2993_v29, %v13335_v13  ;;  %3426 = vmatprep.mubr.bf16.mxu1 %v11375_v25 }
 0x53c   : > { %v3090_v34 = vpack.c.bf16 %v2992_v28, %v2988_v27  ;;  %3427 = vmatmul.mubr.bf16.gmra.mrb[148].mxu1 %v11377_v31 }
 0x53d   : > { %v3091_v35 = vpack.c.bf16 %v2994_v11, %v2990_v32 }
 0x53f   : > { %11382 = vtanh.bf16 %v3091_v35  ;;  %v2997_v38 = vpop.f32.mrb[160].mxu0 }
 0x540   : > { %11384 = vtanh.bf16 %v3090_v34  ;;  %v2999_v39 = vpop.f32.mrb[161].mxu0  ;;  %v2998_v42 = vadd.f32 %v2997_v38, %v13332_v41 }
 0x541   : > { %v3001_v58 = vpop.f32.mrb[162].mxu0  ;;  %v3000_v45 = vadd.f32 %v2999_v39, %v13335_v13 }
 0x542   : > { %v11379_v40 = vpop.eup %11378  ;;  %v3002_v26 = vadd.f32 %v3001_v58, %v13332_v41  ;;  %v3003_v43 = vpop.f32.mrb[163].mxu0 }
 0x543   : > { %v11381_v44 = vpop.eup %11380  ;;  %v3004_v46 = vadd.f32 %v3003_v43, %v13335_v13  ;;  %3436 = vmatprep.mubr.bf16.mxu1 %v11379_v40 }
 0x544   : > { %v3092_v47 = vpack.c.bf16 %v3002_v26, %v2998_v42  ;;  %3437 = vmatmul.mubr.bf16.gmra.mrb[152].mxu1 %v11381_v44 }
 0x545   : > { %v3093_v52 = vpack.c.bf16 %v3004_v46, %v3000_v45 }
 0x547   : > { %11386 = vtanh.bf16 %v3093_v52  ;;  %v3007_v53 = vpop.f32.mrb[164].mxu0 }
 0x548   : > { %11388 = vtanh.bf16 %v3092_v47  ;;  %v3009_v54 = vpop.f32.mrb[165].mxu0  ;;  %v3008_v61 = vadd.f32 %v3007_v53, %v13332_v41 }
 0x549   : > { %v3011_v57 = vpop.f32.mrb[166].mxu0  ;;  %v3010_v2 = vadd.f32 %v3009_v54, %v13335_v13 }
 0x54a   : > { %v11383_v59 = vpop.eup %11382  ;;  %v3012_v62 = vadd.f32 %v3011_v57, %v13332_v41  ;;  %v3013_v63 = vpop.f32.mrb[167].mxu0 }
 0x54b   : > { %v11385_v0 = vpop.eup %11384  ;;  %v3014_v4 = vadd.f32 %v3013_v63, %v13335_v13  ;;  %3446 = vmatprep.mubr.bf16.mxu1 %v11383_v59 }
 0x54c   : > { %v3094_v6 = vpack.c.bf16 %v3012_v62, %v3008_v61  ;;  %3447 = vmatmul.mubr.bf16.gmra.mrb[156].mxu1 %v11385_v0 }
 0x54d   : > { %v3095_v7 = vpack.c.bf16 %v3014_v4, %v3010_v2 }
 0x54f   : > { %11390 = vtanh.bf16 %v3095_v7  ;;  %v3017_v8 = vpop.f32.mrb[168].mxu0 }
 0x550   : > { %11392 = vtanh.bf16 %v3094_v6  ;;  %v3019_v51 = vpop.f32.mrb[169].mxu0  ;;  %v3018_v15 = vadd.f32 %v3017_v8, %v13332_v41 }
 0x551   : > { %v3021_v12 = vpop.f32.mrb[170].mxu0  ;;  %v3020_v19 = vadd.f32 %v3019_v51, %v13335_v13 }
 0x552   : > { %v11387_v14 = vpop.eup %11386  ;;  %v3022_v17 = vadd.f32 %v3021_v12, %v13332_v41  ;;  %v3023_v18 = vpop.f32.mrb[171].mxu0 }
 0x553   : > { %v11389_v33 = vpop.eup %11388  ;;  %v3024_v21 = vadd.f32 %v3023_v18, %v13335_v13  ;;  %3456 = vmatprep.mubr.bf16.mxu1 %v11387_v14  ;;  %v10767_v18 = vld [vmem:[#allocation7 + $0x38] sm:$0xff]  }
 0x554   : > { %v3096_v22 = vpack.c.bf16 %v3022_v17, %v3018_v15  ;;  %3457 = vmatmul.mubr.bf16.gmra.mrb[160].mxu1 %v11389_v33  ;;  %v10766_v17 = vld [vmem:[#allocation7 + $0x78] sm:$0xff]  }
 0x555   : > { %v3097_v25 = vpack.c.bf16 %v3024_v21, %v3020_v19  ;;  %9918 = vmatprep.subr.bf16.mxu0 %v10766_v17 }
 0x556   : > { %9919 = vmatpush3.bf16.msra.mxu0 %v10767_v18 }
 0x557   : > { %11394 = vtanh.bf16 %v3097_v25  ;;  %v3027_v27 = vpop.f32.mrb[172].mxu0 }
 0x558   : > { %11396 = vtanh.bf16 %v3096_v22  ;;  %v3029_v28 = vpop.f32.mrb[173].mxu0  ;;  %v3028_v32 = vadd.f32 %v3027_v27, %v13332_v41 }
 0x559   : > { %v3031_v29 = vpop.f32.mrb[174].mxu0  ;;  %v3030_v38 = vadd.f32 %v3029_v28, %v13335_v13 }
 0x55a   : > { %v11391_v31 = vpop.eup %11390  ;;  %v3032_v11 = vadd.f32 %v3031_v29, %v13332_v41  ;;  %v3033_v34 = vpop.f32.mrb[175].mxu0 }
 0x55b   : > { %v11393_v35 = vpop.eup %11392  ;;  %v3034_v39 = vadd.f32 %v3033_v34, %v13335_v13  ;;  %3466 = vmatprep.mubr.bf16.mxu1 %v11391_v31 }
 0x55c   : > { %v3098_v58 = vpack.c.bf16 %v3032_v11, %v3028_v32  ;;  %3467 = vmatmul.mubr.bf16.gmra.mrb[164].mxu1 %v11393_v35 }
 0x55d   : > { %v3099_v40 = vpack.c.bf16 %v3034_v39, %v3030_v38 }
 0x55f   : > { %11398 = vtanh.bf16 %v3099_v40  ;;  %v3037_v42 = vpop.f32.mrb[176].mxu0 }
 0x560   : > { %11400 = vtanh.bf16 %v3098_v58  ;;  %v3039_v26 = vpop.f32.mrb[177].mxu0  ;;  %v3038_v45 = vadd.f32 %v3037_v42, %v13332_v41 }
 0x561   : > { %v3041_v43 = vpop.f32.mrb[178].mxu0  ;;  %v3040_v53 = vadd.f32 %v3039_v26, %v13335_v13 }
 0x562   : > { %v11395_v44 = vpop.eup %11394  ;;  %v3042_v46 = vadd.f32 %v3041_v43, %v13332_v41  ;;  %v3043_v47 = vpop.f32.mrb[179].mxu0 }
 0x563   : > { %v11397_v52 = vpop.eup %11396  ;;  %v3044_v54 = vadd.f32 %v3043_v47, %v13335_v13  ;;  %3476 = vmatprep.mubr.bf16.mxu1 %v11395_v44 }
 0x564   : > { %v3100_v57 = vpack.c.bf16 %v3042_v46, %v3038_v45  ;;  %3477 = vmatmul.mubr.bf16.gmra.mrb[168].mxu1 %v11397_v52 }
 0x565   : > { %v3101_v59 = vpack.c.bf16 %v3044_v54, %v3040_v53 }
 0x567   : > { %11402 = vtanh.bf16 %v3101_v59  ;;  %v3047_v61 = vpop.f32.mrb[180].mxu0 }
 0x568   : > { %11404 = vtanh.bf16 %v3100_v57  ;;  %v3049_v62 = vpop.f32.mrb[181].mxu0  ;;  %v3048_v2 = vadd.f32 %v3047_v61, %v13332_v41  ;;  %v10768_v61 = vld [vmem:[#allocation8] ss:$8 sps:$4 sm:$0xff]  }
 0x569   : > { %v3051_v63 = vpop.f32.mrb[182].mxu0  ;;  %v3050_v8 = vadd.f32 %v3049_v62, %v13335_v13  ;;  %v10770_v62 = vld [vmem:[#allocation8 + $0x4] ss:$8 sps:$4 sm:$0xff]  }
 0x56a   : > { %v11399_v0 = vpop.eup %11398  ;;  %v3052_v4 = vadd.f32 %v3051_v63, %v13332_v41  ;;  %v3053_v6 = vpop.f32.mrb[183].mxu0  ;;  %4133 = vmatprep.subr.bf16.mxu1 %v10770_v62 }
 0x56b   : > { %v11401_v7 = vpop.eup %11400  ;;  %v3054_v51 = vadd.f32 %v3053_v6, %v13335_v13  ;;  %3486 = vmatprep.mubr.bf16.mxu1 %v11399_v0  ;;  %4134 = vmatpush1.bf16.msra.mxu1 %v10768_v61  ;;  %v10788_v61 = vld [vmem:[#allocation8 + $0x64] ss:$8 sps:$4 sm:$0xff]  }
 0x56c   : > { %v3102_v12 = vpack.c.bf16 %v3052_v4, %v3048_v2  ;;  %3487 = vmatmul.mubr.bf16.gmra.mrb[172].mxu1 %v11401_v7 }
 0x56d   : > { %v3103_v14 = vpack.c.bf16 %v3054_v51, %v3050_v8  ;;  %v10771_v51 = vld [vmem:[#allocation8 + $0x10] ss:$8 sps:$4 sm:$0xff]  }
 0x56f   : > { %11406 = vtanh.bf16 %v3103_v14  ;;  %v3057_v15 = vpop.f32.mrb[184].mxu0 }
 0x570   : > { %11408 = vtanh.bf16 %v3102_v12  ;;  %v3059_v33 = vpop.f32.mrb[185].mxu0  ;;  %v3058_v22 = vadd.f32 %v3057_v15, %v13332_v41  ;;  %v10773_v12 = vld [vmem:[#allocation8 + $0x14] ss:$8 sps:$4 sm:$0xff]  }
 0x571   : > { %v3061_v19 = vpop.f32.mrb[186].mxu0  ;;  %v3060_v29 = vadd.f32 %v3059_v33, %v13335_v13  ;;  %4135 = vmatprep.subr.bf16.mxu1 %v10773_v12  ;;  %v10791_v12 = vld [vmem:[#allocation8 + $0x74] ss:$8 sps:$4 sm:$0xff]  }
 0x572   : > { %v11403_v21 = vpop.eup %11402  ;;  %v3062_v25 = vadd.f32 %v3061_v19, %v13332_v41  ;;  %v3063_v27 = vpop.f32.mrb[187].mxu0  ;;  %4136 = vmatpush1.bf16.msra.mxu1 %v10771_v51 }
 0x573   : > { %v11405_v28 = vpop.eup %11404  ;;  %v3064_v31 = vadd.f32 %v3063_v27, %v13335_v13  ;;  %3496 = vmatprep.mubr.bf16.mxu1 %v11403_v21 }
 0x574   : > { %v3104_v32 = vpack.c.bf16 %v3062_v25, %v3058_v22  ;;  %3497 = vmatmul.mubr.bf16.gmra.mrb[176].mxu1 %v11405_v28  ;;  %v10774_v28 = vld [vmem:[#allocation8 + $0x20] ss:$8 sps:$4 sm:$0xff]  }
 0x575   : > { %v3105_v11 = vpack.c.bf16 %v3064_v31, %v3060_v29  ;;  %v10776_v29 = vld [vmem:[#allocation8 + $0x24] ss:$8 sps:$4 sm:$0xff]  }
 0x576   : > { %4137 = vmatprep.subr.bf16.mxu1 %v10776_v29 }
 0x577   : > { %11410 = vtanh.bf16 %v3105_v11  ;;  %v3067_v34 = vpop.f32.mrb[188].mxu0  ;;  %4138 = vmatpush1.bf16.msra.mxu1 %v10774_v28 }
 0x578   : > { %11412 = vtanh.bf16 %v3104_v32  ;;  %v3069_v35 = vpop.f32.mrb[189].mxu0  ;;  %v3068_v58 = vadd.f32 %v3067_v34, %v13332_v41  ;;  %v10779_v32 = vld [vmem:[#allocation8 + $0x34] ss:$8 sps:$4 sm:$0xff]   ;;  %v10777_v34 = vld [vmem:[#allocation8 + $0x30] ss:$8 sps:$4 sm:$0xff]  }
 0x579   : > { %v3071_v38 = vpop.f32.mrb[190].mxu0  ;;  %v3070_v43 = vadd.f32 %v3069_v35, %v13335_v13  ;;  %4139 = vmatprep.subr.bf16.mxu1 %v10779_v32  ;;  %v10792_v32 = vld [vmem:[#allocation8 + $0x80] ss:$8 sps:$4 sm:$0xff]  }
 0x57a   : > { %v11407_v39 = vpop.eup %11406  ;;  %v3072_v40 = vadd.f32 %v3071_v38, %v13332_v41  ;;  %v3073_v42 = vpop.f32.mrb[191].mxu0  ;;  %v3172_v41 = vld [vmem:[%s15242_s12] sm:$0x3]  ;;  %v10782_v38 = vld [vmem:[#allocation8 + $0x44] ss:$8 sps:$4 sm:$0xff]  }
 0x57b   : > { %v11409_v26 = vpop.eup %11408  ;;  %v3074_v44 = vadd.f32 %v3073_v42, %v13335_v13  ;;  %3506 = vmatprep.mubr.bf16.mxu1 %v11407_v39  ;;  %v13406_v13 = vrot.slane %v3172_v41, %v12808_v55  ;;  %v13409_v59 = vrot.slane %v3172_v41, %v12810_v56  ;;  %4140 = vmatpush1.bf16.msra.mxu1 %v10777_v34  ;;  %v10783_v41 = vld [vmem:[#allocation8 + $0x50] ss:$8 sps:$4 sm:$0xff]   ;;  %v10797_v34 = vld [vmem:[#allocation8 + $0x94] ss:$8 sps:$4 sm:$0xff]  }
 0x57c   : > { %v3106_v45 = vpack.c.bf16 %v3072_v40, %v3068_v58  ;;  %3507 = vmatmul.mubr.bf16.gmra.mrb[180].mxu1 %v11409_v26  ;;  %4141 = vmatprep.subr.bf16.mxu1 %v10782_v38 }
 0x57d   : > { %v3107_v46 = vpack.c.bf16 %v3074_v44, %v3070_v43 }
 0x57f   : > { %11414 = vtanh.bf16 %v3107_v46  ;;  %v10780_v46 = vld [vmem:[#allocation8 + $0x40] ss:$8 sps:$4 sm:$0xff]  }
 0x580   : > { %11416 = vtanh.bf16 %v3106_v45  ;;  %4142 = vmatpush1.bf16.msra.mxu1 %v10780_v46 }
 0x582   : > { %v11411_v47 = vpop.eup %11410 }
 0x583   : > { %v11413_v52 = vpop.eup %11412  ;;  %3516 = vmatprep.mubr.bf16.mxu1 %v11411_v47 }
 0x584   : > { %3517 = vmatmul.mubr.bf16.gmra.mrb[184].mxu1 %v11413_v52  ;;  %v10785_v52 = vld [vmem:[#allocation8 + $0x54] ss:$8 sps:$4 sm:$0xff]  }
 0x585   : > { %4143 = vmatprep.subr.bf16.mxu1 %v10785_v52 }
 0x586   : > { %4144 = vmatpush1.bf16.msra.mxu1 %v10783_v41  ;;  %v10803_v41 = vld [vmem:[#allocation8 + $0xb4] ss:$8 sps:$4 sm:$0xff]  }
 0x587   : > { %4145 = vmatprep.subr.bf16.mxu1 %v10788_v61 }
 0x58a   : > { %v11415_v53 = vpop.eup %11414 }
 0x58b   : > { %v11417_v54 = vpop.eup %11416  ;;  %3526 = vmatprep.mubr.bf16.mxu1 %v11415_v53 }
 0x58c   : > { %3527 = vmatmul.mubr.bf16.gmra.mrb[188].mxu1 %v11417_v54 }
 0x58d   : > { %4165 = vmatprep.mubr.bf16.mxu1 %v13235_v20 }
 0x5e7   : > { %v3378_v57 = vpop.f32.mrb[128].mxu1 }
 0x5e8   : > { %v3380_v63 = vpop.f32.mrb[129].mxu1  ;;  %v3379_v2 = vadd.f32 %v3378_v57, %v13406_v13 }
 0x5e9   : > { %v3382_v0 = vpop.f32.mrb[130].mxu1  ;;  %v3381_v6 = vadd.f32 %v3380_v63, %v13409_v59 }
 0x5ea   : > { %v3383_v20 = vadd.f32 %v3382_v0, %v13406_v13  ;;  %v3384_v4 = vpop.f32.mrb[131].mxu1 }
 0x5eb   : > { %v3385_v7 = vadd.f32 %v3384_v4, %v13409_v59 }
 0x5ec   : > { %v3537_v8 = vpack.c.bf16 %v3383_v20, %v3379_v2 }
 0x5ed   : > { %v3538_v14 = vpack.c.bf16 %v3385_v7, %v3381_v6 }
 0x5ef   : > { %11418 = vtanh.bf16 %v3538_v14  ;;  %v3388_v15 = vpop.f32.mrb[132].mxu1 }
 0x5f0   : > { %11420 = vtanh.bf16 %v3537_v8  ;;  %v3390_v17 = vpop.f32.mrb[133].mxu1  ;;  %v3389_v33 = vadd.f32 %v3388_v15, %v13406_v13  ;;  %v10786_v8 = vld [vmem:[#allocation8 + $0x60] ss:$8 sps:$4 sm:$0xff]  }
 0x5f1   : > { %v3392_v18 = vpop.f32.mrb[134].mxu1  ;;  %v3391_v22 = vadd.f32 %v3390_v17, %v13409_v59  ;;  %4146 = vmatpush1.bf16.msra.mxu1 %v10786_v8  ;;  %v10789_v17 = vld [vmem:[#allocation8 + $0x70] ss:$8 sps:$4 sm:$0xff]  }
 0x5f2   : > { %v3393_v19 = vadd.f32 %v3392_v18, %v13406_v13  ;;  %v3394_v21 = vpop.f32.mrb[135].mxu1  ;;  %4147 = vmatprep.subr.bf16.mxu1 %v10791_v12 }
 0x5f3   : > { %v3395_v25 = vadd.f32 %v3394_v21, %v13409_v59 }
 0x5f4   : > { %v3539_v27 = vpack.c.bf16 %v3393_v19, %v3389_v33  ;;  %v10794_v33 = vld [vmem:[#allocation8 + $0x84] ss:$8 sps:$4 sm:$0xff]  }
 0x5f5   : > { %v3540_v31 = vpack.c.bf16 %v3395_v25, %v3391_v22  ;;  %4148 = vmatpush1.bf16.msra.mxu1 %v10789_v17  ;;  %v10809_v17 = vld [vmem:[#allocation8 + $0xd4] ss:$8 sps:$4 sm:$0xff]  }
 0x5f6   : > { %4149 = vmatprep.subr.bf16.mxu1 %v10794_v33 }
 0x5f7   : > { %11422 = vtanh.bf16 %v3540_v31  ;;  %v3398_v11 = vpop.f32.mrb[136].mxu1 }
 0x5f8   : > { %11424 = vtanh.bf16 %v3539_v27  ;;  %v3400_v35 = vpop.f32.mrb[137].mxu1  ;;  %v3399_v40 = vadd.f32 %v3398_v11, %v13406_v13 }
 0x5f9   : > { %v3402_v39 = vpop.f32.mrb[138].mxu1  ;;  %v3401_v44 = vadd.f32 %v3400_v35, %v13409_v59  ;;  %4150 = vmatpush1.bf16.msra.mxu1 %v10792_v32 }
 0x5fa   : > { %v11419_v58 = vpop.eup %11418  ;;  %v3403_v42 = vadd.f32 %v3402_v39, %v13406_v13  ;;  %v3404_v26 = vpop.f32.mrb[139].mxu1  ;;  %v10795_v39 = vld [vmem:[#allocation8 + $0x90] ss:$8 sps:$4 sm:$0xff]   ;;  %4151 = vmatprep.subr.bf16.mxu1 %v10797_v34 }
 0x5fb   : > { %v11421_v43 = vpop.eup %11420  ;;  %v3405_v45 = vadd.f32 %v3404_v26, %v13409_v59  ;;  %3768 = vmatprep.mubr.bf16.mxu0 %v11419_v58 }
 0x5fc   : > { %v3541_v47 = vpack.c.bf16 %v3403_v42, %v3399_v40  ;;  %3769 = vmatmul.mubr.bf16.vlgmr.msra.gmra.mrb[192].mxu0 %v11421_v43  ;;  %v10800_v40 = vld [vmem:[#allocation8 + $0xa4] ss:$8 sps:$4 sm:$0xff]  }
 0x5fd   : > { %v3542_v53 = vpack.c.bf16 %v3405_v45, %v3401_v44  ;;  %4152 = vmatpush1.bf16.msra.mxu1 %v10795_v39 }
 0x5fe   : > { %4153 = vmatprep.subr.bf16.mxu1 %v10800_v40 }
 0x5ff   : > { %11426 = vtanh.bf16 %v3542_v53  ;;  %v3408_v54 = vpop.f32.mrb[140].mxu1  ;;  %v10798_v53 = vld [vmem:[#allocation8 + $0xa0] ss:$8 sps:$4 sm:$0xff]  }
 0x600   : > { %11428 = vtanh.bf16 %v3541_v47  ;;  %v3410_v57 = vpop.f32.mrb[141].mxu1  ;;  %v3409_v0 = vadd.f32 %v3408_v54, %v13406_v13 }
 0x601   : > { %v3412_v62 = vpop.f32.mrb[142].mxu1  ;;  %v3411_v6 = vadd.f32 %v3410_v57, %v13409_v59  ;;  %4154 = vmatpush1.bf16.msra.mxu1 %v10798_v53 }
 0x602   : > { %v11423_v63 = vpop.eup %11422  ;;  %v3413_v2 = vadd.f32 %v3412_v62, %v13406_v13  ;;  %v3414_v20 = vpop.f32.mrb[143].mxu1  ;;  %v10801_v62 = vld [vmem:[#allocation8 + $0xb0] ss:$8 sps:$4 sm:$0xff]   ;;  %4155 = vmatprep.subr.bf16.mxu1 %v10803_v41 }
 0x603   : > { %v11425_v4 = vpop.eup %11424  ;;  %v3415_v7 = vadd.f32 %v3414_v20, %v13409_v59  ;;  %3776 = vmatprep.mubr.bf16.mxu0 %v11423_v63 }
 0x604   : > { %v3543_v51 = vpack.c.bf16 %v3413_v2, %v3409_v0  ;;  %3777 = vmatmul.mubr.bf16.gmra.mrb[196].mxu0 %v11425_v4  ;;  %v10806_v0 = vld [vmem:[#allocation8 + $0xc4] ss:$8 sps:$4 sm:$0xff]  }
 0x605   : > { %v3544_v14 = vpack.c.bf16 %v3415_v7, %v3411_v6  ;;  %4156 = vmatpush1.bf16.msra.mxu1 %v10801_v62 }
 0x606   : > { %4157 = vmatprep.subr.bf16.mxu1 %v10806_v0 }
 0x607   : > { %11430 = vtanh.bf16 %v3544_v14  ;;  %v3418_v15 = vpop.f32.mrb[144].mxu1  ;;  %v10804_v14 = vld [vmem:[#allocation8 + $0xc0] ss:$8 sps:$4 sm:$0xff]  }
 0x608   : > { %11432 = vtanh.bf16 %v3543_v51  ;;  %v3420_v18 = vpop.f32.mrb[145].mxu1  ;;  %v3419_v22 = vadd.f32 %v3418_v15, %v13406_v13 }
 0x609   : > { %v3422_v19 = vpop.f32.mrb[146].mxu1  ;;  %v3421_v29 = vadd.f32 %v3420_v18, %v13409_v59  ;;  %4158 = vmatpush1.bf16.msra.mxu1 %v10804_v14 }
 0x60a   : > { %v11427_v21 = vpop.eup %11426  ;;  %v3423_v25 = vadd.f32 %v3422_v19, %v13406_v13  ;;  %v3424_v27 = vpop.f32.mrb[147].mxu1  ;;  %v10807_v19 = vld [vmem:[#allocation8 + $0xd0] ss:$8 sps:$4 sm:$0xff]   ;;  %4159 = vmatprep.subr.bf16.mxu1 %v10809_v17 }
 0x60b   : > { %v11429_v28 = vpop.eup %11428  ;;  %v3425_v31 = vadd.f32 %v3424_v27, %v13409_v59  ;;  %3784 = vmatprep.mubr.bf16.mxu0 %v11427_v21 }
 0x60c   : > { %v3545_v11 = vpack.c.bf16 %v3423_v25, %v3419_v22  ;;  %3785 = vmatmul.mubr.bf16.gmra.mrb[200].mxu0 %v11429_v28 }
 0x60d   : > { %v3546_v35 = vpack.c.bf16 %v3425_v31, %v3421_v29  ;;  %4160 = vmatpush1.bf16.msra.mxu1 %v10807_v19 }
 0x60f   : > { %11434 = vtanh.bf16 %v3546_v35  ;;  %v3428_v38 = vpop.f32.mrb[148].mxu1 }
 0x610   : > { %11436 = vtanh.bf16 %v3545_v11  ;;  %v3430_v58 = vpop.f32.mrb[149].mxu1  ;;  %v3429_v43 = vadd.f32 %v3428_v38, %v13406_v13 }
 0x611   : > { %v3432_v42 = vpop.f32.mrb[150].mxu1  ;;  %v3431_v47 = vadd.f32 %v3430_v58, %v13409_v59 }
 0x612   : > { %v11431_v26 = vpop.eup %11430  ;;  %v3433_v44 = vadd.f32 %v3432_v42, %v13406_v13  ;;  %v3434_v45 = vpop.f32.mrb[151].mxu1 }
 0x613   : > { %v11433_v46 = vpop.eup %11432  ;;  %v3435_v52 = vadd.f32 %v3434_v45, %v13409_v59  ;;  %3792 = vmatprep.mubr.bf16.mxu0 %v11431_v26 }
 0x614   : > { %v3547_v54 = vpack.c.bf16 %v3433_v44, %v3429_v43  ;;  %3793 = vmatmul.mubr.bf16.gmra.mrb[204].mxu0 %v11433_v46 }
 0x615   : > { %v3548_v57 = vpack.c.bf16 %v3435_v52, %v3431_v47 }
 0x617   : > { %11438 = vtanh.bf16 %v3548_v57  ;;  %v3438_v61 = vpop.f32.mrb[152].mxu1 }
 0x618   : > { %11440 = vtanh.bf16 %v3547_v54  ;;  %v3440_v63 = vpop.f32.mrb[153].mxu1  ;;  %v3439_v4 = vadd.f32 %v3438_v61, %v13406_v13 }
 0x619   : > { %v3442_v2 = vpop.f32.mrb[154].mxu1  ;;  %v3441_v51 = vadd.f32 %v3440_v63, %v13409_v59 }
 0x61a   : > { %v11435_v20 = vpop.eup %11434  ;;  %v3443_v6 = vadd.f32 %v3442_v2, %v13406_v13  ;;  %v3444_v7 = vpop.f32.mrb[155].mxu1 }
 0x61b   : > { %v11437_v8 = vpop.eup %11436  ;;  %v3445_v12 = vadd.f32 %v3444_v7, %v13409_v59  ;;  %3800 = vmatprep.mubr.bf16.mxu0 %v11435_v20 }
 0x61c   : > { %v3549_v15 = vpack.c.bf16 %v3443_v6, %v3439_v4  ;;  %3801 = vmatmul.mubr.bf16.gmra.mrb[208].mxu0 %v11437_v8 }
 0x61d   : > { %v3550_v18 = vpack.c.bf16 %v3445_v12, %v3441_v51 }
 0x61f   : > { %11442 = vtanh.bf16 %v3550_v18  ;;  %v3448_v33 = vpop.f32.mrb[156].mxu1 }
 0x620   : > { %11444 = vtanh.bf16 %v3549_v15  ;;  %v3450_v21 = vpop.f32.mrb[157].mxu1  ;;  %v3449_v27 = vadd.f32 %v3448_v33, %v13406_v13 }
 0x621   : > { %v3452_v22 = vpop.f32.mrb[158].mxu1  ;;  %v3451_v32 = vadd.f32 %v3450_v21, %v13409_v59 }
 0x622   : > { %v11439_v25 = vpop.eup %11438  ;;  %v3453_v28 = vadd.f32 %v3452_v22, %v13406_v13  ;;  %v3454_v29 = vpop.f32.mrb[159].mxu1 }
 0x623   : > { %v11441_v31 = vpop.eup %11440  ;;  %v3455_v11 = vadd.f32 %v3454_v29, %v13409_v59  ;;  %3808 = vmatprep.mubr.bf16.mxu0 %v11439_v25 }
 0x624   : > { %v3551_v34 = vpack.c.bf16 %v3453_v28, %v3449_v27  ;;  %3809 = vmatmul.mubr.bf16.gmra.mrb[212].mxu0 %v11441_v31 }
 0x625   : > { %v3552_v35 = vpack.c.bf16 %v3455_v11, %v3451_v32 }
 0x627   : > { %11446 = vtanh.bf16 %v3552_v35  ;;  %v3458_v38 = vpop.f32.mrb[160].mxu1 }
 0x628   : > { %11448 = vtanh.bf16 %v3551_v34  ;;  %v3460_v39 = vpop.f32.mrb[161].mxu1  ;;  %v3459_v42 = vadd.f32 %v3458_v38, %v13406_v13 }
 0x629   : > { %v3462_v58 = vpop.f32.mrb[162].mxu1  ;;  %v3461_v45 = vadd.f32 %v3460_v39, %v13409_v59 }
 0x62a   : > { %v11443_v40 = vpop.eup %11442  ;;  %v3463_v26 = vadd.f32 %v3462_v58, %v13406_v13  ;;  %v3464_v43 = vpop.f32.mrb[163].mxu1 }
 0x62b   : > { %v11445_v44 = vpop.eup %11444  ;;  %v3465_v46 = vadd.f32 %v3464_v43, %v13409_v59  ;;  %3816 = vmatprep.mubr.bf16.mxu0 %v11443_v40 }
 0x62c   : > { %v3553_v47 = vpack.c.bf16 %v3463_v26, %v3459_v42  ;;  %3817 = vmatmul.mubr.bf16.gmra.mrb[216].mxu0 %v11445_v44 }
 0x62d   : > { %v3554_v52 = vpack.c.bf16 %v3465_v46, %v3461_v45 }
 0x62f   : > { %11450 = vtanh.bf16 %v3554_v52  ;;  %v3468_v53 = vpop.f32.mrb[164].mxu1 }
 0x630   : > { %11452 = vtanh.bf16 %v3553_v47  ;;  %v3470_v54 = vpop.f32.mrb[165].mxu1  ;;  %v3469_v61 = vadd.f32 %v3468_v53, %v13406_v13 }
 0x631   : > { %v3472_v41 = vpop.f32.mrb[166].mxu1  ;;  %v3471_v2 = vadd.f32 %v3470_v54, %v13409_v59 }
 0x632   : > { %v11447_v57 = vpop.eup %11446  ;;  %v3473_v62 = vadd.f32 %v3472_v41, %v13406_v13  ;;  %v3474_v63 = vpop.f32.mrb[167].mxu1 }
 0x633   : > { %v11449_v0 = vpop.eup %11448  ;;  %v3475_v20 = vadd.f32 %v3474_v63, %v13409_v59  ;;  %3824 = vmatprep.mubr.bf16.mxu0 %v11447_v57 }
 0x634   : > { %v3555_v4 = vpack.c.bf16 %v3473_v62, %v3469_v61  ;;  %3825 = vmatmul.mubr.bf16.gmra.mrb[220].mxu0 %v11449_v0 }
 0x635   : > { %v3556_v6 = vpack.c.bf16 %v3475_v20, %v3471_v2 }
 0x637   : > { %11454 = vtanh.bf16 %v3556_v6  ;;  %v3478_v7 = vpop.f32.mrb[168].mxu1 }
 0x638   : > { %11456 = vtanh.bf16 %v3555_v4  ;;  %v3480_v8 = vpop.f32.mrb[169].mxu1  ;;  %v3479_v14 = vadd.f32 %v3478_v7, %v13406_v13 }
 0x639   : > { %v3482_v51 = vpop.f32.mrb[170].mxu1  ;;  %v3481_v33 = vadd.f32 %v3480_v8, %v13409_v59 }
 0x63a   : > { %v11451_v12 = vpop.eup %11450  ;;  %v3483_v15 = vadd.f32 %v3482_v51, %v13406_v13  ;;  %v3484_v17 = vpop.f32.mrb[171].mxu1 }
 0x63b   : > { %v11453_v18 = vpop.eup %11452  ;;  %v3485_v19 = vadd.f32 %v3484_v17, %v13409_v59  ;;  %3832 = vmatprep.mubr.bf16.mxu0 %v11451_v12  ;;  %v10810_v17 = vld [vmem:[#allocation8 + $0xe0] ss:$8 sps:$4 sm:$0xff]  }
 0x63c   : > { %v3557_v21 = vpack.c.bf16 %v3483_v15, %v3479_v14  ;;  %3833 = vmatmul.mubr.bf16.gmra.mrb[224].mxu0 %v11453_v18  ;;  %v10812_v18 = vld [vmem:[#allocation8 + $0xe4] ss:$8 sps:$4 sm:$0xff]  }
 0x63d   : > { %v3558_v22 = vpack.c.bf16 %v3485_v19, %v3481_v33  ;;  %4161 = vmatprep.subr.bf16.mxu1 %v10812_v18 }
 0x63e   : > { %4162 = vmatpush1.bf16.msra.mxu1 %v10810_v17 }
 0x63f   : > { %11458 = vtanh.bf16 %v3558_v22  ;;  %v3488_v25 = vpop.f32.mrb[172].mxu1 }
 0x640   : > { %11460 = vtanh.bf16 %v3557_v21  ;;  %v3490_v27 = vpop.f32.mrb[173].mxu1  ;;  %v3489_v31 = vadd.f32 %v3488_v25, %v13406_v13 }
 0x641   : > { %v3492_v28 = vpop.f32.mrb[174].mxu1  ;;  %v3491_v35 = vadd.f32 %v3490_v27, %v13409_v59 }
 0x642   : > { %v11455_v29 = vpop.eup %11454  ;;  %v3493_v32 = vadd.f32 %v3492_v28, %v13406_v13  ;;  %v3494_v11 = vpop.f32.mrb[175].mxu1 }
 0x643   : > { %v11457_v34 = vpop.eup %11456  ;;  %v3495_v38 = vadd.f32 %v3494_v11, %v13409_v59  ;;  %3840 = vmatprep.mubr.bf16.mxu0 %v11455_v29  ;;  %v10815_v11 = vld [vmem:[#allocation8 + $0xf4] ss:$8 sps:$4 sm:$0xff]  }
 0x644   : > { %v3559_v39 = vpack.c.bf16 %v3493_v32, %v3489_v31  ;;  %3841 = vmatmul.mubr.bf16.gmra.mrb[228].mxu0 %v11457_v34  ;;  %4163 = vmatprep.subr.bf16.mxu1 %v10815_v11 }
 0x645   : > { %v3560_v58 = vpack.c.bf16 %v3495_v38, %v3491_v35  ;;  %v10813_v35 = vld [vmem:[#allocation8 + $0xf0] ss:$8 sps:$4 sm:$0xff]  }
 0x646   : > { %4164 = vmatpush1.bf16.msra.mxu1 %v10813_v35 }
 0x647   : > { %11462 = vtanh.bf16 %v3560_v58  ;;  %v3498_v40 = vpop.f32.mrb[176].mxu1 }
 0x648   : > { %11464 = vtanh.bf16 %v3559_v39  ;;  %v3500_v42 = vpop.f32.mrb[177].mxu1  ;;  %v3499_v44 = vadd.f32 %v3498_v40, %v13406_v13 }
 0x649   : > { %v3502_v26 = vpop.f32.mrb[178].mxu1  ;;  %v3501_v52 = vadd.f32 %v3500_v42, %v13409_v59 }
 0x64a   : > { %v11459_v43 = vpop.eup %11458  ;;  %v3503_v45 = vadd.f32 %v3502_v26, %v13406_v13  ;;  %v3504_v46 = vpop.f32.mrb[179].mxu1 }
 0x64b   : > { %v11461_v47 = vpop.eup %11460  ;;  %v3505_v53 = vadd.f32 %v3504_v46, %v13409_v59  ;;  %3848 = vmatprep.mubr.bf16.mxu0 %v11459_v43 }
 0x64c   : > { %v3561_v54 = vpack.c.bf16 %v3503_v45, %v3499_v44  ;;  %3849 = vmatmul.mubr.bf16.gmra.mrb[232].mxu0 %v11461_v47  ;;  %v5134_v47 = vld [vmem:[%s15280_s1] sm:$0xff] }
 0x64d   : > { %v3562_v41 = vpack.c.bf16 %v3505_v53, %v3501_v52  ;;  %v9545_v53 = vcombine.high %v5134_v47, %v5134_v47 }
 0x64f   : > { %11466 = vtanh.bf16 %v3562_v41  ;;  %v3508_v57 = vpop.f32.mrb[180].mxu1  ;;  %9546 = vmatprep.subr.msk.bf16.mxu1 %vm1229_vm0, %v9545_v53 }
 0x650   : > { %11468 = vtanh.bf16 %v3561_v54  ;;  %v3510_v61 = vpop.f32.mrb[181].mxu1  ;;  %v3509_v0 = vadd.f32 %v3508_v57, %v13406_v13 }
 0x651   : > { %v3512_v62 = vpop.f32.mrb[182].mxu1  ;;  %v3511_v6 = vadd.f32 %v3510_v61, %v13409_v59 }
 0x652   : > { %v11463_v63 = vpop.eup %11462  ;;  %v3513_v2 = vadd.f32 %v3512_v62, %v13406_v13  ;;  %v3514_v20 = vpop.f32.mrb[183].mxu1 }
 0x653   : > { %v11465_v4 = vpop.eup %11464  ;;  %v3515_v7 = vadd.f32 %v3514_v20, %v13409_v59  ;;  %3856 = vmatprep.mubr.bf16.mxu0 %v11463_v63  ;;  %v10818_v63 = vld [vmem:[%s15247_s17 + $0x40] sm:$0xff]  }
 0x654   : > { %v3563_v8 = vpack.c.bf16 %v3513_v2, %v3509_v0  ;;  %3857 = vmatmul.mubr.bf16.gmra.mrb[236].mxu0 %v11465_v4  ;;  %v10819_v0 = vld [vmem:[%s15247_s17] sm:$0xff]   ;;  %10016 = vmatprep.subr.bf16.mxu0 %v10818_v63 }
 0x655   : > { %v3564_v51 = vpack.c.bf16 %v3515_v7, %v3511_v6  ;;  %v13488_v2 = vld [vmem:[%s15283_s21] ss:$0 sm:$0xff]  ;;  %10017 = vmatpush3.bf16.msra.mxu0 %v10819_v0 }
 0x657   : > { %11470 = vtanh.bf16 %v3564_v51  ;;  %v3518_v12 = vpop.f32.mrb[184].mxu1 }
 0x658   : > { %11472 = vtanh.bf16 %v3563_v8  ;;  %v3520_v14 = vpop.f32.mrb[185].mxu1  ;;  %v3519_v19 = vadd.f32 %v3518_v12, %v13406_v13  ;;  %v10820_v8 = vld [vmem:[%s15247_s17 + $0x48] sm:$0xff]  }
 0x659   : > { %v3522_v15 = vpop.f32.mrb[186].mxu1  ;;  %v3521_v27 = vadd.f32 %v3520_v14, %v13409_v59  ;;  %10018 = vmatprep.subr.bf16.mxu0 %v10820_v8 }
 0x65a   : > { %v11467_v33 = vpop.eup %11466  ;;  %v3523_v21 = vadd.f32 %v3522_v15, %v13406_v13  ;;  %v3524_v22 = vpop.f32.mrb[187].mxu1 }
 0x65b   : > { %v11469_v25 = vpop.eup %11468  ;;  %v3525_v28 = vadd.f32 %v3524_v22, %v13409_v59  ;;  %3864 = vmatprep.mubr.bf16.mxu0 %v11467_v33  ;;  %v10821_v22 = vld [vmem:[%s15247_s17 + $0x8] sm:$0xff]  }
 0x65c   : > { %v3565_v29 = vpack.c.bf16 %v3523_v21, %v3519_v19  ;;  %3865 = vmatmul.mubr.bf16.gmra.mrb[240].mxu0 %v11469_v25 }
 0x65d   : > { %v3566_v31 = vpack.c.bf16 %v3525_v28, %v3521_v27  ;;  %v9544_v28 = vcombine.low %v5134_v47, %v5134_v47  ;;  %10019 = vmatpush3.bf16.msra.mxu0 %v10821_v22 }
 0x65f   : > { %11474 = vtanh.bf16 %v3566_v31  ;;  %v3528_v32 = vpop.f32.mrb[188].mxu1  ;;  %v5281_v35 = vsel %vm1229_vm0, %v9544_v28, 0 }
 0x660   : > { %11476 = vtanh.bf16 %v3565_v29  ;;  %v3530_v34 = vpop.f32.mrb[189].mxu1  ;;  %v3529_v58 = vadd.f32 %v3528_v32, %v13406_v13 }
 0x661   : > { %v3532_v38 = vpop.f32.mrb[190].mxu1  ;;  %v3531_v43 = vadd.f32 %v3530_v34, %v13409_v59 }
 0x662   : > { %v11471_v39 = vpop.eup %11470  ;;  %v3533_v40 = vadd.f32 %v3532_v38, %v13406_v13  ;;  %v3534_v42 = vpop.f32.mrb[191].mxu1 }
 0x663   : > { %v11473_v26 = vpop.eup %11472  ;;  %v3535_v44 = vadd.f32 %v3534_v42, %v13409_v59  ;;  %3872 = vmatprep.mubr.bf16.mxu0 %v11471_v39  ;;  %v10824_v42 = vld [vmem:[%s15247_s17 + $0x10] sm:$0xff]  }
 0x664   : > { %v3567_v45 = vpack.c.bf16 %v3533_v40, %v3529_v58  ;;  %3873 = vmatmul.mubr.bf16.gmra.mrb[244].mxu0 %v11473_v26  ;;  %v10823_v40 = vld [vmem:[%s15247_s17 + $0x50] sm:$0xff]  }
 0x665   : > { %v3568_v46 = vpack.c.bf16 %v3535_v44, %v3531_v43  ;;  %10020 = vmatprep.subr.bf16.mxu0 %v10823_v40 }
 0x666   : > { %10021 = vmatpush3.bf16.msra.mxu0 %v10824_v42 }
 0x667   : > { %11478 = vtanh.bf16 %v3568_v46 }
 0x668   : > { %11480 = vtanh.bf16 %v3567_v45 }
 0x66a   : > { %v11475_v52 = vpop.eup %11474 }
 0x66b   : > { %v11477_v13 = vpop.eup %11476  ;;  %3880 = vmatprep.mubr.bf16.mxu0 %v11475_v52 }
 0x66c   : > { %3881 = vmatmul.mubr.bf16.gmra.mrb[248].mxu0 %v11477_v13 }
 0x672   : > { %v11479_v54 = vpop.eup %11478 }
 0x673   : > { %v11481_v41 = vpop.eup %11480  ;;  %3888 = vmatprep.mubr.bf16.mxu0 %v11479_v54 }
 0x674   : > { %3889 = vmatmul.mubr.bf16.gmra.mrb[252].mxu0 %v11481_v41 }
 0x6cf   : > { %v9920_v59 = vpop.f32.mrb[192].mxu0 }
 0x6d0   : > { %v9921_v57 = vpop.f32.mrb[193].mxu0 }
 0x6d1   : > { %v9922_v61 = vadd.f32 %v9921_v57, %v9920_v59  ;;  %v9923_v62 = vpop.f32.mrb[194].mxu0 }
 0x6d2   : > { %v9924_v20 = vpop.f32.mrb[195].mxu0 }
 0x6d3   : > { %v9925_v4 = vadd.f32 %v9924_v20, %v9923_v62  ;;  %v3771_v6 = vadd.f32 %v9922_v61, %v13488_v2 }
 0x6d5   : > { %v3774_v7 = vadd.f32 %v9925_v4, %v13488_v2 }
 0x6d7   : > { %v3897_v51 = vpack.c.bf16 %v3774_v7, %v3771_v6  ;;  %v9926_v12 = vpop.f32.mrb[196].mxu0  ;;  %v10827_v6 = vld [vmem:[%s15247_s17 + $0x58] sm:$0xff]  }
 0x6d8   : > { %v9927_v14 = vpop.f32.mrb[197].mxu0  ;;  %10022 = vmatprep.subr.bf16.mxu0 %v10827_v6 }
 0x6d9   : > { %11482 = vtanh.bf16 %v3897_v51  ;;  %v9928_v15 = vadd.f32 %v9927_v14, %v9926_v12  ;;  %v9929_v17 = vpop.f32.mrb[198].mxu0 }
 0x6da   : > { %v9930_v18 = vpop.f32.mrb[199].mxu0 }
 0x6db   : > { %v9931_v33 = vadd.f32 %v9930_v18, %v9929_v17  ;;  %v3779_v19 = vadd.f32 %v9928_v15, %v13488_v2 }
 0x6dd   : > { %v3782_v21 = vadd.f32 %v9931_v33, %v13488_v2 }
 0x6df   : > { %v3898_v25 = vpack.c.bf16 %v3782_v21, %v3779_v19  ;;  %v9932_v27 = vpop.f32.mrb[200].mxu0 }
 0x6e0   : > { %v9933_v29 = vpop.f32.mrb[201].mxu0 }
 0x6e1   : > { %11484 = vtanh.bf16 %v3898_v25  ;;  %v9934_v31 = vadd.f32 %v9933_v29, %v9932_v27  ;;  %v9935_v32 = vpop.f32.mrb[202].mxu0 }
 0x6e2   : > { %v9936_v11 = vpop.f32.mrb[203].mxu0 }
 0x6e3   : > { %v9937_v34 = vadd.f32 %v9936_v11, %v9935_v32  ;;  %v3787_v39 = vadd.f32 %v9934_v31, %v13488_v2 }
 0x6e4   : > { %v11483_v38 = vpop.eup %11482 }
 0x6e5   : > { %v3790_v58 = vadd.f32 %v9937_v34, %v13488_v2  ;;  %4166 = vmatmul.mubr.bf16.vlgmr.msra.gmra.mrb[192].mxu1 %v11483_v38  ;;  %v10831_v34 = vld [vmem:[%s15247_s17 + $0x60] sm:$0xff]  }
 0x6e6   : > { %5287 = vmatpush1.bf16.msra.mxu1 %v5281_v35  ;;  %4175 = vmatprep.mubr.bf16.mxu1 %v13241_v36 }
 0x6e7   : > { %v3899_v26 = vpack.c.bf16 %v3790_v58, %v3787_v39  ;;  %v9938_v43 = vpop.f32.mrb[204].mxu0 }
 0x6e8   : > { %v9939_v44 = vpop.f32.mrb[205].mxu0 }
 0x6e9   : > { %11486 = vtanh.bf16 %v3899_v26  ;;  %v9940_v45 = vadd.f32 %v9939_v44, %v9938_v43  ;;  %v9941_v46 = vpop.f32.mrb[206].mxu0 }
 0x6ea   : > { %v9942_v47 = vpop.f32.mrb[207].mxu0 }
 0x6eb   : > { %v9943_v52 = vadd.f32 %v9942_v47, %v9941_v46  ;;  %v3795_v13 = vadd.f32 %v9940_v45, %v13488_v2 }
 0x6ec   : > { %v11485_v53 = vpop.eup %11484 }
 0x6ed   : > { %v3798_v54 = vadd.f32 %v9943_v52, %v13488_v2  ;;  %4176 = vmatmul.mubr.bf16.gmra.mrb[196].mxu1 %v11485_v53 }
 0x6ee   : > { %4185 = vmatprep.mubr.bf16.mxu1 %v13247_v48  ;;  %v10828_v48 = vld [vmem:[%s15247_s17 + $0x18] sm:$0xff]  }
 0x6ef   : > { %v3900_v36 = vpack.c.bf16 %v3798_v54, %v3795_v13  ;;  %v9944_v41 = vpop.f32.mrb[208].mxu0  ;;  %10023 = vmatpush3.bf16.msra.mxu0 %v10828_v48 }
 0x6f0   : > { %v9945_v59 = vpop.f32.mrb[209].mxu0  ;;  %10024 = vmatprep.subr.bf16.mxu0 %v10831_v34 }
 0x6f1   : > { %11488 = vtanh.bf16 %v3900_v36  ;;  %v9946_v57 = vadd.f32 %v9945_v59, %v9944_v41  ;;  %v9947_v61 = vpop.f32.mrb[210].mxu0 }
 0x6f2   : > { %v9948_v62 = vpop.f32.mrb[211].mxu0 }
 0x6f3   : > { %v9949_v63 = vadd.f32 %v9948_v62, %v9947_v61  ;;  %v3803_v20 = vadd.f32 %v9946_v57, %v13488_v2  ;;  %v10835_v57 = vld [vmem:[%s15247_s17 + $0x68] sm:$0xff]  }
 0x6f4   : > { %v11487_v0 = vpop.eup %11486 }
 0x6f5   : > { %v3806_v4 = vadd.f32 %v9949_v63, %v13488_v2  ;;  %4186 = vmatmul.mubr.bf16.gmra.mrb[200].mxu1 %v11487_v0 }
 0x6f6   : > { %4195 = vmatprep.mubr.bf16.mxu1 %v13253_v3 }
 0x6f7   : > { %v3901_v7 = vpack.c.bf16 %v3806_v4, %v3803_v20  ;;  %v9950_v8 = vpop.f32.mrb[212].mxu0 }
 0x6f8   : > { %v9951_v51 = vpop.f32.mrb[213].mxu0 }
 0x6f9   : > { %11490 = vtanh.bf16 %v3901_v7  ;;  %v9952_v12 = vadd.f32 %v9951_v51, %v9950_v8  ;;  %v9953_v14 = vpop.f32.mrb[214].mxu0 }
 0x6fa   : > { %v9954_v15 = vpop.f32.mrb[215].mxu0 }
 0x6fb   : > { %v9955_v17 = vadd.f32 %v9954_v15, %v9953_v14  ;;  %v3811_v33 = vadd.f32 %v9952_v12, %v13488_v2 }
 0x6fc   : > { %v11489_v18 = vpop.eup %11488 }
 0x6fd   : > { %v3814_v19 = vadd.f32 %v9955_v17, %v13488_v2  ;;  %4196 = vmatmul.mubr.bf16.gmra.mrb[204].mxu1 %v11489_v18 }
 0x6fe   : > { %4205 = vmatprep.mubr.bf16.mxu1 %v13259_v16  ;;  %v10832_v16 = vld [vmem:[%s15247_s17 + $0x20] sm:$0xff]  }
 0x6ff   : > { %v3902_v3 = vpack.c.bf16 %v3814_v19, %v3811_v33  ;;  %v9956_v21 = vpop.f32.mrb[216].mxu0  ;;  %10025 = vmatpush3.bf16.msra.mxu0 %v10832_v16 }
 0x700   : > { %v9957_v22 = vpop.f32.mrb[217].mxu0  ;;  %10026 = vmatprep.subr.bf16.mxu0 %v10835_v57 }
 0x701   : > { %11492 = vtanh.bf16 %v3902_v3  ;;  %v9958_v25 = vadd.f32 %v9957_v22, %v9956_v21  ;;  %v9959_v27 = vpop.f32.mrb[218].mxu0  ;;  %v10839_v21 = vld [vmem:[%s15247_s17 + $0x70] sm:$0xff]  }
 0x702   : > { %v9960_v28 = vpop.f32.mrb[219].mxu0 }
 0x703   : > { %v9961_v29 = vadd.f32 %v9960_v28, %v9959_v27  ;;  %v3819_v32 = vadd.f32 %v9958_v25, %v13488_v2 }
 0x704   : > { %v11491_v31 = vpop.eup %11490 }
 0x705   : > { %v3822_v11 = vadd.f32 %v9961_v29, %v13488_v2  ;;  %4206 = vmatmul.mubr.bf16.gmra.mrb[208].mxu1 %v11491_v31 }
 0x706   : > { %4215 = vmatprep.mubr.bf16.mxu1 %v13265_v30 }
 0x707   : > { %v3903_v35 = vpack.c.bf16 %v3822_v11, %v3819_v32  ;;  %v9962_v38 = vpop.f32.mrb[220].mxu0 }
 0x708   : > { %v9963_v39 = vpop.f32.mrb[221].mxu0 }
 0x709   : > { %11494 = vtanh.bf16 %v3903_v35  ;;  %v9964_v58 = vadd.f32 %v9963_v39, %v9962_v38  ;;  %v9965_v40 = vpop.f32.mrb[222].mxu0 }
 0x70a   : > { %v9966_v42 = vpop.f32.mrb[223].mxu0 }
 0x70b   : > { %v9967_v26 = vadd.f32 %v9966_v42, %v9965_v40  ;;  %v3827_v44 = vadd.f32 %v9964_v58, %v13488_v2 }
 0x70c   : > { %v11493_v43 = vpop.eup %11492 }
 0x70d   : > { %v3830_v45 = vadd.f32 %v9967_v26, %v13488_v2  ;;  %4216 = vmatmul.mubr.bf16.gmra.mrb[212].mxu1 %v11493_v43 }
 0x70e   : > { %4225 = vmatprep.mubr.bf16.mxu1 %v13273_v24  ;;  %v10836_v24 = vld [vmem:[%s15247_s17 + $0x28] sm:$0xff]  }
 0x70f   : > { %v3904_v30 = vpack.c.bf16 %v3830_v45, %v3827_v44  ;;  %v9968_v46 = vpop.f32.mrb[224].mxu0  ;;  %10027 = vmatpush3.bf16.msra.mxu0 %v10836_v24  ;;  %v10844_v24 = vld [vmem:[%s15247_s17 + $0x38] sm:$0xff]  }
 0x710   : > { %v9969_v47 = vpop.f32.mrb[225].mxu0  ;;  %10028 = vmatprep.subr.bf16.mxu0 %v10839_v21  ;;  %v10829_v21 = vld [vmem:[%s12658_s19 + $0x98] sm:$0xff]  }
 0x711   : > { %11496 = vtanh.bf16 %v3904_v30  ;;  %v9970_v52 = vadd.f32 %v9969_v47, %v9968_v46  ;;  %v9971_v53 = vpop.f32.mrb[226].mxu0 }
 0x712   : > { %v9972_v13 = vpop.f32.mrb[227].mxu0 }
 0x713   : > { %v9973_v54 = vadd.f32 %v9972_v13, %v9971_v53  ;;  %v3835_v41 = vadd.f32 %v9970_v52, %v13488_v2 }
 0x714   : > { %v11495_v36 = vpop.eup %11494 }
 0x715   : > { %v3838_v59 = vadd.f32 %v9973_v54, %v13488_v2  ;;  %4226 = vmatmul.mubr.bf16.gmra.mrb[216].mxu1 %v11495_v36 }
 0x716   : > { %4235 = vmatprep.mubr.bf16.mxu1 %v13279_v50 }
 0x717   : > { %v3905_v61 = vpack.c.bf16 %v3838_v59, %v3835_v41  ;;  %v9974_v62 = vpop.f32.mrb[228].mxu0 }
 0x718   : > { %v9975_v63 = vpop.f32.mrb[229].mxu0 }
 0x719   : > { %11498 = vtanh.bf16 %v3905_v61  ;;  %v9976_v0 = vadd.f32 %v9975_v63, %v9974_v62  ;;  %v9977_v20 = vpop.f32.mrb[230].mxu0 }
 0x71a   : > { %v9978_v4 = vpop.f32.mrb[231].mxu0 }
 0x71b   : > { %v9979_v6 = vadd.f32 %v9978_v4, %v9977_v20  ;;  %v3843_v7 = vadd.f32 %v9976_v0, %v13488_v2 }
 0x71c   : > { %v11497_v48 = vpop.eup %11496 }
 0x71d   : > { %v3846_v8 = vadd.f32 %v9979_v6, %v13488_v2  ;;  %4236 = vmatmul.mubr.bf16.gmra.mrb[220].mxu1 %v11497_v48 }
 0x71e   : > { %4245 = vmatprep.mubr.bf16.mxu1 %v13285_v1  ;;  %v10840_v1 = vld [vmem:[%s15247_s17 + $0x30] sm:$0xff]  }
 0x71f   : > { %v3906_v50 = vpack.c.bf16 %v3846_v8, %v3843_v7  ;;  %v9980_v51 = vpop.f32.mrb[232].mxu0  ;;  %10029 = vmatpush3.bf16.msra.mxu0 %v10840_v1  ;;  %v10830_v1 = vld [vmem:[%s12658_s19 + $0xa0] sm:$0xff]  }
 0x720   : > { %v9981_v12 = vpop.f32.mrb[233].mxu0 }
 0x721   : > { %11500 = vtanh.bf16 %v3906_v50  ;;  %v9982_v14 = vadd.f32 %v9981_v12, %v9980_v51  ;;  %v9983_v15 = vpop.f32.mrb[234].mxu0 }
 0x722   : > { %v9984_v17 = vpop.f32.mrb[235].mxu0 }
 0x723   : > { %v9985_v18 = vadd.f32 %v9984_v17, %v9983_v15  ;;  %v3851_v19 = vadd.f32 %v9982_v14, %v13488_v2 }
 0x724   : > { %v11499_v33 = vpop.eup %11498 }
 0x725   : > { %v3854_v3 = vadd.f32 %v9985_v18, %v13488_v2  ;;  %4246 = vmatmul.mubr.bf16.gmra.mrb[224].mxu1 %v11499_v33 }
 0x726   : > { %4255 = vmatprep.mubr.bf16.mxu1 %v13291_v10 }
 0x727   : > { %v3907_v22 = vpack.c.bf16 %v3854_v3, %v3851_v19  ;;  %v9986_v25 = vpop.f32.mrb[236].mxu0  ;;  %v10825_v3 = vld [vmem:[%s12658_s19 + $0x88] sm:$0xff]  }
 0x728   : > { %v9987_v27 = vpop.f32.mrb[237].mxu0 }
 0x729   : > { %11502 = vtanh.bf16 %v3907_v22  ;;  %v9988_v28 = vadd.f32 %v9987_v27, %v9986_v25  ;;  %v9989_v29 = vpop.f32.mrb[238].mxu0  ;;  %v10833_v22 = vld [vmem:[%s12658_s19 + $0xa8] sm:$0xff]   ;;  %v10834_v25 = vld [vmem:[%s12658_s19 + $0xb0] sm:$0xff]   ;;  %v10837_v27 = vld [vmem:[%s12658_s19 + $0xb8] sm:$0xff]  }
 0x72a   : > { %v9990_v31 = vpop.f32.mrb[239].mxu0 }
 0x72b   : > { %v9991_v32 = vadd.f32 %v9990_v31, %v9989_v29  ;;  %v3859_v34 = vadd.f32 %v9988_v28, %v13488_v2  ;;  %v10838_v28 = vld [vmem:[%s12658_s19 + $0xc0] sm:$0xff]   ;;  %v10841_v29 = vld [vmem:[%s12658_s19 + $0xc8] sm:$0xff]   ;;  %v10842_v31 = vld [vmem:[%s12658_s19 + $0xd0] sm:$0xff]  }
 0x72c   : > { %v11501_v11 = vpop.eup %11500 }
 0x72d   : > { %v3862_v16 = vadd.f32 %v9991_v32, %v13488_v2  ;;  %4256 = vmatmul.mubr.bf16.gmra.mrb[228].mxu1 %v11501_v11  ;;  %v3961_v32 = vld [vmem:[%s15284_s22] sm:$0x3] }
 0x72e   : > { %4265 = vmatprep.mubr.bf16.mxu1 %v13297_v23  ;;  %v13623_v11 = vrot.slane %v3961_v32, %v12808_v55 }
 0x72f   : > { %v3908_v10 = vpack.c.bf16 %v3862_v16, %v3859_v34  ;;  %v9992_v35 = vpop.f32.mrb[240].mxu0  ;;  %v13626_v16 = vrot.slane %v3961_v32, %v12810_v56  ;;  %v10858_v32 = vld [vmem:[%s12658_s19 + $0xf8] sm:$0xff]  }
 0x730   : > { %v9993_v38 = vpop.f32.mrb[241].mxu0 }
 0x731   : > { %11504 = vtanh.bf16 %v3908_v10  ;;  %v9994_v39 = vadd.f32 %v9993_v38, %v9992_v35  ;;  %v9995_v58 = vpop.f32.mrb[242].mxu0  ;;  %v10845_v35 = vld [vmem:[%s12658_s19 + $0xd8] sm:$0xff]  }
 0x732   : > { %v9996_v40 = vpop.f32.mrb[243].mxu0 }
 0x733   : > { %v9997_v42 = vadd.f32 %v9996_v40, %v9995_v58  ;;  %v3867_v43 = vadd.f32 %v9994_v39, %v13488_v2 }
 0x734   : > { %v11503_v26 = vpop.eup %11502 }
 0x735   : > { %v3870_v44 = vadd.f32 %v9997_v42, %v13488_v2  ;;  %4266 = vmatmul.mubr.bf16.gmra.mrb[232].mxu1 %v11503_v26 }
 0x736   : > { %4275 = vmatprep.mubr.bf16.mxu1 %v13303_v37  ;;  %v10843_v37 = vld [vmem:[%s15247_s17 + $0x78] sm:$0xff]  }
 0x737   : > { %v3909_v45 = vpack.c.bf16 %v3870_v44, %v3867_v43  ;;  %v9998_v30 = vpop.f32.mrb[244].mxu0  ;;  %10030 = vmatprep.subr.bf16.mxu0 %v10843_v37  ;;  %v10850_v37 = vld [vmem:[%s12658_s19 + $0xe8] sm:$0xff]  }
 0x738   : > { %v9999_v46 = vpop.f32.mrb[245].mxu0  ;;  %10031 = vmatpush3.bf16.msra.mxu0 %v10844_v24 }
 0x739   : > { %11506 = vtanh.bf16 %v3909_v45  ;;  %v10000_v23 = vadd.f32 %v9999_v46, %v9998_v30  ;;  %v10001_v47 = vpop.f32.mrb[246].mxu0  ;;  %v10846_v46 = vld [vmem:[%s12658_s19 + $0xe0] sm:$0xff]  }
 0x73a   : > { %v10002_v52 = vpop.f32.mrb[247].mxu0 }
 0x73b   : > { %v10003_v53 = vadd.f32 %v10002_v52, %v10001_v47  ;;  %v3875_v54 = vadd.f32 %v10000_v23, %v13488_v2 }
 0x73c   : > { %v11505_v13 = vpop.eup %11504 }
 0x73d   : > { %v3878_v36 = vadd.f32 %v10003_v53, %v13488_v2  ;;  %4276 = vmatmul.mubr.bf16.gmra.mrb[236].mxu1 %v11505_v13 }
 0x73e   : > { %4285 = vmatprep.mubr.bf16.mxu1 %v13309_v49 }
 0x73f   : > { %v3910_v41 = vpack.c.bf16 %v3878_v36, %v3875_v54  ;;  %v10004_v59 = vpop.f32.mrb[248].mxu0 }
 0x740   : > { %v10005_v57 = vpop.f32.mrb[249].mxu0 }
 0x741   : > { %11508 = vtanh.bf16 %v3910_v41  ;;  %v10006_v61 = vadd.f32 %v10005_v57, %v10004_v59  ;;  %v10007_v62 = vpop.f32.mrb[250].mxu0 }
 0x742   : > { %v10008_v63 = vpop.f32.mrb[251].mxu0 }
 0x743   : > { %v10009_v0 = vadd.f32 %v10008_v63, %v10007_v62  ;;  %v3883_v49 = vadd.f32 %v10006_v61, %v13488_v2  ;;  %v10847_v61 = vld [vmem:[%s15281_s23] ss:$8 sps:$4 sm:$0xff]  }
 0x744   : > { %v11507_v20 = vpop.eup %11506 }
 0x745   : > { %v3886_v4 = vadd.f32 %v10009_v0, %v13488_v2  ;;  %4286 = vmatmul.mubr.bf16.gmra.mrb[240].mxu1 %v11507_v20 }
 0x746   : > { %4295 = vmatprep.mubr.bf16.mxu1 %v13315_v5  ;;  %v10849_v5 = vld [vmem:[%s15281_s23 + $0x4] ss:$8 sps:$4 sm:$0xff]  }
 0x747   : > { %v3911_v6 = vpack.c.bf16 %v3886_v4, %v3883_v49  ;;  %v10010_v48 = vpop.f32.mrb[252].mxu0  ;;  %5747 = vmatprep.subr.bf16.mxu0 %v10849_v5  ;;  %v10853_v49 = vld [vmem:[%s15281_s23 + $0x14] ss:$8 sps:$4 sm:$0xff]  }
 0x748   : > { %v10011_v7 = vpop.f32.mrb[253].mxu0 }
 0x749   : > { %11510 = vtanh.bf16 %v3911_v6  ;;  %v10012_v8 = vadd.f32 %v10011_v7, %v10010_v48  ;;  %v10013_v50 = vpop.f32.mrb[254].mxu0 }
 0x74a   : > { %v10014_v51 = vpop.f32.mrb[255].mxu0 }
 0x74b   : > { %v10015_v12 = vadd.f32 %v10014_v51, %v10013_v50  ;;  %v3891_v15 = vadd.f32 %v10012_v8, %v13488_v2  ;;  %v10851_v50 = vld [vmem:[%s15281_s23 + $0x10] ss:$8 sps:$4 sm:$0xff]   ;;  %v10857_v51 = vld [vmem:[%s15281_s23 + $0x24] ss:$8 sps:$4 sm:$0xff]  }
 0x74c   : > { %v11509_v14 = vpop.eup %11508 }
 0x74d   : > { %v3894_v17 = vadd.f32 %v10015_v12, %v13488_v2  ;;  %4296 = vmatmul.mubr.bf16.gmra.mrb[244].mxu1 %v11509_v14  ;;  %v13583_v2 = vld [vmem:[#allocation2 + $0x8] sm:$0xff] }
 0x74e   : > { %4305 = vmatprep.mubr.bf16.mxu1 %v13321_v60  ;;  %v10822_v60 = vld [vmem:[%s12658_s19 + $0x80] sm:$0xff]  }
 0x74f   : > { %v3912_v18 = vpack.c.bf16 %v3894_v17, %v3891_v15  ;;  %v10854_v15 = vld [vmem:[%s12658_s19 + $0xf0] sm:$0xff]  }
 0x751   : > { %11512 = vtanh.bf16 %v3912_v18  ;;  %v10855_v18 = vld [vmem:[%s15281_s23 + $0x20] ss:$8 sps:$4 sm:$0xff]  }
 0x754   : > { %v11511_v33 = vpop.eup %11510 }
 0x755   : > { %4306 = vmatmul.mubr.bf16.gmra.mrb[248].mxu1 %v11511_v33 }
 0x756   : > { %4315 = vmatprep.mubr.bf16.mxu1 %v13325_v9  ;;  %v10826_v9 = vld [vmem:[%s12658_s19 + $0x90] sm:$0xff]  }
 0x75c   : > { %v11513_v19 = vpop.eup %11512 }
 0x75d   : > { %4316 = vmatmul.mubr.bf16.gmra.mrb[252].mxu1 %v11513_v19 }
 0x75e   : > { %5318 = vmatprep.mubr.bf16.mxu1 %v13583_v2 }
 0x765   : > { %9547 = vmatmul.mubr.msk.bf16.vlgmr.msra.gmra.mrb[0].mxu1 %vm986_vm1, %v10822_v60 }
 0x766   : > { %5328 = vmatprep.mubr.bf16.mxu1 %v13583_v2 }
 0x76d   : > { %9548 = vmatmul.mubr.msk.bf16.gmra.mrb[4].mxu1 %vm986_vm1, %v10825_v3  ;;  %v10861_v3 = vld [vmem:[%s15281_s23 + $0x34] ss:$8 sps:$4 sm:$0xff]  }
 0x76e   : > { %5338 = vmatprep.mubr.bf16.mxu1 %v13583_v2 }
 0x775   : > { %9549 = vmatmul.mubr.msk.bf16.gmra.mrb[8].mxu1 %vm986_vm1, %v10826_v9 }
 0x776   : > { %5348 = vmatprep.mubr.bf16.mxu1 %v13583_v2 }
 0x77d   : > { %9550 = vmatmul.mubr.msk.bf16.gmra.mrb[12].mxu1 %vm986_vm1, %v10829_v21 }
 0x77e   : > { %5358 = vmatprep.mubr.bf16.mxu1 %v13583_v2 }
 0x785   : > { %9551 = vmatmul.mubr.msk.bf16.gmra.mrb[16].mxu1 %vm986_vm1, %v10830_v1 }
 0x786   : > { %5368 = vmatprep.mubr.bf16.mxu1 %v13583_v2 }
 0x78d   : > { %9552 = vmatmul.mubr.msk.bf16.gmra.mrb[20].mxu1 %vm986_vm1, %v10833_v22 }
 0x78e   : > { %5378 = vmatprep.mubr.bf16.mxu1 %v13583_v2 }
 0x795   : > { %9553 = vmatmul.mubr.msk.bf16.gmra.mrb[24].mxu1 %vm986_vm1, %v10834_v25 }
 0x796   : > { %5388 = vmatprep.mubr.bf16.mxu1 %v13583_v2 }
 0x79d   : > { %9554 = vmatmul.mubr.msk.bf16.gmra.mrb[28].mxu1 %vm986_vm1, %v10837_v27  ;;  %v10859_v27 = vld [vmem:[%s15281_s23 + $0x30] ss:$8 sps:$4 sm:$0xff]  }
 0x79e   : > { %5398 = vmatprep.mubr.bf16.mxu1 %v13583_v2 }
 0x7a5   : > { %9555 = vmatmul.mubr.msk.bf16.gmra.mrb[32].mxu1 %vm986_vm1, %v10838_v28  ;;  %v10864_v28 = vld [vmem:[%s15281_s23 + $0x44] ss:$8 sps:$4 sm:$0xff]  }
 0x7a6   : > { %5408 = vmatprep.mubr.bf16.mxu1 %v13583_v2 }
 0x7ad   : > { %9556 = vmatmul.mubr.msk.bf16.gmra.mrb[36].mxu1 %vm986_vm1, %v10841_v29 }
 0x7ae   : > { %5418 = vmatprep.mubr.bf16.mxu1 %v13583_v2 }
 0x7b5   : > { %9557 = vmatmul.mubr.msk.bf16.gmra.mrb[40].mxu1 %vm986_vm1, %v10842_v31 }
 0x7b6   : > { %5428 = vmatprep.mubr.bf16.mxu1 %v13583_v2 }
 0x7b8   : > { %v4167_v34 = vpop.f32.mrb[192].mxu1 }
 0x7b9   : > { %v4169_v10 = vpop.f32.mrb[193].mxu1  ;;  %v4168_v39 = vadd.f32 %v4167_v34, %v13623_v11 }
 0x7ba   : > { %v4171_v38 = vpop.f32.mrb[194].mxu1  ;;  %v4170_v42 = vadd.f32 %v4169_v10, %v13626_v16 }
 0x7bb   : > { %v4172_v58 = vadd.f32 %v4171_v38, %v13623_v11  ;;  %v4173_v40 = vpop.f32.mrb[195].mxu1 }
 0x7bc   : > { %v4174_v26 = vadd.f32 %v4173_v40, %v13626_v16 }
 0x7bd   : > { %v4326_v43 = vpack.c.bf16 %v4172_v58, %v4168_v39  ;;  %9558 = vmatmul.mubr.msk.bf16.gmra.mrb[44].mxu1 %vm986_vm1, %v10845_v35  ;;  %v10867_v58 = vld [vmem:[%s15281_s23 + $0x54] ss:$8 sps:$4 sm:$0xff]  }
 0x7be   : > { %v4327_v44 = vpack.c.bf16 %v4174_v26, %v4170_v42  ;;  %5438 = vmatprep.mubr.bf16.mxu1 %v13583_v2 }
 0x7c0   : > { %11514 = vtanh.bf16 %v4327_v44  ;;  %v4177_v45 = vpop.f32.mrb[196].mxu1 }
 0x7c1   : > { %11516 = vtanh.bf16 %v4326_v43  ;;  %v4179_v30 = vpop.f32.mrb[197].mxu1  ;;  %v4178_v47 = vadd.f32 %v4177_v45, %v13623_v11  ;;  %v10865_v45 = vld [vmem:[%s15281_s23 + $0x50] ss:$8 sps:$4 sm:$0xff]  }
 0x7c2   : > { %v4181_v23 = vpop.f32.mrb[198].mxu1  ;;  %v4180_v13 = vadd.f32 %v4179_v30, %v13626_v16  ;;  %v10870_v30 = vld [vmem:[%s15281_s23 + $0x64] ss:$8 sps:$4 sm:$0xff]  }
 0x7c3   : > { %v4182_v52 = vadd.f32 %v4181_v23, %v13623_v11  ;;  %v4183_v53 = vpop.f32.mrb[199].mxu1 }
 0x7c4   : > { %v4184_v54 = vadd.f32 %v4183_v53, %v13626_v16 }
 0x7c5   : > { %v4328_v36 = vpack.c.bf16 %v4182_v52, %v4178_v47  ;;  %9559 = vmatmul.mubr.msk.bf16.gmra.mrb[48].mxu1 %vm986_vm1, %v10846_v46  ;;  %v10868_v52 = vld [vmem:[%s15281_s23 + $0x60] ss:$8 sps:$4 sm:$0xff]  }
 0x7c6   : > { %v4329_v41 = vpack.c.bf16 %v4184_v54, %v4180_v13  ;;  %5448 = vmatprep.mubr.bf16.mxu1 %v13583_v2 }
 0x7c8   : > { %11518 = vtanh.bf16 %v4329_v41  ;;  %v4187_v59 = vpop.f32.mrb[200].mxu1  ;;  %v10873_v41 = vld [vmem:[%s15281_s23 + $0x74] ss:$8 sps:$4 sm:$0xff]  }
 0x7c9   : > { %11520 = vtanh.bf16 %v4328_v36  ;;  %v4189_v57 = vpop.f32.mrb[201].mxu1  ;;  %v4188_v63 = vadd.f32 %v4187_v59, %v13623_v11 }
 0x7ca   : > { %v4191_v24 = vpop.f32.mrb[202].mxu1  ;;  %v4190_v6 = vadd.f32 %v4189_v57, %v13626_v16 }
 0x7cb   : > { %v11515_v62 = vpop.eup %11514  ;;  %v4192_v0 = vadd.f32 %v4191_v24, %v13623_v11  ;;  %v4193_v20 = vpop.f32.mrb[203].mxu1 }
 0x7cc   : > { %v11517_v4 = vpop.eup %11516  ;;  %v4194_v48 = vadd.f32 %v4193_v20, %v13626_v16  ;;  %4557 = vmatprep.mubr.bf16.mxu0 %v11515_v62  ;;  %v10871_v62 = vld [vmem:[%s15281_s23 + $0x70] ss:$8 sps:$4 sm:$0xff]  }
 0x7cd   : > { %v4330_v7 = vpack.c.bf16 %v4192_v0, %v4188_v63  ;;  %4558 = vmatmul.mubr.bf16.vlgmr.msra.gmra.mrb[0].mxu0 %v11517_v4  ;;  %9560 = vmatmul.mubr.msk.bf16.gmra.mrb[52].mxu1 %vm986_vm1, %v10850_v37  ;;  %v10876_v63 = vld [vmem:[%s15281_s23 + $0x84] ss:$8 sps:$4 sm:$0xff]   ;;  %v10874_v4 = vld [vmem:[%s15281_s23 + $0x80] ss:$8 sps:$4 sm:$0xff]  }
 0x7ce   : > { %v4331_v8 = vpack.c.bf16 %v4194_v48, %v4190_v6  ;;  %5748 = vmatpush1.bf16.msra.mxu0 %v10847_v61  ;;  %5458 = vmatprep.mubr.bf16.mxu1 %v13583_v2 }
 0x7cf   : > { %5749 = vmatprep.subr.bf16.mxu0 %v10853_v49 }
 0x7d0   : > { %11522 = vtanh.bf16 %v4331_v8  ;;  %v4197_v12 = vpop.f32.mrb[204].mxu1 }
 0x7d1   : > { %11524 = vtanh.bf16 %v4330_v7  ;;  %v4199_v14 = vpop.f32.mrb[205].mxu1  ;;  %v4198_v33 = vadd.f32 %v4197_v12, %v13623_v11 }
 0x7d2   : > { %v4201_v17 = vpop.f32.mrb[206].mxu1  ;;  %5750 = vmatpush1.bf16.msra.mxu0 %v10851_v50  ;;  %v4200_v21 = vadd.f32 %v4199_v14, %v13626_v16  ;;  %v10879_v50 = vld [vmem:[%s15281_s23 + $0x94] ss:$8 sps:$4 sm:$0xff]  }
 0x7d3   : > { %v11519_v5 = vpop.eup %11518  ;;  %v4202_v19 = vadd.f32 %v4201_v17, %v13623_v11  ;;  %v4203_v60 = vpop.f32.mrb[207].mxu1  ;;  %5751 = vmatprep.subr.bf16.mxu0 %v10857_v51 }
 0x7d4   : > { %v11521_v9 = vpop.eup %11520  ;;  %v4204_v1 = vadd.f32 %v4203_v60, %v13626_v16  ;;  %4565 = vmatprep.mubr.bf16.mxu0 %v11519_v5  ;;  %v10882_v5 = vld [vmem:[%s15281_s23 + $0xa4] ss:$8 sps:$4 sm:$0xff]  }
 0x7d5   : > { %v4332_v22 = vpack.c.bf16 %v4202_v19, %v4198_v33  ;;  %4566 = vmatmul.mubr.bf16.gmra.mrb[4].mxu0 %v11521_v9  ;;  %9561 = vmatmul.mubr.msk.bf16.gmra.mrb[56].mxu1 %vm986_vm1, %v10854_v15 }
 0x7d6   : > { %v4333_v25 = vpack.c.bf16 %v4204_v1, %v4200_v21  ;;  %5468 = vmatprep.mubr.bf16.mxu1 %v13583_v2  ;;  %5752 = vmatpush1.bf16.msra.mxu0 %v10855_v18  ;;  %v10862_v2 = vld [vmem:[%s15281_s23 + $0x40] ss:$8 sps:$4 sm:$0xff]   ;;  %v10877_v18 = vld [vmem:[%s15281_s23 + $0x90] ss:$8 sps:$4 sm:$0xff]  }
 0x7d7   : > { %5753 = vmatprep.subr.bf16.mxu0 %v10861_v3  ;;  %v10880_v3 = vld [vmem:[%s15281_s23 + $0xa0] ss:$8 sps:$4 sm:$0xff]  }
 0x7d8   : > { %11526 = vtanh.bf16 %v4333_v25  ;;  %v4207_v29 = vpop.f32.mrb[208].mxu1  ;;  %v10885_v25 = vld [vmem:[%s15281_s23 + $0xb4] ss:$8 sps:$4 sm:$0xff]  }
 0x7d9   : > { %11528 = vtanh.bf16 %v4332_v22  ;;  %v4209_v31 = vpop.f32.mrb[209].mxu1  ;;  %v4208_v35 = vadd.f32 %v4207_v29, %v13623_v11 }
 0x7da   : > { %v4211_v34 = vpop.f32.mrb[210].mxu1  ;;  %5754 = vmatpush1.bf16.msra.mxu0 %v10859_v27  ;;  %v4210_v42 = vadd.f32 %v4209_v31, %v13626_v16 }
 0x7db   : > { %v11523_v10 = vpop.eup %11522  ;;  %v4212_v38 = vadd.f32 %v4211_v34, %v13623_v11  ;;  %v4213_v39 = vpop.f32.mrb[211].mxu1  ;;  %5755 = vmatprep.subr.bf16.mxu0 %v10864_v28  ;;  %v10883_v34 = vld [vmem:[%s15281_s23 + $0xb0] ss:$8 sps:$4 sm:$0xff]  }
 0x7dc   : > { %v11525_v40 = vpop.eup %11524  ;;  %v4214_v26 = vadd.f32 %v4213_v39, %v13626_v16  ;;  %4573 = vmatprep.mubr.bf16.mxu0 %v11523_v10  ;;  %v10886_v39 = vld [vmem:[%s15281_s23 + $0xc0] ss:$8 sps:$4 sm:$0xff]  }
 0x7dd   : > { %v4334_v43 = vpack.c.bf16 %v4212_v38, %v4208_v35  ;;  %4574 = vmatmul.mubr.bf16.gmra.mrb[8].mxu0 %v11525_v40  ;;  %9562 = vmatmul.mubr.msk.bf16.gmra.mrb[60].mxu1 %vm986_vm1, %v10858_v32 }
 0x7de   : > { %v4335_v44 = vpack.c.bf16 %v4214_v26, %v4210_v42  ;;  %5756 = vmatpush1.bf16.msra.mxu0 %v10862_v2  ;;  %v10888_v2 = vld [vmem:[%s15281_s23 + $0xc4] ss:$8 sps:$4 sm:$0xff]  }
 0x7df   : > { %5757 = vmatprep.subr.bf16.mxu0 %v10867_v58 }
 0x7e0   : > { %11530 = vtanh.bf16 %v4335_v44  ;;  %v4217_v46 = vpop.f32.mrb[212].mxu1 }
 0x7e1   : > { %11532 = vtanh.bf16 %v4334_v43  ;;  %v4219_v23 = vpop.f32.mrb[213].mxu1  ;;  %v4218_v13 = vadd.f32 %v4217_v46, %v13623_v11  ;;  %v10891_v43 = vld [vmem:[%s15281_s23 + $0xd4] ss:$8 sps:$4 sm:$0xff]  }
 0x7e2   : > { %v4221_v47 = vpop.f32.mrb[214].mxu1  ;;  %5758 = vmatpush1.bf16.msra.mxu0 %v10865_v45  ;;  %v4220_v57 = vadd.f32 %v4219_v23, %v13626_v16 }
 0x7e3   : > { %v11527_v53 = vpop.eup %11526  ;;  %v4222_v54 = vadd.f32 %v4221_v47, %v13623_v11  ;;  %v4223_v36 = vpop.f32.mrb[215].mxu1  ;;  %5759 = vmatprep.subr.bf16.mxu0 %v10870_v30  ;;  %v10889_v47 = vld [vmem:[%s15281_s23 + $0xd0] ss:$8 sps:$4 sm:$0xff]  }
 0x7e4   : > { %v11529_v59 = vpop.eup %11528  ;;  %v4224_v37 = vadd.f32 %v4223_v36, %v13626_v16  ;;  %4581 = vmatprep.mubr.bf16.mxu0 %v11527_v53  ;;  %v10892_v36 = vld [vmem:[%s15281_s23 + $0xe0] ss:$8 sps:$4 sm:$0xff]  }
 0x7e5   : > { %v4336_v24 = vpack.c.bf16 %v4222_v54, %v4218_v13  ;;  %4582 = vmatmul.mubr.bf16.gmra.mrb[12].mxu0 %v11529_v59 }
 0x7e6   : > { %v4337_v61 = vpack.c.bf16 %v4224_v37, %v4220_v57  ;;  %5760 = vmatpush1.bf16.msra.mxu0 %v10868_v52  ;;  %v10894_v52 = vld [vmem:[%s15281_s23 + $0xe4] ss:$8 sps:$4 sm:$0xff]  }
 0x7e7   : > { %5761 = vmatprep.subr.bf16.mxu0 %v10873_v41 }
 0x7e8   : > { %11534 = vtanh.bf16 %v4337_v61  ;;  %v4227_v0 = vpop.f32.mrb[216].mxu1 }
 0x7e9   : > { %11536 = vtanh.bf16 %v4336_v24  ;;  %v4229_v20 = vpop.f32.mrb[217].mxu1  ;;  %v4228_v48 = vadd.f32 %v4227_v0, %v13623_v11  ;;  %v10897_v24 = vld [vmem:[%s15281_s23 + $0xf4] ss:$8 sps:$4 sm:$0xff]  }
 0x7ea   : > { %v4231_v49 = vpop.f32.mrb[218].mxu1  ;;  %5762 = vmatpush1.bf16.msra.mxu0 %v10871_v62  ;;  %v4230_v12 = vadd.f32 %v4229_v20, %v13626_v16 }
 0x7eb   : > { %v11531_v6 = vpop.eup %11530  ;;  %v4232_v7 = vadd.f32 %v4231_v49, %v13623_v11  ;;  %v4233_v8 = vpop.f32.mrb[219].mxu1  ;;  %5763 = vmatprep.subr.bf16.mxu0 %v10876_v63  ;;  %v10895_v49 = vld [vmem:[%s15281_s23 + $0xf0] ss:$8 sps:$4 sm:$0xff]  }
 0x7ec   : > { %v11533_v51 = vpop.eup %11532  ;;  %v4234_v14 = vadd.f32 %v4233_v8, %v13626_v16  ;;  %4589 = vmatprep.mubr.bf16.mxu0 %v11531_v6 }
 0x7ed   : > { %v4338_v15 = vpack.c.bf16 %v4232_v7, %v4228_v48  ;;  %4590 = vmatmul.mubr.bf16.gmra.mrb[16].mxu0 %v11533_v51 }
 0x7ee   : > { %v4339_v17 = vpack.c.bf16 %v4234_v14, %v4230_v12  ;;  %5764 = vmatpush1.bf16.msra.mxu0 %v10874_v4 }
 0x7ef   : > { %5765 = vmatprep.subr.bf16.mxu0 %v10879_v50 }
 0x7f0   : > { %11538 = vtanh.bf16 %v4339_v17  ;;  %v4237_v33 = vpop.f32.mrb[220].mxu1 }
 0x7f1   : > { %11540 = vtanh.bf16 %v4338_v15  ;;  %v4239_v19 = vpop.f32.mrb[221].mxu1  ;;  %v4238_v21 = vadd.f32 %v4237_v33, %v13623_v11 }
 0x7f2   : > { %v4241_v60 = vpop.f32.mrb[222].mxu1  ;;  %5766 = vmatpush1.bf16.msra.mxu0 %v10877_v18  ;;  %v4240_v28 = vadd.f32 %v4239_v19, %v13626_v16 }
 0x7f3   : > { %v11535_v9 = vpop.eup %11534  ;;  %v4242_v1 = vadd.f32 %v4241_v60, %v13623_v11  ;;  %v4243_v22 = vpop.f32.mrb[223].mxu1  ;;  %5767 = vmatprep.subr.bf16.mxu0 %v10882_v5 }
 0x7f4   : > { %v11537_v27 = vpop.eup %11536  ;;  %v4244_v29 = vadd.f32 %v4243_v22, %v13626_v16  ;;  %4597 = vmatprep.mubr.bf16.mxu0 %v11535_v9 }
 0x7f5   : > { %v4340_v31 = vpack.c.bf16 %v4242_v1, %v4238_v21  ;;  %4598 = vmatmul.mubr.bf16.gmra.mrb[20].mxu0 %v11537_v27 }
 0x7f6   : > { %v4341_v32 = vpack.c.bf16 %v4244_v29, %v4240_v28  ;;  %5768 = vmatpush1.bf16.msra.mxu0 %v10880_v3 }
 0x7f7   : > { %5769 = vmatprep.subr.bf16.mxu0 %v10885_v25 }
 0x7f8   : > { %11542 = vtanh.bf16 %v4341_v32  ;;  %v4247_v10 = vpop.f32.mrb[224].mxu1 }
 0x7f9   : > { %11544 = vtanh.bf16 %v4340_v31  ;;  %v4249_v35 = vpop.f32.mrb[225].mxu1  ;;  %v4248_v40 = vadd.f32 %v4247_v10, %v13623_v11 }
 0x7fa   : > { %v4251_v38 = vpop.f32.mrb[226].mxu1  ;;  %5770 = vmatpush1.bf16.msra.mxu0 %v10883_v34  ;;  %v4250_v45 = vadd.f32 %v4249_v35, %v13626_v16 }
 0x7fb   : > { %v11539_v58 = vpop.eup %11538  ;;  %v4252_v42 = vadd.f32 %v4251_v38, %v13623_v11  ;;  %v4253_v26 = vpop.f32.mrb[227].mxu1  ;;  %5771 = vmatprep.subr.bf16.mxu0 %v10888_v2 }
 0x7fc   : > { %v11541_v44 = vpop.eup %11540  ;;  %v4254_v30 = vadd.f32 %v4253_v26, %v13626_v16  ;;  %4605 = vmatprep.mubr.bf16.mxu0 %v11539_v58 }
 0x7fd   : > { %v4342_v46 = vpack.c.bf16 %v4252_v42, %v4248_v40  ;;  %4606 = vmatmul.mubr.bf16.gmra.mrb[24].mxu0 %v11541_v44 }
 0x7fe   : > { %v4343_v23 = vpack.c.bf16 %v4254_v30, %v4250_v45  ;;  %5772 = vmatpush1.bf16.msra.mxu0 %v10886_v39 }
 0x7ff   : > { %5773 = vmatprep.subr.bf16.mxu0 %v10891_v43 }
 0x800   : > { %11546 = vtanh.bf16 %v4343_v23  ;;  %v4257_v53 = vpop.f32.mrb[228].mxu1 }
 0x801   : > { %11548 = vtanh.bf16 %v4342_v46  ;;  %v4259_v13 = vpop.f32.mrb[229].mxu1  ;;  %v4258_v59 = vadd.f32 %v4257_v53, %v13623_v11 }
 0x802   : > { %v4261_v54 = vpop.f32.mrb[230].mxu1  ;;  %5774 = vmatpush1.bf16.msra.mxu0 %v10889_v47  ;;  %v4260_v62 = vadd.f32 %v4259_v13, %v13626_v16 }
 0x803   : > { %v11543_v41 = vpop.eup %11542  ;;  %v4262_v57 = vadd.f32 %v4261_v54, %v13623_v11  ;;  %v4263_v37 = vpop.f32.mrb[231].mxu1  ;;  %5775 = vmatprep.subr.bf16.mxu0 %v10894_v52 }
 0x804   : > { %v11545_v61 = vpop.eup %11544  ;;  %v4264_v63 = vadd.f32 %v4263_v37, %v13626_v16  ;;  %4613 = vmatprep.mubr.bf16.mxu0 %v11543_v41 }
 0x805   : > { %v4344_v0 = vpack.c.bf16 %v4262_v57, %v4258_v59  ;;  %4614 = vmatmul.mubr.bf16.gmra.mrb[28].mxu0 %v11545_v61 }
 0x806   : > { %v4345_v20 = vpack.c.bf16 %v4264_v63, %v4260_v62  ;;  %5776 = vmatpush1.bf16.msra.mxu0 %v10892_v36 }
 0x807   : > { %5777 = vmatprep.subr.bf16.mxu0 %v10897_v24 }
 0x808   : > { %11550 = vtanh.bf16 %v4345_v20  ;;  %v4267_v4 = vpop.f32.mrb[232].mxu1 }
 0x809   : > { %11552 = vtanh.bf16 %v4344_v0  ;;  %v4269_v6 = vpop.f32.mrb[233].mxu1  ;;  %v4268_v8 = vadd.f32 %v4267_v4, %v13623_v11 }
 0x80a   : > { %v4271_v48 = vpop.f32.mrb[234].mxu1  ;;  %5778 = vmatpush1.bf16.msra.mxu0 %v10895_v49  ;;  %v4270_v14 = vadd.f32 %v4269_v6, %v13626_v16 }
 0x80b   : > { %v11547_v7 = vpop.eup %11546  ;;  %v4272_v50 = vadd.f32 %v4271_v48, %v13623_v11  ;;  %v4273_v51 = vpop.f32.mrb[235].mxu1 }
 0x80c   : > { %v11549_v12 = vpop.eup %11548  ;;  %v4274_v15 = vadd.f32 %v4273_v51, %v13626_v16  ;;  %4621 = vmatprep.mubr.bf16.mxu0 %v11547_v7 }
 0x80d   : > { %v4346_v17 = vpack.c.bf16 %v4272_v50, %v4268_v8  ;;  %4622 = vmatmul.mubr.bf16.gmra.mrb[32].mxu0 %v11549_v12 }
 0x80e   : > { %v4347_v18 = vpack.c.bf16 %v4274_v15, %v4270_v14 }
 0x810   : > { %11554 = vtanh.bf16 %v4347_v18  ;;  %v4277_v5 = vpop.f32.mrb[236].mxu1 }
 0x811   : > { %11556 = vtanh.bf16 %v4346_v17  ;;  %v4279_v33 = vpop.f32.mrb[237].mxu1  ;;  %v4278_v3 = vadd.f32 %v4277_v5, %v13623_v11  ;;  %v5135_v17 = vld [vmem:[%s15282_s16] sm:$0x3] }
 0x812   : > { %v4281_v19 = vpop.f32.mrb[238].mxu1  ;;  %v4280_v22 = vadd.f32 %v4279_v33, %v13626_v16  ;;  %v13803_v33 = vrot.slane %v5135_v17, %v12808_v55 }
 0x813   : > { %v11551_v60 = vpop.eup %11550  ;;  %v4282_v9 = vadd.f32 %v4281_v19, %v13623_v11  ;;  %v4283_v21 = vpop.f32.mrb[239].mxu1 }
 0x814   : > { %v11553_v1 = vpop.eup %11552  ;;  %v4284_v25 = vadd.f32 %v4283_v21, %v13626_v16  ;;  %4629 = vmatprep.mubr.bf16.mxu0 %v11551_v60 }
 0x815   : > { %v4348_v27 = vpack.c.bf16 %v4282_v9, %v4278_v3  ;;  %4630 = vmatmul.mubr.bf16.gmra.mrb[36].mxu0 %v11553_v1  ;;  %v10900_v9 = vld [vmem:[%s15235_s5 + $0x4] ss:$8 sps:$4 sm:$0xff]  }
 0x816   : > { %v4349_v28 = vpack.c.bf16 %v4284_v25, %v4280_v22  ;;  %6208 = vmatprep.subr.bf16.mxu1 %v10900_v9 }
 0x818   : > { %11558 = vtanh.bf16 %v4349_v28  ;;  %v4287_v29 = vpop.f32.mrb[240].mxu1 }
 0x819   : > { %11560 = vtanh.bf16 %v4348_v27  ;;  %v4289_v31 = vpop.f32.mrb[241].mxu1  ;;  %v4288_v2 = vadd.f32 %v4287_v29, %v13623_v11 }
 0x81a   : > { %v4291_v32 = vpop.f32.mrb[242].mxu1  ;;  %v4290_v39 = vadd.f32 %v4289_v31, %v13626_v16 }
 0x81b   : > { %v11555_v34 = vpop.eup %11554  ;;  %v4292_v10 = vadd.f32 %v4291_v32, %v13623_v11  ;;  %v4293_v35 = vpop.f32.mrb[243].mxu1 }
 0x81c   : > { %v11557_v38 = vpop.eup %11556  ;;  %v4294_v58 = vadd.f32 %v4293_v35, %v13626_v16  ;;  %4637 = vmatprep.mubr.bf16.mxu0 %v11555_v34  ;;  %v10901_v35 = vld [vmem:[%s15235_s5 + $0x10] ss:$8 sps:$4 sm:$0xff]  }
 0x81d   : > { %v4350_v40 = vpack.c.bf16 %v4292_v10, %v4288_v2  ;;  %4638 = vmatmul.mubr.bf16.gmra.mrb[40].mxu0 %v11557_v38  ;;  %v10903_v38 = vld [vmem:[%s15235_s5 + $0x14] ss:$8 sps:$4 sm:$0xff]  }
 0x81e   : > { %v4351_v42 = vpack.c.bf16 %v4294_v58, %v4290_v39 }
 0x820   : > { %11562 = vtanh.bf16 %v4351_v42  ;;  %v4297_v26 = vpop.f32.mrb[244].mxu1 }
 0x821   : > { %11564 = vtanh.bf16 %v4350_v40  ;;  %v4299_v43 = vpop.f32.mrb[245].mxu1  ;;  %v4298_v30 = vadd.f32 %v4297_v26, %v13623_v11 }
 0x822   : > { %v4301_v44 = vpop.f32.mrb[246].mxu1  ;;  %v4300_v52 = vadd.f32 %v4299_v43, %v13626_v16 }
 0x823   : > { %v11559_v45 = vpop.eup %11558  ;;  %v4302_v46 = vadd.f32 %v4301_v44, %v13623_v11  ;;  %v4303_v23 = vpop.f32.mrb[247].mxu1 }
 0x824   : > { %v11561_v47 = vpop.eup %11560  ;;  %v4304_v53 = vadd.f32 %v4303_v23, %v13626_v16  ;;  %4645 = vmatprep.mubr.bf16.mxu0 %v11559_v45 }
 0x825   : > { %v4352_v13 = vpack.c.bf16 %v4302_v46, %v4298_v30  ;;  %4646 = vmatmul.mubr.bf16.gmra.mrb[44].mxu0 %v11561_v47 }
 0x826   : > { %v4353_v54 = vpack.c.bf16 %v4304_v53, %v4300_v52  ;;  %v10904_v52 = vld [vmem:[%s15235_s5 + $0x20] ss:$8 sps:$4 sm:$0xff]   ;;  %v10906_v53 = vld [vmem:[%s15235_s5 + $0x24] ss:$8 sps:$4 sm:$0xff]  }
 0x828   : > { %11566 = vtanh.bf16 %v4353_v54  ;;  %v4307_v36 = vpop.f32.mrb[248].mxu1 }
 0x829   : > { %11568 = vtanh.bf16 %v4352_v13  ;;  %v4309_v41 = vpop.f32.mrb[249].mxu1  ;;  %v4308_v37 = vadd.f32 %v4307_v36, %v13623_v11 }
 0x82a   : > { %v4311_v59 = vpop.f32.mrb[250].mxu1  ;;  %v4310_v63 = vadd.f32 %v4309_v41, %v13626_v16 }
 0x82b   : > { %v11563_v57 = vpop.eup %11562  ;;  %v4312_v24 = vadd.f32 %v4311_v59, %v13623_v11  ;;  %v4313_v61 = vpop.f32.mrb[251].mxu1 }
 0x82c   : > { %v11565_v62 = vpop.eup %11564  ;;  %v4314_v0 = vadd.f32 %v4313_v61, %v13626_v16  ;;  %4653 = vmatprep.mubr.bf16.mxu0 %v11563_v57 }
 0x82d   : > { %v4354_v20 = vpack.c.bf16 %v4312_v24, %v4308_v37  ;;  %4654 = vmatmul.mubr.bf16.gmra.mrb[48].mxu0 %v11565_v62 }
 0x82e   : > { %v4355_v49 = vpack.c.bf16 %v4314_v0, %v4310_v63 }
 0x830   : > { %11570 = vtanh.bf16 %v4355_v49  ;;  %v4317_v4 = vpop.f32.mrb[252].mxu1  ;;  %v10909_v49 = vld [vmem:[%s15235_s5 + $0x34] ss:$8 sps:$4 sm:$0xff]  }
 0x831   : > { %11572 = vtanh.bf16 %v4354_v20  ;;  %v4319_v6 = vpop.f32.mrb[253].mxu1  ;;  %v4318_v8 = vadd.f32 %v4317_v4, %v13623_v11  ;;  %v10907_v20 = vld [vmem:[%s15235_s5 + $0x30] ss:$8 sps:$4 sm:$0xff]  }
 0x832   : > { %v4321_v48 = vpop.f32.mrb[254].mxu1  ;;  %v4320_v14 = vadd.f32 %v4319_v6, %v13626_v16 }
 0x833   : > { %v11567_v7 = vpop.eup %11566  ;;  %v4322_v50 = vadd.f32 %v4321_v48, %v13623_v11  ;;  %v4323_v51 = vpop.f32.mrb[255].mxu1  ;;  %v13806_v11 = vrot.slane %v5135_v17, %v12810_v56 }
 0x834   : > { %v11569_v12 = vpop.eup %11568  ;;  %v4324_v15 = vadd.f32 %v4323_v51, %v13626_v16  ;;  %4661 = vmatprep.mubr.bf16.mxu0 %v11567_v7  ;;  %v10898_v16 = vld [vmem:[%s15235_s5] ss:$8 sps:$4 sm:$0xff]  }
 0x835   : > { %v4356_v18 = vpack.c.bf16 %v4322_v50, %v4318_v8  ;;  %4662 = vmatmul.mubr.bf16.gmra.mrb[52].mxu0 %v11569_v12  ;;  %6209 = vmatpush1.bf16.msra.mxu1 %v10898_v16 }
 0x836   : > { %v4357_v5 = vpack.c.bf16 %v4324_v15, %v4320_v14  ;;  %6210 = vmatprep.subr.bf16.mxu1 %v10903_v38 }
 0x838   : > { %11574 = vtanh.bf16 %v4357_v5  ;;  %v5320_v19 = vpop.f32.mrb[0].mxu1  ;;  %v10910_v5 = vld [vmem:[%s15235_s5 + $0x40] ss:$8 sps:$4 sm:$0xff]  }
 0x839   : > { %11576 = vtanh.bf16 %v4356_v18  ;;  %v5322_v60 = vpop.f32.mrb[1].mxu1  ;;  %v5321_v1 = vadd.f32 %v5320_v19, %v13803_v33  ;;  %6211 = vmatpush1.bf16.msra.mxu1 %v10901_v35  ;;  %v10912_v19 = vld [vmem:[%s15235_s5 + $0x44] ss:$8 sps:$4 sm:$0xff]  }
 0x83a   : > { %v5324_v3 = vpop.f32.mrb[2].mxu1  ;;  %v5323_v28 = vadd.f32 %v5322_v60, %v13806_v11  ;;  %6212 = vmatprep.subr.bf16.mxu1 %v10906_v53 }
 0x83b   : > { %v11571_v21 = vpop.eup %11570  ;;  %v5325_v22 = vadd.f32 %v5324_v3, %v13803_v33  ;;  %v5326_v25 = vpop.f32.mrb[3].mxu1 }
 0x83c   : > { %v11573_v27 = vpop.eup %11572  ;;  %v5327_v29 = vadd.f32 %v5326_v25, %v13806_v11  ;;  %4669 = vmatprep.mubr.bf16.mxu0 %v11571_v21 }
 0x83d   : > { %v5479_v31 = vpack.c.bf16 %v5325_v22, %v5321_v1  ;;  %4670 = vmatmul.mubr.bf16.gmra.mrb[56].mxu0 %v11573_v27  ;;  %6213 = vmatpush1.bf16.msra.mxu1 %v10904_v52 }
 0x83e   : > { %v5480_v32 = vpack.c.bf16 %v5327_v29, %v5323_v28  ;;  %6214 = vmatprep.subr.bf16.mxu1 %v10909_v49 }
 0x840   : > { %11578 = vtanh.bf16 %v5480_v32  ;;  %v5330_v34 = vpop.f32.mrb[4].mxu1  ;;  %v10913_v32 = vld [vmem:[%s15235_s5 + $0x50] ss:$8 sps:$4 sm:$0xff]  }
 0x841   : > { %11580 = vtanh.bf16 %v5479_v31  ;;  %v5332_v2 = vpop.f32.mrb[5].mxu1  ;;  %v5331_v58 = vadd.f32 %v5330_v34, %v13803_v33  ;;  %6215 = vmatpush1.bf16.msra.mxu1 %v10907_v20  ;;  %v10915_v34 = vld [vmem:[%s15235_s5 + $0x54] ss:$8 sps:$4 sm:$0xff]  }
 0x842   : > { %v5334_v10 = vpop.f32.mrb[6].mxu1  ;;  %v5333_v43 = vadd.f32 %v5332_v2, %v13806_v11  ;;  %6216 = vmatprep.subr.bf16.mxu1 %v10912_v19 }
 0x843   : > { %v11575_v39 = vpop.eup %11574  ;;  %v5335_v40 = vadd.f32 %v5334_v10, %v13803_v33  ;;  %v5336_v42 = vpop.f32.mrb[7].mxu1 }
 0x844   : > { %v11577_v26 = vpop.eup %11576  ;;  %v5337_v44 = vadd.f32 %v5336_v42, %v13806_v11  ;;  %4677 = vmatprep.mubr.bf16.mxu0 %v11575_v39 }
 0x845   : > { %v5481_v45 = vpack.c.bf16 %v5335_v40, %v5331_v58  ;;  %4678 = vmatmul.mubr.bf16.gmra.mrb[60].mxu0 %v11577_v26  ;;  %6217 = vmatpush1.bf16.msra.mxu1 %v10910_v5 }
 0x846   : > { %v5482_v30 = vpack.c.bf16 %v5337_v44, %v5333_v43  ;;  %6218 = vmatprep.subr.bf16.mxu1 %v10915_v34 }
 0x848   : > { %11582 = vtanh.bf16 %v5482_v30  ;;  %v5340_v46 = vpop.f32.mrb[8].mxu1  ;;  %v10916_v30 = vld [vmem:[%s15235_s5 + $0x60] ss:$8 sps:$4 sm:$0xff]  }
 0x849   : > { %11584 = vtanh.bf16 %v5481_v45  ;;  %v5342_v23 = vpop.f32.mrb[9].mxu1  ;;  %v5341_v54 = vadd.f32 %v5340_v46, %v13803_v33  ;;  %6219 = vmatpush1.bf16.msra.mxu1 %v10913_v32  ;;  %v10918_v46 = vld [vmem:[%s15235_s5 + $0x64] ss:$8 sps:$4 sm:$0xff]  }
 0x84a   : > { %v5344_v47 = vpop.f32.mrb[10].mxu1  ;;  %v5343_v57 = vadd.f32 %v5342_v23, %v13806_v11  ;;  %6220 = vmatprep.subr.bf16.mxu1 %v10918_v46 }
 0x84b   : > { %v11579_v13 = vpop.eup %11578  ;;  %v5345_v36 = vadd.f32 %v5344_v47, %v13803_v33  ;;  %v5346_v41 = vpop.f32.mrb[11].mxu1 }
 0x84c   : > { %v11581_v59 = vpop.eup %11580  ;;  %v5347_v37 = vadd.f32 %v5346_v41, %v13806_v11  ;;  %5779 = vmatprep.mubr.bf16.mxu0 %v11579_v13 }
 0x84d   : > { %v5483_v24 = vpack.c.bf16 %v5345_v36, %v5341_v54  ;;  %5780 = vmatmul.mubr.bf16.vlgmr.msra.gmra.mrb[64].mxu0 %v11581_v59  ;;  %6221 = vmatpush1.bf16.msra.mxu1 %v10916_v30 }
 0x84e   : > { %v5484_v61 = vpack.c.bf16 %v5347_v37, %v5343_v57 }
 0x850   : > { %11586 = vtanh.bf16 %v5484_v61  ;;  %v5350_v62 = vpop.f32.mrb[12].mxu1  ;;  %v10919_v61 = vld [vmem:[%s15235_s5 + $0x70] ss:$8 sps:$4 sm:$0xff]  }
 0x851   : > { %11588 = vtanh.bf16 %v5483_v24  ;;  %v5352_v63 = vpop.f32.mrb[13].mxu1  ;;  %v5351_v6 = vadd.f32 %v5350_v62, %v13803_v33  ;;  %v10921_v62 = vld [vmem:[%s15235_s5 + $0x74] ss:$8 sps:$4 sm:$0xff]  }
 0x852   : > { %v5354_v0 = vpop.f32.mrb[14].mxu1  ;;  %v5353_v50 = vadd.f32 %v5352_v63, %v13806_v11  ;;  %6222 = vmatprep.subr.bf16.mxu1 %v10921_v62 }
 0x853   : > { %v11583_v4 = vpop.eup %11582  ;;  %v5355_v48 = vadd.f32 %v5354_v0, %v13803_v33  ;;  %v5356_v7 = vpop.f32.mrb[15].mxu1  ;;  %6223 = vmatpush1.bf16.msra.mxu1 %v10919_v61 }
 0x854   : > { %v11585_v8 = vpop.eup %11584  ;;  %v5357_v51 = vadd.f32 %v5356_v7, %v13806_v11  ;;  %5789 = vmatprep.mubr.bf16.mxu0 %v11583_v4 }
 0x855   : > { %v5485_v12 = vpack.c.bf16 %v5355_v48, %v5351_v6  ;;  %5790 = vmatmul.mubr.bf16.gmra.mrb[68].mxu0 %v11585_v8 }
 0x856   : > { %v5486_v14 = vpack.c.bf16 %v5357_v51, %v5353_v50 }
 0x858   : > { %11590 = vtanh.bf16 %v5486_v14  ;;  %v5360_v15 = vpop.f32.mrb[16].mxu1  ;;  %v10922_v14 = vld [vmem:[%s15235_s5 + $0x80] ss:$8 sps:$4 sm:$0xff]  }
 0x859   : > { %11592 = vtanh.bf16 %v5485_v12  ;;  %v5362_v17 = vpop.f32.mrb[17].mxu1  ;;  %v5361_v3 = vadd.f32 %v5360_v15, %v13803_v33  ;;  %v10924_v15 = vld [vmem:[%s15235_s5 + $0x84] ss:$8 sps:$4 sm:$0xff]  }
 0x85a   : > { %v5364_v18 = vpop.f32.mrb[18].mxu1  ;;  %v5363_v1 = vadd.f32 %v5362_v17, %v13806_v11  ;;  %6224 = vmatprep.subr.bf16.mxu1 %v10924_v15 }
 0x85b   : > { %v11587_v60 = vpop.eup %11586  ;;  %v5365_v16 = vadd.f32 %v5364_v18, %v13803_v33  ;;  %v5366_v9 = vpop.f32.mrb[19].mxu1  ;;  %6225 = vmatpush1.bf16.msra.mxu1 %v10922_v14 }
 0x85c   : > { %v11589_v21 = vpop.eup %11588  ;;  %v5367_v22 = vadd.f32 %v5366_v9, %v13806_v11  ;;  %5799 = vmatprep.mubr.bf16.mxu0 %v11587_v60 }
 0x85d   : > { %v5487_v25 = vpack.c.bf16 %v5365_v16, %v5361_v3  ;;  %5800 = vmatmul.mubr.bf16.gmra.mrb[72].mxu0 %v11589_v21 }
 0x85e   : > { %v5488_v27 = vpack.c.bf16 %v5367_v22, %v5363_v1 }
 0x860   : > { %11594 = vtanh.bf16 %v5488_v27  ;;  %v5370_v28 = vpop.f32.mrb[20].mxu1  ;;  %v10925_v27 = vld [vmem:[%s15235_s5 + $0x90] ss:$8 sps:$4 sm:$0xff]  }
 0x861   : > { %11596 = vtanh.bf16 %v5487_v25  ;;  %v5372_v29 = vpop.f32.mrb[21].mxu1  ;;  %v5371_v10 = vadd.f32 %v5370_v28, %v13803_v33  ;;  %v10927_v28 = vld [vmem:[%s15235_s5 + $0x94] ss:$8 sps:$4 sm:$0xff]  }
 0x862   : > { %v5374_v31 = vpop.f32.mrb[22].mxu1  ;;  %v5373_v58 = vadd.f32 %v5372_v29, %v13806_v11  ;;  %6226 = vmatprep.subr.bf16.mxu1 %v10927_v28  ;;  %v10939_v28 = vld [vmem:[%s15235_s5 + $0xd4] ss:$8 sps:$4 sm:$0xff]  }
 0x863   : > { %v11591_v2 = vpop.eup %11590  ;;  %v5375_v35 = vadd.f32 %v5374_v31, %v13803_v33  ;;  %v5376_v38 = vpop.f32.mrb[23].mxu1  ;;  %6227 = vmatpush1.bf16.msra.mxu1 %v10925_v27  ;;  %v10937_v27 = vld [vmem:[%s15235_s5 + $0xd0] ss:$8 sps:$4 sm:$0xff]  }
 0x864   : > { %v11593_v39 = vpop.eup %11592  ;;  %v5377_v40 = vadd.f32 %v5376_v38, %v13806_v11  ;;  %5809 = vmatprep.mubr.bf16.mxu0 %v11591_v2 }
 0x865   : > { %v5489_v42 = vpack.c.bf16 %v5375_v35, %v5371_v10  ;;  %5810 = vmatmul.mubr.bf16.gmra.mrb[76].mxu0 %v11593_v39 }
 0x866   : > { %v5490_v26 = vpack.c.bf16 %v5377_v40, %v5373_v58 }
 0x868   : > { %11598 = vtanh.bf16 %v5490_v26  ;;  %v5380_v43 = vpop.f32.mrb[24].mxu1  ;;  %v10928_v26 = vld [vmem:[%s15235_s5 + $0xa0] ss:$8 sps:$4 sm:$0xff]  }
 0x869   : > { %11600 = vtanh.bf16 %v5489_v42  ;;  %v5382_v44 = vpop.f32.mrb[25].mxu1  ;;  %v5381_v47 = vadd.f32 %v5380_v43, %v13803_v33  ;;  %v10930_v43 = vld [vmem:[%s15235_s5 + $0xa4] ss:$8 sps:$4 sm:$0xff]  }
 0x86a   : > { %v5384_v45 = vpop.f32.mrb[26].mxu1  ;;  %v5383_v54 = vadd.f32 %v5382_v44, %v13806_v11  ;;  %6228 = vmatprep.subr.bf16.mxu1 %v10930_v43 }
 0x86b   : > { %v11595_v23 = vpop.eup %11594  ;;  %v5385_v52 = vadd.f32 %v5384_v45, %v13803_v33  ;;  %v5386_v53 = vpop.f32.mrb[27].mxu1  ;;  %6229 = vmatpush1.bf16.msra.mxu1 %v10928_v26 }
 0x86c   : > { %v11597_v13 = vpop.eup %11596  ;;  %v5387_v36 = vadd.f32 %v5386_v53, %v13806_v11  ;;  %5819 = vmatprep.mubr.bf16.mxu0 %v11595_v23 }
 0x86d   : > { %v5491_v41 = vpack.c.bf16 %v5385_v52, %v5381_v47  ;;  %5820 = vmatmul.mubr.bf16.gmra.mrb[80].mxu0 %v11597_v13 }
 0x86e   : > { %v5492_v59 = vpack.c.bf16 %v5387_v36, %v5383_v54 }
 0x870   : > { %11602 = vtanh.bf16 %v5492_v59  ;;  %v5390_v57 = vpop.f32.mrb[28].mxu1  ;;  %v10931_v59 = vld [vmem:[%s15235_s5 + $0xb0] ss:$8 sps:$4 sm:$0xff]  }
 0x871   : > { %11604 = vtanh.bf16 %v5491_v41  ;;  %v5392_v37 = vpop.f32.mrb[29].mxu1  ;;  %v5391_v0 = vadd.f32 %v5390_v57, %v13803_v33  ;;  %v10933_v57 = vld [vmem:[%s15235_s5 + $0xb4] ss:$8 sps:$4 sm:$0xff]  }
 0x872   : > { %v5394_v24 = vpop.f32.mrb[30].mxu1  ;;  %v5393_v6 = vadd.f32 %v5392_v37, %v13806_v11  ;;  %6230 = vmatprep.subr.bf16.mxu1 %v10933_v57 }
 0x873   : > { %v11599_v63 = vpop.eup %11598  ;;  %v5395_v20 = vadd.f32 %v5394_v24, %v13803_v33  ;;  %v5396_v49 = vpop.f32.mrb[31].mxu1  ;;  %6231 = vmatpush1.bf16.msra.mxu1 %v10931_v59 }
 0x874   : > { %v11601_v4 = vpop.eup %11600  ;;  %v5397_v48 = vadd.f32 %v5396_v49, %v13806_v11  ;;  %5829 = vmatprep.mubr.bf16.mxu0 %v11599_v63 }
 0x875   : > { %v5493_v7 = vpack.c.bf16 %v5395_v20, %v5391_v0  ;;  %5830 = vmatmul.mubr.bf16.gmra.mrb[84].mxu0 %v11601_v4 }
 0x876   : > { %v5494_v8 = vpack.c.bf16 %v5397_v48, %v5393_v6 }
 0x878   : > { %11606 = vtanh.bf16 %v5494_v8  ;;  %v5400_v50 = vpop.f32.mrb[32].mxu1  ;;  %v10934_v8 = vld [vmem:[%s15235_s5 + $0xc0] ss:$8 sps:$4 sm:$0xff]  }
 0x879   : > { %11608 = vtanh.bf16 %v5493_v7  ;;  %v5402_v51 = vpop.f32.mrb[33].mxu1  ;;  %v5401_v18 = vadd.f32 %v5400_v50, %v13803_v33  ;;  %v10936_v50 = vld [vmem:[%s15235_s5 + $0xc4] ss:$8 sps:$4 sm:$0xff]  }
 0x87a   : > { %v5404_v12 = vpop.f32.mrb[34].mxu1  ;;  %v5403_v3 = vadd.f32 %v5402_v51, %v13806_v11  ;;  %6232 = vmatprep.subr.bf16.mxu1 %v10936_v50  ;;  %v10943_v50 = vld [vmem:[%s15235_s5 + $0xf0] ss:$8 sps:$4 sm:$0xff]  }
 0x87b   : > { %v11603_v17 = vpop.eup %11602  ;;  %v5405_v5 = vadd.f32 %v5404_v12, %v13803_v33  ;;  %v5406_v19 = vpop.f32.mrb[35].mxu1  ;;  %6233 = vmatpush1.bf16.msra.mxu1 %v10934_v8 }
 0x87c   : > { %v11605_v60 = vpop.eup %11604  ;;  %v5407_v16 = vadd.f32 %v5406_v19, %v13806_v11  ;;  %5839 = vmatprep.mubr.bf16.mxu0 %v11603_v17  ;;  %6234 = vmatprep.subr.bf16.mxu1 %v10939_v28 }
 0x87d   : > { %v5495_v9 = vpack.c.bf16 %v5405_v5, %v5401_v18  ;;  %5840 = vmatmul.mubr.bf16.gmra.mrb[88].mxu0 %v11605_v60 }
 0x87e   : > { %v5496_v21 = vpack.c.bf16 %v5407_v16, %v5403_v3 }
 0x87f   : > { %6235 = vmatpush1.bf16.msra.mxu1 %v10937_v27 }
 0x880   : > { %11610 = vtanh.bf16 %v5496_v21  ;;  %v5410_v1 = vpop.f32.mrb[36].mxu1 }
 0x881   : > { %11612 = vtanh.bf16 %v5495_v9  ;;  %v5412_v22 = vpop.f32.mrb[37].mxu1  ;;  %v5411_v31 = vadd.f32 %v5410_v1, %v13803_v33 }
 0x882   : > { %v5414_v25 = vpop.f32.mrb[38].mxu1  ;;  %v5413_v10 = vadd.f32 %v5412_v22, %v13806_v11 }
 0x883   : > { %v11607_v29 = vpop.eup %11606  ;;  %v5415_v32 = vadd.f32 %v5414_v25, %v13803_v33  ;;  %v5416_v34 = vpop.f32.mrb[39].mxu1 }
 0x884   : > { %v11609_v2 = vpop.eup %11608  ;;  %v5417_v35 = vadd.f32 %v5416_v34, %v13806_v11  ;;  %5849 = vmatprep.mubr.bf16.mxu0 %v11607_v29 }
 0x885   : > { %v5497_v38 = vpack.c.bf16 %v5415_v32, %v5411_v31  ;;  %5850 = vmatmul.mubr.bf16.gmra.mrb[92].mxu0 %v11609_v2  ;;  %v13948_v32 = vld [vmem:[%s15285_s27] ss:$0 sm:$0xff] }
 0x886   : > { %v5498_v39 = vpack.c.bf16 %v5417_v35, %v5413_v10 }
 0x888   : > { %11614 = vtanh.bf16 %v5498_v39  ;;  %v5420_v58 = vpop.f32.mrb[40].mxu1 }
 0x889   : > { %11616 = vtanh.bf16 %v5497_v38  ;;  %v5422_v40 = vpop.f32.mrb[41].mxu1  ;;  %v5421_v45 = vadd.f32 %v5420_v58, %v13803_v33 }
 0x88a   : > { %v5424_v42 = vpop.f32.mrb[42].mxu1  ;;  %v5423_v47 = vadd.f32 %v5422_v40, %v13806_v11 }
 0x88b   : > { %v11611_v44 = vpop.eup %11610  ;;  %v5425_v30 = vadd.f32 %v5424_v42, %v13803_v33  ;;  %v5426_v46 = vpop.f32.mrb[43].mxu1 }
 0x88c   : > { %v11613_v23 = vpop.eup %11612  ;;  %v5427_v52 = vadd.f32 %v5426_v46, %v13806_v11  ;;  %5859 = vmatprep.mubr.bf16.mxu0 %v11611_v44  ;;  %v10940_v46 = vld [vmem:[%s15235_s5 + $0xe0] ss:$8 sps:$4 sm:$0xff]  }
 0x88d   : > { %v5499_v53 = vpack.c.bf16 %v5425_v30, %v5421_v45  ;;  %5860 = vmatmul.mubr.bf16.gmra.mrb[96].mxu0 %v11613_v23  ;;  %v10942_v23 = vld [vmem:[%s15235_s5 + $0xe4] ss:$8 sps:$4 sm:$0xff]  }
 0x88e   : > { %v5500_v13 = vpack.c.bf16 %v5427_v52, %v5423_v47  ;;  %6236 = vmatprep.subr.bf16.mxu1 %v10942_v23 }
 0x88f   : > { %6237 = vmatpush1.bf16.msra.mxu1 %v10940_v46 }
 0x890   : > { %11618 = vtanh.bf16 %v5500_v13  ;;  %v5430_v54 = vpop.f32.mrb[44].mxu1 }
 0x891   : > { %11620 = vtanh.bf16 %v5499_v53  ;;  %v5432_v36 = vpop.f32.mrb[45].mxu1  ;;  %v5431_v24 = vadd.f32 %v5430_v54, %v13803_v33 }
 0x892   : > { %v5434_v41 = vpop.f32.mrb[46].mxu1  ;;  %v5433_v0 = vadd.f32 %v5432_v36, %v13806_v11 }
 0x893   : > { %v11615_v37 = vpop.eup %11614  ;;  %v5435_v61 = vadd.f32 %v5434_v41, %v13803_v33  ;;  %v5436_v62 = vpop.f32.mrb[47].mxu1 }
 0x894   : > { %v11617_v63 = vpop.eup %11616  ;;  %v5437_v20 = vadd.f32 %v5436_v62, %v13806_v11  ;;  %5869 = vmatprep.mubr.bf16.mxu0 %v11615_v37 }
 0x895   : > { %v5501_v49 = vpack.c.bf16 %v5435_v61, %v5431_v24  ;;  %5870 = vmatmul.mubr.bf16.gmra.mrb[100].mxu0 %v11617_v63 }
 0x896   : > { %v5502_v4 = vpack.c.bf16 %v5437_v20, %v5433_v0 }
 0x898   : > { %11622 = vtanh.bf16 %v5502_v4  ;;  %v5440_v6 = vpop.f32.mrb[48].mxu1 }
 0x899   : > { %11624 = vtanh.bf16 %v5501_v49  ;;  %v5442_v48 = vpop.f32.mrb[49].mxu1  ;;  %v5441_v12 = vadd.f32 %v5440_v6, %v13803_v33  ;;  %v10945_v6 = vld [vmem:[%s15235_s5 + $0xf4] ss:$8 sps:$4 sm:$0xff]  }
 0x89a   : > { %v5444_v7 = vpop.f32.mrb[50].mxu1  ;;  %v5443_v18 = vadd.f32 %v5442_v48, %v13806_v11  ;;  %6238 = vmatprep.subr.bf16.mxu1 %v10945_v6 }
 0x89b   : > { %v11619_v51 = vpop.eup %11618  ;;  %v5445_v14 = vadd.f32 %v5444_v7, %v13803_v33  ;;  %v5446_v15 = vpop.f32.mrb[51].mxu1  ;;  %6239 = vmatpush1.bf16.msra.mxu1 %v10943_v50 }
 0x89c   : > { %v11621_v17 = vpop.eup %11620  ;;  %v5447_v5 = vadd.f32 %v5446_v15, %v13806_v11  ;;  %5879 = vmatprep.mubr.bf16.mxu0 %v11619_v51 }
 0x89d   : > { %v5503_v19 = vpack.c.bf16 %v5445_v14, %v5441_v12  ;;  %5880 = vmatmul.mubr.bf16.gmra.mrb[104].mxu0 %v11621_v17 }
 0x89e   : > { %v5504_v60 = vpack.c.bf16 %v5447_v5, %v5443_v18 }
 0x8a0   : > { %11626 = vtanh.bf16 %v5504_v60  ;;  %v10032_v3 = vpop.f32.mrb[0].mxu0  ;;  %v5450_v16 = vpop.f32.mrb[52].mxu1 }
 0x8a1   : > { %11628 = vtanh.bf16 %v5503_v19  ;;  %v10033_v9 = vpop.f32.mrb[1].mxu0  ;;  %v5452_v21 = vpop.f32.mrb[53].mxu1  ;;  %v5451_v31 = vadd.f32 %v5450_v16, %v13803_v33 }
 0x8a2   : > { %v10034_v1 = vadd.f32 %v10033_v9, %v10032_v3  ;;  %v10035_v22 = vpop.f32.mrb[2].mxu0  ;;  %v5454_v25 = vpop.f32.mrb[54].mxu1  ;;  %v5453_v38 = vadd.f32 %v5452_v21, %v13806_v11 }
 0x8a3   : > { %v11623_v29 = vpop.eup %11622  ;;  %v5455_v34 = vadd.f32 %v5454_v25, %v13803_v33  ;;  %v10036_v2 = vpop.f32.mrb[3].mxu0 }
 0x8a4   : > { %v5456_v10 = vpop.f32.mrb[55].mxu1  ;;  %v11625_v35 = vpop.eup %11624  ;;  %v10037_v39 = vadd.f32 %v10036_v2, %v10035_v22  ;;  %5889 = vmatprep.mubr.bf16.mxu0 %v11623_v29  ;;  %v4560_v42 = vadd.f32 %v10034_v1, %v13948_v32 }
 0x8a5   : > { %v5457_v58 = vadd.f32 %v5456_v10, %v13806_v11  ;;  %v5505_v40 = vpack.c.bf16 %v5455_v34, %v5451_v31  ;;  %5890 = vmatmul.mubr.bf16.gmra.mrb[108].mxu0 %v11625_v35 }
 0x8a6   : > { %v4563_v26 = vadd.f32 %v10037_v39, %v13948_v32 }
 0x8a7   : > { %v5506_v43 = vpack.c.bf16 %v5457_v58, %v5453_v38 }
 0x8a8   : > { %v4686_v44 = vpack.c.bf16 %v4563_v26, %v4560_v42  ;;  %v10038_v45 = vpop.f32.mrb[4].mxu0  ;;  %v5460_v30 = vpop.f32.mrb[56].mxu1 }
 0x8a9   : > { %11630 = vtanh.bf16 %v5506_v43  ;;  %v10039_v47 = vpop.f32.mrb[5].mxu0  ;;  %v5462_v52 = vpop.f32.mrb[57].mxu1  ;;  %v5461_v41 = vadd.f32 %v5460_v30, %v13803_v33 }
 0x8aa   : > { %11632 = vtanh.bf16 %v5505_v40  ;;  %v10040_v53 = vadd.f32 %v10039_v47, %v10038_v45  ;;  %v10041_v13 = vpop.f32.mrb[6].mxu0  ;;  %v5464_v54 = vpop.f32.mrb[58].mxu1  ;;  %v5463_v61 = vadd.f32 %v5462_v52, %v13806_v11 }
 0x8ab   : > { %11634 = vtanh.bf16 %v4686_v44  ;;  %v11627_v36 = vpop.eup %11626  ;;  %v5465_v59 = vadd.f32 %v5464_v54, %v13803_v33  ;;  %v10042_v57 = vpop.f32.mrb[7].mxu0 }
 0x8ac   : > { %v5466_v37 = vpop.f32.mrb[59].mxu1  ;;  %v11629_v24 = vpop.eup %11628  ;;  %v10043_v62 = vadd.f32 %v10042_v57, %v10041_v13  ;;  %5899 = vmatprep.mubr.bf16.mxu0 %v11627_v36  ;;  %v4568_v20 = vadd.f32 %v10040_v53, %v13948_v32 }
 0x8ad   : > { %v5467_v63 = vadd.f32 %v5466_v37, %v13806_v11  ;;  %v5507_v0 = vpack.c.bf16 %v5465_v59, %v5461_v41  ;;  %5900 = vmatmul.mubr.bf16.gmra.mrb[112].mxu0 %v11629_v24 }
 0x8ae   : > { %v4571_v49 = vadd.f32 %v10043_v62, %v13948_v32 }
 0x8af   : > { %v5508_v4 = vpack.c.bf16 %v5467_v63, %v5463_v61 }
 0x8b0   : > { %v4687_v48 = vpack.c.bf16 %v4571_v49, %v4568_v20  ;;  %v10044_v7 = vpop.f32.mrb[8].mxu0  ;;  %v5470_v8 = vpop.f32.mrb[60].mxu1 }
 0x8b1   : > { %11636 = vtanh.bf16 %v5508_v4  ;;  %v10045_v51 = vpop.f32.mrb[9].mxu0  ;;  %v5472_v12 = vpop.f32.mrb[61].mxu1  ;;  %v5471_v5 = vadd.f32 %v5470_v8, %v13803_v33 }
 0x8b2   : > { %11638 = vtanh.bf16 %v5507_v0  ;;  %v10046_v14 = vadd.f32 %v10045_v51, %v10044_v7  ;;  %v10047_v15 = vpop.f32.mrb[10].mxu0  ;;  %v5474_v17 = vpop.f32.mrb[62].mxu1  ;;  %v5473_v9 = vadd.f32 %v5472_v12, %v13806_v11 }
 0x8b3   : > { %11640 = vtanh.bf16 %v4687_v48  ;;  %v5475_v19 = vadd.f32 %v5474_v17, %v13803_v33  ;;  %v10048_v60 = vpop.f32.mrb[11].mxu0  ;;  %v5476_v3 = vpop.f32.mrb[63].mxu1 }
 0x8b4   : > { %v11631_v18 = vpop.eup %11630  ;;  %v10049_v21 = vadd.f32 %v10048_v60, %v10047_v15  ;;  %v5477_v1 = vadd.f32 %v5476_v3, %v13806_v11  ;;  %v4576_v25 = vadd.f32 %v10046_v14, %v13948_v32 }
 0x8b5   : > { %v11633_v16 = vpop.eup %11632  ;;  %5909 = vmatprep.mubr.bf16.mxu0 %v11631_v18  ;;  %v5509_v27 = vpack.c.bf16 %v5475_v19, %v5471_v5 }
 0x8b6   : > { %v11635_v22 = vpop.eup %11634  ;;  %5910 = vmatmul.mubr.bf16.gmra.mrb[116].mxu0 %v11633_v16  ;;  %v4579_v28 = vadd.f32 %v10049_v21, %v13948_v32  ;;  %v5510_v29 = vpack.c.bf16 %v5477_v1, %v5473_v9 }
 0x8b7   : > { %v13979_v31 = vunpack.c.l.bf16 %v11635_v22  ;;  %v13981_v33 = vunpack.c.h.bf16 %v11635_v22 }
 0x8b8   : > { %v4688_v34 = vpack.c.bf16 %v4579_v28, %v4576_v25  ;;  %11642 = vtanh.bf16 %v5510_v29  ;;  %v10050_v2 = vpop.f32.mrb[12].mxu0 }
 0x8b9   : > { %v4750_v10 = vmul.f32 %v13979_v31, %v13979_v31  ;;  %11644 = vtanh.bf16 %v5509_v27  ;;  %v10051_v11 = vpop.f32.mrb[13].mxu0  ;;  %v4751_v35 = vmul.f32 %v13981_v33, %v13981_v33 }
 0x8ba   : > { %11646 = vtanh.bf16 %v4688_v34  ;;  %v10052_v38 = vadd.f32 %v10051_v11, %v10050_v2  ;;  %v10053_v39 = vpop.f32.mrb[14].mxu0 }
 0x8bb   : > { %v4782_v58 = vsel %vm986_vm1, %v4750_v10, 0.0  ;;  %v10054_v42 = vpop.f32.mrb[15].mxu0  ;;  %v4785_v45 = vsel %vm986_vm1, %v4751_v35, 0.0 }
 0x8bc   : > { %v11637_v40 = vpop.eup %11636  ;;  %4783 = vadd.xlane.f32.xlu0 %v4782_v58  ;;  %v10055_v43 = vadd.f32 %v10054_v42, %v10053_v39  ;;  %v4584_v30 = vadd.f32 %v10052_v38, %v13948_v32 }
 0x8bd   : > { %v11639_v26 = vpop.eup %11638  ;;  %5919 = vmatprep.mubr.bf16.mxu0 %v11637_v40 }
 0x8be   : > { %v11641_v44 = vpop.eup %11640  ;;  %5920 = vmatmul.mubr.bf16.gmra.mrb[120].mxu0 %v11639_v26  ;;  %v4587_v46 = vadd.f32 %v10055_v43, %v13948_v32 }
 0x8bf   : > { %v13991_v23 = vunpack.c.l.bf16 %v11641_v44  ;;  %v13993_v47 = vunpack.c.h.bf16 %v11641_v44 }
 0x8c0   : > { %4786 = vadd.xlane.f32.xlu0 %v4785_v45  ;;  %v4689_v52 = vpack.c.bf16 %v4587_v46, %v4584_v30  ;;  %v10056_v53 = vpop.f32.mrb[16].mxu0 }
 0x8c1   : > { %v4752_v13 = vmul.f32 %v13991_v23, %v13991_v23  ;;  %v10057_v54 = vpop.f32.mrb[17].mxu0  ;;  %v4753_v36 = vmul.f32 %v13993_v47, %v13993_v47 }
 0x8c2   : > { %11648 = vtanh.bf16 %v4689_v52  ;;  %v10058_v41 = vadd.f32 %v10057_v54, %v10056_v53  ;;  %v10059_v59 = vpop.f32.mrb[18].mxu0 }
 0x8c3   : > { %v4788_v57 = vsel %vm986_vm1, %v4752_v13, 0.0  ;;  %v11643_v37 = vpop.eup %11642  ;;  %v10060_v24 = vpop.f32.mrb[19].mxu0  ;;  %v4791_v0 = vsel %vm986_vm1, %v4753_v36, 0.0 }
 0x8c4   : > { %4789 = vadd.xlane.f32.xlu1 %v4788_v57  ;;  %v11645_v61 = vpop.eup %11644  ;;  %v10061_v62 = vadd.f32 %v10060_v24, %v10059_v59  ;;  %5929 = vmatprep.mubr.bf16.mxu0 %v11643_v37  ;;  %v4592_v20 = vadd.f32 %v10058_v41, %v13948_v32 }
 0x8c5   : > { %v11647_v63 = vpop.eup %11646 }
 0x8c6   : > { %5930 = vmatmul.mubr.bf16.gmra.mrb[124].mxu0 %v11645_v61  ;;  %v4595_v49 = vadd.f32 %v10061_v62, %v13948_v32  ;;  %v14003_v4 = vunpack.c.h.bf16 %v11647_v63  ;;  %v14005_v6 = vunpack.c.l.bf16 %v11647_v63 }
 0x8c8   : > { %4792 = vadd.xlane.f32.xlu1 %v4791_v0  ;;  %v4690_v48 = vpack.c.bf16 %v4595_v49, %v4592_v20  ;;  %v10062_v7 = vpop.f32.mrb[20].mxu0  ;;  %v4755_v8 = vmul.f32 %v14003_v4, %v14003_v4  ;;  %v4754_v50 = vmul.f32 %v14005_v6, %v14005_v6 }
 0x8c9   : > { %v10063_v51 = vpop.f32.mrb[21].mxu0 }
 0x8ca   : > { %11650 = vtanh.bf16 %v4690_v48  ;;  %v10064_v12 = vadd.f32 %v10063_v51, %v10062_v7  ;;  %v10065_v14 = vpop.f32.mrb[22].mxu0  ;;  %v4797_v15 = vsel %vm986_vm1, %v4755_v8, 0.0  ;;  %v4794_v17 = vsel %vm986_vm1, %v4754_v50, 0.0 }
 0x8cb   : > { %v10066_v18 = vpop.f32.mrb[23].mxu0  ;;  %4795 = vadd.xlane.f32.xlu0 %v4794_v17 }
 0x8cc   : > { %4798 = vadd.xlane.f32.xlu1 %v4797_v15  ;;  %v10067_v5 = vadd.f32 %v10066_v18, %v10065_v14  ;;  %v4600_v60 = vadd.f32 %v10064_v12, %v13948_v32 }
 0x8cd   : > { %v11649_v19 = vpop.eup %11648 }
 0x8ce   : > { %v4603_v3 = vadd.f32 %v10067_v5, %v13948_v32  ;;  %v14015_v16 = vunpack.c.h.bf16 %v11649_v19  ;;  %v14017_v9 = vunpack.c.l.bf16 %v11649_v19 }
 0x8d0   : > { %v4691_v21 = vpack.c.bf16 %v4603_v3, %v4600_v60  ;;  %v10068_v1 = vpop.f32.mrb[24].mxu0  ;;  %v4757_v22 = vmul.f32 %v14015_v16, %v14015_v16  ;;  %v4756_v25 = vmul.f32 %v14017_v9, %v14017_v9 }
 0x8d1   : > { %v10069_v27 = vpop.f32.mrb[25].mxu0 }
 0x8d2   : > { %11652 = vtanh.bf16 %v4691_v21  ;;  %v10070_v28 = vadd.f32 %v10069_v27, %v10068_v1  ;;  %v10071_v29 = vpop.f32.mrb[26].mxu0  ;;  %v4803_v34 = vsel %vm986_vm1, %v4757_v22, 0.0  ;;  %v4800_v2 = vsel %vm986_vm1, %v4756_v25, 0.0 }
 0x8d3   : > { %v10072_v10 = vpop.f32.mrb[27].mxu0  ;;  %4804 = vadd.xlane.f32.xlu1 %v4803_v34  ;;  %4801 = vadd.xlane.f32.xlu0 %v4800_v2 }
 0x8d4   : > { %v10073_v11 = vadd.f32 %v10072_v10, %v10071_v29  ;;  %v4608_v38 = vadd.f32 %v10070_v28, %v13948_v32 }
 0x8d5   : > { %v11651_v35 = vpop.eup %11650 }
 0x8d6   : > { %v4611_v39 = vadd.f32 %v10073_v11, %v13948_v32  ;;  %v14027_v58 = vunpack.c.h.bf16 %v11651_v35  ;;  %v14029_v40 = vunpack.c.l.bf16 %v11651_v35 }
 0x8d8   : > { %v4692_v42 = vpack.c.bf16 %v4611_v39, %v4608_v38  ;;  %v10074_v26 = vpop.f32.mrb[28].mxu0  ;;  %v4759_v43 = vmul.f32 %v14027_v58, %v14027_v58  ;;  %v4758_v44 = vmul.f32 %v14029_v40, %v14029_v40 }
 0x8d9   : > { %v10075_v45 = vpop.f32.mrb[29].mxu0 }
 0x8da   : > { %11654 = vtanh.bf16 %v4692_v42  ;;  %v10076_v30 = vadd.f32 %v10075_v45, %v10074_v26  ;;  %v10077_v46 = vpop.f32.mrb[30].mxu0  ;;  %v4809_v52 = vsel %vm986_vm1, %v4759_v43, 0.0  ;;  %v4806_v53 = vsel %vm986_vm1, %v4758_v44, 0.0 }
 0x8db   : > { %v10078_v13 = vpop.f32.mrb[31].mxu0  ;;  %4810 = vadd.xlane.f32.xlu1 %v4809_v52  ;;  %4807 = vadd.xlane.f32.xlu0 %v4806_v53 }
 0x8dc   : > { %v10079_v54 = vadd.f32 %v10078_v13, %v10077_v46  ;;  %v4616_v41 = vadd.f32 %v10076_v30, %v13948_v32 }
 0x8dd   : > { %v11653_v36 = vpop.eup %11652 }
 0x8de   : > { %v4619_v59 = vadd.f32 %v10079_v54, %v13948_v32  ;;  %v14039_v57 = vunpack.c.h.bf16 %v11653_v36  ;;  %v14041_v37 = vunpack.c.l.bf16 %v11653_v36 }
 0x8e0   : > { %v4693_v24 = vpack.c.bf16 %v4619_v59, %v4616_v41  ;;  %v10080_v61 = vpop.f32.mrb[32].mxu0  ;;  %v4761_v62 = vmul.f32 %v14039_v57, %v14039_v57  ;;  %v4760_v63 = vmul.f32 %v14041_v37, %v14041_v37 }
 0x8e1   : > { %v10081_v0 = vpop.f32.mrb[33].mxu0 }
 0x8e2   : > { %11656 = vtanh.bf16 %v4693_v24  ;;  %v10082_v20 = vadd.f32 %v10081_v0, %v10080_v61  ;;  %v10083_v49 = vpop.f32.mrb[34].mxu0  ;;  %v4815_v48 = vsel %vm986_vm1, %v4761_v62, 0.0  ;;  %v4812_v7 = vsel %vm986_vm1, %v4760_v63, 0.0 }
 0x8e3   : > { %v10084_v8 = vpop.f32.mrb[35].mxu0  ;;  %4816 = vadd.xlane.f32.xlu1 %v4815_v48  ;;  %4813 = vadd.xlane.f32.xlu0 %v4812_v7 }
 0x8e4   : > { %v10085_v50 = vadd.f32 %v10084_v8, %v10083_v49  ;;  %v4624_v12 = vadd.f32 %v10082_v20, %v13948_v32 }
 0x8e5   : > { %v11655_v51 = vpop.eup %11654 }
 0x8e6   : > { %v4627_v14 = vadd.f32 %v10085_v50, %v13948_v32  ;;  %v14051_v15 = vunpack.c.h.bf16 %v11655_v51  ;;  %v14053_v17 = vunpack.c.l.bf16 %v11655_v51 }
 0x8e8   : > { %v4694_v18 = vpack.c.bf16 %v4627_v14, %v4624_v12  ;;  %v10086_v5 = vpop.f32.mrb[36].mxu0  ;;  %v4763_v19 = vmul.f32 %v14051_v15, %v14051_v15  ;;  %v4762_v60 = vmul.f32 %v14053_v17, %v14053_v17 }
 0x8e9   : > { %v10087_v3 = vpop.f32.mrb[37].mxu0 }
 0x8ea   : > { %11658 = vtanh.bf16 %v4694_v18  ;;  %v10088_v21 = vadd.f32 %v10087_v3, %v10086_v5  ;;  %v10089_v1 = vpop.f32.mrb[38].mxu0  ;;  %v4821_v22 = vsel %vm986_vm1, %v4763_v19, 0.0  ;;  %v4818_v25 = vsel %vm986_vm1, %v4762_v60, 0.0 }
 0x8eb   : > { %v10090_v27 = vpop.f32.mrb[39].mxu0  ;;  %4822 = vadd.xlane.f32.xlu1 %v4821_v22  ;;  %4819 = vadd.xlane.f32.xlu0 %v4818_v25 }
 0x8ec   : > { %v10091_v28 = vadd.f32 %v10090_v27, %v10089_v1  ;;  %v4632_v34 = vadd.f32 %v10088_v21, %v13948_v32 }
 0x8ed   : > { %v11657_v29 = vpop.eup %11656 }
 0x8ee   : > { %v4635_v2 = vadd.f32 %v10091_v28, %v13948_v32  ;;  %v14063_v10 = vunpack.c.h.bf16 %v11657_v29  ;;  %v14065_v11 = vunpack.c.l.bf16 %v11657_v29 }
 0x8f0   : > { %v4695_v35 = vpack.c.bf16 %v4635_v2, %v4632_v34  ;;  %v10092_v38 = vpop.f32.mrb[40].mxu0  ;;  %v4765_v39 = vmul.f32 %v14063_v10, %v14063_v10  ;;  %v4764_v42 = vmul.f32 %v14065_v11, %v14065_v11 }
 0x8f1   : > { %v10093_v26 = vpop.f32.mrb[41].mxu0 }
 0x8f2   : > { %11660 = vtanh.bf16 %v4695_v35  ;;  %v10094_v43 = vadd.f32 %v10093_v26, %v10092_v38  ;;  %v10095_v44 = vpop.f32.mrb[42].mxu0  ;;  %v4827_v45 = vsel %vm986_vm1, %v4765_v39, 0.0  ;;  %v4824_v30 = vsel %vm986_vm1, %v4764_v42, 0.0 }
 0x8f3   : > { %v10096_v46 = vpop.f32.mrb[43].mxu0  ;;  %4828 = vadd.xlane.f32.xlu1 %v4827_v45  ;;  %4825 = vadd.xlane.f32.xlu0 %v4824_v30 }
 0x8f4   : > { %v10097_v52 = vadd.f32 %v10096_v46, %v10095_v44  ;;  %v4640_v13 = vadd.f32 %v10094_v43, %v13948_v32 }
 0x8f5   : > { %v11659_v53 = vpop.eup %11658 }
 0x8f6   : > { %v4643_v54 = vadd.f32 %v10097_v52, %v13948_v32  ;;  %v14075_v36 = vunpack.c.h.bf16 %v11659_v53  ;;  %v14077_v41 = vunpack.c.l.bf16 %v11659_v53 }
 0x8f8   : > { %v4696_v59 = vpack.c.bf16 %v4643_v54, %v4640_v13  ;;  %v10098_v24 = vpop.f32.mrb[44].mxu0  ;;  %v4767_v61 = vmul.f32 %v14075_v36, %v14075_v36  ;;  %v4766_v62 = vmul.f32 %v14077_v41, %v14077_v41 }
 0x8f9   : > { %v10099_v63 = vpop.f32.mrb[45].mxu0 }
 0x8fa   : > { %11662 = vtanh.bf16 %v4696_v59  ;;  %v10100_v0 = vadd.f32 %v10099_v63, %v10098_v24  ;;  %v10101_v20 = vpop.f32.mrb[46].mxu0  ;;  %v4833_v49 = vsel %vm986_vm1, %v4767_v61, 0.0  ;;  %v4830_v48 = vsel %vm986_vm1, %v4766_v62, 0.0 }
 0x8fb   : > { %v10102_v7 = vpop.f32.mrb[47].mxu0  ;;  %4834 = vadd.xlane.f32.xlu1 %v4833_v49  ;;  %4831 = vadd.xlane.f32.xlu0 %v4830_v48 }
 0x8fc   : > { %v10103_v8 = vadd.f32 %v10102_v7, %v10101_v20  ;;  %v4648_v51 = vadd.f32 %v10100_v0, %v13948_v32 }
 0x8fd   : > { %v11661_v50 = vpop.eup %11660 }
 0x8fe   : > { %v4651_v12 = vadd.f32 %v10103_v8, %v13948_v32  ;;  %v14087_v14 = vunpack.c.h.bf16 %v11661_v50  ;;  %v14089_v18 = vunpack.c.l.bf16 %v11661_v50 }
 0x900   : > { %v4697_v5 = vpack.c.bf16 %v4651_v12, %v4648_v51  ;;  %v10104_v19 = vpop.f32.mrb[48].mxu0  ;;  %v4769_v60 = vmul.f32 %v14087_v14, %v14087_v14  ;;  %v4768_v3 = vmul.f32 %v14089_v18, %v14089_v18 }
 0x901   : > { %v10105_v21 = vpop.f32.mrb[49].mxu0 }
 0x902   : > { %11664 = vtanh.bf16 %v4697_v5  ;;  %v10106_v1 = vadd.f32 %v10105_v21, %v10104_v19  ;;  %v10107_v22 = vpop.f32.mrb[50].mxu0  ;;  %v4839_v25 = vsel %vm986_vm1, %v4769_v60, 0.0  ;;  %v4836_v27 = vsel %vm986_vm1, %v4768_v3, 0.0 }
 0x903   : > { %v10108_v28 = vpop.f32.mrb[51].mxu0  ;;  %4840 = vadd.xlane.f32.xlu1 %v4839_v25  ;;  %4837 = vadd.xlane.f32.xlu0 %v4836_v27 }
 0x904   : > { %v10109_v29 = vadd.f32 %v10108_v28, %v10107_v22  ;;  %v4656_v2 = vadd.f32 %v10106_v1, %v13948_v32 }
 0x905   : > { %v11663_v34 = vpop.eup %11662 }
 0x906   : > { %v4659_v35 = vadd.f32 %v10109_v29, %v13948_v32  ;;  %v14099_v38 = vunpack.c.h.bf16 %v11663_v34  ;;  %v14101_v39 = vunpack.c.l.bf16 %v11663_v34 }
 0x908   : > { %v4698_v42 = vpack.c.bf16 %v4659_v35, %v4656_v2  ;;  %v10110_v26 = vpop.f32.mrb[52].mxu0  ;;  %v4771_v43 = vmul.f32 %v14099_v38, %v14099_v38  ;;  %v4770_v44 = vmul.f32 %v14101_v39, %v14101_v39 }
 0x909   : > { %v10111_v45 = vpop.f32.mrb[53].mxu0 }
 0x90a   : > { %11666 = vtanh.bf16 %v4698_v42  ;;  %v10112_v30 = vadd.f32 %v10111_v45, %v10110_v26  ;;  %v10113_v46 = vpop.f32.mrb[54].mxu0  ;;  %v4845_v52 = vsel %vm986_vm1, %v4771_v43, 0.0  ;;  %v4842_v53 = vsel %vm986_vm1, %v4770_v44, 0.0  ;;  %v5575_v45 = vld [vmem:[%s15234_s4] sm:$0x3] }
 0x90b   : > { %v10114_v13 = vpop.f32.mrb[55].mxu0  ;;  %4846 = vadd.xlane.f32.xlu1 %v4845_v52  ;;  %4843 = vadd.xlane.f32.xlu0 %v4842_v53 }
 0x90c   : > { %v10115_v54 = vadd.f32 %v10114_v13, %v10113_v46  ;;  %v4664_v24 = vadd.f32 %v10112_v30, %v13948_v32 }
 0x90d   : > { %v11665_v59 = vpop.eup %11664 }
 0x90e   : > { %v4667_v61 = vadd.f32 %v10115_v54, %v13948_v32  ;;  %v14111_v62 = vunpack.c.h.bf16 %v11665_v59  ;;  %v14113_v63 = vunpack.c.l.bf16 %v11665_v59  ;;  %v14143_v54 = vrot.slane %v5575_v45, %v12808_v55 }
 0x910   : > { %v4699_v0 = vpack.c.bf16 %v4667_v61, %v4664_v24  ;;  %v10116_v20 = vpop.f32.mrb[56].mxu0  ;;  %v4773_v49 = vmul.f32 %v14111_v62, %v14111_v62  ;;  %v4772_v48 = vmul.f32 %v14113_v63, %v14113_v63  ;;  %v14146_v61 = vrot.slane %v5575_v45, %v12810_v56 }
 0x911   : > { %v10117_v7 = vpop.f32.mrb[57].mxu0 }
 0x912   : > { %11668 = vtanh.bf16 %v4699_v0  ;;  %v10118_v8 = vadd.f32 %v10117_v7, %v10116_v20  ;;  %v10119_v50 = vpop.f32.mrb[58].mxu0  ;;  %v4851_v51 = vsel %vm986_vm1, %v4773_v49, 0.0  ;;  %v4848_v12 = vsel %vm986_vm1, %v4772_v48, 0.0 }
 0x913   : > { %v10120_v5 = vpop.f32.mrb[59].mxu0  ;;  %4852 = vadd.xlane.f32.xlu1 %v4851_v51  ;;  %4849 = vadd.xlane.f32.xlu0 %v4848_v12 }
 0x914   : > { %v10121_v19 = vadd.f32 %v10120_v5, %v10119_v50  ;;  %v4672_v3 = vadd.f32 %v10118_v8, %v13948_v32 }
 0x915   : > { %v11667_v60 = vpop.eup %11666 }
 0x916   : > { %v4675_v21 = vadd.f32 %v10121_v19, %v13948_v32  ;;  %v14123_v1 = vunpack.c.h.bf16 %v11667_v60  ;;  %v14125_v22 = vunpack.c.l.bf16 %v11667_v60 }
 0x918   : > { %v4700_v25 = vpack.c.bf16 %v4675_v21, %v4672_v3  ;;  %v10122_v27 = vpop.f32.mrb[60].mxu0  ;;  %v4775_v28 = vmul.f32 %v14123_v1, %v14123_v1  ;;  %v4774_v29 = vmul.f32 %v14125_v22, %v14125_v22 }
 0x919   : > { %v10123_v34 = vpop.f32.mrb[61].mxu0 }
 0x91a   : > { %11670 = vtanh.bf16 %v4700_v25  ;;  %v10124_v2 = vadd.f32 %v10123_v34, %v10122_v27  ;;  %v10125_v35 = vpop.f32.mrb[62].mxu0  ;;  %v4857_v42 = vsel %vm986_vm1, %v4775_v28, 0.0  ;;  %v4854_v26 = vsel %vm986_vm1, %v4774_v29, 0.0 }
 0x91b   : > { %v10126_v43 = vpop.f32.mrb[63].mxu0  ;;  %4858 = vadd.xlane.f32.xlu1 %v4857_v42  ;;  %4855 = vadd.xlane.f32.xlu0 %v4854_v26 }
 0x91c   : > { %v10127_v44 = vadd.f32 %v10126_v43, %v10125_v35  ;;  %v4680_v46 = vadd.f32 %v10124_v2, %v13948_v32 }
 0x91d   : > { %v11669_v30 = vpop.eup %11668 }
 0x91e   : > { %v4683_v52 = vadd.f32 %v10127_v44, %v13948_v32  ;;  %v14138_v53 = vunpack.c.h.bf16 %v11669_v30  ;;  %v14140_v13 = vunpack.c.l.bf16 %v11669_v30 }
 0x920   : > { %v4701_v59 = vpack.c.bf16 %v4683_v52, %v4680_v46  ;;  %v5781_v24 = vpop.f32.mrb[64].mxu0  ;;  %v4777_v0 = vmul.f32 %v14138_v53, %v14138_v53  ;;  %v4776_v20 = vmul.f32 %v14140_v13, %v14140_v13 }
 0x921   : > { %v5783_v49 = vpop.f32.mrb[65].mxu0  ;;  %v5782_v8 = vadd.f32 %v5781_v24, %v14143_v54  ;;  %v10947_v24 = vld [vmem:[%s15237_s7] sm:$0xff]  }
 0x922   : > { %11672 = vtanh.bf16 %v4701_v59  ;;  %v5785_v32 = vpop.f32.mrb[66].mxu0  ;;  %v4863_v48 = vsel %vm986_vm1, %v4777_v0, 0.0  ;;  %v4860_v7 = vsel %vm986_vm1, %v4776_v20, 0.0  ;;  %v5784_v12 = vadd.f32 %v5783_v49, %v14146_v61  ;;  %v10946_v59 = vld [vmem:[%s15237_s7 + $0x40] sm:$0xff]  }
 0x923   : > { %v5786_v50 = vadd.f32 %v5785_v32, %v14143_v54  ;;  %v5787_v51 = vpop.f32.mrb[67].mxu0  ;;  %4864 = vadd.xlane.f32.xlu1 %v4863_v48  ;;  %4861 = vadd.xlane.f32.xlu0 %v4860_v7 }
 0x924   : > { %v5788_v5 = vadd.f32 %v5787_v51, %v14146_v61  ;;  %10128 = vmatprep.subr.bf16.mxu0 %v10946_v59 }
 0x925   : > { %v11671_v19 = vpop.eup %11670  ;;  %v5940_v60 = vpack.c.bf16 %v5786_v50, %v5782_v8  ;;  %10129 = vmatpush3.bf16.msra.mxu0 %v10947_v24 }
 0x926   : > { %v5941_v3 = vpack.c.bf16 %v5788_v5, %v5784_v12  ;;  %v14158_v21 = vunpack.c.h.bf16 %v11671_v19  ;;  %v14160_v25 = vunpack.c.l.bf16 %v11671_v19 }
 0x928   : > { %11674 = vtanh.bf16 %v5941_v3  ;;  %v5791_v27 = vpop.f32.mrb[68].mxu0  ;;  %v4779_v28 = vmul.f32 %v14158_v21, %v14158_v21  ;;  %v4778_v29 = vmul.f32 %v14160_v25, %v14160_v25 }
 0x929   : > { %11676 = vtanh.bf16 %v5940_v60  ;;  %v5793_v34 = vpop.f32.mrb[69].mxu0  ;;  %v5792_v26 = vadd.f32 %v5791_v27, %v14143_v54 }
 0x92a   : > { %v5795_v2 = vpop.f32.mrb[70].mxu0  ;;  %v4869_v35 = vsel %vm986_vm1, %v4779_v28, 0.0  ;;  %v4866_v42 = vsel %vm986_vm1, %v4778_v29, 0.0  ;;  %v5794_v45 = vadd.f32 %v5793_v34, %v14146_v61 }
 0x92b   : > { %v5796_v43 = vadd.f32 %v5795_v2, %v14143_v54  ;;  %v5797_v44 = vpop.f32.mrb[71].mxu0  ;;  %4870 = vadd.xlane.f32.xlu1 %v4869_v35  ;;  %4867 = vadd.xlane.f32.xlu0 %v4866_v42 }
 0x92c   : > { %v5798_v30 = vadd.f32 %v5797_v44, %v14146_v61 }
 0x92d   : > { %v11673_v46 = vpop.eup %11672  ;;  %v5942_v52 = vpack.c.bf16 %v5796_v43, %v5792_v26 }
 0x92e   : > { %v5943_v0 = vpack.c.bf16 %v5798_v30, %v5794_v45  ;;  %v14178_v20 = vunpack.c.h.bf16 %v11673_v46  ;;  %v14180_v49 = vunpack.c.l.bf16 %v11673_v46 }
 0x930   : > { %11678 = vtanh.bf16 %v5943_v0  ;;  %v5801_v32 = vpop.f32.mrb[72].mxu0  ;;  %v4781_v48 = vmul.f32 %v14178_v20, %v14178_v20  ;;  %v4780_v7 = vmul.f32 %v14180_v49, %v14180_v49  ;;  %v10948_v0 = vld [vmem:[%s15237_s7 + $0x48] sm:$0xff]  }
 0x931   : > { %11680 = vtanh.bf16 %v5942_v52  ;;  %v5803_v8 = vpop.f32.mrb[73].mxu0  ;;  %v5802_v19 = vadd.f32 %v5801_v32, %v14143_v54  ;;  %v10949_v32 = vld [vmem:[%s15237_s7 + $0x8] sm:$0xff]   ;;  %10130 = vmatprep.subr.bf16.mxu0 %v10948_v0 }
 0x932   : > { %v5805_v50 = vpop.f32.mrb[74].mxu0  ;;  %v4875_v51 = vsel %vm986_vm1, %v4781_v48, 0.0  ;;  %v4872_v12 = vsel %vm986_vm1, %v4780_v7, 0.0  ;;  %v5804_v28 = vadd.f32 %v5803_v8, %v14146_v61  ;;  %10131 = vmatpush3.bf16.msra.mxu0 %v10949_v32 }
 0x933   : > { %v11675_v5 = vpop.eup %11674  ;;  %v5806_v60 = vadd.f32 %v5805_v50, %v14143_v54  ;;  %v5807_v3 = vpop.f32.mrb[75].mxu0  ;;  %4876 = vadd.xlane.f32.xlu1 %v4875_v51  ;;  %4873 = vadd.xlane.f32.xlu0 %v4872_v12 }
 0x934   : > { %v11677_v27 = vpop.eup %11676  ;;  %v5808_v29 = vadd.f32 %v5807_v3, %v14146_v61  ;;  %6240 = vmatprep.mubr.bf16.mxu1 %v11675_v5 }
 0x935   : > { %v5944_v34 = vpack.c.bf16 %v5806_v60, %v5802_v19  ;;  %6241 = vmatmul.mubr.bf16.vlgmr.msra.gmra.mrb[64].mxu1 %v11677_v27 }
 0x936   : > { %v5945_v2 = vpack.c.bf16 %v5808_v29, %v5804_v28 }
 0x938   : > { %11682 = vtanh.bf16 %v5945_v2  ;;  %v5811_v35 = vpop.f32.mrb[76].mxu0 }
 0x939   : > { %11684 = vtanh.bf16 %v5944_v34  ;;  %v5813_v42 = vpop.f32.mrb[77].mxu0  ;;  %v5812_v44 = vadd.f32 %v5811_v35, %v14143_v54 }
 0x93a   : > { %v5815_v26 = vpop.f32.mrb[78].mxu0  ;;  %v5814_v52 = vadd.f32 %v5813_v42, %v14146_v61 }
 0x93b   : > { %v11679_v43 = vpop.eup %11678  ;;  %v5816_v45 = vadd.f32 %v5815_v26, %v14143_v54  ;;  %v5817_v30 = vpop.f32.mrb[79].mxu0 }
 0x93c   : > { %v11681_v46 = vpop.eup %11680  ;;  %v5818_v59 = vadd.f32 %v5817_v30, %v14146_v61  ;;  %6250 = vmatprep.mubr.bf16.mxu1 %v11679_v43 }
 0x93d   : > { %v5946_v24 = vpack.c.bf16 %v5816_v45, %v5812_v44  ;;  %6251 = vmatmul.mubr.bf16.gmra.mrb[68].mxu1 %v11681_v46 }
 0x93e   : > { %v5947_v48 = vpack.c.bf16 %v5818_v59, %v5814_v52 }
 0x940   : > { %11686 = vtanh.bf16 %v5947_v48  ;;  %v5821_v7 = vpop.f32.mrb[80].mxu0  ;;  %v10950_v48 = vld [vmem:[%s15237_s7 + $0x50] sm:$0xff]  }
 0x941   : > { %11688 = vtanh.bf16 %v5946_v24  ;;  %v5823_v8 = vpop.f32.mrb[81].mxu0  ;;  %v5822_v12 = vadd.f32 %v5821_v7, %v14143_v54  ;;  %v10951_v7 = vld [vmem:[%s15237_s7 + $0x10] sm:$0xff]   ;;  %10132 = vmatprep.subr.bf16.mxu0 %v10950_v48 }
 0x942   : > { %v5825_v50 = vpop.f32.mrb[82].mxu0  ;;  %v5824_v3 = vadd.f32 %v5823_v8, %v14146_v61  ;;  %10133 = vmatpush3.bf16.msra.mxu0 %v10951_v7 }
 0x943   : > { %v11683_v51 = vpop.eup %11682  ;;  %v5826_v5 = vadd.f32 %v5825_v50, %v14143_v54  ;;  %v5827_v19 = vpop.f32.mrb[83].mxu0 }
 0x944   : > { %v11685_v60 = vpop.eup %11684  ;;  %v5828_v27 = vadd.f32 %v5827_v19, %v14146_v61  ;;  %6260 = vmatprep.mubr.bf16.mxu1 %v11683_v51 }
 0x945   : > { %v5948_v28 = vpack.c.bf16 %v5826_v5, %v5822_v12  ;;  %6261 = vmatmul.mubr.bf16.gmra.mrb[72].mxu1 %v11685_v60 }
 0x946   : > { %v5949_v29 = vpack.c.bf16 %v5828_v27, %v5824_v3 }
 0x948   : > { %11690 = vtanh.bf16 %v5949_v29  ;;  %v5831_v34 = vpop.f32.mrb[84].mxu0 }
 0x949   : > { %v4784_v2 = vpop.xlane.xlu0 %4783  ;;  %11692 = vtanh.bf16 %v5948_v28  ;;  %v5833_v42 = vpop.f32.mrb[85].mxu0  ;;  %v5832_v44 = vadd.f32 %v5831_v34, %v14143_v54 }
 0x94a   : > { %v4878_v35 = vmax.f32 %v4784_v2, 1.1920929e-07  ;;  %v5835_v26 = vpop.f32.mrb[86].mxu0  ;;  %v5834_v52 = vadd.f32 %v5833_v42, %v14146_v61 }
 0x94b   : > { %v11687_v43 = vpop.eup %11686  ;;  %v5836_v45 = vadd.f32 %v5835_v26, %v14143_v54  ;;  %v5837_v30 = vpop.f32.mrb[87].mxu0 }
 0x94c   : > { %11694 = vrsqrt.f32 %v4878_v35  ;;  %v11689_v46 = vpop.eup %11688  ;;  %v5838_v59 = vadd.f32 %v5837_v30, %v14146_v61  ;;  %6270 = vmatprep.mubr.bf16.mxu1 %v11687_v43  ;;  %v10954_v30 = vld [vmem:[%s15237_s7 + $0x60] sm:$0xff]  }
 0x94d   : > { %v4787_v24 = vpop.xlane.xlu0 %4786  ;;  %v5950_v0 = vpack.c.bf16 %v5836_v45, %v5832_v44  ;;  %6271 = vmatmul.mubr.bf16.gmra.mrb[76].mxu1 %v11689_v46  ;;  %v10952_v44 = vld [vmem:[%s15237_s7 + $0x58] sm:$0xff]  }
 0x94e   : > { %v4879_v32 = vmax.f32 %v4787_v24, 1.1920929e-07  ;;  %v5951_v8 = vpack.c.bf16 %v5838_v59, %v5834_v52  ;;  %v10953_v45 = vld [vmem:[%s15237_s7 + $0x18] sm:$0xff]   ;;  %10134 = vmatprep.subr.bf16.mxu0 %v10952_v44 }
 0x94f   : > { %11696 = vtanh.bf16 %v5950_v0  ;;  %10135 = vmatpush3.bf16.msra.mxu0 %v10953_v45 }
 0x950   : > { %11698 = vtanh.bf16 %v5951_v8  ;;  %v5841_v50 = vpop.f32.mrb[88].mxu0  ;;  %10136 = vmatprep.subr.bf16.mxu0 %v10954_v30  ;;  %v10956_v8 = vld [vmem:[%s15237_s7 + $0x68] sm:$0xff]  }
 0x951   : > { %v4790_v51 = vpop.xlane.xlu1 %4789  ;;  %11700 = vrsqrt.f32 %v4879_v32  ;;  %v5843_v5 = vpop.f32.mrb[89].mxu0  ;;  %v5842_v3 = vadd.f32 %v5841_v50, %v14143_v54  ;;  %v10955_v32 = vld [vmem:[%s15237_s7 + $0x20] sm:$0xff]  }
 0x952   : > { %v4880_v12 = vmax.f32 %v4790_v51, 1.1920929e-07  ;;  %v5845_v19 = vpop.f32.mrb[90].mxu0  ;;  %v5844_v34 = vadd.f32 %v5843_v5, %v14146_v61 }
 0x953   : > { %v11691_v60 = vpop.eup %11690  ;;  %v5846_v27 = vadd.f32 %v5845_v19, %v14143_v54  ;;  %v5847_v28 = vpop.f32.mrb[91].mxu0  ;;  %10137 = vmatpush3.bf16.msra.mxu0 %v10955_v32 }
 0x954   : > { %11702 = vrsqrt.f32 %v4880_v12  ;;  %v11693_v29 = vpop.eup %11692  ;;  %v5848_v2 = vadd.f32 %v5847_v28, %v14146_v61  ;;  %6280 = vmatprep.mubr.bf16.mxu1 %v11691_v60  ;;  %10138 = vmatprep.subr.bf16.mxu0 %v10956_v8 }
 0x955   : > { %v4793_v35 = vpop.xlane.xlu1 %4792  ;;  %v5952_v26 = vpack.c.bf16 %v5846_v27, %v5842_v3  ;;  %6281 = vmatmul.mubr.bf16.gmra.mrb[80].mxu1 %v11693_v29 }
 0x956   : > { %v11695_v42 = vpop.eup %11694  ;;  %v4881_v43 = vmax.f32 %v4793_v35, 1.1920929e-07  ;;  %v5953_v52 = vpack.c.bf16 %v5848_v2, %v5844_v34  ;;  %v10957_v35 = vld [vmem:[%s15237_s7 + $0x28] sm:$0xff]  }
 0x957   : > { %v4942_v46 = vmul.f32 %v11695_v42, %v13979_v31  ;;  %11704 = vtanh.bf16 %v5952_v26  ;;  %10139 = vmatpush3.bf16.msra.mxu0 %v10957_v35 }
 0x958   : > { %11706 = vtanh.bf16 %v5953_v52  ;;  %v5851_v24 = vpop.f32.mrb[92].mxu0  ;;  %v4796_v48 = vpop.xlane.xlu0 %4795 }
 0x959   : > { %v4974_v59 = vmul.f32 1.002, %v4942_v46  ;;  %v4799_v0 = vpop.xlane.xlu1 %4798  ;;  %11708 = vrsqrt.f32 %v4881_v43  ;;  %v5853_v7 = vpop.f32.mrb[93].mxu0  ;;  %v4882_v12 = vmax.f32 %v4796_v48, 1.1920929e-07  ;;  %v5852_v3 = vadd.f32 %v5851_v24, %v14143_v54  ;;  %v10958_v43 = vld [vmem:[%s15237_s7 + $0x70] sm:$0xff]  }
 0x95a   : > { %v4883_v31 = vmax.f32 %v4799_v0, 1.1920929e-07  ;;  %v11697_v50 = vpop.eup %11696  ;;  %v5855_v5 = vpop.f32.mrb[94].mxu0  ;;  %v5854_v34 = vadd.f32 %v5853_v7, %v14146_v61  ;;  %v10959_v24 = vld [vmem:[%s15237_s7 + $0x30] sm:$0xff]   ;;  %10140 = vmatprep.subr.bf16.mxu0 %v10958_v43 }
 0x95b   : > { %v9496_v51 = vadd.f32 -0.001, %v4974_v59  ;;  %v11699_v19 = vpop.eup %11698  ;;  %v5856_v27 = vadd.f32 %v5855_v5, %v14143_v54  ;;  %v5857_v28 = vpop.f32.mrb[95].mxu0  ;;  %10141 = vmatpush3.bf16.msra.mxu0 %v10959_v24 }
 0x95c   : > { %v11701_v60 = vpop.eup %11700  ;;  %11710 = vrsqrt.f32 %v4883_v31  ;;  %v5858_v2 = vadd.f32 %v5857_v28, %v14146_v61  ;;  %6290 = vmatprep.mubr.bf16.mxu1 %v11699_v19 }
 0x95d   : > { %5038 = vst.msk [vmem:[%s14237_s28] sm:$0xff] %vm986_vm1, %v9496_v51  ;;  %v4943_v29 = vmul.f32 %v11701_v60, %v13981_v33  ;;  %11712 = vrsqrt.f32 %v4882_v12  ;;  %v5954_v26 = vpack.c.bf16 %v5856_v27, %v5852_v3  ;;  %6291 = vmatmul.mubr.bf16.gmra.mrb[84].mxu1 %v11697_v50 }
 0x95e   : > { %v11703_v42 = vpop.eup %11702  ;;  %v5955_v45 = vpack.c.bf16 %v5858_v2, %v5854_v34 }
 0x95f   : > { %v4975_v33 = vmul.f32 1.002, %v4943_v29  ;;  %v4944_v44 = vmul.f32 %v11703_v42, %v13991_v23 }
 0x960   : > { %11714 = vtanh.bf16 %v5955_v45  ;;  %v5861_v52 = vpop.f32.mrb[96].mxu0  ;;  %v4805_v59 = vpop.xlane.xlu1 %4804 }
 0x961   : > { %v9497_v30 = vadd.f32 -0.001, %v4975_v33  ;;  %v4976_v46 = vmul.f32 1.002, %v4944_v44  ;;  %11716 = vtanh.bf16 %v5954_v26  ;;  %v4885_v0 = vmax.f32 %v4805_v59, 1.1920929e-07  ;;  %v4802_v32 = vpop.xlane.xlu0 %4801  ;;  %v5863_v31 = vpop.f32.mrb[97].mxu0 }
 0x962   : > { %v11705_v48 = vpop.eup %11704  ;;  %v4884_v7 = vmax.f32 %v4802_v32, 1.1920929e-07  ;;  %v5865_v8 = vpop.f32.mrb[98].mxu0  ;;  %v5862_v12 = vadd.f32 %v5861_v52, %v14143_v54  ;;  %v5864_v3 = vadd.f32 %v5863_v31, %v14146_v61 }
 0x963   : > { %5039 = vst.msk [vmem:[%s14237_s28 + $0x8] sm:$0xff] %vm986_vm1, %v9497_v30  ;;  %v9498_v23 = vadd.f32 -0.001, %v4976_v46  ;;  %v11707_v50 = vpop.eup %11706  ;;  %11718 = vrsqrt.f32 %v4885_v0  ;;  %v5866_v5 = vadd.f32 %v5865_v8, %v14143_v54  ;;  %v5867_v19 = vpop.f32.mrb[99].mxu0 }
 0x964   : > { %v11709_v51 = vpop.eup %11708  ;;  %11720 = vrsqrt.f32 %v4884_v7  ;;  %v5868_v27 = vadd.f32 %v5867_v19, %v14146_v61  ;;  %6300 = vmatprep.mubr.bf16.mxu1 %v11707_v50 }
 0x965   : > { %5040 = vst.msk [vmem:[%s14237_s28 + $0x10] sm:$0xff] %vm986_vm1, %v9498_v23  ;;  %v4945_v60 = vmul.f32 %v11709_v51, %v13993_v47  ;;  %v5956_v29 = vpack.c.bf16 %v5866_v5, %v5862_v12  ;;  %6301 = vmatmul.mubr.bf16.gmra.mrb[88].mxu1 %v11705_v48 }
 0x966   : > { %v11711_v28 = vpop.eup %11710  ;;  %v5957_v42 = vpack.c.bf16 %v5868_v27, %v5864_v3 }
 0x967   : > { %v11713_v34 = vpop.eup %11712  ;;  %v4977_v2 = vmul.f32 1.002, %v4945_v60  ;;  %v4947_v35 = vmul.f32 %v11711_v28, %v14003_v4 }
 0x968   : > { %v4946_v26 = vmul.f32 %v11713_v34, %v14005_v6  ;;  %11722 = vtanh.bf16 %v5957_v42  ;;  %v5871_v33 = vpop.f32.mrb[100].mxu0  ;;  %v4811_v44 = vpop.xlane.xlu1 %4810 }
 0x969   : > { %v9499_v43 = vadd.f32 -0.001, %v4977_v2  ;;  %v4979_v47 = vmul.f32 1.002, %v4947_v35  ;;  %11724 = vtanh.bf16 %v5956_v29  ;;  %v4887_v30 = vmax.f32 %v4811_v44, 1.1920929e-07  ;;  %v4808_v46 = vpop.xlane.xlu0 %4807  ;;  %v5873_v52 = vpop.f32.mrb[101].mxu0 }
 0x96a   : > { %v4978_v45 = vmul.f32 1.002, %v4946_v26  ;;  %v4886_v24 = vmax.f32 %v4808_v46, 1.1920929e-07  ;;  %v5875_v4 = vpop.f32.mrb[102].mxu0  ;;  %v5872_v6 = vadd.f32 %v5871_v33, %v14143_v54  ;;  %v5874_v7 = vadd.f32 %v5873_v52, %v14146_v61 }
 0x96b   : > { %5041 = vst.msk [vmem:[%s14237_s28 + $0x18] sm:$0xff] %vm986_vm1, %v9499_v43  ;;  %v9501_v59 = vadd.f32 -0.001, %v4979_v47  ;;  %v11715_v0 = vpop.eup %11714  ;;  %11726 = vrsqrt.f32 %v4887_v30  ;;  %v5876_v31 = vadd.f32 %v5875_v4, %v14143_v54  ;;  %v5877_v48 = vpop.f32.mrb[103].mxu0 }
 0x96c   : > { %v9500_v32 = vadd.f32 -0.001, %v4978_v45  ;;  %v11717_v23 = vpop.eup %11716  ;;  %11728 = vrsqrt.f32 %v4886_v24  ;;  %v5878_v8 = vadd.f32 %v5877_v48, %v14146_v61  ;;  %6310 = vmatprep.mubr.bf16.mxu1 %v11715_v0 }
 0x96d   : > { %5043 = vst.msk [vmem:[%s14237_s28 + $0x28] sm:$0xff] %vm986_vm1, %v9501_v59  ;;  %v11719_v50 = vpop.eup %11718  ;;  %v5958_v51 = vpack.c.bf16 %v5876_v31, %v5872_v6  ;;  %6311 = vmatmul.mubr.bf16.gmra.mrb[92].mxu1 %v11717_v23 }
 0x96e   : > { %5042 = vst.msk [vmem:[%s14237_s28 + $0x20] sm:$0xff] %vm986_vm1, %v9500_v32  ;;  %v11721_v12 = vpop.eup %11720  ;;  %v4949_v5 = vmul.f32 %v11719_v50, %v14015_v16  ;;  %v5959_v19 = vpack.c.bf16 %v5878_v8, %v5874_v7 }
 0x96f   : > { %v4948_v60 = vmul.f32 %v11721_v12, %v14017_v9 }
 0x970   : > { %v4981_v3 = vmul.f32 1.002, %v4949_v5  ;;  %11730 = vtanh.bf16 %v5959_v19  ;;  %v5881_v27 = vpop.f32.mrb[104].mxu0  ;;  %v4817_v28 = vpop.xlane.xlu1 %4816 }
 0x971   : > { %v4980_v29 = vmul.f32 1.002, %v4948_v60  ;;  %11732 = vtanh.bf16 %v5958_v51  ;;  %v4889_v34 = vmax.f32 %v4817_v28, 1.1920929e-07  ;;  %v4814_v2 = vpop.xlane.xlu0 %4813  ;;  %v5883_v35 = vpop.f32.mrb[105].mxu0  ;;  %v5882_v16 = vadd.f32 %v5881_v27, %v14143_v54 }
 0x972   : > { %v9503_v42 = vadd.f32 -0.001, %v4981_v3  ;;  %v4888_v26 = vmax.f32 %v4814_v2, 1.1920929e-07  ;;  %v5885_v43 = vpop.f32.mrb[106].mxu0  ;;  %v5884_v30 = vadd.f32 %v5883_v35, %v14146_v61 }
 0x973   : > { %v11723_v47 = vpop.eup %11722  ;;  %v9502_v33 = vadd.f32 -0.001, %v4980_v29  ;;  %11734 = vrsqrt.f32 %v4889_v34  ;;  %v5886_v9 = vadd.f32 %v5885_v43, %v14143_v54  ;;  %v5887_v44 = vpop.f32.mrb[107].mxu0 }
 0x974   : > { %v11725_v45 = vpop.eup %11724  ;;  %5045 = vst.msk [vmem:[%s14237_s28 + $0x38] sm:$0xff] %vm986_vm1, %v9503_v42  ;;  %11736 = vrsqrt.f32 %v4888_v26  ;;  %v5888_v46 = vadd.f32 %v5887_v44, %v14146_v61  ;;  %6320 = vmatprep.mubr.bf16.mxu1 %v11723_v47 }
 0x975   : > { %v11727_v52 = vpop.eup %11726  ;;  %5044 = vst.msk [vmem:[%s14237_s28 + $0x30] sm:$0xff] %vm986_vm1, %v9502_v33  ;;  %v5960_v59 = vpack.c.bf16 %v5886_v9, %v5882_v16  ;;  %6321 = vmatmul.mubr.bf16.gmra.mrb[96].mxu1 %v11725_v45 }
 0x976   : > { %v11729_v24 = vpop.eup %11728  ;;  %v4951_v4 = vmul.f32 %v11727_v52, %v14027_v58  ;;  %v5961_v0 = vpack.c.bf16 %v5888_v46, %v5884_v30 }
 0x977   : > { %v4950_v32 = vmul.f32 %v11729_v24, %v14029_v40 }
 0x978   : > { %v4983_v6 = vmul.f32 1.002, %v4951_v4  ;;  %11738 = vtanh.bf16 %v5961_v0  ;;  %v5891_v31 = vpop.f32.mrb[108].mxu0  ;;  %v4823_v48 = vpop.xlane.xlu1 %4822 }
 0x979   : > { %v4982_v23 = vmul.f32 1.002, %v4950_v32  ;;  %11740 = vtanh.bf16 %v5960_v59  ;;  %v4891_v7 = vmax.f32 %v4823_v48, 1.1920929e-07  ;;  %v4820_v8 = vpop.xlane.xlu0 %4819  ;;  %v5893_v50 = vpop.f32.mrb[109].mxu0  ;;  %v5892_v58 = vadd.f32 %v5891_v31, %v14143_v54 }
 0x97a   : > { %v9505_v51 = vadd.f32 -0.001, %v4983_v6  ;;  %v4890_v12 = vmax.f32 %v4820_v8, 1.1920929e-07  ;;  %v5895_v5 = vpop.f32.mrb[110].mxu0  ;;  %v5894_v28 = vadd.f32 %v5893_v50, %v14146_v61 }
 0x97b   : > { %v11731_v19 = vpop.eup %11730  ;;  %v9504_v60 = vadd.f32 -0.001, %v4982_v23  ;;  %11742 = vrsqrt.f32 %v4891_v7  ;;  %v5896_v40 = vadd.f32 %v5895_v5, %v14143_v54  ;;  %v5897_v3 = vpop.f32.mrb[111].mxu0 }
 0x97c   : > { %v11733_v27 = vpop.eup %11732  ;;  %5047 = vst.msk [vmem:[%s14237_s28 + $0x48] sm:$0xff] %vm986_vm1, %v9505_v51  ;;  %11744 = vrsqrt.f32 %v4890_v12  ;;  %v5898_v29 = vadd.f32 %v5897_v3, %v14146_v61  ;;  %6330 = vmatprep.mubr.bf16.mxu1 %v11731_v19 }
 0x97d   : > { %v11735_v34 = vpop.eup %11734  ;;  %5046 = vst.msk [vmem:[%s14237_s28 + $0x40] sm:$0xff] %vm986_vm1, %v9504_v60  ;;  %v5962_v2 = vpack.c.bf16 %v5896_v40, %v5892_v58  ;;  %6331 = vmatmul.mubr.bf16.gmra.mrb[100].mxu1 %v11733_v27 }
 0x97e   : > { %v11737_v35 = vpop.eup %11736  ;;  %v4953_v42 = vmul.f32 %v11735_v34, %v14039_v57  ;;  %v5963_v26 = vpack.c.bf16 %v5898_v29, %v5894_v28  ;;  %v10960_v34 = vld [vmem:[%s12658_s19 + $0x80] sm:$0xff]  }
 0x97f   : > { %v4952_v43 = vmul.f32 %v11737_v35, %v14041_v37  ;;  %1003 = vst.msk [vmem:[#allocation2 + $0x100] sm:$0xff] %vm986_vm1, %v10960_v34 }
 0x980   : > { %v4985_v47 = vmul.f32 1.002, %v4953_v42  ;;  %11746 = vtanh.bf16 %v5963_v26  ;;  %v5901_v33 = vpop.f32.mrb[112].mxu0  ;;  %v4829_v16 = vpop.xlane.xlu1 %4828 }
 0x981   : > { %v4984_v9 = vmul.f32 1.002, %v4952_v43  ;;  %11748 = vtanh.bf16 %v5962_v2  ;;  %v4893_v44 = vmax.f32 %v4829_v16, 1.1920929e-07  ;;  %v4826_v45 = vpop.xlane.xlu0 %4825  ;;  %v5903_v30 = vpop.f32.mrb[113].mxu0  ;;  %v5902_v57 = vadd.f32 %v5901_v33, %v14143_v54 }
 0x982   : > { %v9507_v46 = vadd.f32 -0.001, %v4985_v47  ;;  %v4892_v52 = vmax.f32 %v4826_v45, 1.1920929e-07  ;;  %v5905_v59 = vpop.f32.mrb[114].mxu0  ;;  %v5904_v6 = vadd.f32 %v5903_v30, %v14146_v61 }
 0x983   : > { %v11739_v24 = vpop.eup %11738  ;;  %v9506_v4 = vadd.f32 -0.001, %v4984_v9  ;;  %11750 = vrsqrt.f32 %v4893_v44  ;;  %v5906_v37 = vadd.f32 %v5905_v59, %v14143_v54  ;;  %v5907_v0 = vpop.f32.mrb[115].mxu0 }
 0x984   : > { %v11741_v32 = vpop.eup %11740  ;;  %5049 = vst.msk [vmem:[%s14237_s28 + $0x58] sm:$0xff] %vm986_vm1, %v9507_v46  ;;  %11752 = vrsqrt.f32 %v4892_v52  ;;  %v5908_v31 = vadd.f32 %v5907_v0, %v14146_v61  ;;  %6340 = vmatprep.mubr.bf16.mxu1 %v11739_v24 }
 0x985   : > { %v11743_v48 = vpop.eup %11742  ;;  %5048 = vst.msk [vmem:[%s14237_s28 + $0x50] sm:$0xff] %vm986_vm1, %v9506_v4  ;;  %v5964_v23 = vpack.c.bf16 %v5906_v37, %v5902_v57  ;;  %6341 = vmatmul.mubr.bf16.gmra.mrb[104].mxu1 %v11741_v32 }
 0x986   : > { %v11745_v7 = vpop.eup %11744  ;;  %v4955_v8 = vmul.f32 %v11743_v48, %v14051_v15  ;;  %v5965_v50 = vpack.c.bf16 %v5908_v31, %v5904_v6 }
 0x987   : > { %v4954_v51 = vmul.f32 %v11745_v7, %v14053_v17 }
 0x988   : > { %v4987_v12 = vmul.f32 1.002, %v4955_v8  ;;  %11754 = vtanh.bf16 %v5965_v50  ;;  %v4835_v19 = vpop.xlane.xlu1 %4834  ;;  %v4832_v40 = vpop.xlane.xlu0 %4831 }
 0x989   : > { %v5911_v5 = vpop.f32.mrb[116].mxu0  ;;  %v4986_v60 = vmul.f32 1.002, %v4954_v51  ;;  %11756 = vtanh.bf16 %v5964_v23  ;;  %v4895_v58 = vmax.f32 %v4835_v19, 1.1920929e-07  ;;  %v4894_v28 = vmax.f32 %v4832_v40, 1.1920929e-07 }
 0x98a   : > { %v5913_v3 = vpop.f32.mrb[117].mxu0  ;;  %v9509_v27 = vadd.f32 -0.001, %v4987_v12  ;;  %v5912_v35 = vadd.f32 %v5911_v5, %v14143_v54 }
 0x98b   : > { %v5915_v29 = vpop.f32.mrb[118].mxu0  ;;  %v11747_v2 = vpop.eup %11746  ;;  %v9508_v15 = vadd.f32 -0.001, %v4986_v60  ;;  %11758 = vrsqrt.f32 %v4895_v58  ;;  %v5914_v43 = vadd.f32 %v5913_v3, %v14146_v61 }
 0x98c   : > { %v5916_v17 = vadd.f32 %v5915_v29, %v14143_v54  ;;  %v5917_v42 = vpop.f32.mrb[119].mxu0  ;;  %v11749_v26 = vpop.eup %11748  ;;  %5051 = vst.msk [vmem:[%s14237_s28 + $0x68] sm:$0xff] %vm986_vm1, %v9509_v27  ;;  %11760 = vrsqrt.f32 %v4894_v28  ;;  %6350 = vmatprep.mubr.bf16.mxu1 %v11747_v2 }
 0x98d   : > { %v5918_v47 = vadd.f32 %v5917_v42, %v14146_v61  ;;  %v11751_v33 = vpop.eup %11750  ;;  %5050 = vst.msk [vmem:[%s14237_s28 + $0x60] sm:$0xff] %vm986_vm1, %v9508_v15  ;;  %6351 = vmatmul.mubr.bf16.gmra.mrb[108].mxu1 %v11749_v26 }
 0x98e   : > { %v5966_v16 = vpack.c.bf16 %v5916_v17, %v5912_v35  ;;  %v11753_v9 = vpop.eup %11752  ;;  %v4957_v44 = vmul.f32 %v11751_v33, %v14063_v10  ;;  %v10962_v33 = vld [vmem:[%s15237_s7 + $0x38] sm:$0xff]  }
 0x98f   : > { %v5967_v45 = vpack.c.bf16 %v5918_v47, %v5914_v43  ;;  %v4956_v30 = vmul.f32 %v11753_v9, %v14065_v11  ;;  %v10961_v47 = vld [vmem:[%s15237_s7 + $0x78] sm:$0xff]  }
 0x990   : > { %v4989_v46 = vmul.f32 1.002, %v4957_v44  ;;  %v4841_v59 = vpop.xlane.xlu1 %4840  ;;  %v4838_v57 = vpop.xlane.xlu0 %4837  ;;  %10142 = vmatprep.subr.bf16.mxu0 %v10961_v47 }
 0x991   : > { %11762 = vtanh.bf16 %v5967_v45  ;;  %v5921_v52 = vpop.f32.mrb[120].mxu0  ;;  %v4988_v24 = vmul.f32 1.002, %v4956_v30  ;;  %v4897_v4 = vmax.f32 %v4841_v59, 1.1920929e-07  ;;  %v4896_v32 = vmax.f32 %v4838_v57, 1.1920929e-07  ;;  %10143 = vmatpush3.bf16.msra.mxu0 %v10962_v33 }
 0x992   : > { %11764 = vtanh.bf16 %v5966_v16  ;;  %v5923_v37 = vpop.f32.mrb[121].mxu0  ;;  %v9511_v0 = vadd.f32 -0.001, %v4989_v46  ;;  %v5922_v10 = vadd.f32 %v5921_v52, %v14143_v54  ;;  %v10963_v16 = vld [vmem:[%s12658_s19 + $0x88] sm:$0xff]  }
 0x993   : > { %v5925_v6 = vpop.f32.mrb[122].mxu0  ;;  %v11755_v31 = vpop.eup %11754  ;;  %v9510_v48 = vadd.f32 -0.001, %v4988_v24  ;;  %11766 = vrsqrt.f32 %v4897_v4  ;;  %v5924_v8 = vadd.f32 %v5923_v37, %v14146_v61  ;;  %1004 = vst.msk [vmem:[#allocation2 + $0x110] sm:$0xff] %vm986_vm1, %v10963_v16 }
 0x994   : > { %v5926_v11 = vadd.f32 %v5925_v6, %v14143_v54  ;;  %v5927_v23 = vpop.f32.mrb[123].mxu0  ;;  %v11757_v7 = vpop.eup %11756  ;;  %5053 = vst.msk [vmem:[%s14237_s28 + $0x78] sm:$0xff] %vm986_vm1, %v9511_v0  ;;  %11768 = vrsqrt.f32 %v4896_v32  ;;  %6360 = vmatprep.mubr.bf16.mxu1 %v11755_v31 }
 0x995   : > { %v5928_v50 = vadd.f32 %v5927_v23, %v14146_v61  ;;  %v11759_v51 = vpop.eup %11758  ;;  %5052 = vst.msk [vmem:[%s14237_s28 + $0x70] sm:$0xff] %vm986_vm1, %v9510_v48  ;;  %6361 = vmatmul.mubr.bf16.gmra.mrb[112].mxu1 %v11757_v7 }
 0x996   : > { %v5968_v12 = vpack.c.bf16 %v5926_v11, %v5922_v10  ;;  %v11761_v5 = vpop.eup %11760  ;;  %v4959_v19 = vmul.f32 %v11759_v51, %v14075_v36 }
 0x997   : > { %v5969_v60 = vpack.c.bf16 %v5928_v50, %v5924_v8  ;;  %v4958_v58 = vmul.f32 %v11761_v5, %v14077_v41 }
 0x998   : > { %v4991_v40 = vmul.f32 1.002, %v4959_v19  ;;  %v4847_v27 = vpop.xlane.xlu1 %4846  ;;  %v4844_v34 = vpop.xlane.xlu0 %4843 }
 0x999   : > { %11770 = vtanh.bf16 %v5969_v60  ;;  %v5931_v3 = vpop.f32.mrb[124].mxu0  ;;  %v4990_v28 = vmul.f32 1.002, %v4958_v58  ;;  %v4899_v29 = vmax.f32 %v4847_v27, 1.1920929e-07  ;;  %v4898_v35 = vmax.f32 %v4844_v34, 1.1920929e-07 }
 0x99a   : > { %11772 = vtanh.bf16 %v5968_v12  ;;  %v5933_v2 = vpop.f32.mrb[125].mxu0  ;;  %v9513_v15 = vadd.f32 -0.001, %v4991_v40  ;;  %v5932_v26 = vadd.f32 %v5931_v3, %v14143_v54  ;;  %v10965_v3 = vld [vmem:[%s12658_s19 + $0x98] sm:$0xff]  }
 0x99b   : > { %v5935_v17 = vpop.f32.mrb[126].mxu0  ;;  %v9512_v36 = vadd.f32 -0.001, %v4990_v28  ;;  %11774 = vrsqrt.f32 %v4899_v29  ;;  %v5934_v44 = vadd.f32 %v5933_v2, %v14146_v61  ;;  %1006 = vst.msk [vmem:[#allocation2 + $0x130] sm:$0xff] %vm986_vm1, %v10965_v3  ;;  %v14367_v29 = vld [vmem:[#allocation2 + $0x8] sm:$0xff] }
 0x99c   : > { %v11763_v42 = vpop.eup %11762  ;;  %v5936_v41 = vadd.f32 %v5935_v17, %v14143_v54  ;;  %v5937_v43 = vpop.f32.mrb[127].mxu0  ;;  %5055 = vst.msk [vmem:[%s14237_s28 + $0x88] sm:$0xff] %vm986_vm1, %v9513_v15  ;;  %11776 = vrsqrt.f32 %v4898_v35  ;;  %v10971_v3 = vld [vmem:[%s12658_s19 + $0xc8] sm:$0xff]  }
 0x99d   : > { %v11765_v9 = vpop.eup %11764  ;;  %v5938_v45 = vadd.f32 %v5937_v43, %v14146_v61  ;;  %6370 = vmatprep.mubr.bf16.mxu1 %v11763_v42  ;;  %5054 = vst.msk [vmem:[%s14237_s28 + $0x80] sm:$0xff] %vm986_vm1, %v9512_v36  ;;  %v10966_v43 = vld [vmem:[%s12658_s19 + $0xa0] sm:$0xff]   ;;  %1012 = vst.msk [vmem:[#allocation2 + $0x190] sm:$0xff] %vm986_vm1, %v10971_v3 }
 0x99e   : > { %v11767_v54 = vpop.eup %11766  ;;  %v5970_v30 = vpack.c.bf16 %v5936_v41, %v5932_v26  ;;  %6371 = vmatmul.mubr.bf16.gmra.mrb[116].mxu1 %v11765_v9  ;;  %1007 = vst.msk [vmem:[#allocation2 + $0x140] sm:$0xff] %vm986_vm1, %v10966_v43 }
 0x99f   : > { %v11769_v46 = vpop.eup %11768  ;;  %v4961_v52 = vmul.f32 %v11767_v54, %v14087_v14  ;;  %v5971_v59 = vpack.c.bf16 %v5938_v45, %v5934_v44  ;;  %v10964_v14 = vld [vmem:[%s12658_s19 + $0x90] sm:$0xff]  }
 0x9a0   : > { %v4960_v24 = vmul.f32 %v11769_v46, %v14089_v18  ;;  %v4853_v61 = vpop.xlane.xlu1 %4852  ;;  %v4850_v57 = vpop.xlane.xlu0 %4849  ;;  %1005 = vst.msk [vmem:[#allocation2 + $0x120] sm:$0xff] %vm986_vm1, %v10964_v14  ;;  %v10968_v14 = vld [vmem:[%s12658_s19 + $0xb0] sm:$0xff]  }
 0x9a1   : > { %v4993_v4 = vmul.f32 1.002, %v4961_v52  ;;  %11778 = vtanh.bf16 %v5971_v59  ;;  %v4901_v0 = vmax.f32 %v4853_v61, 1.1920929e-07  ;;  %v4900_v32 = vmax.f32 %v4850_v57, 1.1920929e-07  ;;  %v10967_v59 = vld [vmem:[%s12658_s19 + $0xa8] sm:$0xff]   ;;  %1009 = vst.msk [vmem:[#allocation2 + $0x160] sm:$0xff] %vm986_vm1, %v10968_v14 }
 0x9a2   : > { %v4992_v37 = vmul.f32 1.002, %v4960_v24  ;;  %11780 = vtanh.bf16 %v5970_v30  ;;  %1008 = vst.msk [vmem:[#allocation2 + $0x150] sm:$0xff] %vm986_vm1, %v10967_v59 }
 0x9a3   : > { %v9515_v6 = vadd.f32 -0.001, %v4993_v4  ;;  %11782 = vrsqrt.f32 %v4901_v0 }
 0x9a4   : > { %v11771_v31 = vpop.eup %11770  ;;  %v9514_v48 = vadd.f32 -0.001, %v4992_v37  ;;  %11784 = vrsqrt.f32 %v4900_v32 }
 0x9a5   : > { %v11773_v10 = vpop.eup %11772  ;;  %5057 = vst.msk [vmem:[%s14237_s28 + $0x98] sm:$0xff] %vm986_vm1, %v9515_v6  ;;  %6380 = vmatprep.mubr.bf16.mxu1 %v11771_v31 }
 0x9a6   : > { %v11775_v18 = vpop.eup %11774  ;;  %5056 = vst.msk [vmem:[%s14237_s28 + $0x90] sm:$0xff] %vm986_vm1, %v9514_v48  ;;  %6381 = vmatmul.mubr.bf16.gmra.mrb[120].mxu1 %v11773_v10 }
 0x9a7   : > { %v11777_v11 = vpop.eup %11776  ;;  %v4963_v23 = vmul.f32 %v11775_v18, %v14099_v38 }
 0x9a8   : > { %v4962_v7 = vmul.f32 %v11777_v11, %v14101_v39  ;;  %v4859_v50 = vpop.xlane.xlu1 %4858  ;;  %v4856_v51 = vpop.xlane.xlu0 %4855 }
 0x9a9   : > { %v4995_v8 = vmul.f32 1.002, %v4963_v23  ;;  %v4903_v5 = vmax.f32 %v4859_v50, 1.1920929e-07  ;;  %v4902_v19 = vmax.f32 %v4856_v51, 1.1920929e-07  ;;  %v10969_v50 = vld [vmem:[%s12658_s19 + $0xb8] sm:$0xff]  }
 0x9aa   : > { %v4994_v12 = vmul.f32 1.002, %v4962_v7  ;;  %1010 = vst.msk [vmem:[#allocation2 + $0x170] sm:$0xff] %vm986_vm1, %v10969_v50 }
 0x9ab   : > { %v9517_v60 = vadd.f32 -0.001, %v4995_v8  ;;  %11786 = vrsqrt.f32 %v4903_v5 }
 0x9ac   : > { %v11779_v58 = vpop.eup %11778  ;;  %v9516_v40 = vadd.f32 -0.001, %v4994_v12  ;;  %11788 = vrsqrt.f32 %v4902_v19 }
 0x9ad   : > { %v11781_v27 = vpop.eup %11780  ;;  %5059 = vst.msk [vmem:[%s14237_s28 + $0xa8] sm:$0xff] %vm986_vm1, %v9517_v60  ;;  %6390 = vmatprep.mubr.bf16.mxu1 %v11779_v58 }
 0x9ae   : > { %v11783_v38 = vpop.eup %11782  ;;  %5058 = vst.msk [vmem:[%s14237_s28 + $0xa0] sm:$0xff] %vm986_vm1, %v9516_v40  ;;  %6391 = vmatmul.mubr.bf16.gmra.mrb[124].mxu1 %v11781_v27  ;;  %v10970_v40 = vld [vmem:[%s12658_s19 + $0xc0] sm:$0xff]  }
 0x9af   : > { %v11785_v39 = vpop.eup %11784  ;;  %v4965_v28 = vmul.f32 %v11783_v38, %v14111_v62  ;;  %6965 = vmatprep.mubr.bf16.mxu1 %v14367_v29  ;;  %1011 = vst.msk [vmem:[#allocation2 + $0x180] sm:$0xff] %vm986_vm1, %v10970_v40  ;;  %v10974_v27 = vld [vmem:[%s12658_s19 + $0xe0] sm:$0xff]   ;;  %v10975_v38 = vld [vmem:[%s12658_s19 + $0xe8] sm:$0xff]  }
 0x9b0   : > { %v4964_v34 = vmul.f32 %v11785_v39, %v14113_v63  ;;  %v4865_v15 = vpop.xlane.xlu1 %4864  ;;  %v4862_v35 = vpop.xlane.xlu0 %4861  ;;  %1015 = vst.msk [vmem:[#allocation2 + $0x1c0] sm:$0xff] %vm986_vm1, %v10974_v27  ;;  %1016 = vst.msk [vmem:[#allocation2 + $0x1d0] sm:$0xff] %vm986_vm1, %v10975_v38  ;;  %v10976_v39 = vld [vmem:[%s12658_s19 + $0xf0] sm:$0xff]  }
 0x9b1   : > { %v4997_v2 = vmul.f32 1.002, %v4965_v28  ;;  %v4905_v42 = vmax.f32 %v4865_v15, 1.1920929e-07  ;;  %v4904_v36 = vmax.f32 %v4862_v35, 1.1920929e-07  ;;  %v6036_v28 = vld [vmem:[%s15236_s6] sm:$0x3] }
 0x9b2   : > { %v4996_v17 = vmul.f32 1.002, %v4964_v34  ;;  %1017 = vst.msk [vmem:[#allocation2 + $0x1e0] sm:$0xff] %vm986_vm1, %v10976_v39  ;;  %v14425_v34 = vrot.slane %v6036_v28, %v12808_v55  ;;  %v14428_v15 = vrot.slane %v6036_v28, %v12810_v56  ;;  %v10995_v27 = vld [vmem:[#allocation3 + $0x54] ss:$8 sps:$4 sm:$0xff]  }
 0x9b3   : > { %v9519_v26 = vadd.f32 -0.001, %v4997_v2  ;;  %11790 = vrsqrt.f32 %v4905_v42 }
 0x9b4   : > { %v9518_v41 = vadd.f32 -0.001, %v4996_v17  ;;  %11792 = vrsqrt.f32 %v4904_v36 }
 0x9b5   : > { %5061 = vst.msk [vmem:[%s14237_s28 + $0xb8] sm:$0xff] %vm986_vm1, %v9519_v26  ;;  %v11787_v62 = vpop.eup %11786 }
 0x9b6   : > { %5060 = vst.msk [vmem:[%s14237_s28 + $0xb0] sm:$0xff] %vm986_vm1, %v9518_v41  ;;  %v11789_v63 = vpop.eup %11788  ;;  %v4967_v47 = vmul.f32 %v11787_v62, %v14123_v1  ;;  %v10977_v41 = vld [vmem:[%s12658_s19 + $0xf8] sm:$0xff]  }
 0x9b7   : > { %v4966_v33 = vmul.f32 %v11789_v63, %v14125_v22  ;;  %1018 = vst.msk [vmem:[#allocation2 + $0x1f0] sm:$0xff] %vm986_vm1, %v10977_v41 }
 0x9b8   : > { %v4999_v16 = vmul.f32 1.002, %v4967_v47  ;;  %v4871_v9 = vpop.xlane.xlu1 %4870  ;;  %v4868_v44 = vpop.xlane.xlu0 %4867 }
 0x9b9   : > { %v4998_v45 = vmul.f32 1.002, %v4966_v33  ;;  %v4907_v54 = vmax.f32 %v4871_v9, 1.1920929e-07  ;;  %v4906_v30 = vmax.f32 %v4868_v44, 1.1920929e-07 }
 0x9ba   : > { %v9521_v46 = vadd.f32 -0.001, %v4999_v16 }
 0x9bb   : > { %v9520_v52 = vadd.f32 -0.001, %v4998_v45  ;;  %11794 = vrsqrt.f32 %v4907_v54 }
 0x9bc   : > { %5063 = vst.msk [vmem:[%s14237_s28 + $0xc8] sm:$0xff] %vm986_vm1, %v9521_v46  ;;  %11796 = vrsqrt.f32 %v4906_v30  ;;  %v10978_v30 = vld [vmem:[#allocation3] ss:$8 sps:$4 sm:$0xff]   ;;  %v10980_v46 = vld [vmem:[#allocation3 + $0x4] ss:$8 sps:$4 sm:$0xff]  }
 0x9bd   : > { %v11791_v24 = vpop.eup %11790  ;;  %5062 = vst.msk [vmem:[%s14237_s28 + $0xc0] sm:$0xff] %vm986_vm1, %v9520_v52  ;;  %6933 = vmatprep.subr.bf16.mxu1 %v10980_v46 }
 0x9be   : > { %v11793_v1 = vpop.eup %11792  ;;  %v4969_v22 = vmul.f32 %v11791_v24, %v14138_v53  ;;  %6934 = vmatpush1.bf16.msra.mxu1 %v10978_v30 }
 0x9bf   : > { %v4968_v4 = vmul.f32 %v11793_v1, %v14140_v13 }
 0x9c0   : > { %v5001_v61 = vmul.f32 1.002, %v4969_v22  ;;  %v4877_v57 = vpop.xlane.xlu1 %4876  ;;  %v4874_v37 = vpop.xlane.xlu0 %4873  ;;  %v10981_v22 = vld [vmem:[#allocation3 + $0x10] ss:$8 sps:$4 sm:$0xff]  }
 0x9c1   : > { %v5000_v0 = vmul.f32 1.002, %v4968_v4  ;;  %v4909_v32 = vmax.f32 %v4877_v57, 1.1920929e-07  ;;  %v4908_v6 = vmax.f32 %v4874_v37, 1.1920929e-07  ;;  %v10983_v4 = vld [vmem:[#allocation3 + $0x14] ss:$8 sps:$4 sm:$0xff]  }
 0x9c2   : > { %v9523_v31 = vadd.f32 -0.001, %v5001_v61  ;;  %v10986_v57 = vld [vmem:[#allocation3 + $0x24] ss:$8 sps:$4 sm:$0xff]   ;;  %6935 = vmatprep.subr.bf16.mxu1 %v10983_v4  ;;  %v5108_v4 = vld [vmem:[#allocation2 + $0x130] sm:$0xff] }
 0x9c3   : > { %v9522_v48 = vadd.f32 -0.001, %v5000_v0  ;;  %11798 = vrsqrt.f32 %v4909_v32  ;;  %v5102_v32 = vld [vmem:[#allocation2 + $0x100] sm:$0xff]  ;;  %6936 = vmatpush1.bf16.msra.mxu1 %v10981_v22 }
 0x9c4   : > { %5065 = vst.msk [vmem:[%s14237_s28 + $0xd8] sm:$0xff] %vm986_vm1, %v9523_v31  ;;  %11800 = vrsqrt.f32 %v4908_v6  ;;  %v10984_v31 = vld [vmem:[#allocation3 + $0x20] ss:$8 sps:$4 sm:$0xff]   ;;  %6937 = vmatprep.subr.bf16.mxu1 %v10986_v57 }
 0x9c5   : > { %v11795_v10 = vpop.eup %11794  ;;  %5064 = vst.msk [vmem:[%s14237_s28 + $0xd0] sm:$0xff] %vm986_vm1, %v9522_v48 }
 0x9c6   : > { %v11797_v53 = vpop.eup %11796  ;;  %v4971_v13 = vmul.f32 %v11795_v10, %v14158_v21 }
 0x9c7   : > { %v4970_v18 = vmul.f32 %v11797_v53, %v14160_v25  ;;  %6938 = vmatpush1.bf16.msra.mxu1 %v10984_v31 }
 0x9c8   : > { %v5003_v11 = vmul.f32 1.002, %v4971_v13  ;;  %v10989_v13 = vld [vmem:[#allocation3 + $0x34] ss:$8 sps:$4 sm:$0xff]  }
 0x9c9   : > { %v5002_v23 = vmul.f32 1.002, %v4970_v18  ;;  %6939 = vmatprep.subr.bf16.mxu1 %v10989_v13 }
 0x9ca   : > { %v9525_v7 = vadd.f32 -0.001, %v5003_v11 }
 0x9cb   : > { %v9524_v8 = vadd.f32 -0.001, %v5002_v23 }
 0x9cc   : > { %5067 = vst.msk [vmem:[%s14237_s28 + $0xe8] sm:$0xff] %vm986_vm1, %v9525_v7 }
 0x9cd   : > { %v11799_v51 = vpop.eup %11798  ;;  %5066 = vst.msk [vmem:[%s14237_s28 + $0xe0] sm:$0xff] %vm986_vm1, %v9524_v8 }
 0x9ce   : > { %v11801_v21 = vpop.eup %11800  ;;  %v4973_v25 = vmul.f32 %v11799_v51, %v14178_v20  ;;  %v10972_v20 = vld [vmem:[%s12658_s19 + $0xd0] sm:$0xff]  }
 0x9cf   : > { %v4972_v12 = vmul.f32 %v11801_v21, %v14180_v49  ;;  %1013 = vst.msk [vmem:[#allocation2 + $0x1a0] sm:$0xff] %vm986_vm1, %v10972_v20  ;;  %v10973_v49 = vld [vmem:[%s12658_s19 + $0xd8] sm:$0xff]   ;;  %v10992_v21 = vld [vmem:[#allocation3 + $0x44] ss:$8 sps:$4 sm:$0xff]  }
 0x9d0   : > { %v5005_v5 = vmul.f32 1.002, %v4973_v25  ;;  %1014 = vst.msk [vmem:[#allocation2 + $0x1b0] sm:$0xff] %vm986_vm1, %v10973_v49  ;;  %v10987_v51 = vld [vmem:[#allocation3 + $0x30] ss:$8 sps:$4 sm:$0xff]  }
 0x9d1   : > { %v5004_v19 = vmul.f32 1.002, %v4972_v12  ;;  %6940 = vmatpush1.bf16.msra.mxu1 %v10987_v51 }
 0x9d2   : > { %v9527_v60 = vadd.f32 -0.001, %v5005_v5  ;;  %6941 = vmatprep.subr.bf16.mxu1 %v10992_v21 }
 0x9d3   : > { %v9526_v58 = vadd.f32 -0.001, %v5004_v19  ;;  %v5104_v19 = vld [vmem:[#allocation2 + $0x110] sm:$0xff] }
 0x9d4   : > { %5069 = vst.msk [vmem:[%s14237_s28 + $0xf8] sm:$0xff] %vm986_vm1, %v9527_v60 }
 0x9d5   : > { %5068 = vst.msk [vmem:[%s14237_s28 + $0xf0] sm:$0xff] %vm986_vm1, %v9526_v58  ;;  %v10990_v58 = vld [vmem:[#allocation3 + $0x40] ss:$8 sps:$4 sm:$0xff]  }
 0x9d6   : > { %6942 = vmatpush1.bf16.msra.mxu1 %v10990_v58 }
 0x9d7   : > { %6943 = vmatprep.subr.bf16.mxu1 %v10995_v27 }
 0xa08   : > { %v6242_v2 = vpop.f32.mrb[64].mxu1 }
 0xa09   : > { %v6244_v35 = vpop.f32.mrb[65].mxu1  ;;  %v6243_v42 = vadd.f32 %v6242_v2, %v14425_v34 }
 0xa0a   : > { %v6246_v17 = vpop.f32.mrb[66].mxu1  ;;  %v6245_v43 = vadd.f32 %v6244_v35, %v14428_v15 }
 0xa0b   : > { %v6247_v36 = vadd.f32 %v6246_v17, %v14425_v34  ;;  %v6248_v26 = vpop.f32.mrb[67].mxu1 }
 0xa0c   : > { %v6249_v62 = vadd.f32 %v6248_v26, %v14428_v15 }
 0xa0d   : > { %v6401_v63 = vpack.c.bf16 %v6247_v36, %v6243_v42  ;;  %v10993_v42 = vld [vmem:[#allocation3 + $0x50] ss:$8 sps:$4 sm:$0xff]   ;;  %v10998_v36 = vld [vmem:[#allocation3 + $0x64] ss:$8 sps:$4 sm:$0xff]  }
 0xa0e   : > { %v6402_v47 = vpack.c.bf16 %v6249_v62, %v6245_v43  ;;  %v5106_v62 = vld [vmem:[#allocation2 + $0x120] sm:$0xff]  ;;  %6944 = vmatpush1.bf16.msra.mxu1 %v10993_v42 }
 0xa0f   : > { %11802 = vtanh.bf16 %v6401_v63  ;;  %6945 = vmatprep.subr.bf16.mxu1 %v10998_v36 }
 0xa10   : > { %11804 = vtanh.bf16 %v6402_v47  ;;  %v6252_v33 = vpop.f32.mrb[68].mxu1  ;;  %v10996_v47 = vld [vmem:[#allocation3 + $0x60] ss:$8 sps:$4 sm:$0xff]  }
 0xa11   : > { %v6254_v16 = vpop.f32.mrb[69].mxu1  ;;  %v6253_v44 = vadd.f32 %v6252_v33, %v14425_v34 }
 0xa12   : > { %v6256_v9 = vpop.f32.mrb[70].mxu1  ;;  %v6255_v52 = vadd.f32 %v6254_v16, %v14428_v15  ;;  %6946 = vmatpush1.bf16.msra.mxu1 %v10996_v47  ;;  %v5114_v47 = vld [vmem:[#allocation2 + $0x160] sm:$0xff] }
 0xa13   : > { %v6257_v45 = vadd.f32 %v6256_v9, %v14425_v34  ;;  %v6258_v54 = vpop.f32.mrb[71].mxu1 }
 0xa14   : > { %v6259_v59 = vadd.f32 %v6258_v54, %v14428_v15 }
 0xa15   : > { %v6403_v24 = vpack.c.bf16 %v6257_v45, %v6253_v44 }
 0xa16   : > { %v6404_v1 = vpack.c.bf16 %v6259_v59, %v6255_v52 }
 0xa17   : > { %11806 = vtanh.bf16 %v6403_v24 }
 0xa18   : > { %11808 = vtanh.bf16 %v6404_v1  ;;  %v6262_v61 = vpop.f32.mrb[72].mxu1 }
 0xa19   : > { %v6264_v37 = vpop.f32.mrb[73].mxu1  ;;  %v6263_v14 = vadd.f32 %v6262_v61, %v14425_v34 }
 0xa1a   : > { %v11803_v0 = vpop.eup %11802  ;;  %v6266_v6 = vpop.f32.mrb[74].mxu1  ;;  %v6265_v18 = vadd.f32 %v6264_v37, %v14428_v15 }
 0xa1b   : > { %v11805_v48 = vpop.eup %11804  ;;  %v6267_v10 = vadd.f32 %v6266_v6, %v14425_v34  ;;  %v6268_v53 = vpop.f32.mrb[75].mxu1  ;;  %v6465_v7 = vadd.bf16 %v11803_v0, %v5102_v32 }
 0xa1c   : > { %v6269_v11 = vadd.f32 %v6268_v53, %v14428_v15  ;;  %v6466_v23 = vadd.bf16 %v14367_v29, %v11805_v48 }
 0xa1d   : > { %v6405_v8 = vpack.c.bf16 %v6267_v10, %v6263_v14 }
 0xa1e   : > { %v6406_v50 = vpack.c.bf16 %v6269_v11, %v6265_v18  ;;  %6664 = vmatprep.mubr.bf16.mxu0 %v6466_v23  ;;  %v5110_v23 = vld [vmem:[#allocation2 + $0x140] sm:$0xff] }
 0xa1f   : > { %11810 = vtanh.bf16 %v6405_v8  ;;  %6665 = vmatmul.mubr.bf16.vlgmr.msra.gmra.mrb[128].mxu0 %v6465_v7 }
 0xa20   : > { %11812 = vtanh.bf16 %v6406_v50  ;;  %v6272_v25 = vpop.f32.mrb[76].mxu1 }
 0xa21   : > { %v6274_v12 = vpop.f32.mrb[77].mxu1  ;;  %v6273_v3 = vadd.f32 %v6272_v25, %v14425_v34 }
 0xa22   : > { %v11807_v5 = vpop.eup %11806  ;;  %v6276_v60 = vpop.f32.mrb[78].mxu1  ;;  %v6275_v38 = vadd.f32 %v6274_v12, %v14428_v15 }
 0xa23   : > { %v11809_v40 = vpop.eup %11808  ;;  %v6277_v20 = vadd.f32 %v6276_v60, %v14425_v34  ;;  %v6278_v49 = vpop.f32.mrb[79].mxu1  ;;  %v6467_v2 = vadd.bf16 %v11807_v5, %v5104_v19 }
 0xa24   : > { %v6279_v39 = vadd.f32 %v6278_v49, %v14428_v15  ;;  %v6468_v28 = vadd.bf16 %v14367_v29, %v11809_v40  ;;  %v5112_v49 = vld [vmem:[#allocation2 + $0x150] sm:$0xff] }
 0xa25   : > { %v6407_v35 = vpack.c.bf16 %v6277_v20, %v6273_v3 }
 0xa26   : > { %v6408_v17 = vpack.c.bf16 %v6279_v39, %v6275_v38  ;;  %6672 = vmatprep.mubr.bf16.mxu0 %v6468_v28 }
 0xa27   : > { %11814 = vtanh.bf16 %v6407_v35  ;;  %6673 = vmatmul.mubr.bf16.gmra.mrb[132].mxu0 %v6467_v2 }
 0xa28   : > { %11816 = vtanh.bf16 %v6408_v17  ;;  %v6282_v26 = vpop.f32.mrb[80].mxu1 }
 0xa29   : > { %v6284_v41 = vpop.f32.mrb[81].mxu1  ;;  %v6283_v16 = vadd.f32 %v6282_v26, %v14425_v34 }
 0xa2a   : > { %v11811_v43 = vpop.eup %11810  ;;  %v6286_v63 = vpop.f32.mrb[82].mxu1  ;;  %v6285_v45 = vadd.f32 %v6284_v41, %v14428_v15 }
 0xa2b   : > { %v11813_v33 = vpop.eup %11812  ;;  %v6287_v9 = vadd.f32 %v6286_v63, %v14425_v34  ;;  %v6288_v44 = vpop.f32.mrb[83].mxu1  ;;  %v6469_v46 = vadd.bf16 %v11811_v43, %v5106_v62 }
 0xa2c   : > { %v6289_v54 = vadd.f32 %v6288_v44, %v14428_v15  ;;  %v6470_v30 = vadd.bf16 %v14367_v29, %v11813_v33 }
 0xa2d   : > { %v6409_v52 = vpack.c.bf16 %v6287_v9, %v6283_v16 }
 0xa2e   : > { %v6410_v59 = vpack.c.bf16 %v6289_v54, %v6285_v45  ;;  %6680 = vmatprep.mubr.bf16.mxu0 %v6470_v30 }
 0xa2f   : > { %11818 = vtanh.bf16 %v6409_v52  ;;  %6681 = vmatmul.mubr.bf16.gmra.mrb[136].mxu0 %v6469_v46 }
 0xa30   : > { %11820 = vtanh.bf16 %v6410_v59  ;;  %v6292_v24 = vpop.f32.mrb[84].mxu1 }
 0xa31   : > { %v6294_v1 = vpop.f32.mrb[85].mxu1  ;;  %v6293_v37 = vadd.f32 %v6292_v24, %v14425_v34 }
 0xa32   : > { %v11815_v22 = vpop.eup %11814  ;;  %v6296_v61 = vpop.f32.mrb[86].mxu1  ;;  %v6295_v6 = vadd.f32 %v6294_v1, %v14428_v15 }
 0xa33   : > { %v11817_v57 = vpop.eup %11816  ;;  %v6297_v0 = vadd.f32 %v6296_v61, %v14425_v34  ;;  %v6298_v32 = vpop.f32.mrb[87].mxu1  ;;  %v6471_v14 = vadd.bf16 %v11815_v22, %v5108_v4  ;;  %v5116_v61 = vld [vmem:[#allocation2 + $0x170] sm:$0xff] }
 0xa34   : > { %v6299_v31 = vadd.f32 %v6298_v32, %v14428_v15  ;;  %v6472_v48 = vadd.bf16 %v14367_v29, %v11817_v57 }
 0xa35   : > { %v6411_v10 = vpack.c.bf16 %v6297_v0, %v6293_v37 }
 0xa36   : > { %v6412_v53 = vpack.c.bf16 %v6299_v31, %v6295_v6  ;;  %6688 = vmatprep.mubr.bf16.mxu0 %v6472_v48 }
 0xa37   : > { %11822 = vtanh.bf16 %v6411_v10  ;;  %6689 = vmatmul.mubr.bf16.gmra.mrb[140].mxu0 %v6471_v14 }
 0xa38   : > { %11824 = vtanh.bf16 %v6412_v53  ;;  %v6302_v13 = vpop.f32.mrb[88].mxu1 }
 0xa39   : > { %v6304_v18 = vpop.f32.mrb[89].mxu1  ;;  %v6303_v50 = vadd.f32 %v6302_v13, %v14425_v34 }
 0xa3a   : > { %v11819_v11 = vpop.eup %11818  ;;  %v6306_v7 = vpop.f32.mrb[90].mxu1  ;;  %v6305_v25 = vadd.f32 %v6304_v18, %v14428_v15 }
 0xa3b   : > { %v11821_v8 = vpop.eup %11820  ;;  %v6307_v51 = vadd.f32 %v6306_v7, %v14425_v34  ;;  %v6308_v21 = vpop.f32.mrb[91].mxu1  ;;  %v6473_v19 = vadd.bf16 %v11819_v11, %v5110_v23  ;;  %v5118_v7 = vld [vmem:[#allocation2 + $0x180] sm:$0xff] }
 0xa3c   : > { %v6309_v12 = vadd.f32 %v6308_v21, %v14428_v15  ;;  %v6474_v5 = vadd.bf16 %v14367_v29, %v11821_v8 }
 0xa3d   : > { %v6413_v60 = vpack.c.bf16 %v6307_v51, %v6303_v50 }
 0xa3e   : > { %v6414_v58 = vpack.c.bf16 %v6309_v12, %v6305_v25  ;;  %6696 = vmatprep.mubr.bf16.mxu0 %v6474_v5 }
 0xa3f   : > { %11826 = vtanh.bf16 %v6413_v60  ;;  %6697 = vmatmul.mubr.bf16.gmra.mrb[144].mxu0 %v6473_v19 }
 0xa40   : > { %11828 = vtanh.bf16 %v6414_v58  ;;  %v6312_v40 = vpop.f32.mrb[92].mxu1 }
 0xa41   : > { %v6314_v3 = vpop.f32.mrb[93].mxu1  ;;  %v6313_v39 = vadd.f32 %v6312_v40, %v14425_v34 }
 0xa42   : > { %v11823_v20 = vpop.eup %11822  ;;  %v6316_v27 = vpop.f32.mrb[94].mxu1  ;;  %v6315_v35 = vadd.f32 %v6314_v3, %v14428_v15 }
 0xa43   : > { %v11825_v38 = vpop.eup %11824  ;;  %v6317_v28 = vadd.f32 %v6316_v27, %v14425_v34  ;;  %v6318_v2 = vpop.f32.mrb[95].mxu1  ;;  %v6475_v36 = vadd.bf16 %v11823_v20, %v5112_v49  ;;  %v5120_v27 = vld [vmem:[#allocation2 + $0x190] sm:$0xff] }
 0xa44   : > { %v6319_v17 = vadd.f32 %v6318_v2, %v14428_v15  ;;  %v6476_v42 = vadd.bf16 %v14367_v29, %v11825_v38 }
 0xa45   : > { %v6415_v26 = vpack.c.bf16 %v6317_v28, %v6313_v39 }
 0xa46   : > { %v6416_v41 = vpack.c.bf16 %v6319_v17, %v6315_v35  ;;  %6704 = vmatprep.mubr.bf16.mxu0 %v6476_v42 }
 0xa47   : > { %11830 = vtanh.bf16 %v6415_v26  ;;  %6705 = vmatmul.mubr.bf16.gmra.mrb[148].mxu0 %v6475_v36 }
 0xa48   : > { %11832 = vtanh.bf16 %v6416_v41  ;;  %v6322_v43 = vpop.f32.mrb[96].mxu1 }
 0xa49   : > { %v6324_v62 = vpop.f32.mrb[97].mxu1  ;;  %v6323_v9 = vadd.f32 %v6322_v43, %v14425_v34 }
 0xa4a   : > { %v11827_v63 = vpop.eup %11826  ;;  %v6326_v33 = vpop.f32.mrb[98].mxu1  ;;  %v6325_v54 = vadd.f32 %v6324_v62, %v14428_v15 }
 0xa4b   : > { %v11829_v16 = vpop.eup %11828  ;;  %v6327_v44 = vadd.f32 %v6326_v33, %v14425_v34  ;;  %v6328_v45 = vpop.f32.mrb[99].mxu1  ;;  %v6477_v52 = vadd.bf16 %v11827_v63, %v5114_v47  ;;  %v5122_v33 = vld [vmem:[#allocation2 + $0x1a0] sm:$0xff] }
 0xa4c   : > { %v6329_v30 = vadd.f32 %v6328_v45, %v14428_v15  ;;  %v6478_v46 = vadd.bf16 %v14367_v29, %v11829_v16 }
 0xa4d   : > { %v6417_v59 = vpack.c.bf16 %v6327_v44, %v6323_v9 }
 0xa4e   : > { %v6418_v24 = vpack.c.bf16 %v6329_v30, %v6325_v54  ;;  %6712 = vmatprep.mubr.bf16.mxu0 %v6478_v46 }
 0xa4f   : > { %11834 = vtanh.bf16 %v6417_v59  ;;  %6713 = vmatmul.mubr.bf16.gmra.mrb[152].mxu0 %v6477_v52 }
 0xa50   : > { %11836 = vtanh.bf16 %v6418_v24  ;;  %v6332_v1 = vpop.f32.mrb[100].mxu1 }
 0xa51   : > { %v6334_v22 = vpop.f32.mrb[101].mxu1  ;;  %v6333_v0 = vadd.f32 %v6332_v1, %v14425_v34 }
 0xa52   : > { %v11831_v4 = vpop.eup %11830  ;;  %v6336_v57 = vpop.f32.mrb[102].mxu1  ;;  %v6335_v31 = vadd.f32 %v6334_v22, %v14428_v15 }
 0xa53   : > { %v11833_v37 = vpop.eup %11832  ;;  %v6337_v32 = vadd.f32 %v6336_v57, %v14425_v34  ;;  %v6338_v6 = vpop.f32.mrb[103].mxu1  ;;  %v6479_v10 = vadd.bf16 %v11831_v4, %v5116_v61  ;;  %v5124_v57 = vld [vmem:[#allocation2 + $0x1b0] sm:$0xff] }
 0xa54   : > { %v6339_v48 = vadd.f32 %v6338_v6, %v14428_v15  ;;  %v6480_v14 = vadd.bf16 %v14367_v29, %v11833_v37 }
 0xa55   : > { %v6419_v53 = vpack.c.bf16 %v6337_v32, %v6333_v0 }
 0xa56   : > { %v6420_v13 = vpack.c.bf16 %v6339_v48, %v6335_v31  ;;  %6720 = vmatprep.mubr.bf16.mxu0 %v6480_v14 }
 0xa57   : > { %11838 = vtanh.bf16 %v6419_v53  ;;  %6721 = vmatmul.mubr.bf16.gmra.mrb[156].mxu0 %v6479_v10 }
 0xa58   : > { %11840 = vtanh.bf16 %v6420_v13  ;;  %v6342_v18 = vpop.f32.mrb[104].mxu1 }
 0xa59   : > { %v6344_v11 = vpop.f32.mrb[105].mxu1  ;;  %v6343_v51 = vadd.f32 %v6342_v18, %v14425_v34 }
 0xa5a   : > { %v11835_v23 = vpop.eup %11834  ;;  %v6346_v8 = vpop.f32.mrb[106].mxu1  ;;  %v6345_v12 = vadd.f32 %v6344_v11, %v14428_v15 }
 0xa5b   : > { %v11837_v50 = vpop.eup %11836  ;;  %v6347_v21 = vadd.f32 %v6346_v8, %v14425_v34  ;;  %v6348_v25 = vpop.f32.mrb[107].mxu1  ;;  %v6481_v60 = vadd.bf16 %v11835_v23, %v5118_v7  ;;  %v5126_v8 = vld [vmem:[#allocation2 + $0x1c0] sm:$0xff] }
 0xa5c   : > { %v6349_v5 = vadd.f32 %v6348_v25, %v14428_v15  ;;  %v6482_v19 = vadd.bf16 %v14367_v29, %v11837_v50 }
 0xa5d   : > { %v6421_v58 = vpack.c.bf16 %v6347_v21, %v6343_v51 }
 0xa5e   : > { %v6422_v40 = vpack.c.bf16 %v6349_v5, %v6345_v12  ;;  %6728 = vmatprep.mubr.bf16.mxu0 %v6482_v19 }
 0xa5f   : > { %11842 = vtanh.bf16 %v6421_v58  ;;  %6729 = vmatmul.mubr.bf16.gmra.mrb[160].mxu0 %v6481_v60  ;;  %v10999_v58 = vld [vmem:[#allocation3 + $0x70] ss:$8 sps:$4 sm:$0xff]  }
 0xa60   : > { %11844 = vtanh.bf16 %v6422_v40  ;;  %v6352_v3 = vpop.f32.mrb[108].mxu1  ;;  %v11001_v40 = vld [vmem:[#allocation3 + $0x74] ss:$8 sps:$4 sm:$0xff]  }
 0xa61   : > { %v6354_v20 = vpop.f32.mrb[109].mxu1  ;;  %v6353_v28 = vadd.f32 %v6352_v3, %v14425_v34  ;;  %6947 = vmatprep.subr.bf16.mxu1 %v11001_v40 }
 0xa62   : > { %v11839_v49 = vpop.eup %11838  ;;  %v6356_v38 = vpop.f32.mrb[110].mxu1  ;;  %v6355_v17 = vadd.f32 %v6354_v20, %v14428_v15  ;;  %6948 = vmatpush1.bf16.msra.mxu1 %v10999_v58 }
 0xa63   : > { %v11841_v39 = vpop.eup %11840  ;;  %v6357_v2 = vadd.f32 %v6356_v38, %v14425_v34  ;;  %v6358_v35 = vpop.f32.mrb[111].mxu1  ;;  %v6483_v26 = vadd.bf16 %v11839_v49, %v5120_v27 }
 0xa64   : > { %v6359_v42 = vadd.f32 %v6358_v35, %v14428_v15  ;;  %v6484_v36 = vadd.bf16 %v14367_v29, %v11841_v39 }
 0xa65   : > { %v6423_v41 = vpack.c.bf16 %v6357_v2, %v6353_v28  ;;  %v5128_v28 = vld [vmem:[#allocation2 + $0x1d0] sm:$0xff] }
 0xa66   : > { %v6424_v43 = vpack.c.bf16 %v6359_v42, %v6355_v17  ;;  %6736 = vmatprep.mubr.bf16.mxu0 %v6484_v36 }
 0xa67   : > { %11846 = vtanh.bf16 %v6423_v41  ;;  %6737 = vmatmul.mubr.bf16.gmra.mrb[164].mxu0 %v6483_v26 }
 0xa68   : > { %11848 = vtanh.bf16 %v6424_v43  ;;  %v6362_v62 = vpop.f32.mrb[112].mxu1 }
 0xa69   : > { %v6364_v63 = vpop.f32.mrb[113].mxu1  ;;  %v6363_v44 = vadd.f32 %v6362_v62, %v14425_v34 }
 0xa6a   : > { %v11843_v47 = vpop.eup %11842  ;;  %v6366_v16 = vpop.f32.mrb[114].mxu1  ;;  %v6365_v30 = vadd.f32 %v6364_v63, %v14428_v15 }
 0xa6b   : > { %v11845_v9 = vpop.eup %11844  ;;  %v6367_v45 = vadd.f32 %v6366_v16, %v14425_v34  ;;  %v6368_v54 = vpop.f32.mrb[115].mxu1  ;;  %v6485_v59 = vadd.bf16 %v11843_v47, %v5122_v33  ;;  %v5130_v16 = vld [vmem:[#allocation2 + $0x1e0] sm:$0xff] }
 0xa6c   : > { %v6369_v46 = vadd.f32 %v6368_v54, %v14428_v15  ;;  %v6486_v52 = vadd.bf16 %v14367_v29, %v11845_v9  ;;  %v5132_v54 = vld [vmem:[#allocation2 + $0x1f0] sm:$0xff] }
 0xa6d   : > { %v6425_v24 = vpack.c.bf16 %v6367_v45, %v6363_v44 }
 0xa6e   : > { %v6426_v1 = vpack.c.bf16 %v6369_v46, %v6365_v30  ;;  %6744 = vmatprep.mubr.bf16.mxu0 %v6486_v52 }
 0xa6f   : > { %11850 = vtanh.bf16 %v6425_v24  ;;  %6745 = vmatmul.mubr.bf16.gmra.mrb[168].mxu0 %v6485_v59 }
 0xa70   : > { %11852 = vtanh.bf16 %v6426_v1 }
 0xa71   : > { %v6372_v22 = vpop.f32.mrb[116].mxu1 }
 0xa72   : > { %v6374_v4 = vpop.f32.mrb[117].mxu1  ;;  %v11847_v61 = vpop.eup %11846  ;;  %v6373_v32 = vadd.f32 %v6372_v22, %v14425_v34  ;;  %v11002_v22 = vld [vmem:[#allocation5] ss:$8 sps:$4 sm:$0xff]  }
 0xa73   : > { %v6376_v37 = vpop.f32.mrb[118].mxu1  ;;  %v11849_v0 = vpop.eup %11848  ;;  %v6375_v48 = vadd.f32 %v6374_v4, %v14428_v15  ;;  %v6487_v53 = vadd.bf16 %v11847_v61, %v5124_v57  ;;  %v11004_v4 = vld [vmem:[#allocation5 + $0x4] ss:$8 sps:$4 sm:$0xff]   ;;  %v14515_v61 = vld [vmem:[%s15238_s8] ss:$0 sm:$0xff] }
 0xa74   : > { %v6377_v6 = vadd.f32 %v6376_v37, %v14425_v34  ;;  %v6378_v31 = vpop.f32.mrb[119].mxu1  ;;  %v6488_v10 = vadd.bf16 %v14367_v29, %v11849_v0  ;;  %v11007_v37 = vld [vmem:[#allocation5 + $0x14] ss:$8 sps:$4 sm:$0xff]   ;;  %7394 = vmatprep.subr.bf16.mxu0 %v11004_v4 }
 0xa75   : > { %v6379_v14 = vadd.f32 %v6378_v31, %v14428_v15  ;;  %7395 = vmatpush1.bf16.msra.mxu0 %v11002_v22  ;;  %v11029_v22 = vld [vmem:[#allocation5 + $0x90] ss:$8 sps:$4 sm:$0xff]  }
 0xa76   : > { %v6427_v13 = vpack.c.bf16 %v6377_v6, %v6373_v32  ;;  %6752 = vmatprep.mubr.bf16.mxu0 %v6488_v10  ;;  %v11005_v32 = vld [vmem:[#allocation5 + $0x10] ss:$8 sps:$4 sm:$0xff]   ;;  %7396 = vmatprep.subr.bf16.mxu0 %v11007_v37  ;;  %v14538_v37 = vld [vmem:[#allocation2 + $0x8] sm:$0xff] }
 0xa77   : > { %v6428_v18 = vpack.c.bf16 %v6379_v14, %v6375_v48  ;;  %6753 = vmatmul.mubr.bf16.gmra.mrb[172].mxu0 %v6487_v53  ;;  %v11010_v48 = vld [vmem:[#allocation5 + $0x24] ss:$8 sps:$4 sm:$0xff]  }
 0xa78   : > { %11854 = vtanh.bf16 %v6427_v13  ;;  %v11008_v13 = vld [vmem:[#allocation5 + $0x20] ss:$8 sps:$4 sm:$0xff]  }
 0xa79   : > { %11856 = vtanh.bf16 %v6428_v18  ;;  %v6382_v11 = vpop.f32.mrb[120].mxu1  ;;  %7397 = vmatpush1.bf16.msra.mxu0 %v11005_v32 }
 0xa7a   : > { %v6384_v23 = vpop.f32.mrb[121].mxu1  ;;  %v11851_v7 = vpop.eup %11850  ;;  %v6383_v21 = vadd.f32 %v6382_v11, %v14425_v34  ;;  %7398 = vmatprep.subr.bf16.mxu0 %v11010_v48 }
 0xa7b   : > { %v6386_v50 = vpop.f32.mrb[122].mxu1  ;;  %v11853_v51 = vpop.eup %11852  ;;  %v6385_v5 = vadd.f32 %v6384_v23, %v14428_v15  ;;  %v6489_v3 = vadd.bf16 %v11851_v7, %v5126_v8 }
 0xa7c   : > { %v6387_v25 = vadd.f32 %v6386_v50, %v14425_v34  ;;  %v6388_v12 = vpop.f32.mrb[123].mxu1  ;;  %v6490_v60 = vadd.bf16 %v14367_v29, %v11853_v51  ;;  %v11011_v51 = vld [vmem:[#allocation5 + $0x30] ss:$8 sps:$4 sm:$0xff]  }
 0xa7d   : > { %v6389_v19 = vadd.f32 %v6388_v12, %v14428_v15  ;;  %7399 = vmatpush1.bf16.msra.mxu0 %v11008_v13 }
 0xa7e   : > { %v6429_v20 = vpack.c.bf16 %v6387_v25, %v6383_v21  ;;  %6760 = vmatprep.mubr.bf16.mxu0 %v6490_v60  ;;  %v11013_v21 = vld [vmem:[#allocation5 + $0x34] ss:$8 sps:$4 sm:$0xff]   ;;  %v11016_v25 = vld [vmem:[#allocation5 + $0x44] ss:$8 sps:$4 sm:$0xff]   ;;  %v11014_v60 = vld [vmem:[#allocation5 + $0x40] ss:$8 sps:$4 sm:$0xff]  }
 0xa7f   : > { %v6430_v49 = vpack.c.bf16 %v6389_v19, %v6385_v5  ;;  %6761 = vmatmul.mubr.bf16.gmra.mrb[176].mxu0 %v6489_v3  ;;  %7400 = vmatprep.subr.bf16.mxu0 %v11013_v21  ;;  %v11019_v3 = vld [vmem:[#allocation5 + $0x54] ss:$8 sps:$4 sm:$0xff]  }
 0xa80   : > { %11858 = vtanh.bf16 %v6429_v20 }
 0xa81   : > { %11860 = vtanh.bf16 %v6430_v49  ;;  %v6392_v27 = vpop.f32.mrb[124].mxu1  ;;  %7401 = vmatpush1.bf16.msra.mxu0 %v11011_v51 }
 0xa82   : > { %v6394_v38 = vpop.f32.mrb[125].mxu1  ;;  %v6393_v17 = vadd.f32 %v6392_v27, %v14425_v34  ;;  %7402 = vmatprep.subr.bf16.mxu0 %v11016_v25  ;;  %v11038_v25 = vld [vmem:[#allocation5 + $0xc0] ss:$8 sps:$4 sm:$0xff]  }
 0xa83   : > { %v11855_v39 = vpop.eup %11854  ;;  %v6396_v2 = vpop.f32.mrb[126].mxu1  ;;  %v6395_v26 = vadd.f32 %v6394_v38, %v14428_v15  ;;  %v11017_v38 = vld [vmem:[#allocation5 + $0x50] ss:$8 sps:$4 sm:$0xff]  }
 0xa84   : > { %v11857_v35 = vpop.eup %11856  ;;  %v6397_v42 = vadd.f32 %v6396_v2, %v14425_v34  ;;  %v6398_v36 = vpop.f32.mrb[127].mxu1  ;;  %v6491_v62 = vadd.bf16 %v11855_v39, %v5128_v28  ;;  %v11022_v2 = vld [vmem:[#allocation5 + $0x64] ss:$8 sps:$4 sm:$0xff]  }
 0xa85   : > { %v6399_v41 = vadd.f32 %v6398_v36, %v14428_v15  ;;  %v6492_v43 = vadd.bf16 %v14367_v29, %v11857_v35  ;;  %7403 = vmatpush1.bf16.msra.mxu0 %v11014_v60  ;;  %v11020_v36 = vld [vmem:[#allocation5 + $0x60] ss:$8 sps:$4 sm:$0xff]  }
 0xa86   : > { %v6431_v63 = vpack.c.bf16 %v6397_v42, %v6393_v17  ;;  %7404 = vmatprep.subr.bf16.mxu0 %v11019_v3  ;;  %v11041_v3 = vld [vmem:[#allocation5 + $0xd0] ss:$8 sps:$4 sm:$0xff]  }
 0xa87   : > { %v6432_v47 = vpack.c.bf16 %v6399_v41, %v6395_v26  ;;  %6768 = vmatprep.mubr.bf16.mxu0 %v6492_v43  ;;  %v11025_v43 = vld [vmem:[#allocation5 + $0x74] ss:$8 sps:$4 sm:$0xff]  }
 0xa88   : > { %11862 = vtanh.bf16 %v6431_v63  ;;  %6769 = vmatmul.mubr.bf16.gmra.mrb[180].mxu0 %v6491_v62 }
 0xa89   : > { %11864 = vtanh.bf16 %v6432_v47  ;;  %7405 = vmatpush1.bf16.msra.mxu0 %v11017_v38 }
 0xa8a   : > { %7406 = vmatprep.subr.bf16.mxu0 %v11022_v2 }
 0xa8b   : > { %v11859_v33 = vpop.eup %11858 }
 0xa8c   : > { %v11861_v9 = vpop.eup %11860  ;;  %v6493_v34 = vadd.bf16 %v11859_v33, %v5130_v16  ;;  %v11023_v33 = vld [vmem:[#allocation5 + $0x70] ss:$8 sps:$4 sm:$0xff]  }
 0xa8d   : > { %v6494_v44 = vadd.bf16 %v14367_v29, %v11861_v9  ;;  %7407 = vmatpush1.bf16.msra.mxu0 %v11020_v36 }
 0xa8e   : > { %7408 = vmatprep.subr.bf16.mxu0 %v11025_v43 }
 0xa8f   : > { %6776 = vmatprep.mubr.bf16.mxu0 %v6494_v44  ;;  %v11028_v44 = vld [vmem:[#allocation5 + $0x84] ss:$8 sps:$4 sm:$0xff]  }
 0xa90   : > { %6777 = vmatmul.mubr.bf16.gmra.mrb[184].mxu0 %v6493_v34 }
 0xa91   : > { %7409 = vmatpush1.bf16.msra.mxu0 %v11023_v33 }
 0xa92   : > { %7410 = vmatprep.subr.bf16.mxu0 %v11028_v44 }
 0xa93   : > { %v11863_v45 = vpop.eup %11862 }
 0xa94   : > { %v11865_v15 = vpop.eup %11864  ;;  %v6495_v46 = vadd.bf16 %v11863_v45, %v5132_v54 }
 0xa95   : > { %v6496_v30 = vadd.bf16 %v14367_v29, %v11865_v15  ;;  %v11026_v15 = vld [vmem:[#allocation5 + $0x80] ss:$8 sps:$4 sm:$0xff]  }
 0xa96   : > { %7411 = vmatpush1.bf16.msra.mxu0 %v11026_v15 }
 0xa97   : > { %6784 = vmatprep.mubr.bf16.mxu0 %v6496_v30 }
 0xa98   : > { %6785 = vmatmul.mubr.bf16.gmra.mrb[188].mxu0 %v6495_v46 }
 0xaf2   : > { %v10144_v52 = vpop.f32.mrb[128].mxu0 }
 0xaf3   : > { %v10145_v59 = vpop.f32.mrb[129].mxu0 }
 0xaf4   : > { %v10146_v24 = vadd.f32 %v10145_v59, %v10144_v52  ;;  %v10147_v1 = vpop.f32.mrb[130].mxu0  ;;  %v11031_v52 = vld [vmem:[#allocation5 + $0x94] ss:$8 sps:$4 sm:$0xff]  }
 0xaf5   : > { %v10148_v57 = vpop.f32.mrb[131].mxu0  ;;  %7412 = vmatprep.subr.bf16.mxu0 %v11031_v52 }
 0xaf6   : > { %v10149_v0 = vadd.f32 %v10148_v57, %v10147_v1  ;;  %v6667_v6 = vadd.f32 %v10146_v24, %v14515_v61  ;;  %v11034_v57 = vld [vmem:[#allocation5 + $0xa4] ss:$8 sps:$4 sm:$0xff]   ;;  %7413 = vmatpush1.bf16.msra.mxu0 %v11029_v22 }
 0xaf7   : > { %7414 = vmatprep.subr.bf16.mxu0 %v11034_v57 }
 0xaf8   : > { %v6670_v31 = vadd.f32 %v10149_v0, %v14515_v61 }
 0xafa   : > { %v6793_v14 = vpack.c.bf16 %v6670_v31, %v6667_v6  ;;  %v10150_v10 = vpop.f32.mrb[132].mxu0  ;;  %v11032_v31 = vld [vmem:[#allocation5 + $0xa0] ss:$8 sps:$4 sm:$0xff]  }
 0xafb   : > { %v10151_v53 = vpop.f32.mrb[133].mxu0  ;;  %7415 = vmatpush1.bf16.msra.mxu0 %v11032_v31 }
 0xafc   : > { %11866 = vtanh.bf16 %v6793_v14  ;;  %v10152_v18 = vadd.f32 %v10151_v53, %v10150_v10  ;;  %v10153_v11 = vpop.f32.mrb[134].mxu0  ;;  %v11037_v10 = vld [vmem:[#allocation5 + $0xb4] ss:$8 sps:$4 sm:$0xff]  }
 0xafd   : > { %v10154_v23 = vpop.f32.mrb[135].mxu0  ;;  %7416 = vmatprep.subr.bf16.mxu0 %v11037_v10 }
 0xafe   : > { %v10155_v7 = vadd.f32 %v10154_v23, %v10153_v11  ;;  %v6675_v8 = vadd.f32 %v10152_v18, %v14515_v61  ;;  %v11035_v11 = vld [vmem:[#allocation5 + $0xb0] ss:$8 sps:$4 sm:$0xff]  }
 0xaff   : > { %7417 = vmatpush1.bf16.msra.mxu0 %v11035_v11 }
 0xb00   : > { %v6678_v50 = vadd.f32 %v10155_v7, %v14515_v61 }
 0xb02   : > { %v6794_v12 = vpack.c.bf16 %v6678_v50, %v6675_v8  ;;  %v10156_v5 = vpop.f32.mrb[136].mxu0  ;;  %v11040_v8 = vld [vmem:[#allocation5 + $0xc4] ss:$8 sps:$4 sm:$0xff]  }
 0xb03   : > { %v10157_v19 = vpop.f32.mrb[137].mxu0  ;;  %7418 = vmatprep.subr.bf16.mxu0 %v11040_v8 }
 0xb04   : > { %11868 = vtanh.bf16 %v6794_v12  ;;  %v10158_v58 = vadd.f32 %v10157_v19, %v10156_v5  ;;  %v10159_v40 = vpop.f32.mrb[138].mxu0  ;;  %v11043_v19 = vld [vmem:[#allocation5 + $0xd4] ss:$8 sps:$4 sm:$0xff]   ;;  %7419 = vmatpush1.bf16.msra.mxu0 %v11038_v25 }
 0xb05   : > { %v10160_v20 = vpop.f32.mrb[139].mxu0  ;;  %7420 = vmatprep.subr.bf16.mxu0 %v11043_v19 }
 0xb06   : > { %v10161_v49 = vadd.f32 %v10160_v20, %v10159_v40  ;;  %v6683_v39 = vadd.f32 %v10158_v58, %v14515_v61 }
 0xb07   : > { %v14521_v27 = vpop.eup %11866 }
 0xb08   : > { %v6686_v28 = vadd.f32 %v10161_v49, %v14515_v61  ;;  %6966 = vmatmul.mubr.bf16.vlgmr.msra.gmra.mrb[128].mxu1 %v14521_v27  ;;  %7421 = vmatpush1.bf16.msra.mxu0 %v11041_v3 }
 0xb09   : > { %6975 = vmatprep.mubr.bf16.mxu1 %v14367_v29 }
 0xb0a   : > { %v6795_v35 = vpack.c.bf16 %v6686_v28, %v6683_v39  ;;  %v10162_v17 = vpop.f32.mrb[140].mxu0 }
 0xb0b   : > { %v10163_v42 = vpop.f32.mrb[141].mxu0 }
 0xb0c   : > { %11870 = vtanh.bf16 %v6795_v35  ;;  %v10164_v26 = vadd.f32 %v10163_v42, %v10162_v17  ;;  %v10165_v41 = vpop.f32.mrb[142].mxu0 }
 0xb0d   : > { %v10166_v62 = vpop.f32.mrb[143].mxu0 }
 0xb0e   : > { %v10167_v63 = vadd.f32 %v10166_v62, %v10165_v41  ;;  %v6691_v16 = vadd.f32 %v10164_v26, %v14515_v61 }
 0xb0f   : > { %v14527_v47 = vpop.eup %11868 }
 0xb10   : > { %v6694_v9 = vadd.f32 %v10167_v63, %v14515_v61  ;;  %6976 = vmatmul.mubr.bf16.gmra.mrb[132].mxu1 %v14527_v47 }
 0xb11   : > { %6985 = vmatprep.mubr.bf16.mxu1 %v14367_v29 }
 0xb12   : > { %v6796_v34 = vpack.c.bf16 %v6694_v9, %v6691_v16  ;;  %v10168_v45 = vpop.f32.mrb[144].mxu0 }
 0xb13   : > { %v10169_v54 = vpop.f32.mrb[145].mxu0 }
 0xb14   : > { %11872 = vtanh.bf16 %v6796_v34  ;;  %v10170_v30 = vadd.f32 %v10169_v54, %v10168_v45  ;;  %v10171_v46 = vpop.f32.mrb[146].mxu0 }
 0xb15   : > { %v10172_v59 = vpop.f32.mrb[147].mxu0 }
 0xb16   : > { %v10173_v24 = vadd.f32 %v10172_v59, %v10171_v46  ;;  %v6699_v4 = vadd.f32 %v10170_v30, %v14515_v61 }
 0xb17   : > { %v14533_v1 = vpop.eup %11870 }
 0xb18   : > { %v6702_v29 = vadd.f32 %v10173_v24, %v14515_v61  ;;  %6986 = vmatmul.mubr.bf16.gmra.mrb[136].mxu1 %v14533_v1 }
 0xb19   : > { %6995 = vmatprep.mubr.bf16.mxu1 %v14538_v37 }
 0xb1a   : > { %v6797_v0 = vpack.c.bf16 %v6702_v29, %v6699_v4  ;;  %v10174_v32 = vpop.f32.mrb[148].mxu0 }
 0xb1b   : > { %v10175_v6 = vpop.f32.mrb[149].mxu0 }
 0xb1c   : > { %11874 = vtanh.bf16 %v6797_v0  ;;  %v10176_v48 = vadd.f32 %v10175_v6, %v10174_v32  ;;  %v10177_v14 = vpop.f32.mrb[150].mxu0 }
 0xb1d   : > { %v10178_v53 = vpop.f32.mrb[151].mxu0 }
 0xb1e   : > { %v10179_v13 = vadd.f32 %v10178_v53, %v10177_v14  ;;  %v6707_v23 = vadd.f32 %v10176_v48, %v14515_v61 }
 0xb1f   : > { %v14541_v18 = vpop.eup %11872 }
 0xb20   : > { %v6710_v7 = vadd.f32 %v10179_v13, %v14515_v61  ;;  %6996 = vmatmul.mubr.bf16.gmra.mrb[140].mxu1 %v14541_v18 }
 0xb21   : > { %7005 = vmatprep.mubr.bf16.mxu1 %v14538_v37 }
 0xb22   : > { %v6798_v50 = vpack.c.bf16 %v6710_v7, %v6707_v23  ;;  %v10180_v51 = vpop.f32.mrb[152].mxu0 }
 0xb23   : > { %v10181_v21 = vpop.f32.mrb[153].mxu0 }
 0xb24   : > { %11876 = vtanh.bf16 %v6798_v50  ;;  %v10182_v12 = vadd.f32 %v10181_v21, %v10180_v51  ;;  %v10183_v5 = vpop.f32.mrb[154].mxu0 }
 0xb25   : > { %v10184_v60 = vpop.f32.mrb[155].mxu0 }
 0xb26   : > { %v10185_v58 = vadd.f32 %v10184_v60, %v10183_v5  ;;  %v6715_v20 = vadd.f32 %v10182_v12, %v14515_v61 }
 0xb27   : > { %v14547_v40 = vpop.eup %11874 }
 0xb28   : > { %v6718_v49 = vadd.f32 %v10185_v58, %v14515_v61  ;;  %7006 = vmatmul.mubr.bf16.gmra.mrb[144].mxu1 %v14547_v40 }
 0xb29   : > { %7015 = vmatprep.mubr.bf16.mxu1 %v14538_v37 }
 0xb2a   : > { %v6799_v38 = vpack.c.bf16 %v6718_v49, %v6715_v20  ;;  %v10186_v39 = vpop.f32.mrb[156].mxu0 }
 0xb2b   : > { %v10187_v28 = vpop.f32.mrb[157].mxu0 }
 0xb2c   : > { %11878 = vtanh.bf16 %v6799_v38  ;;  %v10188_v2 = vadd.f32 %v10187_v28, %v10186_v39  ;;  %v10189_v35 = vpop.f32.mrb[158].mxu0 }
 0xb2d   : > { %v10190_v17 = vpop.f32.mrb[159].mxu0 }
 0xb2e   : > { %v10191_v42 = vadd.f32 %v10190_v17, %v10189_v35  ;;  %v6723_v26 = vadd.f32 %v10188_v2, %v14515_v61 }
 0xb2f   : > { %v14553_v36 = vpop.eup %11876 }
 0xb30   : > { %v6726_v41 = vadd.f32 %v10191_v42, %v14515_v61  ;;  %7016 = vmatmul.mubr.bf16.gmra.mrb[148].mxu1 %v14553_v36 }
 0xb31   : > { %7025 = vmatprep.mubr.bf16.mxu1 %v14538_v37 }
 0xb32   : > { %v6800_v43 = vpack.c.bf16 %v6726_v41, %v6723_v26  ;;  %v10192_v62 = vpop.f32.mrb[160].mxu0 }
 0xb33   : > { %v10193_v63 = vpop.f32.mrb[161].mxu0 }
 0xb34   : > { %11880 = vtanh.bf16 %v6800_v43  ;;  %v10194_v33 = vadd.f32 %v10193_v63, %v10192_v62  ;;  %v10195_v16 = vpop.f32.mrb[162].mxu0 }
 0xb35   : > { %v10196_v9 = vpop.f32.mrb[163].mxu0 }
 0xb36   : > { %v10197_v44 = vadd.f32 %v10196_v9, %v10195_v16  ;;  %v6731_v45 = vadd.f32 %v10194_v33, %v14515_v61 }
 0xb37   : > { %v14559_v34 = vpop.eup %11878 }
 0xb38   : > { %v6734_v54 = vadd.f32 %v10197_v44, %v14515_v61  ;;  %7026 = vmatmul.mubr.bf16.gmra.mrb[152].mxu1 %v14559_v34 }
 0xb39   : > { %7035 = vmatprep.mubr.bf16.mxu1 %v14538_v37 }
 0xb3a   : > { %v6801_v15 = vpack.c.bf16 %v6734_v54, %v6731_v45  ;;  %v10198_v30 = vpop.f32.mrb[164].mxu0 }
 0xb3b   : > { %v10199_v46 = vpop.f32.mrb[165].mxu0 }
 0xb3c   : > { %11882 = vtanh.bf16 %v6801_v15  ;;  %v10200_v52 = vadd.f32 %v10199_v46, %v10198_v30  ;;  %v10201_v59 = vpop.f32.mrb[166].mxu0  ;;  %v11044_v15 = vld [vmem:[#allocation5 + $0xe0] ss:$8 sps:$4 sm:$0xff]   ;;  %v11046_v30 = vld [vmem:[#allocation5 + $0xe4] ss:$8 sps:$4 sm:$0xff]  }
 0xb3d   : > { %v10202_v24 = vpop.f32.mrb[167].mxu0  ;;  %7422 = vmatprep.subr.bf16.mxu0 %v11046_v30  ;;  %v11054_v30 = vld [vmem:[#allocation7 + $0x50] sm:$0xff]  }
 0xb3e   : > { %v10203_v22 = vadd.f32 %v10202_v24, %v10201_v59  ;;  %v6739_v29 = vadd.f32 %v10200_v52, %v14515_v61  ;;  %7423 = vmatpush1.bf16.msra.mxu0 %v11044_v15 }
 0xb3f   : > { %v14565_v4 = vpop.eup %11880 }
 0xb40   : > { %v6742_v57 = vadd.f32 %v10203_v22, %v14515_v61  ;;  %7036 = vmatmul.mubr.bf16.gmra.mrb[156].mxu1 %v14565_v4 }
 0xb41   : > { %7045 = vmatprep.mubr.bf16.mxu1 %v14538_v37 }
 0xb42   : > { %v6802_v0 = vpack.c.bf16 %v6742_v57, %v6739_v29  ;;  %v10204_v32 = vpop.f32.mrb[168].mxu0 }
 0xb43   : > { %v10205_v6 = vpop.f32.mrb[169].mxu0 }
 0xb44   : > { %11884 = vtanh.bf16 %v6802_v0  ;;  %v10206_v31 = vadd.f32 %v10205_v6, %v10204_v32  ;;  %v10207_v48 = vpop.f32.mrb[170].mxu0 }
 0xb45   : > { %v10208_v14 = vpop.f32.mrb[171].mxu0 }
 0xb46   : > { %v10209_v10 = vadd.f32 %v10208_v14, %v10207_v48  ;;  %v6747_v13 = vadd.f32 %v10206_v31, %v14515_v61  ;;  %v11047_v31 = vld [vmem:[#allocation5 + $0xf0] ss:$8 sps:$4 sm:$0xff]   ;;  %v11049_v48 = vld [vmem:[#allocation5 + $0xf4] ss:$8 sps:$4 sm:$0xff]  }
 0xb47   : > { %v14571_v53 = vpop.eup %11882  ;;  %7424 = vmatprep.subr.bf16.mxu0 %v11049_v48 }
 0xb48   : > { %v6750_v11 = vadd.f32 %v10209_v10, %v14515_v61  ;;  %7046 = vmatmul.mubr.bf16.gmra.mrb[160].mxu1 %v14571_v53  ;;  %7425 = vmatpush1.bf16.msra.mxu0 %v11047_v31  ;;  %v11057_v31 = vld [vmem:[#allocation7 + $0x18] sm:$0xff]  }
 0xb49   : > { %7055 = vmatprep.mubr.bf16.mxu1 %v14538_v37 }
 0xb4a   : > { %v6803_v23 = vpack.c.bf16 %v6750_v11, %v6747_v13  ;;  %v10210_v7 = vpop.f32.mrb[172].mxu0 }
 0xb4b   : > { %v10211_v8 = vpop.f32.mrb[173].mxu0 }
 0xb4c   : > { %11886 = vtanh.bf16 %v6803_v23  ;;  %v10212_v50 = vadd.f32 %v10211_v8, %v10210_v7  ;;  %v10213_v51 = vpop.f32.mrb[174].mxu0 }
 0xb4d   : > { %v10214_v21 = vpop.f32.mrb[175].mxu0 }
 0xb4e   : > { %v10215_v25 = vadd.f32 %v10214_v21, %v10213_v51  ;;  %v6755_v5 = vadd.f32 %v10212_v50, %v14515_v61 }
 0xb4f   : > { %v14577_v12 = vpop.eup %11884 }
 0xb50   : > { %v6758_v19 = vadd.f32 %v10215_v25, %v14515_v61  ;;  %7056 = vmatmul.mubr.bf16.gmra.mrb[164].mxu1 %v14577_v12 }
 0xb51   : > { %7065 = vmatprep.mubr.bf16.mxu1 %v14538_v37 }
 0xb52   : > { %v6804_v60 = vpack.c.bf16 %v6758_v19, %v6755_v5  ;;  %v10216_v58 = vpop.f32.mrb[176].mxu0 }
 0xb53   : > { %v10217_v3 = vpop.f32.mrb[177].mxu0 }
 0xb54   : > { %11888 = vtanh.bf16 %v6804_v60  ;;  %v10218_v20 = vadd.f32 %v10217_v3, %v10216_v58  ;;  %v10219_v49 = vpop.f32.mrb[178].mxu0  ;;  %v11050_v60 = vld [vmem:[#allocation7 + $0x40] sm:$0xff]  }
 0xb55   : > { %v10220_v38 = vpop.f32.mrb[179].mxu0  ;;  %v11051_v58 = vld [vmem:[#allocation7] sm:$0xff]   ;;  %10240 = vmatprep.subr.bf16.mxu1 %v11050_v60 }
 0xb56   : > { %v10221_v39 = vadd.f32 %v10220_v38, %v10219_v49  ;;  %v6763_v2 = vadd.f32 %v10218_v20, %v14515_v61  ;;  %10241 = vmatpush3.bf16.msra.mxu1 %v11051_v58 }
 0xb57   : > { %v14583_v28 = vpop.eup %11886 }
 0xb58   : > { %v6766_v35 = vadd.f32 %v10221_v39, %v14515_v61  ;;  %7066 = vmatmul.mubr.bf16.gmra.mrb[168].mxu1 %v14583_v28 }
 0xb59   : > { %7075 = vmatprep.mubr.bf16.mxu1 %v14538_v37 }
 0xb5a   : > { %v6805_v17 = vpack.c.bf16 %v6766_v35, %v6763_v2 }
 0xb5b   : > { %v10222_v42 = vpop.f32.mrb[180].mxu0 }
 0xb5c   : > { %v10223_v26 = vpop.f32.mrb[181].mxu0  ;;  %11890 = vtanh.bf16 %v6805_v17 }
 0xb5d   : > { %v10224_v41 = vadd.f32 %v10223_v26, %v10222_v42  ;;  %v10225_v43 = vpop.f32.mrb[182].mxu0 }
 0xb5e   : > { %v10226_v62 = vpop.f32.mrb[183].mxu0 }
 0xb5f   : > { %v10227_v63 = vadd.f32 %v10226_v62, %v10225_v43  ;;  %v14589_v33 = vpop.eup %11888  ;;  %v6771_v16 = vadd.f32 %v10224_v41, %v14515_v61 }
 0xb60   : > { %7076 = vmatmul.mubr.bf16.gmra.mrb[172].mxu1 %v14589_v33 }
 0xb61   : > { %v6774_v9 = vadd.f32 %v10227_v63, %v14515_v61  ;;  %7085 = vmatprep.mubr.bf16.mxu1 %v14538_v37 }
 0xb63   : > { %v6806_v44 = vpack.c.bf16 %v6774_v9, %v6771_v16  ;;  %v10228_v45 = vpop.f32.mrb[184].mxu0 }
 0xb64   : > { %v10229_v54 = vpop.f32.mrb[185].mxu0 }
 0xb65   : > { %11892 = vtanh.bf16 %v6806_v44  ;;  %v10230_v46 = vadd.f32 %v10229_v54, %v10228_v45  ;;  %v10231_v52 = vpop.f32.mrb[186].mxu0  ;;  %v11052_v44 = vld [vmem:[#allocation7 + $0x48] sm:$0xff]  }
 0xb66   : > { %v10232_v59 = vpop.f32.mrb[187].mxu0  ;;  %v11053_v54 = vld [vmem:[#allocation7 + $0x8] sm:$0xff]   ;;  %10242 = vmatprep.subr.bf16.mxu1 %v11052_v44 }
 0xb67   : > { %v10233_v24 = vadd.f32 %v10232_v59, %v10231_v52  ;;  %v14595_v22 = vpop.eup %11890  ;;  %v6779_v29 = vadd.f32 %v10230_v46, %v14515_v61  ;;  %10243 = vmatpush3.bf16.msra.mxu1 %v11053_v54  ;;  %v11055_v46 = vld [vmem:[#allocation7 + $0x10] sm:$0xff]   ;;  %v11056_v59 = vld [vmem:[#allocation7 + $0x58] sm:$0xff]  }
 0xb68   : > { %7086 = vmatmul.mubr.bf16.gmra.mrb[176].mxu1 %v14595_v22  ;;  %10244 = vmatprep.subr.bf16.mxu1 %v11054_v30 }
 0xb69   : > { %v6782_v57 = vadd.f32 %v10233_v24, %v14515_v61  ;;  %7095 = vmatprep.mubr.bf16.mxu1 %v14538_v37 }
 0xb6b   : > { %v6807_v0 = vpack.c.bf16 %v6782_v57, %v6779_v29  ;;  %v10234_v32 = vpop.f32.mrb[188].mxu0  ;;  %10245 = vmatpush3.bf16.msra.mxu1 %v11055_v46 }
 0xb6c   : > { %v10235_v6 = vpop.f32.mrb[189].mxu0  ;;  %10246 = vmatprep.subr.bf16.mxu1 %v11056_v59 }
 0xb6d   : > { %11894 = vtanh.bf16 %v6807_v0  ;;  %v10236_v14 = vadd.f32 %v10235_v6, %v10234_v32  ;;  %v10237_v10 = vpop.f32.mrb[190].mxu0 }
 0xb6e   : > { %v10238_v13 = vpop.f32.mrb[191].mxu0 }
 0xb6f   : > { %v10239_v11 = vadd.f32 %v10238_v13, %v10237_v10  ;;  %v6787_v7 = vadd.f32 %v10236_v14, %v14515_v61  ;;  %v11058_v13 = vld [vmem:[#allocation7 + $0x60] sm:$0xff]   ;;  %10247 = vmatpush3.bf16.msra.mxu1 %v11057_v31 }
 0xb70   : > { %v14601_v23 = vpop.eup %11892  ;;  %10248 = vmatprep.subr.bf16.mxu1 %v11058_v13 }
 0xb71   : > { %v6790_v8 = vadd.f32 %v10239_v11, %v14515_v61  ;;  %7096 = vmatmul.mubr.bf16.gmra.mrb[180].mxu1 %v14601_v23  ;;  %v6841_v61 = vld [vmem:[%s15240_s10] sm:$0x3] }
 0xb72   : > { %7105 = vmatprep.mubr.bf16.mxu1 %v14538_v37  ;;  %v14618_v25 = vrot.slane %v6841_v61, %v12808_v55  ;;  %v14621_v19 = vrot.slane %v6841_v61, %v12810_v56  ;;  %v11060_v61 = vld [vmem:[#allocation7 + $0x68] sm:$0xff]  }
 0xb73   : > { %v6808_v50 = vpack.c.bf16 %v6790_v8, %v6787_v7  ;;  %v11059_v8 = vld [vmem:[#allocation7 + $0x20] sm:$0xff]  }
 0xb74   : > { %10249 = vmatpush3.bf16.msra.mxu1 %v11059_v8 }
 0xb75   : > { %11896 = vtanh.bf16 %v6808_v50  ;;  %10250 = vmatprep.subr.bf16.mxu1 %v11060_v61 }
 0xb78   : > { %v14607_v51 = vpop.eup %11894 }
 0xb79   : > { %7106 = vmatmul.mubr.bf16.gmra.mrb[184].mxu1 %v14607_v51 }
 0xb7a   : > { %7115 = vmatprep.mubr.bf16.mxu1 %v14538_v37 }
 0xb80   : > { %v14611_v21 = vpop.eup %11896 }
 0xb81   : > { %7116 = vmatmul.mubr.bf16.gmra.mrb[188].mxu1 %v14611_v21 }
 0xbdb   : > { %v6967_v5 = vpop.f32.mrb[128].mxu1 }
 0xbdc   : > { %v6969_v3 = vpop.f32.mrb[129].mxu1  ;;  %v6968_v37 = vadd.f32 %v6967_v5, %v14618_v25 }
 0xbdd   : > { %v6971_v20 = vpop.f32.mrb[130].mxu1  ;;  %v6970_v39 = vadd.f32 %v6969_v3, %v14621_v19 }
 0xbde   : > { %v6972_v49 = vadd.f32 %v6971_v20, %v14618_v25  ;;  %v6973_v38 = vpop.f32.mrb[131].mxu1 }
 0xbdf   : > { %v6974_v2 = vadd.f32 %v6973_v38, %v14621_v19 }
 0xbe0   : > { %v7126_v35 = vpack.c.bf16 %v6972_v49, %v6968_v37  ;;  %v11061_v49 = vld [vmem:[#allocation7 + $0x28] sm:$0xff]  }
 0xbe1   : > { %v7127_v17 = vpack.c.bf16 %v6974_v2, %v6970_v39  ;;  %10251 = vmatpush3.bf16.msra.mxu1 %v11061_v49 }
 0xbe3   : > { %11898 = vtanh.bf16 %v7127_v17  ;;  %v6977_v42 = vpop.f32.mrb[132].mxu1 }
 0xbe4   : > { %11900 = vtanh.bf16 %v7126_v35  ;;  %v6979_v26 = vpop.f32.mrb[133].mxu1  ;;  %v6978_v43 = vadd.f32 %v6977_v42, %v14618_v25  ;;  %v11062_v35 = vld [vmem:[#allocation7 + $0x70] sm:$0xff]  }
 0xbe5   : > { %v6981_v41 = vpop.f32.mrb[134].mxu1  ;;  %v6980_v16 = vadd.f32 %v6979_v26, %v14621_v19  ;;  %v11063_v26 = vld [vmem:[#allocation7 + $0x30] sm:$0xff]   ;;  %10252 = vmatprep.subr.bf16.mxu1 %v11062_v35 }
 0xbe6   : > { %v6982_v62 = vadd.f32 %v6981_v41, %v14618_v25  ;;  %v6983_v63 = vpop.f32.mrb[135].mxu1  ;;  %10253 = vmatpush3.bf16.msra.mxu1 %v11063_v26 }
 0xbe7   : > { %v6984_v9 = vadd.f32 %v6983_v63, %v14621_v19 }
 0xbe8   : > { %v7128_v45 = vpack.c.bf16 %v6982_v62, %v6978_v43 }
 0xbe9   : > { %v7129_v15 = vpack.c.bf16 %v6984_v9, %v6980_v16 }
 0xbeb   : > { %11902 = vtanh.bf16 %v7129_v15  ;;  %v6987_v52 = vpop.f32.mrb[136].mxu1 }
 0xbec   : > { %11904 = vtanh.bf16 %v7128_v45  ;;  %v6989_v24 = vpop.f32.mrb[137].mxu1  ;;  %v6988_v0 = vadd.f32 %v6987_v52, %v14618_v25 }
 0xbed   : > { %v6991_v29 = vpop.f32.mrb[138].mxu1  ;;  %v6990_v14 = vadd.f32 %v6989_v24, %v14621_v19 }
 0xbee   : > { %v11899_v57 = vpop.eup %11898  ;;  %v6992_v32 = vadd.f32 %v6991_v29, %v14618_v25  ;;  %v6993_v6 = vpop.f32.mrb[139].mxu1 }
 0xbef   : > { %v11901_v48 = vpop.eup %11900  ;;  %v6994_v10 = vadd.f32 %v6993_v6, %v14621_v19  ;;  %7426 = vmatprep.mubr.bf16.mxu0 %v11899_v57 }
 0xbf0   : > { %v7130_v11 = vpack.c.bf16 %v6992_v32, %v6988_v0  ;;  %7427 = vmatmul.mubr.bf16.vlgmr.msra.gmra.mrb[192].mxu0 %v11901_v48 }
 0xbf1   : > { %v7131_v7 = vpack.c.bf16 %v6994_v10, %v6990_v14 }
 0xbf3   : > { %11906 = vtanh.bf16 %v7131_v7  ;;  %v6997_v50 = vpop.f32.mrb[140].mxu1 }
 0xbf4   : > { %11908 = vtanh.bf16 %v7130_v11  ;;  %v6999_v5 = vpop.f32.mrb[141].mxu1  ;;  %v6998_v3 = vadd.f32 %v6997_v50, %v14618_v25 }
 0xbf5   : > { %v7001_v60 = vpop.f32.mrb[142].mxu1  ;;  %v7000_v39 = vadd.f32 %v6999_v5, %v14621_v19 }
 0xbf6   : > { %v11903_v58 = vpop.eup %11902  ;;  %v7002_v20 = vadd.f32 %v7001_v60, %v14618_v25  ;;  %v7003_v37 = vpop.f32.mrb[143].mxu1 }
 0xbf7   : > { %v11905_v38 = vpop.eup %11904  ;;  %v7004_v2 = vadd.f32 %v7003_v37, %v14621_v19  ;;  %7436 = vmatprep.mubr.bf16.mxu0 %v11903_v58 }
 0xbf8   : > { %v7132_v17 = vpack.c.bf16 %v7002_v20, %v6998_v3  ;;  %7437 = vmatmul.mubr.bf16.gmra.mrb[196].mxu0 %v11905_v38 }
 0xbf9   : > { %v7133_v42 = vpack.c.bf16 %v7004_v2, %v7000_v39 }
 0xbfb   : > { %11910 = vtanh.bf16 %v7133_v42  ;;  %v7007_v41 = vpop.f32.mrb[144].mxu1 }
 0xbfc   : > { %11912 = vtanh.bf16 %v7132_v17  ;;  %v7009_v43 = vpop.f32.mrb[145].mxu1  ;;  %v7008_v16 = vadd.f32 %v7007_v41, %v14618_v25 }
 0xbfd   : > { %v7011_v62 = vpop.f32.mrb[146].mxu1  ;;  %v7010_v54 = vadd.f32 %v7009_v43, %v14621_v19 }
 0xbfe   : > { %v11907_v63 = vpop.eup %11906  ;;  %v7012_v9 = vadd.f32 %v7011_v62, %v14618_v25  ;;  %v7013_v44 = vpop.f32.mrb[147].mxu1 }
 0xbff   : > { %v11909_v45 = vpop.eup %11908  ;;  %v7014_v15 = vadd.f32 %v7013_v44, %v14621_v19  ;;  %7446 = vmatprep.mubr.bf16.mxu0 %v11907_v63 }
 0xc00   : > { %v7134_v30 = vpack.c.bf16 %v7012_v9, %v7008_v16  ;;  %7447 = vmatmul.mubr.bf16.gmra.mrb[200].mxu0 %v11909_v45 }
 0xc01   : > { %v7135_v46 = vpack.c.bf16 %v7014_v15, %v7010_v54 }
 0xc03   : > { %11914 = vtanh.bf16 %v7135_v46  ;;  %v7017_v52 = vpop.f32.mrb[148].mxu1 }
 0xc04   : > { %11916 = vtanh.bf16 %v7134_v30  ;;  %v7019_v59 = vpop.f32.mrb[149].mxu1  ;;  %v7018_v57 = vadd.f32 %v7017_v52, %v14618_v25 }
 0xc05   : > { %v7021_v24 = vpop.f32.mrb[150].mxu1  ;;  %v7020_v31 = vadd.f32 %v7019_v59, %v14621_v19 }
 0xc06   : > { %v11911_v29 = vpop.eup %11910  ;;  %v7022_v0 = vadd.f32 %v7021_v24, %v14618_v25  ;;  %v7023_v32 = vpop.f32.mrb[151].mxu1 }
 0xc07   : > { %v11913_v6 = vpop.eup %11912  ;;  %v7024_v48 = vadd.f32 %v7023_v32, %v14621_v19  ;;  %7456 = vmatprep.mubr.bf16.mxu0 %v11911_v29 }
 0xc08   : > { %v7136_v14 = vpack.c.bf16 %v7022_v0, %v7018_v57  ;;  %7457 = vmatmul.mubr.bf16.gmra.mrb[204].mxu0 %v11913_v6 }
 0xc09   : > { %v7137_v10 = vpack.c.bf16 %v7024_v48, %v7020_v31 }
 0xc0b   : > { %11918 = vtanh.bf16 %v7137_v10  ;;  %v7027_v13 = vpop.f32.mrb[152].mxu1 }
 0xc0c   : > { %11920 = vtanh.bf16 %v7136_v14  ;;  %v7029_v11 = vpop.f32.mrb[153].mxu1  ;;  %v7028_v50 = vadd.f32 %v7027_v13, %v14618_v25 }
 0xc0d   : > { %v7031_v7 = vpop.f32.mrb[154].mxu1  ;;  %v7030_v58 = vadd.f32 %v7029_v11, %v14621_v19 }
 0xc0e   : > { %v11915_v8 = vpop.eup %11914  ;;  %v7032_v61 = vadd.f32 %v7031_v7, %v14618_v25  ;;  %v7033_v5 = vpop.f32.mrb[155].mxu1 }
 0xc0f   : > { %v11917_v60 = vpop.eup %11916  ;;  %v7034_v3 = vadd.f32 %v7033_v5, %v14621_v19  ;;  %7466 = vmatprep.mubr.bf16.mxu0 %v11915_v8 }
 0xc10   : > { %v7138_v20 = vpack.c.bf16 %v7032_v61, %v7028_v50  ;;  %7467 = vmatmul.mubr.bf16.gmra.mrb[208].mxu0 %v11917_v60 }
 0xc11   : > { %v7139_v37 = vpack.c.bf16 %v7034_v3, %v7030_v58 }
 0xc13   : > { %11922 = vtanh.bf16 %v7139_v37  ;;  %v7037_v49 = vpop.f32.mrb[156].mxu1 }
 0xc14   : > { %11924 = vtanh.bf16 %v7138_v20  ;;  %v7039_v38 = vpop.f32.mrb[157].mxu1  ;;  %v7038_v35 = vadd.f32 %v7037_v49, %v14618_v25 }
 0xc15   : > { %v7041_v39 = vpop.f32.mrb[158].mxu1  ;;  %v7040_v41 = vadd.f32 %v7039_v38, %v14621_v19 }
 0xc16   : > { %v11919_v2 = vpop.eup %11918  ;;  %v7042_v17 = vadd.f32 %v7041_v39, %v14618_v25  ;;  %v7043_v42 = vpop.f32.mrb[159].mxu1 }
 0xc17   : > { %v11921_v26 = vpop.eup %11920  ;;  %v7044_v43 = vadd.f32 %v7043_v42, %v14621_v19  ;;  %7476 = vmatprep.mubr.bf16.mxu0 %v11919_v2 }
 0xc18   : > { %v7140_v62 = vpack.c.bf16 %v7042_v17, %v7038_v35  ;;  %7477 = vmatmul.mubr.bf16.gmra.mrb[212].mxu0 %v11921_v26 }
 0xc19   : > { %v7141_v63 = vpack.c.bf16 %v7044_v43, %v7040_v41 }
 0xc1b   : > { %11926 = vtanh.bf16 %v7141_v63  ;;  %v7047_v16 = vpop.f32.mrb[160].mxu1 }
 0xc1c   : > { %11928 = vtanh.bf16 %v7140_v62  ;;  %v7049_v9 = vpop.f32.mrb[161].mxu1  ;;  %v7048_v54 = vadd.f32 %v7047_v16, %v14618_v25 }
 0xc1d   : > { %v7051_v44 = vpop.f32.mrb[162].mxu1  ;;  %v7050_v52 = vadd.f32 %v7049_v9, %v14621_v19 }
 0xc1e   : > { %v11923_v45 = vpop.eup %11922  ;;  %v7052_v15 = vadd.f32 %v7051_v44, %v14618_v25  ;;  %v7053_v30 = vpop.f32.mrb[163].mxu1 }
 0xc1f   : > { %v11925_v46 = vpop.eup %11924  ;;  %v7054_v59 = vadd.f32 %v7053_v30, %v14621_v19  ;;  %7486 = vmatprep.mubr.bf16.mxu0 %v11923_v45 }
 0xc20   : > { %v7142_v24 = vpack.c.bf16 %v7052_v15, %v7048_v54  ;;  %7487 = vmatmul.mubr.bf16.gmra.mrb[216].mxu0 %v11925_v46 }
 0xc21   : > { %v7143_v29 = vpack.c.bf16 %v7054_v59, %v7050_v52 }
 0xc23   : > { %11930 = vtanh.bf16 %v7143_v29  ;;  %v7057_v57 = vpop.f32.mrb[164].mxu1 }
 0xc24   : > { %11932 = vtanh.bf16 %v7142_v24  ;;  %v7059_v0 = vpop.f32.mrb[165].mxu1  ;;  %v7058_v31 = vadd.f32 %v7057_v57, %v14618_v25 }
 0xc25   : > { %v7061_v32 = vpop.f32.mrb[166].mxu1  ;;  %v7060_v13 = vadd.f32 %v7059_v0, %v14621_v19 }
 0xc26   : > { %v11927_v6 = vpop.eup %11926  ;;  %v7062_v48 = vadd.f32 %v7061_v32, %v14618_v25  ;;  %v7063_v14 = vpop.f32.mrb[167].mxu1 }
 0xc27   : > { %v11929_v10 = vpop.eup %11928  ;;  %v7064_v11 = vadd.f32 %v7063_v14, %v14621_v19  ;;  %7496 = vmatprep.mubr.bf16.mxu0 %v11927_v6 }
 0xc28   : > { %v7144_v7 = vpack.c.bf16 %v7062_v48, %v7058_v31  ;;  %7497 = vmatmul.mubr.bf16.gmra.mrb[220].mxu0 %v11929_v10 }
 0xc29   : > { %v7145_v8 = vpack.c.bf16 %v7064_v11, %v7060_v13 }
 0xc2b   : > { %11934 = vtanh.bf16 %v7145_v8  ;;  %v7067_v50 = vpop.f32.mrb[168].mxu1 }
 0xc2c   : > { %11936 = vtanh.bf16 %v7144_v7  ;;  %v7069_v61 = vpop.f32.mrb[169].mxu1  ;;  %v7068_v58 = vadd.f32 %v7067_v50, %v14618_v25 }
 0xc2d   : > { %v7071_v5 = vpop.f32.mrb[170].mxu1  ;;  %v7070_v49 = vadd.f32 %v7069_v61, %v14621_v19 }
 0xc2e   : > { %v11931_v60 = vpop.eup %11930  ;;  %v7072_v3 = vadd.f32 %v7071_v5, %v14618_v25  ;;  %v7073_v20 = vpop.f32.mrb[171].mxu1 }
 0xc2f   : > { %v11933_v37 = vpop.eup %11932  ;;  %v7074_v38 = vadd.f32 %v7073_v20, %v14621_v19  ;;  %7506 = vmatprep.mubr.bf16.mxu0 %v11931_v60  ;;  %v11065_v20 = vld [vmem:[#allocation7 + $0x38] sm:$0xff]  }
 0xc30   : > { %v7146_v39 = vpack.c.bf16 %v7072_v3, %v7068_v58  ;;  %7507 = vmatmul.mubr.bf16.gmra.mrb[224].mxu0 %v11933_v37  ;;  %v11064_v3 = vld [vmem:[#allocation7 + $0x78] sm:$0xff]  }
 0xc31   : > { %v7147_v2 = vpack.c.bf16 %v7074_v38, %v7070_v49  ;;  %10254 = vmatprep.subr.bf16.mxu1 %v11064_v3 }
 0xc32   : > { %10255 = vmatpush3.bf16.msra.mxu1 %v11065_v20 }
 0xc33   : > { %11938 = vtanh.bf16 %v7147_v2  ;;  %v7077_v35 = vpop.f32.mrb[172].mxu1 }
 0xc34   : > { %11940 = vtanh.bf16 %v7146_v39  ;;  %v7079_v17 = vpop.f32.mrb[173].mxu1  ;;  %v7078_v41 = vadd.f32 %v7077_v35, %v14618_v25 }
 0xc35   : > { %v7081_v42 = vpop.f32.mrb[174].mxu1  ;;  %v7080_v16 = vadd.f32 %v7079_v17, %v14621_v19 }
 0xc36   : > { %v11935_v26 = vpop.eup %11934  ;;  %v7082_v43 = vadd.f32 %v7081_v42, %v14618_v25  ;;  %v7083_v62 = vpop.f32.mrb[175].mxu1 }
 0xc37   : > { %v11937_v63 = vpop.eup %11936  ;;  %v7084_v9 = vadd.f32 %v7083_v62, %v14621_v19  ;;  %7516 = vmatprep.mubr.bf16.mxu0 %v11935_v26 }
 0xc38   : > { %v7148_v44 = vpack.c.bf16 %v7082_v43, %v7078_v41  ;;  %7517 = vmatmul.mubr.bf16.gmra.mrb[228].mxu0 %v11937_v63 }
 0xc39   : > { %v7149_v45 = vpack.c.bf16 %v7084_v9, %v7080_v16 }
 0xc3b   : > { %11942 = vtanh.bf16 %v7149_v45  ;;  %v7087_v54 = vpop.f32.mrb[176].mxu1 }
 0xc3c   : > { %11944 = vtanh.bf16 %v7148_v44  ;;  %v7089_v15 = vpop.f32.mrb[177].mxu1  ;;  %v7088_v52 = vadd.f32 %v7087_v54, %v14618_v25 }
 0xc3d   : > { %v7091_v30 = vpop.f32.mrb[178].mxu1  ;;  %v7090_v57 = vadd.f32 %v7089_v15, %v14621_v19 }
 0xc3e   : > { %v11939_v46 = vpop.eup %11938  ;;  %v7092_v59 = vadd.f32 %v7091_v30, %v14618_v25  ;;  %v7093_v24 = vpop.f32.mrb[179].mxu1 }
 0xc3f   : > { %v11941_v29 = vpop.eup %11940  ;;  %v7094_v0 = vadd.f32 %v7093_v24, %v14621_v19  ;;  %7526 = vmatprep.mubr.bf16.mxu0 %v11939_v46 }
 0xc40   : > { %v7150_v32 = vpack.c.bf16 %v7092_v59, %v7088_v52  ;;  %7527 = vmatmul.mubr.bf16.gmra.mrb[232].mxu0 %v11941_v29 }
 0xc41   : > { %v7151_v6 = vpack.c.bf16 %v7094_v0, %v7090_v57 }
 0xc43   : > { %11946 = vtanh.bf16 %v7151_v6 }
 0xc44   : > { %v7097_v31 = vpop.f32.mrb[180].mxu1  ;;  %11948 = vtanh.bf16 %v7150_v32 }
 0xc45   : > { %v7099_v48 = vpop.f32.mrb[181].mxu1  ;;  %v7098_v13 = vadd.f32 %v7097_v31, %v14618_v25  ;;  %v11066_v31 = vld [vmem:[#allocation8] ss:$8 sps:$4 sm:$0xff]  }
 0xc46   : > { %v7101_v14 = vpop.f32.mrb[182].mxu1  ;;  %v11943_v10 = vpop.eup %11942  ;;  %v7100_v50 = vadd.f32 %v7099_v48, %v14621_v19  ;;  %v11068_v48 = vld [vmem:[#allocation8 + $0x4] ss:$8 sps:$4 sm:$0xff]  }
 0xc47   : > { %v7102_v11 = vadd.f32 %v7101_v14, %v14618_v25  ;;  %v7103_v7 = vpop.f32.mrb[183].mxu1  ;;  %v11945_v8 = vpop.eup %11944  ;;  %7536 = vmatprep.mubr.bf16.mxu0 %v11943_v10  ;;  %8183 = vmatprep.subr.bf16.mxu0 %v11068_v48 }
 0xc48   : > { %v7104_v61 = vadd.f32 %v7103_v7, %v14621_v19  ;;  %7537 = vmatmul.mubr.bf16.gmra.mrb[236].mxu0 %v11945_v8 }
 0xc49   : > { %v7152_v5 = vpack.c.bf16 %v7102_v11, %v7098_v13  ;;  %8184 = vmatpush1.bf16.msra.mxu0 %v11066_v31  ;;  %v11086_v31 = vld [vmem:[#allocation8 + $0x64] ss:$8 sps:$4 sm:$0xff]  }
 0xc4a   : > { %v7153_v60 = vpack.c.bf16 %v7104_v61, %v7100_v50  ;;  %v11069_v61 = vld [vmem:[#allocation8 + $0x10] ss:$8 sps:$4 sm:$0xff]  }
 0xc4c   : > { %11950 = vtanh.bf16 %v7153_v60  ;;  %v7107_v58 = vpop.f32.mrb[184].mxu1 }
 0xc4d   : > { %11952 = vtanh.bf16 %v7152_v5  ;;  %v7109_v37 = vpop.f32.mrb[185].mxu1  ;;  %v7108_v39 = vadd.f32 %v7107_v58, %v14618_v25  ;;  %v11071_v5 = vld [vmem:[#allocation8 + $0x14] ss:$8 sps:$4 sm:$0xff]  }
 0xc4e   : > { %v7111_v49 = vpop.f32.mrb[186].mxu1  ;;  %v11947_v38 = vpop.eup %11946  ;;  %v7110_v42 = vadd.f32 %v7109_v37, %v14621_v19  ;;  %8185 = vmatprep.subr.bf16.mxu0 %v11071_v5  ;;  %v11089_v5 = vld [vmem:[#allocation8 + $0x74] ss:$8 sps:$4 sm:$0xff]  }
 0xc4f   : > { %v7112_v2 = vadd.f32 %v7111_v49, %v14618_v25  ;;  %v7113_v35 = vpop.f32.mrb[187].mxu1  ;;  %v11949_v17 = vpop.eup %11948  ;;  %7546 = vmatprep.mubr.bf16.mxu0 %v11947_v38  ;;  %8186 = vmatpush1.bf16.msra.mxu0 %v11069_v61 }
 0xc50   : > { %v7114_v26 = vadd.f32 %v7113_v35, %v14621_v19  ;;  %7547 = vmatmul.mubr.bf16.gmra.mrb[240].mxu0 %v11949_v17  ;;  %v11072_v17 = vld [vmem:[#allocation8 + $0x20] ss:$8 sps:$4 sm:$0xff]  }
 0xc51   : > { %v7154_v41 = vpack.c.bf16 %v7112_v2, %v7108_v39 }
 0xc52   : > { %v7155_v43 = vpack.c.bf16 %v7114_v26, %v7110_v42  ;;  %v11074_v42 = vld [vmem:[#allocation8 + $0x24] ss:$8 sps:$4 sm:$0xff]  }
 0xc53   : > { %8187 = vmatprep.subr.bf16.mxu0 %v11074_v42 }
 0xc54   : > { %11954 = vtanh.bf16 %v7155_v43  ;;  %v7117_v62 = vpop.f32.mrb[188].mxu1  ;;  %8188 = vmatpush1.bf16.msra.mxu0 %v11072_v17 }
 0xc55   : > { %11956 = vtanh.bf16 %v7154_v41  ;;  %v7119_v63 = vpop.f32.mrb[189].mxu1  ;;  %v7118_v44 = vadd.f32 %v7117_v62, %v14618_v25  ;;  %v11077_v41 = vld [vmem:[#allocation8 + $0x34] ss:$8 sps:$4 sm:$0xff]   ;;  %v11075_v62 = vld [vmem:[#allocation8 + $0x30] ss:$8 sps:$4 sm:$0xff]  }
 0xc56   : > { %v7121_v16 = vpop.f32.mrb[190].mxu1  ;;  %v7120_v30 = vadd.f32 %v7119_v63, %v14621_v19  ;;  %8189 = vmatprep.subr.bf16.mxu0 %v11077_v41  ;;  %v11090_v41 = vld [vmem:[#allocation8 + $0x80] ss:$8 sps:$4 sm:$0xff]  }
 0xc57   : > { %v11951_v9 = vpop.eup %11950  ;;  %v7122_v45 = vadd.f32 %v7121_v16, %v14618_v25  ;;  %v7123_v54 = vpop.f32.mrb[191].mxu1  ;;  %v7222_v25 = vld [vmem:[%s15242_s12] sm:$0x3]  ;;  %v11080_v16 = vld [vmem:[#allocation8 + $0x44] ss:$8 sps:$4 sm:$0xff]  }
 0xc58   : > { %v11953_v15 = vpop.eup %11952  ;;  %v7124_v46 = vadd.f32 %v7123_v54, %v14621_v19  ;;  %7556 = vmatprep.mubr.bf16.mxu0 %v11951_v9  ;;  %v14692_v19 = vrot.slane %v7222_v25, %v12808_v55  ;;  %v14695_v6 = vrot.slane %v7222_v25, %v12810_v56  ;;  %8190 = vmatpush1.bf16.msra.mxu0 %v11075_v62  ;;  %v11081_v25 = vld [vmem:[#allocation8 + $0x50] ss:$8 sps:$4 sm:$0xff]   ;;  %v11095_v62 = vld [vmem:[#allocation8 + $0x94] ss:$8 sps:$4 sm:$0xff]  }
 0xc59   : > { %v7156_v52 = vpack.c.bf16 %v7122_v45, %v7118_v44  ;;  %7557 = vmatmul.mubr.bf16.gmra.mrb[244].mxu0 %v11953_v15  ;;  %8191 = vmatprep.subr.bf16.mxu0 %v11080_v16 }
 0xc5a   : > { %v7157_v59 = vpack.c.bf16 %v7124_v46, %v7120_v30 }
 0xc5c   : > { %11958 = vtanh.bf16 %v7157_v59  ;;  %v11078_v59 = vld [vmem:[#allocation8 + $0x40] ss:$8 sps:$4 sm:$0xff]  }
 0xc5d   : > { %11960 = vtanh.bf16 %v7156_v52  ;;  %8192 = vmatpush1.bf16.msra.mxu0 %v11078_v59 }
 0xc5f   : > { %v11955_v24 = vpop.eup %11954 }
 0xc60   : > { %v11957_v29 = vpop.eup %11956  ;;  %7566 = vmatprep.mubr.bf16.mxu0 %v11955_v24 }
 0xc61   : > { %7567 = vmatmul.mubr.bf16.gmra.mrb[248].mxu0 %v11957_v29  ;;  %v11083_v29 = vld [vmem:[#allocation8 + $0x54] ss:$8 sps:$4 sm:$0xff]  }
 0xc62   : > { %8193 = vmatprep.subr.bf16.mxu0 %v11083_v29 }
 0xc63   : > { %8194 = vmatpush1.bf16.msra.mxu0 %v11081_v25  ;;  %v11101_v25 = vld [vmem:[#allocation8 + $0xb4] ss:$8 sps:$4 sm:$0xff]  }
 0xc64   : > { %8195 = vmatprep.subr.bf16.mxu0 %v11086_v31 }
 0xc67   : > { %v11959_v57 = vpop.eup %11958 }
 0xc68   : > { %v11961_v0 = vpop.eup %11960  ;;  %7576 = vmatprep.mubr.bf16.mxu0 %v11959_v57 }
 0xc69   : > { %7577 = vmatmul.mubr.bf16.gmra.mrb[252].mxu0 %v11961_v0 }
 0xc6a   : > { %8215 = vmatprep.mubr.bf16.mxu0 %v14521_v27 }
 0xcc3   : > { %v7428_v32 = vpop.f32.mrb[192].mxu0 }
 0xcc4   : > { %v7430_v14 = vpop.f32.mrb[193].mxu0  ;;  %v7429_v13 = vadd.f32 %v7428_v32, %v14692_v19 }
 0xcc5   : > { %v7432_v10 = vpop.f32.mrb[194].mxu0  ;;  %v7431_v7 = vadd.f32 %v7430_v14, %v14695_v6 }
 0xcc6   : > { %v7433_v27 = vadd.f32 %v7432_v10, %v14692_v19  ;;  %v7434_v11 = vpop.f32.mrb[195].mxu0 }
 0xcc7   : > { %v7435_v8 = vadd.f32 %v7434_v11, %v14695_v6 }
 0xcc8   : > { %v7587_v50 = vpack.c.bf16 %v7433_v27, %v7429_v13 }
 0xcc9   : > { %v7588_v60 = vpack.c.bf16 %v7435_v8, %v7431_v7 }
 0xccb   : > { %11962 = vtanh.bf16 %v7588_v60  ;;  %v7438_v58 = vpop.f32.mrb[196].mxu0 }
 0xccc   : > { %11964 = vtanh.bf16 %v7587_v50  ;;  %v7440_v3 = vpop.f32.mrb[197].mxu0  ;;  %v7439_v37 = vadd.f32 %v7438_v58, %v14692_v19  ;;  %v11084_v50 = vld [vmem:[#allocation8 + $0x60] ss:$8 sps:$4 sm:$0xff]  }
 0xccd   : > { %v7442_v20 = vpop.f32.mrb[198].mxu0  ;;  %v7441_v39 = vadd.f32 %v7440_v3, %v14695_v6  ;;  %8196 = vmatpush1.bf16.msra.mxu0 %v11084_v50  ;;  %v11087_v3 = vld [vmem:[#allocation8 + $0x70] ss:$8 sps:$4 sm:$0xff]  }
 0xcce   : > { %v7443_v49 = vadd.f32 %v7442_v20, %v14692_v19  ;;  %v7444_v38 = vpop.f32.mrb[199].mxu0  ;;  %8197 = vmatprep.subr.bf16.mxu0 %v11089_v5 }
 0xccf   : > { %v7445_v2 = vadd.f32 %v7444_v38, %v14695_v6 }
 0xcd0   : > { %v7589_v35 = vpack.c.bf16 %v7443_v49, %v7439_v37  ;;  %v11092_v37 = vld [vmem:[#allocation8 + $0x84] ss:$8 sps:$4 sm:$0xff]  }
 0xcd1   : > { %v7590_v26 = vpack.c.bf16 %v7445_v2, %v7441_v39  ;;  %8198 = vmatpush1.bf16.msra.mxu0 %v11087_v3  ;;  %v11107_v3 = vld [vmem:[#allocation8 + $0xd4] ss:$8 sps:$4 sm:$0xff]  }
 0xcd2   : > { %8199 = vmatprep.subr.bf16.mxu0 %v11092_v37 }
 0xcd3   : > { %11966 = vtanh.bf16 %v7590_v26  ;;  %v7448_v43 = vpop.f32.mrb[200].mxu0 }
 0xcd4   : > { %11968 = vtanh.bf16 %v7589_v35  ;;  %v7450_v63 = vpop.f32.mrb[201].mxu0  ;;  %v7449_v45 = vadd.f32 %v7448_v43, %v14692_v19 }
 0xcd5   : > { %v7452_v9 = vpop.f32.mrb[202].mxu0  ;;  %v7451_v46 = vadd.f32 %v7450_v63, %v14695_v6  ;;  %8200 = vmatpush1.bf16.msra.mxu0 %v11090_v41 }
 0xcd6   : > { %v11963_v44 = vpop.eup %11962  ;;  %v7453_v54 = vadd.f32 %v7452_v9, %v14692_v19  ;;  %v7454_v15 = vpop.f32.mrb[203].mxu0  ;;  %v11093_v9 = vld [vmem:[#allocation8 + $0x90] ss:$8 sps:$4 sm:$0xff]   ;;  %8201 = vmatprep.subr.bf16.mxu0 %v11095_v62 }
 0xcd7   : > { %v11965_v30 = vpop.eup %11964  ;;  %v7455_v52 = vadd.f32 %v7454_v15, %v14695_v6  ;;  %7818 = vmatprep.mubr.bf16.mxu1 %v11963_v44 }
 0xcd8   : > { %v7591_v24 = vpack.c.bf16 %v7453_v54, %v7449_v45  ;;  %7819 = vmatmul.mubr.bf16.vlgmr.msra.gmra.mrb[192].mxu1 %v11965_v30  ;;  %v11098_v45 = vld [vmem:[#allocation8 + $0xa4] ss:$8 sps:$4 sm:$0xff]  }
 0xcd9   : > { %v7592_v57 = vpack.c.bf16 %v7455_v52, %v7451_v46  ;;  %8202 = vmatpush1.bf16.msra.mxu0 %v11093_v9 }
 0xcda   : > { %8203 = vmatprep.subr.bf16.mxu0 %v11098_v45 }
 0xcdb   : > { %11970 = vtanh.bf16 %v7592_v57  ;;  %v7458_v0 = vpop.f32.mrb[204].mxu0  ;;  %v11096_v57 = vld [vmem:[#allocation8 + $0xa0] ss:$8 sps:$4 sm:$0xff]  }
 0xcdc   : > { %11972 = vtanh.bf16 %v7591_v24  ;;  %v7460_v32 = vpop.f32.mrb[205].mxu0  ;;  %v7459_v10 = vadd.f32 %v7458_v0, %v14692_v19 }
 0xcdd   : > { %v7462_v48 = vpop.f32.mrb[206].mxu0  ;;  %v7461_v7 = vadd.f32 %v7460_v32, %v14695_v6  ;;  %8204 = vmatpush1.bf16.msra.mxu0 %v11096_v57 }
 0xcde   : > { %v11967_v14 = vpop.eup %11966  ;;  %v7463_v13 = vadd.f32 %v7462_v48, %v14692_v19  ;;  %v7464_v27 = vpop.f32.mrb[207].mxu0  ;;  %v11099_v48 = vld [vmem:[#allocation8 + $0xb0] ss:$8 sps:$4 sm:$0xff]   ;;  %8205 = vmatprep.subr.bf16.mxu0 %v11101_v25 }
 0xcdf   : > { %v11969_v11 = vpop.eup %11968  ;;  %v7465_v8 = vadd.f32 %v7464_v27, %v14695_v6  ;;  %7826 = vmatprep.mubr.bf16.mxu1 %v11967_v14 }
 0xce0   : > { %v7593_v61 = vpack.c.bf16 %v7463_v13, %v7459_v10  ;;  %7827 = vmatmul.mubr.bf16.gmra.mrb[196].mxu1 %v11969_v11  ;;  %v11104_v10 = vld [vmem:[#allocation8 + $0xc4] ss:$8 sps:$4 sm:$0xff]  }
 0xce1   : > { %v7594_v60 = vpack.c.bf16 %v7465_v8, %v7461_v7  ;;  %8206 = vmatpush1.bf16.msra.mxu0 %v11099_v48 }
 0xce2   : > { %8207 = vmatprep.subr.bf16.mxu0 %v11104_v10 }
 0xce3   : > { %11974 = vtanh.bf16 %v7594_v60  ;;  %v7468_v58 = vpop.f32.mrb[208].mxu0  ;;  %v11102_v60 = vld [vmem:[#allocation8 + $0xc0] ss:$8 sps:$4 sm:$0xff]  }
 0xce4   : > { %11976 = vtanh.bf16 %v7593_v61  ;;  %v7470_v20 = vpop.f32.mrb[209].mxu0  ;;  %v7469_v39 = vadd.f32 %v7468_v58, %v14692_v19 }
 0xce5   : > { %v7472_v49 = vpop.f32.mrb[210].mxu0  ;;  %v7471_v42 = vadd.f32 %v7470_v20, %v14695_v6  ;;  %8208 = vmatpush1.bf16.msra.mxu0 %v11102_v60 }
 0xce6   : > { %v11971_v38 = vpop.eup %11970  ;;  %v7473_v2 = vadd.f32 %v7472_v49, %v14692_v19  ;;  %v7474_v35 = vpop.f32.mrb[211].mxu0  ;;  %v11105_v49 = vld [vmem:[#allocation8 + $0xd0] ss:$8 sps:$4 sm:$0xff]   ;;  %8209 = vmatprep.subr.bf16.mxu0 %v11107_v3 }
 0xce7   : > { %v11973_v17 = vpop.eup %11972  ;;  %v7475_v26 = vadd.f32 %v7474_v35, %v14695_v6  ;;  %7834 = vmatprep.mubr.bf16.mxu1 %v11971_v38 }
 0xce8   : > { %v7595_v43 = vpack.c.bf16 %v7473_v2, %v7469_v39  ;;  %7835 = vmatmul.mubr.bf16.gmra.mrb[200].mxu1 %v11973_v17 }
 0xce9   : > { %v7596_v63 = vpack.c.bf16 %v7475_v26, %v7471_v42  ;;  %8210 = vmatpush1.bf16.msra.mxu0 %v11105_v49 }
 0xceb   : > { %11978 = vtanh.bf16 %v7596_v63  ;;  %v7478_v16 = vpop.f32.mrb[212].mxu0 }
 0xcec   : > { %11980 = vtanh.bf16 %v7595_v43  ;;  %v7480_v44 = vpop.f32.mrb[213].mxu0  ;;  %v7479_v30 = vadd.f32 %v7478_v16, %v14692_v19 }
 0xced   : > { %v7482_v54 = vpop.f32.mrb[214].mxu0  ;;  %v7481_v24 = vadd.f32 %v7480_v44, %v14695_v6 }
 0xcee   : > { %v11975_v15 = vpop.eup %11974  ;;  %v7483_v46 = vadd.f32 %v7482_v54, %v14692_v19  ;;  %v7484_v52 = vpop.f32.mrb[215].mxu0 }
 0xcef   : > { %v11977_v59 = vpop.eup %11976  ;;  %v7485_v29 = vadd.f32 %v7484_v52, %v14695_v6  ;;  %7842 = vmatprep.mubr.bf16.mxu1 %v11975_v15 }
 0xcf0   : > { %v7597_v0 = vpack.c.bf16 %v7483_v46, %v7479_v30  ;;  %7843 = vmatmul.mubr.bf16.gmra.mrb[204].mxu1 %v11977_v59 }
 0xcf1   : > { %v7598_v32 = vpack.c.bf16 %v7485_v29, %v7481_v24 }
 0xcf3   : > { %11982 = vtanh.bf16 %v7598_v32  ;;  %v7488_v31 = vpop.f32.mrb[216].mxu0 }
 0xcf4   : > { %11984 = vtanh.bf16 %v7597_v0  ;;  %v7490_v14 = vpop.f32.mrb[217].mxu0  ;;  %v7489_v11 = vadd.f32 %v7488_v31, %v14692_v19 }
 0xcf5   : > { %v7492_v13 = vpop.f32.mrb[218].mxu0  ;;  %v7491_v61 = vadd.f32 %v7490_v14, %v14695_v6 }
 0xcf6   : > { %v11979_v27 = vpop.eup %11978  ;;  %v7493_v7 = vadd.f32 %v7492_v13, %v14692_v19  ;;  %v7494_v8 = vpop.f32.mrb[219].mxu0 }
 0xcf7   : > { %v11981_v50 = vpop.eup %11980  ;;  %v7495_v5 = vadd.f32 %v7494_v8, %v14695_v6  ;;  %7850 = vmatprep.mubr.bf16.mxu1 %v11979_v27 }
 0xcf8   : > { %v7599_v58 = vpack.c.bf16 %v7493_v7, %v7489_v11  ;;  %7851 = vmatmul.mubr.bf16.gmra.mrb[208].mxu1 %v11981_v50 }
 0xcf9   : > { %v7600_v20 = vpack.c.bf16 %v7495_v5, %v7491_v61 }
 0xcfb   : > { %11986 = vtanh.bf16 %v7600_v20  ;;  %v7498_v37 = vpop.f32.mrb[220].mxu0 }
 0xcfc   : > { %11988 = vtanh.bf16 %v7599_v58  ;;  %v7500_v38 = vpop.f32.mrb[221].mxu0  ;;  %v7499_v35 = vadd.f32 %v7498_v37, %v14692_v19 }
 0xcfd   : > { %v7502_v39 = vpop.f32.mrb[222].mxu0  ;;  %v7501_v41 = vadd.f32 %v7500_v38, %v14695_v6 }
 0xcfe   : > { %v11983_v2 = vpop.eup %11982  ;;  %v7503_v17 = vadd.f32 %v7502_v39, %v14692_v19  ;;  %v7504_v42 = vpop.f32.mrb[223].mxu0 }
 0xcff   : > { %v11985_v26 = vpop.eup %11984  ;;  %v7505_v43 = vadd.f32 %v7504_v42, %v14695_v6  ;;  %7858 = vmatprep.mubr.bf16.mxu1 %v11983_v2 }
 0xd00   : > { %v7601_v62 = vpack.c.bf16 %v7503_v17, %v7499_v35  ;;  %7859 = vmatmul.mubr.bf16.gmra.mrb[212].mxu1 %v11985_v26 }
 0xd01   : > { %v7602_v63 = vpack.c.bf16 %v7505_v43, %v7501_v41 }
 0xd03   : > { %11990 = vtanh.bf16 %v7602_v63  ;;  %v7508_v16 = vpop.f32.mrb[224].mxu0 }
 0xd04   : > { %11992 = vtanh.bf16 %v7601_v62  ;;  %v7510_v9 = vpop.f32.mrb[225].mxu0  ;;  %v7509_v54 = vadd.f32 %v7508_v16, %v14692_v19 }
 0xd05   : > { %v7512_v44 = vpop.f32.mrb[226].mxu0  ;;  %v7511_v52 = vadd.f32 %v7510_v9, %v14695_v6 }
 0xd06   : > { %v11987_v45 = vpop.eup %11986  ;;  %v7513_v15 = vadd.f32 %v7512_v44, %v14692_v19  ;;  %v7514_v30 = vpop.f32.mrb[227].mxu0 }
 0xd07   : > { %v11989_v46 = vpop.eup %11988  ;;  %v7515_v59 = vadd.f32 %v7514_v30, %v14695_v6  ;;  %7866 = vmatprep.mubr.bf16.mxu1 %v11987_v45 }
 0xd08   : > { %v7603_v24 = vpack.c.bf16 %v7513_v15, %v7509_v54  ;;  %7867 = vmatmul.mubr.bf16.gmra.mrb[216].mxu1 %v11989_v46 }
 0xd09   : > { %v7604_v29 = vpack.c.bf16 %v7515_v59, %v7511_v52 }
 0xd0b   : > { %11994 = vtanh.bf16 %v7604_v29  ;;  %v7518_v57 = vpop.f32.mrb[228].mxu0 }
 0xd0c   : > { %11996 = vtanh.bf16 %v7603_v24  ;;  %v7520_v0 = vpop.f32.mrb[229].mxu0  ;;  %v7519_v31 = vadd.f32 %v7518_v57, %v14692_v19 }
 0xd0d   : > { %v7522_v25 = vpop.f32.mrb[230].mxu0  ;;  %v7521_v13 = vadd.f32 %v7520_v0, %v14695_v6 }
 0xd0e   : > { %v11991_v32 = vpop.eup %11990  ;;  %v7523_v48 = vadd.f32 %v7522_v25, %v14692_v19  ;;  %v7524_v14 = vpop.f32.mrb[231].mxu0 }
 0xd0f   : > { %v11993_v10 = vpop.eup %11992  ;;  %v7525_v27 = vadd.f32 %v7524_v14, %v14695_v6  ;;  %7874 = vmatprep.mubr.bf16.mxu1 %v11991_v32 }
 0xd10   : > { %v7605_v11 = vpack.c.bf16 %v7523_v48, %v7519_v31  ;;  %7875 = vmatmul.mubr.bf16.gmra.mrb[220].mxu1 %v11993_v10 }
 0xd11   : > { %v7606_v7 = vpack.c.bf16 %v7525_v27, %v7521_v13 }
 0xd13   : > { %11998 = vtanh.bf16 %v7606_v7  ;;  %v7528_v8 = vpop.f32.mrb[232].mxu0 }
 0xd14   : > { %12000 = vtanh.bf16 %v7605_v11  ;;  %v7530_v50 = vpop.f32.mrb[233].mxu0  ;;  %v7529_v60 = vadd.f32 %v7528_v8, %v14692_v19 }
 0xd15   : > { %v7532_v61 = vpop.f32.mrb[234].mxu0  ;;  %v7531_v37 = vadd.f32 %v7530_v50, %v14695_v6 }
 0xd16   : > { %v11995_v5 = vpop.eup %11994  ;;  %v7533_v58 = vadd.f32 %v7532_v61, %v14692_v19  ;;  %v7534_v3 = vpop.f32.mrb[235].mxu0 }
 0xd17   : > { %v11997_v20 = vpop.eup %11996  ;;  %v7535_v49 = vadd.f32 %v7534_v3, %v14695_v6  ;;  %7882 = vmatprep.mubr.bf16.mxu1 %v11995_v5  ;;  %v11108_v3 = vld [vmem:[#allocation8 + $0xe0] ss:$8 sps:$4 sm:$0xff]  }
 0xd18   : > { %v7607_v38 = vpack.c.bf16 %v7533_v58, %v7529_v60  ;;  %7883 = vmatmul.mubr.bf16.gmra.mrb[224].mxu1 %v11997_v20  ;;  %v11110_v20 = vld [vmem:[#allocation8 + $0xe4] ss:$8 sps:$4 sm:$0xff]  }
 0xd19   : > { %v7608_v39 = vpack.c.bf16 %v7535_v49, %v7531_v37  ;;  %8211 = vmatprep.subr.bf16.mxu0 %v11110_v20  ;;  %v11115_v20 = vld [vmem:[%s15247_s17] sm:$0xff]  }
 0xd1a   : > { %8212 = vmatpush1.bf16.msra.mxu0 %v11108_v3  ;;  %v11114_v3 = vld [vmem:[%s15247_s17 + $0x40] sm:$0xff]  }
 0xd1b   : > { %12002 = vtanh.bf16 %v7608_v39  ;;  %v7538_v2 = vpop.f32.mrb[236].mxu0  ;;  %10464 = vmatprep.subr.bf16.mxu1 %v11114_v3 }
 0xd1c   : > { %12004 = vtanh.bf16 %v7607_v38  ;;  %v7540_v35 = vpop.f32.mrb[237].mxu0  ;;  %v7539_v26 = vadd.f32 %v7538_v2, %v14692_v19  ;;  %10472 = vmatpush3.bf16.msra.mxu1 %v11115_v20 }
 0xd1d   : > { %v7542_v17 = vpop.f32.mrb[238].mxu0  ;;  %v7541_v63 = vadd.f32 %v7540_v35, %v14695_v6 }
 0xd1e   : > { %v11999_v42 = vpop.eup %11998  ;;  %v7543_v41 = vadd.f32 %v7542_v17, %v14692_v19  ;;  %v7544_v43 = vpop.f32.mrb[239].mxu0 }
 0xd1f   : > { %v12001_v62 = vpop.eup %12000  ;;  %v7545_v16 = vadd.f32 %v7544_v43, %v14695_v6  ;;  %7890 = vmatprep.mubr.bf16.mxu1 %v11999_v42 }
 0xd20   : > { %v7609_v9 = vpack.c.bf16 %v7543_v41, %v7539_v26  ;;  %7891 = vmatmul.mubr.bf16.gmra.mrb[228].mxu1 %v12001_v62 }
 0xd21   : > { %v7610_v44 = vpack.c.bf16 %v7545_v16, %v7541_v63  ;;  %v11111_v63 = vld [vmem:[#allocation8 + $0xf0] ss:$8 sps:$4 sm:$0xff]   ;;  %v11113_v16 = vld [vmem:[#allocation8 + $0xf4] ss:$8 sps:$4 sm:$0xff]  }
 0xd22   : > { %8213 = vmatprep.subr.bf16.mxu0 %v11113_v16  ;;  %v11119_v16 = vld [vmem:[%s15247_s17 + $0x10] sm:$0xff]  }
 0xd23   : > { %12006 = vtanh.bf16 %v7610_v44  ;;  %v7548_v45 = vpop.f32.mrb[240].mxu0  ;;  %8214 = vmatpush1.bf16.msra.mxu0 %v11111_v63 }
 0xd24   : > { %12008 = vtanh.bf16 %v7609_v9  ;;  %v7550_v54 = vpop.f32.mrb[241].mxu0  ;;  %v7549_v46 = vadd.f32 %v7548_v45, %v14692_v19  ;;  %10352 = vmatprep.subr.bf16.mxu0 %v11114_v3 }
 0xd25   : > { %v7552_v15 = vpop.f32.mrb[242].mxu0  ;;  %v7551_v29 = vadd.f32 %v7550_v54, %v14695_v6 }
 0xd26   : > { %v12003_v30 = vpop.eup %12002  ;;  %v7553_v52 = vadd.f32 %v7552_v15, %v14692_v19  ;;  %v7554_v59 = vpop.f32.mrb[243].mxu0 }
 0xd27   : > { %v12005_v24 = vpop.eup %12004  ;;  %v7555_v57 = vadd.f32 %v7554_v59, %v14695_v6  ;;  %7898 = vmatprep.mubr.bf16.mxu1 %v12003_v30 }
 0xd28   : > { %v7611_v0 = vpack.c.bf16 %v7553_v52, %v7549_v46  ;;  %7899 = vmatmul.mubr.bf16.gmra.mrb[232].mxu1 %v12005_v24 }
 0xd29   : > { %v7612_v25 = vpack.c.bf16 %v7555_v57, %v7551_v29 }
 0xd2b   : > { %12010 = vtanh.bf16 %v7612_v25 }
 0xd2c   : > { %v7558_v32 = vpop.f32.mrb[244].mxu0  ;;  %12012 = vtanh.bf16 %v7611_v0 }
 0xd2d   : > { %v7560_v31 = vpop.f32.mrb[245].mxu0  ;;  %v7559_v10 = vadd.f32 %v7558_v32, %v14692_v19 }
 0xd2e   : > { %v7562_v48 = vpop.f32.mrb[246].mxu0  ;;  %v12007_v14 = vpop.eup %12006  ;;  %v7561_v7 = vadd.f32 %v7560_v31, %v14695_v6  ;;  %v14764_v31 = vld [vmem:[%s15283_s21] ss:$0 sm:$0xff] }
 0xd2f   : > { %v7563_v13 = vadd.f32 %v7562_v48, %v14692_v19  ;;  %v7564_v27 = vpop.f32.mrb[247].mxu0  ;;  %v12009_v11 = vpop.eup %12008  ;;  %7906 = vmatprep.mubr.bf16.mxu1 %v12007_v14 }
 0xd30   : > { %v7565_v8 = vadd.f32 %v7564_v27, %v14695_v6  ;;  %7907 = vmatmul.mubr.bf16.gmra.mrb[236].mxu1 %v12009_v11 }
 0xd31   : > { %v7613_v50 = vpack.c.bf16 %v7563_v13, %v7559_v10 }
 0xd32   : > { %v7614_v61 = vpack.c.bf16 %v7565_v8, %v7561_v7 }
 0xd34   : > { %12014 = vtanh.bf16 %v7614_v61  ;;  %v7568_v5 = vpop.f32.mrb[248].mxu0 }
 0xd35   : > { %12016 = vtanh.bf16 %v7613_v50  ;;  %v7570_v60 = vpop.f32.mrb[249].mxu0  ;;  %v7569_v49 = vadd.f32 %v7568_v5, %v14692_v19 }
 0xd36   : > { %v7572_v58 = vpop.f32.mrb[250].mxu0  ;;  %v12011_v37 = vpop.eup %12010  ;;  %v7571_v35 = vadd.f32 %v7570_v60, %v14695_v6 }
 0xd37   : > { %v7573_v38 = vadd.f32 %v7572_v58, %v14692_v19  ;;  %v7574_v39 = vpop.f32.mrb[251].mxu0  ;;  %v12013_v2 = vpop.eup %12012  ;;  %7914 = vmatprep.mubr.bf16.mxu1 %v12011_v37 }
 0xd38   : > { %v7575_v17 = vadd.f32 %v7574_v39, %v14695_v6  ;;  %7915 = vmatmul.mubr.bf16.gmra.mrb[240].mxu1 %v12013_v2 }
 0xd39   : > { %v7615_v42 = vpack.c.bf16 %v7573_v38, %v7569_v49  ;;  %v11116_v38 = vld [vmem:[%s15247_s17 + $0x48] sm:$0xff]  }
 0xd3a   : > { %v7616_v26 = vpack.c.bf16 %v7575_v17, %v7571_v35  ;;  %10465 = vmatprep.subr.bf16.mxu1 %v11116_v38 }
 0xd3c   : > { %12018 = vtanh.bf16 %v7616_v26  ;;  %v7578_v41 = vpop.f32.mrb[252].mxu0 }
 0xd3d   : > { %12020 = vtanh.bf16 %v7615_v42  ;;  %v7580_v43 = vpop.f32.mrb[253].mxu0  ;;  %v7579_v44 = vadd.f32 %v7578_v41, %v14692_v19  ;;  %v11117_v42 = vld [vmem:[%s15247_s17 + $0x8] sm:$0xff]   ;;  %v11118_v41 = vld [vmem:[%s15247_s17 + $0x50] sm:$0xff]  }
 0xd3e   : > { %v7582_v62 = vpop.f32.mrb[254].mxu0  ;;  %v7581_v30 = vadd.f32 %v7580_v43, %v14695_v6  ;;  %10473 = vmatpush3.bf16.msra.mxu1 %v11117_v42 }
 0xd3f   : > { %v12015_v9 = vpop.eup %12014  ;;  %v7583_v45 = vadd.f32 %v7582_v62, %v14692_v19  ;;  %v7584_v54 = vpop.f32.mrb[255].mxu0  ;;  %10466 = vmatprep.subr.bf16.mxu1 %v11118_v41 }
 0xd40   : > { %v12017_v15 = vpop.eup %12016  ;;  %v7585_v46 = vadd.f32 %v7584_v54, %v14695_v6  ;;  %7922 = vmatprep.mubr.bf16.mxu1 %v12015_v9 }
 0xd41   : > { %v7617_v52 = vpack.c.bf16 %v7583_v45, %v7579_v44  ;;  %7923 = vmatmul.mubr.bf16.gmra.mrb[244].mxu1 %v12017_v15  ;;  %v11120_v45 = vld [vmem:[%s15247_s17 + $0x58] sm:$0xff]  }
 0xd42   : > { %v7618_v59 = vpack.c.bf16 %v7585_v46, %v7581_v30  ;;  %10474 = vmatpush3.bf16.msra.mxu1 %v11119_v16 }
 0xd43   : > { %10467 = vmatprep.subr.bf16.mxu1 %v11120_v45 }
 0xd44   : > { %12022 = vtanh.bf16 %v7618_v59  ;;  %v11122_v59 = vld [vmem:[%s15247_s17 + $0x60] sm:$0xff]  }
 0xd45   : > { %12024 = vtanh.bf16 %v7617_v52 }
 0xd47   : > { %v12019_v24 = vpop.eup %12018 }
 0xd48   : > { %v12021_v29 = vpop.eup %12020  ;;  %7930 = vmatprep.mubr.bf16.mxu1 %v12019_v24 }
 0xd49   : > { %7931 = vmatmul.mubr.bf16.gmra.mrb[248].mxu1 %v12021_v29 }
 0xd4f   : > { %v12023_v57 = vpop.eup %12022 }
 0xd50   : > { %v12025_v19 = vpop.eup %12024  ;;  %7938 = vmatprep.mubr.bf16.mxu1 %v12023_v57 }
 0xd51   : > { %7939 = vmatmul.mubr.bf16.gmra.mrb[252].mxu1 %v12025_v19  ;;  %v11123_v19 = vld [vmem:[%s15247_s17 + $0x20] sm:$0xff]  }
 0xdab   : > { %v10256_v0 = vpop.f32.mrb[192].mxu1 }
 0xdac   : > { %v10257_v25 = vpop.f32.mrb[193].mxu1 }
 0xdad   : > { %v10258_v32 = vadd.f32 %v10257_v25, %v10256_v0  ;;  %v10259_v6 = vpop.f32.mrb[194].mxu1 }
 0xdae   : > { %v10260_v48 = vpop.f32.mrb[195].mxu1 }
 0xdaf   : > { %v10261_v14 = vadd.f32 %v10260_v48, %v10259_v6  ;;  %v7821_v10 = vadd.f32 %v10258_v32, %v14764_v31  ;;  %v11124_v32 = vld [vmem:[%s15247_s17 + $0x68] sm:$0xff]  }
 0xdb1   : > { %v7824_v13 = vadd.f32 %v10261_v14, %v14764_v31 }
 0xdb3   : > { %v7947_v27 = vpack.c.bf16 %v7824_v13, %v7821_v10  ;;  %v10262_v11 = vpop.f32.mrb[196].mxu1 }
 0xdb4   : > { %v10263_v7 = vpop.f32.mrb[197].mxu1 }
 0xdb5   : > { %12026 = vtanh.bf16 %v7947_v27  ;;  %v10264_v8 = vadd.f32 %v10263_v7, %v10262_v11  ;;  %v10265_v50 = vpop.f32.mrb[198].mxu1 }
 0xdb6   : > { %v10266_v61 = vpop.f32.mrb[199].mxu1 }
 0xdb7   : > { %v10267_v5 = vadd.f32 %v10266_v61, %v10265_v50  ;;  %v7829_v60 = vadd.f32 %v10264_v8, %v14764_v31 }
 0xdb9   : > { %v7832_v58 = vadd.f32 %v10267_v5, %v14764_v31 }
 0xdbb   : > { %v7948_v37 = vpack.c.bf16 %v7832_v58, %v7829_v60  ;;  %v10268_v49 = vpop.f32.mrb[200].mxu1 }
 0xdbc   : > { %v10269_v39 = vpop.f32.mrb[201].mxu1 }
 0xdbd   : > { %12028 = vtanh.bf16 %v7948_v37  ;;  %v10270_v2 = vadd.f32 %v10269_v39, %v10268_v49  ;;  %v10271_v35 = vpop.f32.mrb[202].mxu1 }
 0xdbe   : > { %v10272_v17 = vpop.f32.mrb[203].mxu1 }
 0xdbf   : > { %v10273_v26 = vadd.f32 %v10272_v17, %v10271_v35  ;;  %v7837_v62 = vadd.f32 %v10270_v2, %v14764_v31 }
 0xdc0   : > { %v12027_v43 = vpop.eup %12026 }
 0xdc1   : > { %v7840_v63 = vadd.f32 %v10273_v26, %v14764_v31  ;;  %8216 = vmatmul.mubr.bf16.vlgmr.msra.gmra.mrb[0].mxu0 %v12027_v43 }
 0xdc2   : > { %8225 = vmatprep.mubr.bf16.mxu0 %v14527_v47  ;;  %10353 = vmatpush3.bf16.msra.mxu0 %v11115_v20  ;;  %v11121_v47 = vld [vmem:[%s15247_s17 + $0x18] sm:$0xff]  }
 0xdc3   : > { %v7949_v9 = vpack.c.bf16 %v7840_v63, %v7837_v62  ;;  %v10274_v44 = vpop.f32.mrb[204].mxu1  ;;  %10354 = vmatprep.subr.bf16.mxu0 %v11116_v38  ;;  %10475 = vmatpush3.bf16.msra.mxu1 %v11121_v47 }
 0xdc4   : > { %v10275_v54 = vpop.f32.mrb[205].mxu1  ;;  %10468 = vmatprep.subr.bf16.mxu1 %v11122_v59 }
 0xdc5   : > { %12030 = vtanh.bf16 %v7949_v9  ;;  %v10276_v15 = vadd.f32 %v10275_v54, %v10274_v44  ;;  %v10277_v30 = vpop.f32.mrb[206].mxu1 }
 0xdc6   : > { %v10278_v46 = vpop.f32.mrb[207].mxu1  ;;  %10355 = vmatpush3.bf16.msra.mxu0 %v11117_v42 }
 0xdc7   : > { %v10279_v52 = vadd.f32 %v10278_v46, %v10277_v30  ;;  %10356 = vmatprep.subr.bf16.mxu0 %v11118_v41  ;;  %v7845_v29 = vadd.f32 %v10276_v15, %v14764_v31  ;;  %10476 = vmatpush3.bf16.msra.mxu1 %v11123_v19 }
 0xdc8   : > { %v12029_v24 = vpop.eup %12028  ;;  %10469 = vmatprep.subr.bf16.mxu1 %v11124_v32 }
 0xdc9   : > { %v7848_v57 = vadd.f32 %v10279_v52, %v14764_v31  ;;  %8226 = vmatmul.mubr.bf16.gmra.mrb[4].mxu0 %v12029_v24 }
 0xdca   : > { %8235 = vmatprep.mubr.bf16.mxu0 %v14533_v1  ;;  %10357 = vmatpush3.bf16.msra.mxu0 %v11119_v16  ;;  %v11125_v1 = vld [vmem:[%s15247_s17 + $0x28] sm:$0xff]  }
 0xdcb   : > { %v7950_v0 = vpack.c.bf16 %v7848_v57, %v7845_v29  ;;  %v10280_v25 = vpop.f32.mrb[208].mxu1  ;;  %10358 = vmatprep.subr.bf16.mxu0 %v11120_v45  ;;  %10477 = vmatpush3.bf16.msra.mxu1 %v11125_v1 }
 0xdcc   : > { %v10281_v6 = vpop.f32.mrb[209].mxu1 }
 0xdcd   : > { %12032 = vtanh.bf16 %v7950_v0  ;;  %v10282_v48 = vadd.f32 %v10281_v6, %v10280_v25  ;;  %v10283_v14 = vpop.f32.mrb[210].mxu1 }
 0xdce   : > { %v10284_v10 = vpop.f32.mrb[211].mxu1  ;;  %10359 = vmatpush3.bf16.msra.mxu0 %v11121_v47 }
 0xdcf   : > { %v10285_v13 = vadd.f32 %v10284_v10, %v10283_v14  ;;  %10360 = vmatprep.subr.bf16.mxu0 %v11122_v59  ;;  %v7853_v11 = vadd.f32 %v10282_v48, %v14764_v31 }
 0xdd0   : > { %v12031_v27 = vpop.eup %12030 }
 0xdd1   : > { %v7856_v7 = vadd.f32 %v10285_v13, %v14764_v31  ;;  %8236 = vmatmul.mubr.bf16.gmra.mrb[8].mxu0 %v12031_v27 }
 0xdd2   : > { %8245 = vmatprep.mubr.bf16.mxu0 %v14541_v18  ;;  %10361 = vmatpush3.bf16.msra.mxu0 %v11123_v19 }
 0xdd3   : > { %v7951_v8 = vpack.c.bf16 %v7856_v7, %v7853_v11  ;;  %v10286_v50 = vpop.f32.mrb[212].mxu1  ;;  %10362 = vmatprep.subr.bf16.mxu0 %v11124_v32 }
 0xdd4   : > { %v10287_v61 = vpop.f32.mrb[213].mxu1 }
 0xdd5   : > { %12034 = vtanh.bf16 %v7951_v8  ;;  %v10288_v5 = vadd.f32 %v10287_v61, %v10286_v50  ;;  %v10289_v60 = vpop.f32.mrb[214].mxu1 }
 0xdd6   : > { %v10290_v58 = vpop.f32.mrb[215].mxu1  ;;  %10363 = vmatpush3.bf16.msra.mxu0 %v11125_v1 }
 0xdd7   : > { %v10291_v3 = vadd.f32 %v10290_v58, %v10289_v60  ;;  %v7861_v37 = vadd.f32 %v10288_v5, %v14764_v31 }
 0xdd8   : > { %v12033_v20 = vpop.eup %12032 }
 0xdd9   : > { %v7864_v49 = vadd.f32 %v10291_v3, %v14764_v31  ;;  %8246 = vmatmul.mubr.bf16.gmra.mrb[12].mxu0 %v12033_v20 }
 0xdda   : > { %8255 = vmatprep.mubr.bf16.mxu0 %v14547_v40 }
 0xddb   : > { %v7952_v18 = vpack.c.bf16 %v7864_v49, %v7861_v37  ;;  %v10292_v38 = vpop.f32.mrb[216].mxu1 }
 0xddc   : > { %v10293_v39 = vpop.f32.mrb[217].mxu1 }
 0xddd   : > { %12036 = vtanh.bf16 %v7952_v18  ;;  %v10294_v2 = vadd.f32 %v10293_v39, %v10292_v38  ;;  %v10295_v35 = vpop.f32.mrb[218].mxu1 }
 0xdde   : > { %v10296_v17 = vpop.f32.mrb[219].mxu1 }
 0xddf   : > { %v10297_v42 = vadd.f32 %v10296_v17, %v10295_v35  ;;  %v7869_v41 = vadd.f32 %v10294_v2, %v14764_v31 }
 0xde0   : > { %v12035_v26 = vpop.eup %12034 }
 0xde1   : > { %v7872_v43 = vadd.f32 %v10297_v42, %v14764_v31  ;;  %8256 = vmatmul.mubr.bf16.gmra.mrb[16].mxu0 %v12035_v26 }
 0xde2   : > { %8265 = vmatprep.mubr.bf16.mxu0 %v14553_v36 }
 0xde3   : > { %v7953_v62 = vpack.c.bf16 %v7872_v43, %v7869_v41  ;;  %v10298_v63 = vpop.f32.mrb[220].mxu1 }
 0xde4   : > { %v10299_v16 = vpop.f32.mrb[221].mxu1 }
 0xde5   : > { %12038 = vtanh.bf16 %v7953_v62  ;;  %v10300_v40 = vadd.f32 %v10299_v16, %v10298_v63  ;;  %v10301_v9 = vpop.f32.mrb[222].mxu1 }
 0xde6   : > { %v10302_v44 = vpop.f32.mrb[223].mxu1 }
 0xde7   : > { %v10303_v45 = vadd.f32 %v10302_v44, %v10301_v9  ;;  %v7877_v15 = vadd.f32 %v10300_v40, %v14764_v31 }
 0xde8   : > { %v12037_v54 = vpop.eup %12036 }
 0xde9   : > { %v7880_v30 = vadd.f32 %v10303_v45, %v14764_v31  ;;  %8266 = vmatmul.mubr.bf16.gmra.mrb[20].mxu0 %v12037_v54 }
 0xdea   : > { %8275 = vmatprep.mubr.bf16.mxu0 %v14559_v34 }
 0xdeb   : > { %v7954_v46 = vpack.c.bf16 %v7880_v30, %v7877_v15  ;;  %v10304_v47 = vpop.f32.mrb[224].mxu1 }
 0xdec   : > { %v10305_v52 = vpop.f32.mrb[225].mxu1 }
 0xded   : > { %12040 = vtanh.bf16 %v7954_v46  ;;  %v10306_v36 = vadd.f32 %v10305_v52, %v10304_v47  ;;  %v10307_v59 = vpop.f32.mrb[226].mxu1 }
 0xdee   : > { %v10308_v24 = vpop.f32.mrb[227].mxu1 }
 0xdef   : > { %v10309_v29 = vadd.f32 %v10308_v24, %v10307_v59  ;;  %v7885_v19 = vadd.f32 %v10306_v36, %v14764_v31 }
 0xdf0   : > { %v12039_v57 = vpop.eup %12038 }
 0xdf1   : > { %v7888_v0 = vadd.f32 %v10309_v29, %v14764_v31  ;;  %8276 = vmatmul.mubr.bf16.gmra.mrb[24].mxu0 %v12039_v57 }
 0xdf2   : > { %8285 = vmatprep.mubr.bf16.mxu0 %v14565_v4 }
 0xdf3   : > { %v7955_v25 = vpack.c.bf16 %v7888_v0, %v7885_v19  ;;  %v10310_v32 = vpop.f32.mrb[228].mxu1 }
 0xdf4   : > { %v10311_v6 = vpop.f32.mrb[229].mxu1 }
 0xdf5   : > { %12042 = vtanh.bf16 %v7955_v25  ;;  %v10312_v34 = vadd.f32 %v10311_v6, %v10310_v32  ;;  %v10313_v48 = vpop.f32.mrb[230].mxu1 }
 0xdf6   : > { %v10314_v14 = vpop.f32.mrb[231].mxu1 }
 0xdf7   : > { %v10315_v10 = vadd.f32 %v10314_v14, %v10313_v48  ;;  %v7893_v13 = vadd.f32 %v10312_v34, %v14764_v31  ;;  %v11126_v34 = vld [vmem:[%s15247_s17 + $0x70] sm:$0xff]  }
 0xdf8   : > { %v12041_v1 = vpop.eup %12040  ;;  %10470 = vmatprep.subr.bf16.mxu1 %v11126_v34  ;;  %10364 = vmatprep.subr.bf16.mxu0 %v11126_v34 }
 0xdf9   : > { %v7896_v27 = vadd.f32 %v10315_v10, %v14764_v31  ;;  %8286 = vmatmul.mubr.bf16.gmra.mrb[28].mxu0 %v12041_v1 }
 0xdfa   : > { %8295 = vmatprep.mubr.bf16.mxu0 %v14571_v53 }
 0xdfb   : > { %v7956_v11 = vpack.c.bf16 %v7896_v27, %v7893_v13  ;;  %v10316_v7 = vpop.f32.mrb[232].mxu1  ;;  %v11128_v27 = vld [vmem:[%s15247_s17 + $0x78] sm:$0xff]  }
 0xdfc   : > { %v10317_v8 = vpop.f32.mrb[233].mxu1 }
 0xdfd   : > { %12044 = vtanh.bf16 %v7956_v11  ;;  %v10318_v4 = vadd.f32 %v10317_v8, %v10316_v7  ;;  %v10319_v50 = vpop.f32.mrb[234].mxu1 }
 0xdfe   : > { %v10320_v61 = vpop.f32.mrb[235].mxu1 }
 0xdff   : > { %v10321_v5 = vadd.f32 %v10320_v61, %v10319_v50  ;;  %v7901_v58 = vadd.f32 %v10318_v4, %v14764_v31 }
 0xe00   : > { %v12043_v60 = vpop.eup %12042 }
 0xe01   : > { %v7904_v3 = vadd.f32 %v10321_v5, %v14764_v31  ;;  %8296 = vmatmul.mubr.bf16.gmra.mrb[32].mxu0 %v12043_v60 }
 0xe02   : > { %8305 = vmatprep.mubr.bf16.mxu0 %v14577_v12 }
 0xe03   : > { %v7957_v20 = vpack.c.bf16 %v7904_v3, %v7901_v58  ;;  %v10322_v37 = vpop.f32.mrb[236].mxu1  ;;  %v8011_v58 = vld [vmem:[%s15284_s22] sm:$0x3] }
 0xe04   : > { %v10323_v49 = vpop.f32.mrb[237].mxu1  ;;  %v14865_v3 = vrot.slane %v8011_v58, %v12808_v55 }
 0xe05   : > { %12046 = vtanh.bf16 %v7957_v20  ;;  %v10324_v53 = vadd.f32 %v10323_v49, %v10322_v37  ;;  %v10325_v18 = vpop.f32.mrb[238].mxu1 }
 0xe06   : > { %v10326_v38 = vpop.f32.mrb[239].mxu1 }
 0xe07   : > { %v10327_v39 = vadd.f32 %v10326_v38, %v10325_v18  ;;  %v7909_v35 = vadd.f32 %v10324_v53, %v14764_v31 }
 0xe08   : > { %v12045_v2 = vpop.eup %12044 }
 0xe09   : > { %v7912_v17 = vadd.f32 %v10327_v39, %v14764_v31  ;;  %8306 = vmatmul.mubr.bf16.gmra.mrb[36].mxu0 %v12045_v2 }
 0xe0a   : > { %8315 = vmatprep.mubr.bf16.mxu0 %v14583_v28 }
 0xe0b   : > { %v7958_v42 = vpack.c.bf16 %v7912_v17, %v7909_v35  ;;  %v10328_v26 = vpop.f32.mrb[240].mxu1 }
 0xe0c   : > { %v10329_v41 = vpop.f32.mrb[241].mxu1 }
 0xe0d   : > { %12048 = vtanh.bf16 %v7958_v42  ;;  %v10330_v12 = vadd.f32 %v10329_v41, %v10328_v26  ;;  %v10331_v43 = vpop.f32.mrb[242].mxu1 }
 0xe0e   : > { %v10332_v62 = vpop.f32.mrb[243].mxu1 }
 0xe0f   : > { %v10333_v63 = vadd.f32 %v10332_v62, %v10331_v43  ;;  %v7917_v40 = vadd.f32 %v10330_v12, %v14764_v31 }
 0xe10   : > { %v12047_v16 = vpop.eup %12046 }
 0xe11   : > { %v7920_v9 = vadd.f32 %v10333_v63, %v14764_v31  ;;  %8316 = vmatmul.mubr.bf16.gmra.mrb[40].mxu0 %v12047_v16 }
 0xe12   : > { %8325 = vmatprep.mubr.bf16.mxu0 %v14589_v33 }
 0xe13   : > { %v7959_v44 = vpack.c.bf16 %v7920_v9, %v7917_v40 }
 0xe14   : > { %v10334_v45 = vpop.f32.mrb[244].mxu1 }
 0xe15   : > { %v10335_v54 = vpop.f32.mrb[245].mxu1  ;;  %12050 = vtanh.bf16 %v7959_v44 }
 0xe16   : > { %v10336_v28 = vadd.f32 %v10335_v54, %v10334_v45  ;;  %v10337_v15 = vpop.f32.mrb[246].mxu1 }
 0xe17   : > { %v10338_v30 = vpop.f32.mrb[247].mxu1 }
 0xe18   : > { %v10339_v46 = vadd.f32 %v10338_v30, %v10337_v15  ;;  %v12049_v47 = vpop.eup %12048  ;;  %v7925_v52 = vadd.f32 %v10336_v28, %v14764_v31 }
 0xe19   : > { %8326 = vmatmul.mubr.bf16.gmra.mrb[44].mxu0 %v12049_v47 }
 0xe1a   : > { %v7928_v36 = vadd.f32 %v10339_v46, %v14764_v31  ;;  %8335 = vmatprep.mubr.bf16.mxu0 %v14595_v22  ;;  %v11127_v22 = vld [vmem:[%s15247_s17 + $0x30] sm:$0xff]  }
 0xe1b   : > { %10478 = vmatpush3.bf16.msra.mxu1 %v11127_v22  ;;  %10365 = vmatpush3.bf16.msra.mxu0 %v11127_v22 }
 0xe1c   : > { %v7960_v59 = vpack.c.bf16 %v7928_v36, %v7925_v52  ;;  %v10340_v24 = vpop.f32.mrb[248].mxu1  ;;  %10366 = vmatprep.subr.bf16.mxu0 %v11128_v27  ;;  %10471 = vmatprep.subr.bf16.mxu1 %v11128_v27 }
 0xe1d   : > { %v10341_v29 = vpop.f32.mrb[249].mxu1 }
 0xe1e   : > { %12052 = vtanh.bf16 %v7960_v59  ;;  %v10342_v33 = vadd.f32 %v10341_v29, %v10340_v24  ;;  %v10343_v57 = vpop.f32.mrb[250].mxu1 }
 0xe1f   : > { %v10344_v19 = vpop.f32.mrb[251].mxu1 }
 0xe20   : > { %v10345_v0 = vadd.f32 %v10344_v19, %v10343_v57  ;;  %v12051_v25 = vpop.eup %12050  ;;  %v7933_v32 = vadd.f32 %v10342_v33, %v14764_v31 }
 0xe21   : > { %8336 = vmatmul.mubr.bf16.gmra.mrb[48].mxu0 %v12051_v25 }
 0xe22   : > { %v7936_v6 = vadd.f32 %v10345_v0, %v14764_v31  ;;  %8345 = vmatprep.mubr.bf16.mxu0 %v14601_v23  ;;  %v11129_v23 = vld [vmem:[%s15247_s17 + $0x38] sm:$0xff]  }
 0xe23   : > { %10367 = vmatpush3.bf16.msra.mxu0 %v11129_v23  ;;  %10479 = vmatpush3.bf16.msra.mxu1 %v11129_v23 }
 0xe24   : > { %v7961_v48 = vpack.c.bf16 %v7936_v6, %v7933_v32  ;;  %v10346_v14 = vpop.f32.mrb[252].mxu1 }
 0xe25   : > { %v10347_v10 = vpop.f32.mrb[253].mxu1 }
 0xe26   : > { %12054 = vtanh.bf16 %v7961_v48  ;;  %v10348_v1 = vadd.f32 %v10347_v10, %v10346_v14  ;;  %v10349_v13 = vpop.f32.mrb[254].mxu1 }
 0xe27   : > { %v10350_v11 = vpop.f32.mrb[255].mxu1 }
 0xe28   : > { %v10351_v7 = vadd.f32 %v10350_v11, %v10349_v13  ;;  %v7941_v4 = vadd.f32 %v10348_v1, %v14764_v31 }
 0xe29   : > { %v12053_v8 = vpop.eup %12052 }
 0xe2a   : > { %v7944_v50 = vadd.f32 %v10351_v7, %v14764_v31  ;;  %8346 = vmatmul.mubr.bf16.gmra.mrb[52].mxu0 %v12053_v8  ;;  %v14868_v31 = vrot.slane %v8011_v58, %v12810_v56 }
 0xe2b   : > { %8355 = vmatprep.mubr.bf16.mxu0 %v14607_v51 }
 0xe2c   : > { %v7962_v61 = vpack.c.bf16 %v7944_v50, %v7941_v4 }
 0xe2e   : > { %12056 = vtanh.bf16 %v7962_v61 }
 0xe31   : > { %v12055_v5 = vpop.eup %12054 }
 0xe32   : > { %8356 = vmatmul.mubr.bf16.gmra.mrb[56].mxu0 %v12055_v5 }
 0xe33   : > { %8365 = vmatprep.mubr.bf16.mxu0 %v14611_v21 }
 0xe39   : > { %v12057_v60 = vpop.eup %12056 }
 0xe3a   : > { %8366 = vmatmul.mubr.bf16.gmra.mrb[60].mxu0 %v12057_v60 }
 0xe94   : > { %v8217_v20 = vpop.f32.mrb[0].mxu0 }
 0xe95   : > { %v8219_v51 = vpop.f32.mrb[1].mxu0  ;;  %v8218_v49 = vadd.f32 %v8217_v20, %v14865_v3 }
 0xe96   : > { %v8221_v37 = vpop.f32.mrb[2].mxu0  ;;  %v8220_v18 = vadd.f32 %v8219_v51, %v14868_v31 }
 0xe97   : > { %v8222_v53 = vadd.f32 %v8221_v37, %v14865_v3  ;;  %v8223_v21 = vpop.f32.mrb[3].mxu0 }
 0xe98   : > { %v8224_v38 = vadd.f32 %v8223_v21, %v14868_v31 }
 0xe99   : > { %v8376_v39 = vpack.c.bf16 %v8222_v53, %v8218_v49 }
 0xe9a   : > { %v8377_v2 = vpack.c.bf16 %v8224_v38, %v8220_v18 }
 0xe9c   : > { %12058 = vtanh.bf16 %v8377_v2  ;;  %v8227_v55 = vpop.f32.mrb[4].mxu0 }
 0xe9d   : > { %12060 = vtanh.bf16 %v8376_v39  ;;  %v8229_v35 = vpop.f32.mrb[5].mxu0  ;;  %v8228_v56 = vadd.f32 %v8227_v55, %v14865_v3 }
 0xe9e   : > { %v8231_v17 = vpop.f32.mrb[6].mxu0  ;;  %v8230_v41 = vadd.f32 %v8229_v35, %v14868_v31 }
 0xe9f   : > { %v8232_v42 = vadd.f32 %v8231_v17, %v14865_v3  ;;  %v8233_v26 = vpop.f32.mrb[7].mxu0 }
 0xea0   : > { %v8234_v12 = vadd.f32 %v8233_v26, %v14868_v31 }
 0xea1   : > { %v8378_v43 = vpack.c.bf16 %v8232_v42, %v8228_v56 }
 0xea2   : > { %v8379_v62 = vpack.c.bf16 %v8234_v12, %v8230_v41 }
 0xea4   : > { %12062 = vtanh.bf16 %v8379_v62  ;;  %v8237_v63 = vpop.f32.mrb[8].mxu0 }
 0xea5   : > { %12064 = vtanh.bf16 %v8378_v43  ;;  %v8239_v16 = vpop.f32.mrb[9].mxu0  ;;  %v8238_v44 = vadd.f32 %v8237_v63, %v14865_v3 }
 0xea6   : > { %v8241_v40 = vpop.f32.mrb[10].mxu0  ;;  %v8240_v15 = vadd.f32 %v8239_v16, %v14868_v31 }
 0xea7   : > { %v12059_v9 = vpop.eup %12058  ;;  %v8242_v45 = vadd.f32 %v8241_v40, %v14865_v3  ;;  %v8243_v54 = vpop.f32.mrb[11].mxu0 }
 0xea8   : > { %v12061_v28 = vpop.eup %12060  ;;  %v8244_v30 = vadd.f32 %v8243_v54, %v14868_v31  ;;  %8607 = vmatprep.mubr.bf16.mxu0 %v12059_v9 }
 0xea9   : > { %v8380_v46 = vpack.c.bf16 %v8242_v45, %v8238_v44  ;;  %8608 = vmatmul.mubr.bf16.vlgmr.msra.gmra.mrb[64].mxu0 %v12061_v28 }
 0xeaa   : > { %v8381_v47 = vpack.c.bf16 %v8244_v30, %v8240_v15 }
 0xeac   : > { %12066 = vtanh.bf16 %v8381_v47  ;;  %v8247_v52 = vpop.f32.mrb[12].mxu0 }
 0xead   : > { %12068 = vtanh.bf16 %v8380_v46  ;;  %v8249_v36 = vpop.f32.mrb[13].mxu0  ;;  %v8248_v29 = vadd.f32 %v8247_v52, %v14865_v3 }
 0xeae   : > { %v8251_v59 = vpop.f32.mrb[14].mxu0  ;;  %v8250_v0 = vadd.f32 %v8249_v36, %v14868_v31 }
 0xeaf   : > { %v12063_v24 = vpop.eup %12062  ;;  %v8252_v33 = vadd.f32 %v8251_v59, %v14865_v3  ;;  %v8253_v57 = vpop.f32.mrb[15].mxu0 }
 0xeb0   : > { %v12065_v19 = vpop.eup %12064  ;;  %v8254_v25 = vadd.f32 %v8253_v57, %v14868_v31  ;;  %8615 = vmatprep.mubr.bf16.mxu0 %v12063_v24 }
 0xeb1   : > { %v8382_v32 = vpack.c.bf16 %v8252_v33, %v8248_v29  ;;  %8616 = vmatmul.mubr.bf16.gmra.mrb[68].mxu0 %v12065_v19 }
 0xeb2   : > { %v8383_v6 = vpack.c.bf16 %v8254_v25, %v8250_v0 }
 0xeb4   : > { %12070 = vtanh.bf16 %v8383_v6  ;;  %v8257_v34 = vpop.f32.mrb[16].mxu0 }
 0xeb5   : > { %12072 = vtanh.bf16 %v8382_v32  ;;  %v8259_v22 = vpop.f32.mrb[17].mxu0  ;;  %v8258_v10 = vadd.f32 %v8257_v34, %v14865_v3 }
 0xeb6   : > { %v8261_v48 = vpop.f32.mrb[18].mxu0  ;;  %v8260_v11 = vadd.f32 %v8259_v22, %v14868_v31 }
 0xeb7   : > { %v12067_v14 = vpop.eup %12066  ;;  %v8262_v1 = vadd.f32 %v8261_v48, %v14865_v3  ;;  %v8263_v13 = vpop.f32.mrb[19].mxu0 }
 0xeb8   : > { %v12069_v27 = vpop.eup %12068  ;;  %v8264_v23 = vadd.f32 %v8263_v13, %v14868_v31  ;;  %8623 = vmatprep.mubr.bf16.mxu0 %v12067_v14 }
 0xeb9   : > { %v8384_v7 = vpack.c.bf16 %v8262_v1, %v8258_v10  ;;  %8624 = vmatmul.mubr.bf16.gmra.mrb[72].mxu0 %v12069_v27 }
 0xeba   : > { %v8385_v8 = vpack.c.bf16 %v8264_v23, %v8260_v11 }
 0xebc   : > { %12074 = vtanh.bf16 %v8385_v8  ;;  %v8267_v4 = vpop.f32.mrb[20].mxu0 }
 0xebd   : > { %12076 = vtanh.bf16 %v8384_v7  ;;  %v8269_v50 = vpop.f32.mrb[21].mxu0  ;;  %v8268_v60 = vadd.f32 %v8267_v4, %v14865_v3 }
 0xebe   : > { %v8271_v61 = vpop.f32.mrb[22].mxu0  ;;  %v8270_v37 = vadd.f32 %v8269_v50, %v14868_v31 }
 0xebf   : > { %v12071_v5 = vpop.eup %12070  ;;  %v8272_v58 = vadd.f32 %v8271_v61, %v14865_v3  ;;  %v8273_v20 = vpop.f32.mrb[23].mxu0 }
 0xec0   : > { %v12073_v51 = vpop.eup %12072  ;;  %v8274_v49 = vadd.f32 %v8273_v20, %v14868_v31  ;;  %8631 = vmatprep.mubr.bf16.mxu1 %v12071_v5 }
 0xec1   : > { %v8386_v53 = vpack.c.bf16 %v8272_v58, %v8268_v60  ;;  %8632 = vmatmul.mubr.bf16.vlgmr.msra.gmra.mrb[0].mxu1 %v12073_v51 }
 0xec2   : > { %v8387_v21 = vpack.c.bf16 %v8274_v49, %v8270_v37 }
 0xec4   : > { %12078 = vtanh.bf16 %v8387_v21  ;;  %v8277_v18 = vpop.f32.mrb[24].mxu0 }
 0xec5   : > { %12080 = vtanh.bf16 %v8386_v53  ;;  %v8279_v38 = vpop.f32.mrb[25].mxu0  ;;  %v8278_v55 = vadd.f32 %v8277_v18, %v14865_v3 }
 0xec6   : > { %v8281_v39 = vpop.f32.mrb[26].mxu0  ;;  %v8280_v42 = vadd.f32 %v8279_v38, %v14868_v31 }
 0xec7   : > { %v12075_v2 = vpop.eup %12074  ;;  %v8282_v35 = vadd.f32 %v8281_v39, %v14865_v3  ;;  %v8283_v17 = vpop.f32.mrb[27].mxu0 }
 0xec8   : > { %v12077_v56 = vpop.eup %12076  ;;  %v8284_v26 = vadd.f32 %v8283_v17, %v14868_v31  ;;  %8639 = vmatprep.mubr.bf16.mxu1 %v12075_v2 }
 0xec9   : > { %v8388_v41 = vpack.c.bf16 %v8282_v35, %v8278_v55  ;;  %8640 = vmatmul.mubr.bf16.gmra.mrb[4].mxu1 %v12077_v56 }
 0xeca   : > { %v8389_v12 = vpack.c.bf16 %v8284_v26, %v8280_v42 }
 0xecc   : > { %12082 = vtanh.bf16 %v8389_v12  ;;  %v8287_v43 = vpop.f32.mrb[28].mxu0 }
 0xecd   : > { %12084 = vtanh.bf16 %v8388_v41  ;;  %v8289_v62 = vpop.f32.mrb[29].mxu0  ;;  %v8288_v40 = vadd.f32 %v8287_v43, %v14865_v3 }
 0xece   : > { %v8291_v63 = vpop.f32.mrb[30].mxu0  ;;  %v8290_v54 = vadd.f32 %v8289_v62, %v14868_v31 }
 0xecf   : > { %v12079_v16 = vpop.eup %12078  ;;  %v8292_v9 = vadd.f32 %v8291_v63, %v14865_v3  ;;  %v8293_v44 = vpop.f32.mrb[31].mxu0 }
 0xed0   : > { %v12081_v45 = vpop.eup %12080  ;;  %v8294_v28 = vadd.f32 %v8293_v44, %v14868_v31  ;;  %8647 = vmatprep.mubr.bf16.mxu1 %v12079_v16 }
 0xed1   : > { %v8390_v15 = vpack.c.bf16 %v8292_v9, %v8288_v40  ;;  %8648 = vmatmul.mubr.bf16.gmra.mrb[8].mxu1 %v12081_v45 }
 0xed2   : > { %v8391_v30 = vpack.c.bf16 %v8294_v28, %v8290_v54 }
 0xed4   : > { %12086 = vtanh.bf16 %v8391_v30  ;;  %v8297_v46 = vpop.f32.mrb[32].mxu0 }
 0xed5   : > { %12088 = vtanh.bf16 %v8390_v15  ;;  %v8299_v47 = vpop.f32.mrb[33].mxu0  ;;  %v8298_v59 = vadd.f32 %v8297_v46, %v14865_v3 }
 0xed6   : > { %v8301_v52 = vpop.f32.mrb[34].mxu0  ;;  %v8300_v57 = vadd.f32 %v8299_v47, %v14868_v31 }
 0xed7   : > { %v12083_v36 = vpop.eup %12082  ;;  %v8302_v24 = vadd.f32 %v8301_v52, %v14865_v3  ;;  %v8303_v29 = vpop.f32.mrb[35].mxu0 }
 0xed8   : > { %v12085_v33 = vpop.eup %12084  ;;  %v8304_v19 = vadd.f32 %v8303_v29, %v14868_v31  ;;  %8655 = vmatprep.mubr.bf16.mxu1 %v12083_v36 }
 0xed9   : > { %v8392_v0 = vpack.c.bf16 %v8302_v24, %v8298_v59  ;;  %8656 = vmatmul.mubr.bf16.gmra.mrb[12].mxu1 %v12085_v33 }
 0xeda   : > { %v8393_v25 = vpack.c.bf16 %v8304_v19, %v8300_v57 }
 0xedc   : > { %12090 = vtanh.bf16 %v8393_v25  ;;  %v8307_v32 = vpop.f32.mrb[36].mxu0 }
 0xedd   : > { %12092 = vtanh.bf16 %v8392_v0  ;;  %v8309_v6 = vpop.f32.mrb[37].mxu0  ;;  %v8308_v48 = vadd.f32 %v8307_v32, %v14865_v3 }
 0xede   : > { %v8311_v34 = vpop.f32.mrb[38].mxu0  ;;  %v8310_v13 = vadd.f32 %v8309_v6, %v14868_v31 }
 0xedf   : > { %v12087_v22 = vpop.eup %12086  ;;  %v8312_v14 = vadd.f32 %v8311_v34, %v14865_v3  ;;  %v8313_v10 = vpop.f32.mrb[39].mxu0 }
 0xee0   : > { %v12089_v1 = vpop.eup %12088  ;;  %v8314_v27 = vadd.f32 %v8313_v10, %v14868_v31  ;;  %8663 = vmatprep.mubr.bf16.mxu1 %v12087_v22 }
 0xee1   : > { %v8394_v11 = vpack.c.bf16 %v8312_v14, %v8308_v48  ;;  %8664 = vmatmul.mubr.bf16.gmra.mrb[16].mxu1 %v12089_v1 }
 0xee2   : > { %v8395_v23 = vpack.c.bf16 %v8314_v27, %v8310_v13 }
 0xee4   : > { %12094 = vtanh.bf16 %v8395_v23  ;;  %v8317_v7 = vpop.f32.mrb[40].mxu0 }
 0xee5   : > { %12096 = vtanh.bf16 %v8394_v11  ;;  %v8319_v8 = vpop.f32.mrb[41].mxu0  ;;  %v8318_v61 = vadd.f32 %v8317_v7, %v14865_v3 }
 0xee6   : > { %v8321_v4 = vpop.f32.mrb[42].mxu0  ;;  %v8320_v20 = vadd.f32 %v8319_v8, %v14868_v31 }
 0xee7   : > { %v12091_v50 = vpop.eup %12090  ;;  %v8322_v5 = vadd.f32 %v8321_v4, %v14865_v3  ;;  %v8323_v60 = vpop.f32.mrb[43].mxu0 }
 0xee8   : > { %v12093_v58 = vpop.eup %12092  ;;  %v8324_v51 = vadd.f32 %v8323_v60, %v14868_v31  ;;  %8671 = vmatprep.mubr.bf16.mxu1 %v12091_v50 }
 0xee9   : > { %v8396_v37 = vpack.c.bf16 %v8322_v5, %v8318_v61  ;;  %8672 = vmatmul.mubr.bf16.gmra.mrb[20].mxu1 %v12093_v58 }
 0xeea   : > { %v8397_v49 = vpack.c.bf16 %v8324_v51, %v8320_v20 }
 0xeec   : > { %12098 = vtanh.bf16 %v8397_v49  ;;  %v8327_v53 = vpop.f32.mrb[44].mxu0 }
 0xeed   : > { %12100 = vtanh.bf16 %v8396_v37  ;;  %v8329_v21 = vpop.f32.mrb[45].mxu0  ;;  %v8328_v39 = vadd.f32 %v8327_v53, %v14865_v3 }
 0xeee   : > { %v8331_v18 = vpop.f32.mrb[46].mxu0  ;;  %v8330_v17 = vadd.f32 %v8329_v21, %v14868_v31 }
 0xeef   : > { %v12095_v38 = vpop.eup %12094  ;;  %v8332_v2 = vadd.f32 %v8331_v18, %v14865_v3  ;;  %v8333_v55 = vpop.f32.mrb[47].mxu0 }
 0xef0   : > { %v12097_v35 = vpop.eup %12096  ;;  %v8334_v56 = vadd.f32 %v8333_v55, %v14868_v31  ;;  %8679 = vmatprep.mubr.bf16.mxu1 %v12095_v38 }
 0xef1   : > { %v8398_v42 = vpack.c.bf16 %v8332_v2, %v8328_v39  ;;  %8680 = vmatmul.mubr.bf16.gmra.mrb[24].mxu1 %v12097_v35 }
 0xef2   : > { %v8399_v26 = vpack.c.bf16 %v8334_v56, %v8330_v17 }
 0xef4   : > { %12102 = vtanh.bf16 %v8399_v26  ;;  %v8337_v41 = vpop.f32.mrb[48].mxu0 }
 0xef5   : > { %12104 = vtanh.bf16 %v8398_v42  ;;  %v8339_v12 = vpop.f32.mrb[49].mxu0  ;;  %v8338_v63 = vadd.f32 %v8337_v41, %v14865_v3 }
 0xef6   : > { %v8341_v43 = vpop.f32.mrb[50].mxu0  ;;  %v8340_v44 = vadd.f32 %v8339_v12, %v14868_v31 }
 0xef7   : > { %v12099_v62 = vpop.eup %12098  ;;  %v8342_v16 = vadd.f32 %v8341_v43, %v14865_v3  ;;  %v8343_v40 = vpop.f32.mrb[51].mxu0 }
 0xef8   : > { %v12101_v9 = vpop.eup %12100  ;;  %v8344_v45 = vadd.f32 %v8343_v40, %v14868_v31  ;;  %8687 = vmatprep.mubr.bf16.mxu1 %v12099_v62 }
 0xef9   : > { %v8400_v54 = vpack.c.bf16 %v8342_v16, %v8338_v63  ;;  %8688 = vmatmul.mubr.bf16.gmra.mrb[28].mxu1 %v12101_v9 }
 0xefa   : > { %v8401_v28 = vpack.c.bf16 %v8344_v45, %v8340_v44 }
 0xefc   : > { %12106 = vtanh.bf16 %v8401_v28 }
 0xefd   : > { %v8347_v15 = vpop.f32.mrb[52].mxu0  ;;  %12108 = vtanh.bf16 %v8400_v54 }
 0xefe   : > { %v8349_v30 = vpop.f32.mrb[53].mxu0  ;;  %v8348_v52 = vadd.f32 %v8347_v15, %v14865_v3 }
 0xeff   : > { %v8351_v46 = vpop.f32.mrb[54].mxu0  ;;  %v12103_v47 = vpop.eup %12102  ;;  %v8350_v29 = vadd.f32 %v8349_v30, %v14868_v31 }
 0xf00   : > { %v8352_v36 = vadd.f32 %v8351_v46, %v14865_v3  ;;  %v8353_v59 = vpop.f32.mrb[55].mxu0  ;;  %v12105_v24 = vpop.eup %12104  ;;  %8695 = vmatprep.mubr.bf16.mxu1 %v12103_v47 }
 0xf01   : > { %v8354_v33 = vadd.f32 %v8353_v59, %v14868_v31  ;;  %8696 = vmatmul.mubr.bf16.gmra.mrb[32].mxu1 %v12105_v24 }
 0xf02   : > { %v8402_v57 = vpack.c.bf16 %v8352_v36, %v8348_v52 }
 0xf03   : > { %v8403_v19 = vpack.c.bf16 %v8354_v33, %v8350_v29 }
 0xf05   : > { %12110 = vtanh.bf16 %v8403_v19  ;;  %v8357_v0 = vpop.f32.mrb[56].mxu0 }
 0xf06   : > { %12112 = vtanh.bf16 %v8402_v57  ;;  %v8359_v25 = vpop.f32.mrb[57].mxu0  ;;  %v8358_v34 = vadd.f32 %v8357_v0, %v14865_v3 }
 0xf07   : > { %v8361_v32 = vpop.f32.mrb[58].mxu0  ;;  %v12107_v6 = vpop.eup %12106  ;;  %v8360_v10 = vadd.f32 %v8359_v25, %v14868_v31 }
 0xf08   : > { %v8362_v22 = vadd.f32 %v8361_v32, %v14865_v3  ;;  %v8363_v48 = vpop.f32.mrb[59].mxu0  ;;  %v12109_v14 = vpop.eup %12108  ;;  %8703 = vmatprep.mubr.bf16.mxu1 %v12107_v6 }
 0xf09   : > { %v8364_v1 = vadd.f32 %v8363_v48, %v14868_v31  ;;  %8704 = vmatmul.mubr.bf16.gmra.mrb[36].mxu1 %v12109_v14 }
 0xf0a   : > { %v8404_v13 = vpack.c.bf16 %v8362_v22, %v8358_v34 }
 0xf0b   : > { %v8405_v27 = vpack.c.bf16 %v8364_v1, %v8360_v10 }
 0xf0d   : > { %12114 = vtanh.bf16 %v8405_v27  ;;  %v8367_v11 = vpop.f32.mrb[60].mxu0 }
 0xf0e   : > { %12116 = vtanh.bf16 %v8404_v13  ;;  %v8369_v23 = vpop.f32.mrb[61].mxu0  ;;  %v8368_v4 = vadd.f32 %v8367_v11, %v14865_v3 }
 0xf0f   : > { %v8371_v7 = vpop.f32.mrb[62].mxu0  ;;  %v8370_v60 = vadd.f32 %v8369_v23, %v14868_v31 }
 0xf10   : > { %v12111_v8 = vpop.eup %12110  ;;  %v8372_v50 = vadd.f32 %v8371_v7, %v14865_v3  ;;  %v8373_v61 = vpop.f32.mrb[63].mxu0 }
 0xf11   : > { %v12113_v5 = vpop.eup %12112  ;;  %v8374_v58 = vadd.f32 %v8373_v61, %v14868_v31  ;;  %8711 = vmatprep.mubr.bf16.mxu1 %v12111_v8  ;;  %v14937_v31 = vld [vmem:[%s15285_s27] ss:$0 sm:$0xff] }
 0xf12   : > { %v8406_v20 = vpack.c.bf16 %v8372_v50, %v8368_v4  ;;  %8712 = vmatmul.mubr.bf16.gmra.mrb[40].mxu1 %v12113_v5 }
 0xf13   : > { %v8407_v51 = vpack.c.bf16 %v8374_v58, %v8370_v60 }
 0xf15   : > { %12118 = vtanh.bf16 %v8407_v51 }
 0xf16   : > { %12120 = vtanh.bf16 %v8406_v20 }
 0xf18   : > { %v12115_v37 = vpop.eup %12114 }
 0xf19   : > { %v12117_v49 = vpop.eup %12116  ;;  %8719 = vmatprep.mubr.bf16.mxu1 %v12115_v37 }
 0xf1a   : > { %8720 = vmatmul.mubr.bf16.gmra.mrb[44].mxu1 %v12117_v49 }
 0xf20   : > { %v12119_v53 = vpop.eup %12118 }
 0xf21   : > { %v12121_v21 = vpop.eup %12120  ;;  %8727 = vmatprep.mubr.bf16.mxu1 %v12119_v53 }
 0xf22   : > { %8728 = vmatmul.mubr.bf16.gmra.mrb[48].mxu1 %v12121_v21 }
 0xf7c   : > { %v10368_v3 = vpop.f32.mrb[64].mxu0 }
 0xf7d   : > { %v10369_v18 = vpop.f32.mrb[65].mxu0 }
 0xf7e   : > { %v10370_v38 = vadd.f32 %v10369_v18, %v10368_v3  ;;  %v10371_v39 = vpop.f32.mrb[66].mxu0 }
 0xf7f   : > { %v10372_v2 = vpop.f32.mrb[67].mxu0 }
 0xf80   : > { %v10373_v55 = vadd.f32 %v10372_v2, %v10371_v39  ;;  %v8610_v35 = vadd.f32 %v10370_v38, %v14937_v31 }
 0xf82   : > { %v8613_v17 = vadd.f32 %v10373_v55, %v14937_v31 }
 0xf84   : > { %v8736_v56 = vpack.c.bf16 %v8613_v17, %v8610_v35  ;;  %v10374_v42 = vpop.f32.mrb[68].mxu0 }
 0xf85   : > { %v10375_v26 = vpop.f32.mrb[69].mxu0 }
 0xf86   : > { %12122 = vtanh.bf16 %v8736_v56  ;;  %v10376_v41 = vadd.f32 %v10375_v26, %v10374_v42  ;;  %v10377_v12 = vpop.f32.mrb[70].mxu0 }
 0xf87   : > { %v10378_v43 = vpop.f32.mrb[71].mxu0 }
 0xf88   : > { %v10379_v62 = vadd.f32 %v10378_v43, %v10377_v12  ;;  %v8618_v63 = vadd.f32 %v10376_v41, %v14937_v31 }
 0xf8a   : > { %v8621_v16 = vadd.f32 %v10379_v62, %v14937_v31 }
 0xf8c   : > { %v8737_v40 = vpack.c.bf16 %v8621_v16, %v8618_v63  ;;  %v10380_v9 = vpop.f32.mrb[72].mxu0 }
 0xf8d   : > { %v10381_v44 = vpop.f32.mrb[73].mxu0 }
 0xf8e   : > { %12124 = vtanh.bf16 %v8737_v40  ;;  %v10382_v45 = vadd.f32 %v10381_v44, %v10380_v9  ;;  %v10383_v54 = vpop.f32.mrb[74].mxu0 }
 0xf8f   : > { %v10384_v28 = vpop.f32.mrb[75].mxu0 }
 0xf90   : > { %v10385_v15 = vadd.f32 %v10384_v28, %v10383_v54  ;;  %v8626_v46 = vadd.f32 %v10382_v45, %v14937_v31 }
 0xf91   : > { %v12123_v30 = vpop.eup %12122 }
 0xf92   : > { %v8629_v47 = vadd.f32 %v10385_v15, %v14937_v31  ;;  %v14945_v52 = vunpack.c.h.bf16 %v12123_v30  ;;  %v14947_v36 = vunpack.c.l.bf16 %v12123_v30 }
 0xf94   : > { %v8738_v59 = vpack.c.bf16 %v8629_v47, %v8626_v46  ;;  %v10386_v24 = vpop.f32.mrb[0].mxu1  ;;  %v8801_v29 = vmul.f32 %v14945_v52, %v14945_v52  ;;  %v8800_v33 = vmul.f32 %v14947_v36, %v14947_v36 }
 0xf95   : > { %v10387_v57 = vpop.f32.mrb[1].mxu1 }
 0xf96   : > { %12126 = vtanh.bf16 %v8738_v59  ;;  %v10388_v19 = vadd.f32 %v10387_v57, %v10386_v24  ;;  %v10389_v0 = vpop.f32.mrb[2].mxu1  ;;  %v8835_v25 = vsel %vm986_vm1, %v8801_v29, 0.0  ;;  %v8832_v32 = vsel %vm986_vm1, %v8800_v33, 0.0 }
 0xf97   : > { %v10390_v6 = vpop.f32.mrb[3].mxu1  ;;  %8836 = vadd.xlane.f32.xlu1 %v8835_v25  ;;  %8833 = vadd.xlane.f32.xlu0 %v8832_v32 }
 0xf98   : > { %v10391_v34 = vadd.f32 %v10390_v6, %v10389_v0  ;;  %v8634_v48 = vadd.f32 %v10388_v19, %v14937_v31 }
 0xf99   : > { %v12125_v22 = vpop.eup %12124 }
 0xf9a   : > { %v8637_v14 = vadd.f32 %v10391_v34, %v14937_v31  ;;  %v14957_v10 = vunpack.c.h.bf16 %v12125_v22  ;;  %v14959_v1 = vunpack.c.l.bf16 %v12125_v22 }
 0xf9c   : > { %v8739_v13 = vpack.c.bf16 %v8637_v14, %v8634_v48  ;;  %v10392_v27 = vpop.f32.mrb[4].mxu1  ;;  %v8803_v11 = vmul.f32 %v14957_v10, %v14957_v10  ;;  %v8802_v23 = vmul.f32 %v14959_v1, %v14959_v1 }
 0xf9d   : > { %v10393_v7 = vpop.f32.mrb[5].mxu1 }
 0xf9e   : > { %12128 = vtanh.bf16 %v8739_v13  ;;  %v10394_v8 = vadd.f32 %v10393_v7, %v10392_v27  ;;  %v10395_v4 = vpop.f32.mrb[6].mxu1  ;;  %v8841_v50 = vsel %vm986_vm1, %v8803_v11, 0.0  ;;  %v8838_v61 = vsel %vm986_vm1, %v8802_v23, 0.0 }
 0xf9f   : > { %v10396_v5 = vpop.f32.mrb[7].mxu1  ;;  %8842 = vadd.xlane.f32.xlu1 %v8841_v50  ;;  %8839 = vadd.xlane.f32.xlu0 %v8838_v61 }
 0xfa0   : > { %v10397_v60 = vadd.f32 %v10396_v5, %v10395_v4  ;;  %v8642_v20 = vadd.f32 %v10394_v8, %v14937_v31 }
 0xfa1   : > { %v12127_v58 = vpop.eup %12126 }
 0xfa2   : > { %v8645_v51 = vadd.f32 %v10397_v60, %v14937_v31  ;;  %v14969_v37 = vunpack.c.h.bf16 %v12127_v58  ;;  %v14971_v49 = vunpack.c.l.bf16 %v12127_v58 }
 0xfa4   : > { %v8740_v53 = vpack.c.bf16 %v8645_v51, %v8642_v20  ;;  %v10398_v21 = vpop.f32.mrb[8].mxu1  ;;  %v8805_v3 = vmul.f32 %v14969_v37, %v14969_v37  ;;  %v8804_v18 = vmul.f32 %v14971_v49, %v14971_v49 }
 0xfa5   : > { %v10399_v38 = vpop.f32.mrb[9].mxu1 }
 0xfa6   : > { %12130 = vtanh.bf16 %v8740_v53  ;;  %v10400_v39 = vadd.f32 %v10399_v38, %v10398_v21  ;;  %v10401_v2 = vpop.f32.mrb[10].mxu1  ;;  %v8847_v55 = vsel %vm986_vm1, %v8805_v3, 0.0  ;;  %v8844_v35 = vsel %vm986_vm1, %v8804_v18, 0.0 }
 0xfa7   : > { %v10402_v17 = vpop.f32.mrb[11].mxu1  ;;  %8848 = vadd.xlane.f32.xlu1 %v8847_v55  ;;  %8845 = vadd.xlane.f32.xlu0 %v8844_v35 }
 0xfa8   : > { %v10403_v56 = vadd.f32 %v10402_v17, %v10401_v2  ;;  %v8650_v26 = vadd.f32 %v10400_v39, %v14937_v31 }
 0xfa9   : > { %v12129_v42 = vpop.eup %12128 }
 0xfaa   : > { %v8653_v41 = vadd.f32 %v10403_v56, %v14937_v31  ;;  %v14981_v12 = vunpack.c.h.bf16 %v12129_v42  ;;  %v14983_v43 = vunpack.c.l.bf16 %v12129_v42 }
 0xfac   : > { %v8741_v62 = vpack.c.bf16 %v8653_v41, %v8650_v26  ;;  %v10404_v63 = vpop.f32.mrb[12].mxu1  ;;  %v8807_v16 = vmul.f32 %v14981_v12, %v14981_v12  ;;  %v8806_v40 = vmul.f32 %v14983_v43, %v14983_v43 }
 0xfad   : > { %v10405_v9 = vpop.f32.mrb[13].mxu1 }
 0xfae   : > { %12132 = vtanh.bf16 %v8741_v62  ;;  %v10406_v44 = vadd.f32 %v10405_v9, %v10404_v63  ;;  %v10407_v45 = vpop.f32.mrb[14].mxu1  ;;  %v8853_v54 = vsel %vm986_vm1, %v8807_v16, 0.0  ;;  %v8850_v28 = vsel %vm986_vm1, %v8806_v40, 0.0 }
 0xfaf   : > { %v10408_v15 = vpop.f32.mrb[15].mxu1  ;;  %8854 = vadd.xlane.f32.xlu1 %v8853_v54  ;;  %8851 = vadd.xlane.f32.xlu0 %v8850_v28 }
 0xfb0   : > { %v10409_v30 = vadd.f32 %v10408_v15, %v10407_v45  ;;  %v8658_v47 = vadd.f32 %v10406_v44, %v14937_v31 }
 0xfb1   : > { %v12131_v46 = vpop.eup %12130 }
 0xfb2   : > { %v8661_v59 = vadd.f32 %v10409_v30, %v14937_v31  ;;  %v14993_v24 = vunpack.c.h.bf16 %v12131_v46  ;;  %v14995_v29 = vunpack.c.l.bf16 %v12131_v46 }
 0xfb4   : > { %v8742_v33 = vpack.c.bf16 %v8661_v59, %v8658_v47  ;;  %v10410_v57 = vpop.f32.mrb[16].mxu1  ;;  %v8809_v19 = vmul.f32 %v14993_v24, %v14993_v24  ;;  %v8808_v0 = vmul.f32 %v14995_v29, %v14995_v29 }
 0xfb5   : > { %v10411_v25 = vpop.f32.mrb[17].mxu1 }
 0xfb6   : > { %12134 = vtanh.bf16 %v8742_v33  ;;  %v10412_v32 = vadd.f32 %v10411_v25, %v10410_v57  ;;  %v10413_v6 = vpop.f32.mrb[18].mxu1  ;;  %v8859_v34 = vsel %vm986_vm1, %v8809_v19, 0.0  ;;  %v8856_v22 = vsel %vm986_vm1, %v8808_v0, 0.0 }
 0xfb7   : > { %v10414_v48 = vpop.f32.mrb[19].mxu1  ;;  %8860 = vadd.xlane.f32.xlu1 %v8859_v34  ;;  %8857 = vadd.xlane.f32.xlu0 %v8856_v22 }
 0xfb8   : > { %v10415_v14 = vadd.f32 %v10414_v48, %v10413_v6  ;;  %v8666_v27 = vadd.f32 %v10412_v32, %v14937_v31 }
 0xfb9   : > { %v12133_v13 = vpop.eup %12132 }
 0xfba   : > { %v8669_v11 = vadd.f32 %v10415_v14, %v14937_v31  ;;  %v15005_v23 = vunpack.c.h.bf16 %v12133_v13  ;;  %v15007_v7 = vunpack.c.l.bf16 %v12133_v13 }
 0xfbc   : > { %v8743_v8 = vpack.c.bf16 %v8669_v11, %v8666_v27  ;;  %v10416_v4 = vpop.f32.mrb[20].mxu1  ;;  %v8811_v50 = vmul.f32 %v15005_v23, %v15005_v23  ;;  %v8810_v61 = vmul.f32 %v15007_v7, %v15007_v7 }
 0xfbd   : > { %v10417_v5 = vpop.f32.mrb[21].mxu1 }
 0xfbe   : > { %12136 = vtanh.bf16 %v8743_v8  ;;  %v10418_v60 = vadd.f32 %v10417_v5, %v10416_v4  ;;  %v10419_v58 = vpop.f32.mrb[22].mxu1  ;;  %v8865_v20 = vsel %vm986_vm1, %v8811_v50, 0.0  ;;  %v8862_v51 = vsel %vm986_vm1, %v8810_v61, 0.0 }
 0xfbf   : > { %v10420_v53 = vpop.f32.mrb[23].mxu1  ;;  %8866 = vadd.xlane.f32.xlu1 %v8865_v20  ;;  %8863 = vadd.xlane.f32.xlu0 %v8862_v51 }
 0xfc0   : > { %v10421_v21 = vadd.f32 %v10420_v53, %v10419_v58  ;;  %v8674_v18 = vadd.f32 %v10418_v60, %v14937_v31 }
 0xfc1   : > { %v12135_v3 = vpop.eup %12134 }
 0xfc2   : > { %v8677_v38 = vadd.f32 %v10421_v21, %v14937_v31  ;;  %v15017_v39 = vunpack.c.h.bf16 %v12135_v3  ;;  %v15019_v2 = vunpack.c.l.bf16 %v12135_v3 }
 0xfc4   : > { %v8744_v55 = vpack.c.bf16 %v8677_v38, %v8674_v18  ;;  %v10422_v35 = vpop.f32.mrb[24].mxu1  ;;  %v8813_v17 = vmul.f32 %v15017_v39, %v15017_v39  ;;  %v8812_v56 = vmul.f32 %v15019_v2, %v15019_v2 }
 0xfc5   : > { %v10423_v42 = vpop.f32.mrb[25].mxu1 }
 0xfc6   : > { %12138 = vtanh.bf16 %v8744_v55  ;;  %v10424_v26 = vadd.f32 %v10423_v42, %v10422_v35  ;;  %v10425_v41 = vpop.f32.mrb[26].mxu1  ;;  %v8871_v62 = vsel %vm986_vm1, %v8813_v17, 0.0  ;;  %v8868_v63 = vsel %vm986_vm1, %v8812_v56, 0.0 }
 0xfc7   : > { %v10426_v16 = vpop.f32.mrb[27].mxu1  ;;  %8872 = vadd.xlane.f32.xlu1 %v8871_v62  ;;  %8869 = vadd.xlane.f32.xlu0 %v8868_v63 }
 0xfc8   : > { %v10427_v40 = vadd.f32 %v10426_v16, %v10425_v41  ;;  %v8682_v44 = vadd.f32 %v10424_v26, %v14937_v31 }
 0xfc9   : > { %v12137_v9 = vpop.eup %12136 }
 0xfca   : > { %v8685_v45 = vadd.f32 %v10427_v40, %v14937_v31  ;;  %v15029_v54 = vunpack.c.h.bf16 %v12137_v9  ;;  %v15031_v28 = vunpack.c.l.bf16 %v12137_v9 }
 0xfcc   : > { %v8745_v15 = vpack.c.bf16 %v8685_v45, %v8682_v44  ;;  %v10428_v30 = vpop.f32.mrb[28].mxu1  ;;  %v8815_v46 = vmul.f32 %v15029_v54, %v15029_v54  ;;  %v8814_v47 = vmul.f32 %v15031_v28, %v15031_v28 }
 0xfcd   : > { %v10429_v59 = vpop.f32.mrb[29].mxu1 }
 0xfce   : > { %12140 = vtanh.bf16 %v8745_v15  ;;  %v10430_v33 = vadd.f32 %v10429_v59, %v10428_v30  ;;  %v10431_v57 = vpop.f32.mrb[30].mxu1  ;;  %v8877_v19 = vsel %vm986_vm1, %v8815_v46, 0.0  ;;  %v8874_v0 = vsel %vm986_vm1, %v8814_v47, 0.0 }
 0xfcf   : > { %v10432_v25 = vpop.f32.mrb[31].mxu1  ;;  %8878 = vadd.xlane.f32.xlu1 %v8877_v19  ;;  %8875 = vadd.xlane.f32.xlu0 %v8874_v0 }
 0xfd0   : > { %v10433_v32 = vadd.f32 %v10432_v25, %v10431_v57  ;;  %v8690_v34 = vadd.f32 %v10430_v33, %v14937_v31 }
 0xfd1   : > { %v12139_v6 = vpop.eup %12138 }
 0xfd2   : > { %v8693_v22 = vadd.f32 %v10433_v32, %v14937_v31  ;;  %v15041_v48 = vunpack.c.h.bf16 %v12139_v6  ;;  %v15043_v14 = vunpack.c.l.bf16 %v12139_v6 }
 0xfd4   : > { %v8746_v13 = vpack.c.bf16 %v8693_v22, %v8690_v34  ;;  %v10434_v27 = vpop.f32.mrb[32].mxu1  ;;  %v8817_v11 = vmul.f32 %v15041_v48, %v15041_v48  ;;  %v8816_v8 = vmul.f32 %v15043_v14, %v15043_v14 }
 0xfd5   : > { %v10435_v4 = vpop.f32.mrb[33].mxu1 }
 0xfd6   : > { %12142 = vtanh.bf16 %v8746_v13  ;;  %v10436_v50 = vadd.f32 %v10435_v4, %v10434_v27  ;;  %v10437_v61 = vpop.f32.mrb[34].mxu1  ;;  %v8883_v5 = vsel %vm986_vm1, %v8817_v11, 0.0  ;;  %v8880_v60 = vsel %vm986_vm1, %v8816_v8, 0.0 }
 0xfd7   : > { %v10438_v58 = vpop.f32.mrb[35].mxu1  ;;  %8884 = vadd.xlane.f32.xlu1 %v8883_v5  ;;  %8881 = vadd.xlane.f32.xlu0 %v8880_v60 }
 0xfd8   : > { %v10439_v20 = vadd.f32 %v10438_v58, %v10437_v61  ;;  %v8698_v53 = vadd.f32 %v10436_v50, %v14937_v31 }
 0xfd9   : > { %v12141_v51 = vpop.eup %12140 }
 0xfda   : > { %v8701_v21 = vadd.f32 %v10439_v20, %v14937_v31  ;;  %v15053_v3 = vunpack.c.h.bf16 %v12141_v51  ;;  %v15055_v18 = vunpack.c.l.bf16 %v12141_v51 }
 0xfdc   : > { %v8747_v38 = vpack.c.bf16 %v8701_v21, %v8698_v53  ;;  %v10440_v55 = vpop.f32.mrb[36].mxu1  ;;  %v8819_v35 = vmul.f32 %v15053_v3, %v15053_v3  ;;  %v8818_v17 = vmul.f32 %v15055_v18, %v15055_v18 }
 0xfdd   : > { %v10441_v56 = vpop.f32.mrb[37].mxu1 }
 0xfde   : > { %12144 = vtanh.bf16 %v8747_v38  ;;  %v10442_v42 = vadd.f32 %v10441_v56, %v10440_v55  ;;  %v10443_v26 = vpop.f32.mrb[38].mxu1  ;;  %v8889_v41 = vsel %vm986_vm1, %v8819_v35, 0.0  ;;  %v8886_v62 = vsel %vm986_vm1, %v8818_v17, 0.0 }
 0xfdf   : > { %v10444_v63 = vpop.f32.mrb[39].mxu1  ;;  %8890 = vadd.xlane.f32.xlu1 %v8889_v41  ;;  %8887 = vadd.xlane.f32.xlu0 %v8886_v62 }
 0xfe0   : > { %v10445_v16 = vadd.f32 %v10444_v63, %v10443_v26  ;;  %v8706_v9 = vadd.f32 %v10442_v42, %v14937_v31 }
 0xfe1   : > { %v12143_v40 = vpop.eup %12142 }
 0xfe2   : > { %v8709_v44 = vadd.f32 %v10445_v16, %v14937_v31  ;;  %v15065_v45 = vunpack.c.h.bf16 %v12143_v40  ;;  %v15067_v15 = vunpack.c.l.bf16 %v12143_v40 }
 0xfe4   : > { %v8748_v30 = vpack.c.bf16 %v8709_v44, %v8706_v9  ;;  %v8821_v47 = vmul.f32 %v15065_v45, %v15065_v45  ;;  %v8820_v59 = vmul.f32 %v15067_v15, %v15067_v15 }
 0xfe5   : > { %v10446_v46 = vpop.f32.mrb[40].mxu1 }
 0xfe6   : > { %v10447_v33 = vpop.f32.mrb[41].mxu1  ;;  %12146 = vtanh.bf16 %v8748_v30  ;;  %v8895_v0 = vsel %vm986_vm1, %v8821_v47, 0.0  ;;  %v8892_v25 = vsel %vm986_vm1, %v8820_v59, 0.0 }
 0xfe7   : > { %v10448_v57 = vadd.f32 %v10447_v33, %v10446_v46  ;;  %v10449_v19 = vpop.f32.mrb[42].mxu1  ;;  %8896 = vadd.xlane.f32.xlu1 %v8895_v0  ;;  %8893 = vadd.xlane.f32.xlu0 %v8892_v25 }
 0xfe8   : > { %v10450_v32 = vpop.f32.mrb[43].mxu1 }
 0xfe9   : > { %v10451_v6 = vadd.f32 %v10450_v32, %v10449_v19  ;;  %v12145_v34 = vpop.eup %12144  ;;  %v8714_v22 = vadd.f32 %v10448_v57, %v14937_v31 }
 0xfea   : > { %v15077_v27 = vunpack.c.h.bf16 %v12145_v34  ;;  %v15079_v11 = vunpack.c.l.bf16 %v12145_v34 }
 0xfeb   : > { %v8717_v13 = vadd.f32 %v10451_v6, %v14937_v31 }
 0xfec   : > { %v8823_v50 = vmul.f32 %v15077_v27, %v15077_v27  ;;  %v8822_v61 = vmul.f32 %v15079_v11, %v15079_v11 }
 0xfed   : > { %v8749_v8 = vpack.c.bf16 %v8717_v13, %v8714_v22  ;;  %v10452_v4 = vpop.f32.mrb[44].mxu1 }
 0xfee   : > { %v10453_v5 = vpop.f32.mrb[45].mxu1  ;;  %v8901_v20 = vsel %vm986_vm1, %v8823_v50, 0.0  ;;  %v8898_v51 = vsel %vm986_vm1, %v8822_v61, 0.0 }
 0xfef   : > { %12148 = vtanh.bf16 %v8749_v8  ;;  %v10454_v60 = vadd.f32 %v10453_v5, %v10452_v4  ;;  %v10455_v58 = vpop.f32.mrb[46].mxu1  ;;  %8902 = vadd.xlane.f32.xlu1 %v8901_v20  ;;  %8899 = vadd.xlane.f32.xlu0 %v8898_v51 }
 0xff0   : > { %v10456_v53 = vpop.f32.mrb[47].mxu1 }
 0xff1   : > { %v10457_v21 = vadd.f32 %v10456_v53, %v10455_v58  ;;  %v12147_v38 = vpop.eup %12146  ;;  %v8722_v55 = vadd.f32 %v10454_v60, %v14937_v31 }
 0xff2   : > { %v15089_v17 = vunpack.c.h.bf16 %v12147_v38  ;;  %v15091_v56 = vunpack.c.l.bf16 %v12147_v38 }
 0xff3   : > { %v8725_v35 = vadd.f32 %v10457_v21, %v14937_v31 }
 0xff4   : > { %v8825_v41 = vmul.f32 %v15089_v17, %v15089_v17  ;;  %v8824_v62 = vmul.f32 %v15091_v56, %v15091_v56 }
 0xff5   : > { %v8750_v42 = vpack.c.bf16 %v8725_v35, %v8722_v55  ;;  %v10458_v26 = vpop.f32.mrb[48].mxu1 }
 0xff6   : > { %v10459_v63 = vpop.f32.mrb[49].mxu1  ;;  %v8907_v9 = vsel %vm986_vm1, %v8825_v41, 0.0  ;;  %v8904_v44 = vsel %vm986_vm1, %v8824_v62, 0.0 }
 0xff7   : > { %12150 = vtanh.bf16 %v8750_v42  ;;  %v10460_v16 = vadd.f32 %v10459_v63, %v10458_v26  ;;  %v10461_v40 = vpop.f32.mrb[50].mxu1  ;;  %8908 = vadd.xlane.f32.xlu1 %v8907_v9  ;;  %8905 = vadd.xlane.f32.xlu0 %v8904_v44 }
 0xff8   : > { %v10462_v30 = vpop.f32.mrb[51].mxu1 }
 0xff9   : > { %v10463_v46 = vadd.f32 %v10462_v30, %v10461_v40  ;;  %v8730_v59 = vadd.f32 %v10460_v16, %v14937_v31 }
 0xffa   : > { %v12149_v47 = vpop.eup %12148 }
 0xffb   : > { %v8733_v33 = vadd.f32 %v10463_v46, %v14937_v31  ;;  %v15101_v57 = vunpack.c.h.bf16 %v12149_v47  ;;  %v15103_v19 = vunpack.c.l.bf16 %v12149_v47 }
 0xffd   : > { %v8751_v0 = vpack.c.bf16 %v8733_v33, %v8730_v59  ;;  %v8827_v25 = vmul.f32 %v15101_v57, %v15101_v57  ;;  %v8826_v32 = vmul.f32 %v15103_v19, %v15103_v19 }
 0xfff   : > { %12152 = vtanh.bf16 %v8751_v0  ;;  %v8913_v6 = vsel %vm986_vm1, %v8827_v25, 0.0  ;;  %v8910_v34 = vsel %vm986_vm1, %v8826_v32, 0.0 }
0x1000   : > { %8914 = vadd.xlane.f32.xlu1 %v8913_v6  ;;  %8911 = vadd.xlane.f32.xlu0 %v8910_v34 }
0x1002   : > { %v12151_v22 = vpop.eup %12150 }
0x1003   : > { %v15111_v31 = vunpack.c.h.bf16 %v12151_v22  ;;  %v15113_v13 = vunpack.c.l.bf16 %v12151_v22 }
0x1005   : > { %v8829_v8 = vmul.f32 %v15111_v31, %v15111_v31  ;;  %v8828_v4 = vmul.f32 %v15113_v13, %v15113_v13 }
0x1007   : > { %v8919_v50 = vsel %vm986_vm1, %v8829_v8, 0.0  ;;  %v8916_v61 = vsel %vm986_vm1, %v8828_v4, 0.0 }
0x1008   : > { %8920 = vadd.xlane.f32.xlu1 %v8919_v50  ;;  %8917 = vadd.xlane.f32.xlu0 %v8916_v61 }
0x100a   : > { %v12153_v5 = vpop.eup %12152 }
0x100b   : > { %v15121_v60 = vunpack.c.h.bf16 %v12153_v5  ;;  %v15123_v58 = vunpack.c.l.bf16 %v12153_v5 }
0x100d   : > { %v8831_v20 = vmul.f32 %v15121_v60, %v15121_v60  ;;  %v8830_v51 = vmul.f32 %v15123_v58, %v15123_v58 }
0x100f   : > { %v8925_v53 = vsel %vm986_vm1, %v8831_v20, 0.0  ;;  %v8922_v21 = vsel %vm986_vm1, %v8830_v51, 0.0 }
0x1010   : > { %8926 = vadd.xlane.f32.xlu1 %v8925_v53  ;;  %8923 = vadd.xlane.f32.xlu0 %v8922_v21 }
0x1024   : > { %v8837_v38 = vpop.xlane.xlu1 %8836  ;;  %v8834_v55 = vpop.xlane.xlu0 %8833 }
0x1025   : > { %v8929_v35 = vmax.f32 %v8837_v38, 1.1920929e-07  ;;  %v8928_v42 = vmax.f32 %v8834_v55, 1.1920929e-07 }
0x1027   : > { %12154 = vrsqrt.f32 %v8929_v35 }
0x1028   : > { %12156 = vrsqrt.f32 %v8928_v42 }
0x102c   : > { %v8843_v26 = vpop.xlane.xlu1 %8842  ;;  %v8840_v41 = vpop.xlane.xlu0 %8839 }
0x102d   : > { %v8931_v62 = vmax.f32 %v8843_v26, 1.1920929e-07  ;;  %v8930_v63 = vmax.f32 %v8840_v41, 1.1920929e-07 }
0x102f   : > { %12158 = vrsqrt.f32 %v8931_v62 }
0x1030   : > { %12160 = vrsqrt.f32 %v8930_v63 }
0x1031   : > { %v12155_v16 = vpop.eup %12154 }
0x1032   : > { %v12157_v40 = vpop.eup %12156  ;;  %v8993_v9 = vmul.f32 %v12155_v16, %v14945_v52 }
0x1033   : > { %v8992_v44 = vmul.f32 %v12157_v40, %v14947_v36 }
0x1034   : > { %v9025_v30 = vmul.f32 1.002, %v8993_v9  ;;  %v8849_v46 = vpop.xlane.xlu1 %8848  ;;  %v8846_v47 = vpop.xlane.xlu0 %8845 }
0x1035   : > { %v9024_v59 = vmul.f32 1.002, %v8992_v44  ;;  %v8933_v33 = vmax.f32 %v8849_v46, 1.1920929e-07  ;;  %v8932_v0 = vmax.f32 %v8846_v47, 1.1920929e-07 }
0x1036   : > { %v9759_v25 = vadd.f32 -0.001, %v9025_v30 }
0x1037   : > { %v9758_v32 = vadd.f32 -0.001, %v9024_v59  ;;  %12162 = vrsqrt.f32 %v8933_v33 }
0x1038   : > { %9089 = vst.msk [vmem:[%s14237_s28 + $0x108] sm:$0xff] %vm986_vm1, %v9759_v25  ;;  %12164 = vrsqrt.f32 %v8932_v0 }
0x1039   : > { %v12159_v6 = vpop.eup %12158  ;;  %9088 = vst.msk [vmem:[%s14237_s28 + $0x100] sm:$0xff] %vm986_vm1, %v9758_v32 }
0x103a   : > { %v12161_v52 = vpop.eup %12160  ;;  %v8995_v36 = vmul.f32 %v12159_v6, %v14957_v10 }
0x103b   : > { %v8994_v34 = vmul.f32 %v12161_v52, %v14959_v1 }
0x103c   : > { %v9027_v22 = vmul.f32 1.002, %v8995_v36  ;;  %v8855_v8 = vpop.xlane.xlu1 %8854  ;;  %v8852_v4 = vpop.xlane.xlu0 %8851 }
0x103d   : > { %v9026_v50 = vmul.f32 1.002, %v8994_v34  ;;  %v8935_v61 = vmax.f32 %v8855_v8, 1.1920929e-07  ;;  %v8934_v5 = vmax.f32 %v8852_v4, 1.1920929e-07 }
0x103e   : > { %v9761_v20 = vadd.f32 -0.001, %v9027_v22 }
0x103f   : > { %v9760_v51 = vadd.f32 -0.001, %v9026_v50  ;;  %12166 = vrsqrt.f32 %v8935_v61 }
0x1040   : > { %9091 = vst.msk [vmem:[%s14237_s28 + $0x118] sm:$0xff] %vm986_vm1, %v9761_v20  ;;  %12168 = vrsqrt.f32 %v8934_v5 }
0x1041   : > { %v12163_v53 = vpop.eup %12162  ;;  %9090 = vst.msk [vmem:[%s14237_s28 + $0x110] sm:$0xff] %vm986_vm1, %v9760_v51 }
0x1042   : > { %v12165_v10 = vpop.eup %12164  ;;  %v8997_v1 = vmul.f32 %v12163_v53, %v14969_v37 }
0x1043   : > { %v8996_v21 = vmul.f32 %v12165_v10, %v14971_v49 }
0x1044   : > { %v9029_v38 = vmul.f32 1.002, %v8997_v1  ;;  %v8861_v55 = vpop.xlane.xlu1 %8860  ;;  %v8858_v35 = vpop.xlane.xlu0 %8857 }
0x1045   : > { %v9028_v42 = vmul.f32 1.002, %v8996_v21  ;;  %v8937_v26 = vmax.f32 %v8861_v55, 1.1920929e-07  ;;  %v8936_v41 = vmax.f32 %v8858_v35, 1.1920929e-07 }
0x1046   : > { %v9763_v62 = vadd.f32 -0.001, %v9029_v38 }
0x1047   : > { %v9762_v63 = vadd.f32 -0.001, %v9028_v42  ;;  %12170 = vrsqrt.f32 %v8937_v26 }
0x1048   : > { %9093 = vst.msk [vmem:[%s14237_s28 + $0x128] sm:$0xff] %vm986_vm1, %v9763_v62  ;;  %12172 = vrsqrt.f32 %v8936_v41 }
0x1049   : > { %v12167_v16 = vpop.eup %12166  ;;  %9092 = vst.msk [vmem:[%s14237_s28 + $0x120] sm:$0xff] %vm986_vm1, %v9762_v63 }
0x104a   : > { %v12169_v37 = vpop.eup %12168  ;;  %v8999_v49 = vmul.f32 %v12167_v16, %v14981_v12 }
0x104b   : > { %v8998_v40 = vmul.f32 %v12169_v37, %v14983_v43 }
0x104c   : > { %v9031_v9 = vmul.f32 1.002, %v8999_v49  ;;  %v8867_v44 = vpop.xlane.xlu1 %8866  ;;  %v8864_v30 = vpop.xlane.xlu0 %8863 }
0x104d   : > { %v9030_v46 = vmul.f32 1.002, %v8998_v40  ;;  %v8939_v47 = vmax.f32 %v8867_v44, 1.1920929e-07  ;;  %v8938_v59 = vmax.f32 %v8864_v30, 1.1920929e-07 }
0x104e   : > { %v9765_v33 = vadd.f32 -0.001, %v9031_v9 }
0x104f   : > { %v9764_v0 = vadd.f32 -0.001, %v9030_v46  ;;  %12174 = vrsqrt.f32 %v8939_v47 }
0x1050   : > { %9095 = vst.msk [vmem:[%s14237_s28 + $0x138] sm:$0xff] %vm986_vm1, %v9765_v33  ;;  %12176 = vrsqrt.f32 %v8938_v59 }
0x1051   : > { %v12171_v25 = vpop.eup %12170  ;;  %9094 = vst.msk [vmem:[%s14237_s28 + $0x130] sm:$0xff] %vm986_vm1, %v9764_v0 }
0x1052   : > { %v12173_v12 = vpop.eup %12172  ;;  %v9001_v43 = vmul.f32 %v12171_v25, %v14993_v24 }
0x1053   : > { %v9000_v32 = vmul.f32 %v12173_v12, %v14995_v29 }
0x1054   : > { %v9033_v6 = vmul.f32 1.002, %v9001_v43  ;;  %v8873_v52 = vpop.xlane.xlu1 %8872  ;;  %v8870_v36 = vpop.xlane.xlu0 %8869 }
0x1055   : > { %v9032_v34 = vmul.f32 1.002, %v9000_v32  ;;  %v8941_v22 = vmax.f32 %v8873_v52, 1.1920929e-07  ;;  %v8940_v8 = vmax.f32 %v8870_v36, 1.1920929e-07 }
0x1056   : > { %v9767_v4 = vadd.f32 -0.001, %v9033_v6 }
0x1057   : > { %v9766_v50 = vadd.f32 -0.001, %v9032_v34  ;;  %12178 = vrsqrt.f32 %v8941_v22 }
0x1058   : > { %9097 = vst.msk [vmem:[%s14237_s28 + $0x148] sm:$0xff] %vm986_vm1, %v9767_v4  ;;  %12180 = vrsqrt.f32 %v8940_v8 }
0x1059   : > { %v12175_v61 = vpop.eup %12174  ;;  %9096 = vst.msk [vmem:[%s14237_s28 + $0x140] sm:$0xff] %vm986_vm1, %v9766_v50 }
0x105a   : > { %v12177_v24 = vpop.eup %12176  ;;  %v9003_v29 = vmul.f32 %v12175_v61, %v15005_v23 }
0x105b   : > { %v9002_v5 = vmul.f32 %v12177_v24, %v15007_v7 }
0x105c   : > { %v9035_v20 = vmul.f32 1.002, %v9003_v29  ;;  %v8879_v51 = vpop.xlane.xlu1 %8878  ;;  %v8876_v53 = vpop.xlane.xlu0 %8875 }
0x105d   : > { %v9034_v10 = vmul.f32 1.002, %v9002_v5  ;;  %v8943_v1 = vmax.f32 %v8879_v51, 1.1920929e-07  ;;  %v8942_v21 = vmax.f32 %v8876_v53, 1.1920929e-07 }
0x105e   : > { %v9769_v38 = vadd.f32 -0.001, %v9035_v20 }
0x105f   : > { %v9768_v55 = vadd.f32 -0.001, %v9034_v10  ;;  %12182 = vrsqrt.f32 %v8943_v1 }
0x1060   : > { %9099 = vst.msk [vmem:[%s14237_s28 + $0x158] sm:$0xff] %vm986_vm1, %v9769_v38  ;;  %12184 = vrsqrt.f32 %v8942_v21 }
0x1061   : > { %v12179_v35 = vpop.eup %12178  ;;  %9098 = vst.msk [vmem:[%s14237_s28 + $0x150] sm:$0xff] %vm986_vm1, %v9768_v55 }
0x1062   : > { %v12181_v23 = vpop.eup %12180  ;;  %v9005_v7 = vmul.f32 %v12179_v35, %v15017_v39 }
0x1063   : > { %v9004_v42 = vmul.f32 %v12181_v23, %v15019_v2 }
0x1064   : > { %v9037_v26 = vmul.f32 1.002, %v9005_v7  ;;  %v8885_v41 = vpop.xlane.xlu1 %8884  ;;  %v8882_v62 = vpop.xlane.xlu0 %8881 }
0x1065   : > { %v9036_v63 = vmul.f32 1.002, %v9004_v42  ;;  %v8945_v16 = vmax.f32 %v8885_v41, 1.1920929e-07  ;;  %v8944_v37 = vmax.f32 %v8882_v62, 1.1920929e-07 }
0x1066   : > { %v9771_v49 = vadd.f32 -0.001, %v9037_v26 }
0x1067   : > { %v9770_v40 = vadd.f32 -0.001, %v9036_v63  ;;  %12186 = vrsqrt.f32 %v8945_v16 }
0x1068   : > { %9101 = vst.msk [vmem:[%s14237_s28 + $0x168] sm:$0xff] %vm986_vm1, %v9771_v49  ;;  %12188 = vrsqrt.f32 %v8944_v37 }
0x1069   : > { %v12183_v9 = vpop.eup %12182  ;;  %9100 = vst.msk [vmem:[%s14237_s28 + $0x160] sm:$0xff] %vm986_vm1, %v9770_v40 }
0x106a   : > { %v12185_v39 = vpop.eup %12184  ;;  %v9007_v2 = vmul.f32 %v12183_v9, %v15029_v54 }
0x106b   : > { %v9006_v44 = vmul.f32 %v12185_v39, %v15031_v28 }
0x106c   : > { %v9039_v30 = vmul.f32 1.002, %v9007_v2  ;;  %v8891_v46 = vpop.xlane.xlu1 %8890  ;;  %v8888_v47 = vpop.xlane.xlu0 %8887 }
0x106d   : > { %v9038_v59 = vmul.f32 1.002, %v9006_v44  ;;  %v8947_v33 = vmax.f32 %v8891_v46, 1.1920929e-07  ;;  %v8946_v0 = vmax.f32 %v8888_v47, 1.1920929e-07 }
0x106e   : > { %v9773_v25 = vadd.f32 -0.001, %v9039_v30 }
0x106f   : > { %v9772_v12 = vadd.f32 -0.001, %v9038_v59  ;;  %12190 = vrsqrt.f32 %v8947_v33 }
0x1070   : > { %9103 = vst.msk [vmem:[%s14237_s28 + $0x178] sm:$0xff] %vm986_vm1, %v9773_v25  ;;  %12192 = vrsqrt.f32 %v8946_v0 }
0x1071   : > { %v12187_v43 = vpop.eup %12186  ;;  %9102 = vst.msk [vmem:[%s14237_s28 + $0x170] sm:$0xff] %vm986_vm1, %v9772_v12 }
0x1072   : > { %v12189_v54 = vpop.eup %12188  ;;  %v9009_v28 = vmul.f32 %v12187_v43, %v15041_v48 }
0x1073   : > { %v9008_v32 = vmul.f32 %v12189_v54, %v15043_v14 }
0x1074   : > { %v9041_v6 = vmul.f32 1.002, %v9009_v28  ;;  %v8897_v52 = vpop.xlane.xlu1 %8896  ;;  %v8894_v36 = vpop.xlane.xlu0 %8893 }
0x1075   : > { %v9040_v34 = vmul.f32 1.002, %v9008_v32  ;;  %v8949_v22 = vmax.f32 %v8897_v52, 1.1920929e-07  ;;  %v8948_v8 = vmax.f32 %v8894_v36, 1.1920929e-07 }
0x1076   : > { %v9775_v4 = vadd.f32 -0.001, %v9041_v6 }
0x1077   : > { %v9774_v50 = vadd.f32 -0.001, %v9040_v34  ;;  %12194 = vrsqrt.f32 %v8949_v22 }
0x1078   : > { %9105 = vst.msk [vmem:[%s14237_s28 + $0x188] sm:$0xff] %vm986_vm1, %v9775_v4  ;;  %12196 = vrsqrt.f32 %v8948_v8 }
0x1079   : > { %v12191_v61 = vpop.eup %12190  ;;  %9104 = vst.msk [vmem:[%s14237_s28 + $0x180] sm:$0xff] %vm986_vm1, %v9774_v50 }
0x107a   : > { %v12193_v48 = vpop.eup %12192  ;;  %v9011_v14 = vmul.f32 %v12191_v61, %v15053_v3 }
0x107b   : > { %v9010_v24 = vmul.f32 %v12193_v48, %v15055_v18 }
0x107c   : > { %v9043_v29 = vmul.f32 1.002, %v9011_v14  ;;  %v8903_v5 = vpop.xlane.xlu1 %8902  ;;  %v8900_v20 = vpop.xlane.xlu0 %8899 }
0x107d   : > { %v9042_v51 = vmul.f32 1.002, %v9010_v24  ;;  %v8951_v53 = vmax.f32 %v8903_v5, 1.1920929e-07  ;;  %v8950_v10 = vmax.f32 %v8900_v20, 1.1920929e-07 }
0x107e   : > { %v9777_v1 = vadd.f32 -0.001, %v9043_v29 }
0x107f   : > { %v9776_v21 = vadd.f32 -0.001, %v9042_v51  ;;  %12198 = vrsqrt.f32 %v8951_v53 }
0x1080   : > { %9107 = vst.msk [vmem:[%s14237_s28 + $0x198] sm:$0xff] %vm986_vm1, %v9777_v1  ;;  %12200 = vrsqrt.f32 %v8950_v10 }
0x1081   : > { %v12195_v38 = vpop.eup %12194  ;;  %9106 = vst.msk [vmem:[%s14237_s28 + $0x190] sm:$0xff] %vm986_vm1, %v9776_v21 }
0x1082   : > { %v12197_v3 = vpop.eup %12196  ;;  %v9013_v18 = vmul.f32 %v12195_v38, %v15065_v45 }
0x1083   : > { %v9012_v55 = vmul.f32 %v12197_v3, %v15067_v15 }
0x1084   : > { %v9045_v35 = vmul.f32 1.002, %v9013_v18  ;;  %v8909_v23 = vpop.xlane.xlu1 %8908  ;;  %v8906_v7 = vpop.xlane.xlu0 %8905 }
0x1085   : > { %v9044_v42 = vmul.f32 1.002, %v9012_v55  ;;  %v8953_v26 = vmax.f32 %v8909_v23, 1.1920929e-07  ;;  %v8952_v41 = vmax.f32 %v8906_v7, 1.1920929e-07 }
0x1086   : > { %v9779_v62 = vadd.f32 -0.001, %v9045_v35 }
0x1087   : > { %v9778_v63 = vadd.f32 -0.001, %v9044_v42  ;;  %12202 = vrsqrt.f32 %v8953_v26 }
0x1088   : > { %9109 = vst.msk [vmem:[%s14237_s28 + $0x1a8] sm:$0xff] %vm986_vm1, %v9779_v62  ;;  %12204 = vrsqrt.f32 %v8952_v41 }
0x1089   : > { %v12199_v16 = vpop.eup %12198  ;;  %9108 = vst.msk [vmem:[%s14237_s28 + $0x1a0] sm:$0xff] %vm986_vm1, %v9778_v63 }
0x108a   : > { %v12201_v45 = vpop.eup %12200  ;;  %v9015_v15 = vmul.f32 %v12199_v16, %v15077_v27 }
0x108b   : > { %v9014_v37 = vmul.f32 %v12201_v45, %v15079_v11 }
0x108c   : > { %v9047_v49 = vmul.f32 1.002, %v9015_v15 }
0x108d   : > { %v8915_v40 = vpop.xlane.xlu1 %8914  ;;  %v8912_v9 = vpop.xlane.xlu0 %8911  ;;  %v9046_v39 = vmul.f32 1.002, %v9014_v37 }
0x108e   : > { %v8955_v2 = vmax.f32 %v8915_v40, 1.1920929e-07  ;;  %v8954_v44 = vmax.f32 %v8912_v9, 1.1920929e-07  ;;  %v9781_v30 = vadd.f32 -0.001, %v9047_v49 }
0x108f   : > { %v9780_v46 = vadd.f32 -0.001, %v9046_v39 }
0x1090   : > { %12206 = vrsqrt.f32 %v8955_v2  ;;  %9111 = vst.msk [vmem:[%s14237_s28 + $0x1b8] sm:$0xff] %vm986_vm1, %v9781_v30 }
0x1091   : > { %12208 = vrsqrt.f32 %v8954_v44  ;;  %v12203_v47 = vpop.eup %12202  ;;  %9110 = vst.msk [vmem:[%s14237_s28 + $0x1b0] sm:$0xff] %vm986_vm1, %v9780_v46 }
0x1092   : > { %v12205_v27 = vpop.eup %12204  ;;  %v9017_v11 = vmul.f32 %v12203_v47, %v15089_v17 }
0x1093   : > { %v9016_v59 = vmul.f32 %v12205_v27, %v15091_v56 }
0x1094   : > { %v9049_v33 = vmul.f32 1.002, %v9017_v11 }
0x1095   : > { %v8921_v0 = vpop.xlane.xlu1 %8920  ;;  %v8918_v25 = vpop.xlane.xlu0 %8917  ;;  %v9048_v12 = vmul.f32 1.002, %v9016_v59 }
0x1096   : > { %v8957_v43 = vmax.f32 %v8921_v0, 1.1920929e-07  ;;  %v8956_v54 = vmax.f32 %v8918_v25, 1.1920929e-07  ;;  %v9783_v28 = vadd.f32 -0.001, %v9049_v33 }
0x1097   : > { %v9782_v32 = vadd.f32 -0.001, %v9048_v12 }
0x1098   : > { %12210 = vrsqrt.f32 %v8957_v43  ;;  %9113 = vst.msk [vmem:[%s14237_s28 + $0x1c8] sm:$0xff] %vm986_vm1, %v9783_v28 }
0x1099   : > { %12212 = vrsqrt.f32 %v8956_v54  ;;  %9112 = vst.msk [vmem:[%s14237_s28 + $0x1c0] sm:$0xff] %vm986_vm1, %v9782_v32 }
0x109a   : > { %v12207_v6 = vpop.eup %12206 }
0x109b   : > { %v12209_v17 = vpop.eup %12208  ;;  %v9019_v56 = vmul.f32 %v12207_v6, %v15101_v57 }
0x109c   : > { %v9018_v52 = vmul.f32 %v12209_v17, %v15103_v19 }
0x109d   : > { %v9051_v36 = vmul.f32 1.002, %v9019_v56  ;;  %v8927_v34 = vpop.xlane.xlu1 %8926  ;;  %v8924_v22 = vpop.xlane.xlu0 %8923 }
0x109e   : > { %v9050_v8 = vmul.f32 1.002, %v9018_v52  ;;  %v8959_v4 = vmax.f32 %v8927_v34, 1.1920929e-07  ;;  %v8958_v50 = vmax.f32 %v8924_v22, 1.1920929e-07 }
0x109f   : > { %v9785_v61 = vadd.f32 -0.001, %v9051_v36 }
0x10a0   : > { %v9784_v48 = vadd.f32 -0.001, %v9050_v8  ;;  %12214 = vrsqrt.f32 %v8959_v4 }
0x10a1   : > { %9115 = vst.msk [vmem:[%s14237_s28 + $0x1d8] sm:$0xff] %vm986_vm1, %v9785_v61  ;;  %12216 = vrsqrt.f32 %v8958_v50 }
0x10a2   : > { %v12211_v14 = vpop.eup %12210  ;;  %9114 = vst.msk [vmem:[%s14237_s28 + $0x1d0] sm:$0xff] %vm986_vm1, %v9784_v48 }
0x10a3   : > { %v12213_v57 = vpop.eup %12212  ;;  %v9021_v19 = vmul.f32 %v12211_v14, %v15111_v31 }
0x10a4   : > { %v9020_v24 = vmul.f32 %v12213_v57, %v15113_v13 }
0x10a5   : > { %v9053_v29 = vmul.f32 1.002, %v9021_v19 }
0x10a6   : > { %v9052_v5 = vmul.f32 1.002, %v9020_v24 }
0x10a7   : > { %v9787_v20 = vadd.f32 -0.001, %v9053_v29 }
0x10a8   : > { %v9786_v51 = vadd.f32 -0.001, %v9052_v5 }
0x10a9   : > { %9117 = vst.msk [vmem:[%s14237_s28 + $0x1e8] sm:$0xff] %vm986_vm1, %v9787_v20 }
0x10aa   : > { %v12215_v53 = vpop.eup %12214  ;;  %9116 = vst.msk [vmem:[%s14237_s28 + $0x1e0] sm:$0xff] %vm986_vm1, %v9786_v51 }
0x10ab   : > { %v12217_v10 = vpop.eup %12216  ;;  %v9023_v1 = vmul.f32 %v12215_v53, %v15121_v60 }
0x10ac   : > { %v9022_v21 = vmul.f32 %v12217_v10, %v15123_v58 }
0x10ad   : > { %v9055_v38 = vmul.f32 1.002, %v9023_v1 }
0x10ae   : > { %v9054_v31 = vmul.f32 1.002, %v9022_v21 }
0x10af   : > { %v9789_v3 = vadd.f32 -0.001, %v9055_v38 }
0x10b0   : > { %v9788_v18 = vadd.f32 -0.001, %v9054_v31 }
0x10b1   : > { %9119 = vst.msk [vmem:[%s14237_s28 + $0x1f8] sm:$0xff] %vm986_vm1, %v9789_v3 }
0x10b2   : > { %9118 = vst.msk [vmem:[%s14237_s28 + $0x1f0] sm:$0xff] %vm986_vm1, %v9788_v18 }
0x10b3 PF: > { %s32_s0 = sadd.s32 1, %s12353_s0  }
0x10b4   : > { %p29_p3 = scmp.ge.s32.totalorder %s32_s0, 4  }
0x10b6   :  { %31 = sbr.rel (!%p29_p3) target bundleno = 12 (0xc), region = 143 }
0x10bd   :  { %9142 = vsyncpa [#allocation4], 1 }
0x10be   :  { %9144 = vsyncpa [#allocation4 + $0x1], 1 }
0x10bf   :  { %9145 = vsyncpa [#allocation6], 1 }
0x10c0   :  { %9146 = vsyncpa [#allocation9], 1 }

</bundles_post_ra>
